<compile_context>
chip_gen: v7x
topology: tpu7x:2x2x1
jax: 0.10.0
libtpu: 0.0.40
codegen_flags: <defaults>
</compile_context>

<pallas_src>
import numpy as np
import jax
import jax.numpy as jnp
from jax import lax
from jax.experimental import pallas as pl
from jax.experimental.pallas import tpu as pltpu

# ----------------------------- config ----------------------------------------
B, S, E, F = 2, 8, 32, 16          # batch, seq, embedding_dim, flattened_dim
H = 4                              # num_heads
DH = E // H                        # head_dim
HIDDEN = 4 * E                     # feedforward hidden dim (reference only)
N = B * S * F                      # rows of the internal 2-D layout (256)
G = B * S                          # number of (batch, seq) groups (16)
THRESH = 1.0                       # snn.Leaky default threshold
EPS = 1e-5                         # nn.LayerNorm default eps


# ----------------------------- in-kernel helpers ------------------------------
def _mm_nt(a, b):
    """a (M,K) @ b (N,K)^T with f32 accumulation on the MXU."""
    return lax.dot_general(a, b, (((1,), (1,)), ((), ())),
                           preferred_element_type=jnp.float32)


def _spike(syn, dtype=jnp.float32):
    """snn.Leaky step with zero initial membrane: spk = heaviside(syn - 1)."""
    return (syn > THRESH).astype(dtype)


def _layer_norm(z, gamma, beta):
    """LayerNorm over the last (embedding) axis, torch defaults (biased var)."""
    mean = jnp.mean(z, axis=-1, keepdims=True)
    zc = z - mean
    var = jnp.mean(zc * zc, axis=-1, keepdims=True)
    return zc * lax.rsqrt(var + EPS) * gamma + beta


# ----------------------------- fused layer kernel -----------------------------
def _fused_layer_kernel(x_ref, wq_ref, wk_ref, wv_ref, wo_ref,
                        g1_ref, b1_ref, g2_ref, b2_ref,
                        p_ref, pt_ref, pblkt_ref, sft_ref, hstack_ref, o_ref):
    """Single grid step over the whole layer.  Internal layout: rows are
    (batch, seq, flat) triples (N = B*S*F), columns are embedding features
    e = head*DH + d."""
    f32, bf16 = jnp.float32, jnp.bfloat16
    x = x_ref[...]                                        # (N, E) f32

    # ---- spiking Q/K/V projections (torch (out,in) weights -> x @ W^T) ------
    # Spikes are 0/1 -> exact in bf16; attention matmuls accumulate in f32.
    q = _spike(_mm_nt(x, wq_ref[...]), bf16)              # (N, E) in {0,1}
    k = _spike(_mm_nt(x, wk_ref[...]), bf16)
    v = _spike(_mm_nt(x, wv_ref[...]), bf16)

    # ---- head-stacked K / V: row block h holds k (resp. v) masked to head h --
    hstack = hstack_ref[...]                              # (H*N, E) 0/1 bf16
    kstack = jnp.concatenate([k] * H, axis=0) * hstack    # (H*N, E)
    vstack = jnp.concatenate([v] * H, axis=0) * hstack    # (H*N, E)

    # ---- phase-shifted spiking self-attention --------------------------------
    # scores[b,sq,h,sk]     = sum_{d,f} Q[b,sq,h,d,f] K[b,sk,h,d,f]
    # attended[b,sq,h,d,f]  = sum_{sk}  scores[b,sq,h,sk] V[b,sk,h,d,f]
    sft = sft_ref[...]                                    # (N, H*N) same-(batch,phase)
    # per-head gram over the head's embedding columns, restricted to rows with
    # the same batch and the same flattened (phase) index
    gram = _mm_nt(q, kstack).astype(bf16) * sft           # (N, H*N), ints <= DH
    # segment-sum over the F phase rows/cols -> per-head (G, G) scores
    t1 = jnp.dot(pt_ref[...], gram,
                 preferred_element_type=f32).astype(bf16)                     # (G, H*N)
    scores = _mm_nt(t1, pblkt_ref[...]).astype(bf16)                          # (G, H*G)
    # broadcast the scores back, only onto the same-phase entries consumed
    t3 = jnp.dot(p_ref[...], scores,
                 preferred_element_type=f32).astype(bf16)                     # (N, H*G)
    bigs = jnp.dot(t3, pblkt_ref[...],
                   preferred_element_type=f32).astype(bf16) * sft             # (N, H*N)
    att = jnp.dot(bigs, vstack, preferred_element_type=f32)                   # (N, E) f32

    attended = _spike(_mm_nt(att, wo_ref[...]))           # output projection spikes

    # ---- residual add + LayerNorm over the embedding dim ---------------------
    x1 = _layer_norm(x + attended, g1_ref[...], b1_ref[...])

    # ---- spiking feedforward (mathematically zero) ----------------------------
    # layer1 emits spikes in {0,1}; the extra Leaky with a strict (> 1.0)
    # threshold never fires, so layer2's input and output are exactly zero.
    # Hence x2 = LayerNorm(x1); the dead matmuls are elided (reference keeps
    # them and the check in main confirms equality).
    o_ref[...] = _layer_norm(x1, g2_ref[...], b2_ref[...])


# ----------------------------- host-side constants ----------------------------
def _attention_constants(b, s, f, h, e, dtype=jnp.bfloat16):
    """0/1 masks consumed by the attention matmuls (hoisted out of the kernel)."""
    n, g = b * s * f, b * s
    r = np.arange(n)
    grp, phase, batch = r // f, r % f, r // (s * f)
    # group projector: row r belongs to (batch, seq) group grp[r]
    p = (grp[:, None] == np.arange(g)[None, :]).astype(np.float32)        # (n, g)
    pt = np.ascontiguousarray(p.T)                                        # (g, n)
    # same (batch, phase) mask, tiled across the H head blocks
    same = ((phase[:, None] == phase[None, :]) &
            (batch[:, None] == batch[None, :])).astype(np.float32)        # (n, n)
    sft = np.concatenate([same] * h, axis=1)                              # (n, h*n)
    # block-diagonal P^T (one block per head)
    pblkt = np.zeros((h * g, h * n), np.float32)
    for hh in range(h):
        pblkt[hh * g:(hh + 1) * g, hh * n:(hh + 1) * n] = pt
    # per-head embedding-column mask, expanded to the stacked row layout
    dh = e // h
    hm = (np.arange(e)[None, :] // dh == np.arange(h)[:, None]).astype(np.float32)
    hstack = np.repeat(hm, n, axis=0)                                     # (h*n, e)
    cast = lambda a: jnp.asarray(a, dtype)
    return cast(p), cast(pt), cast(pblkt), cast(sft), cast(hstack)


# ----------------------------- module forward ---------------------------------
def spiking_transformer_layer(x, params):
    b, s, e, f = x.shape
    n = b * s * f
    # single boundary permute into the internal (rows=(b,s,f), cols=e) layout
    x_in = jnp.transpose(x, (0, 1, 3, 2)).reshape(n, e)

    p, pt, pblkt, sft, hstack = _attention_constants(b, s, f, H, e)

    def spec(shape):
        zeros = (0,) * len(shape)
        return pl.BlockSpec(shape, lambda i: zeros)

    out = pl.pallas_call(
        _fused_layer_kernel,
        out_shape=jax.ShapeDtypeStruct((n, e), jnp.float32),
        grid=(1,),                       # whole layer in one step (single-TC chips)
        in_specs=[
            spec((n, e)),
            spec((e, e)), spec((e, e)), spec((e, e)), spec((e, e)),
            spec((1, e)), spec((1, e)), spec((1, e)), spec((1, e)),
            spec(p.shape), spec(pt.shape), spec(pblkt.shape),
            spec(sft.shape), spec(hstack.shape),
        ],
        out_specs=spec((n, e)),
        compiler_params=pltpu.CompilerParams(
            dimension_semantics=("arbitrary",)),
    )(x_in,
      params["Wq"], params["Wk"], params["Wv"], params["Wo"],
      params["g1"].reshape(1, e), params["b1"].reshape(1, e),
      params["g2"].reshape(1, e), params["b2"].reshape(1, e),
      p, pt, pblkt, sft, hstack)

    # single boundary permute back to (B, S, E, F)
    return jnp.transpose(out.reshape(b, s, f, e), (0, 1, 3, 2))


# ----------------------------- plain-JAX reference ------------------------------
def reference_forward(x, p):
    hi = jax.lax.Precision.HIGHEST
    bb, ss, ee, ff_ = x.shape

    def slin(t, w):
        t2 = jnp.transpose(t, (0, 1, 3, 2)).reshape(-1, w.shape[1])
        syn = jnp.dot(t2, w.T, precision=hi)
        spk = (syn > THRESH).astype(jnp.float32)
        return jnp.transpose(spk.reshape(bb, ss, ff_, w.shape[0]), (0, 1, 3, 2))

    def cln(t, g, bt):
        z = jnp.transpose(t, (0, 1, 3, 2))
        m = z.mean(-1, keepdims=True)
        var = ((z - m) ** 2).mean(-1, keepdims=True)
        zn = (z - m) * jax.lax.rsqrt(var + EPS) * g + bt
        return jnp.transpose(zn, (0, 1, 3, 2))

    q = slin(x, p["Wq"]).reshape(bb, ss, H, DH, ff_)
    k = slin(x, p["Wk"]).reshape(bb, ss, H, DH, ff_)
    v = slin(x, p["Wv"]).reshape(bb, ss, H, DH, ff_)
    scores = jnp.einsum('bqhdf,bkhdf->bqhk', q, k, precision=hi)
    av = jnp.einsum('bqhk,bkhdf->bqhdf', scores, v,
                    precision=hi).reshape(bb, ss, ee, ff_)
    attended = slin(av, p["Wo"])
    x1 = cln(x + attended, p["g1"], p["b1"])
    h1 = slin(x1, p["W1"])                       # spikes in {0,1}
    spk = (h1 > THRESH).astype(jnp.float32)      # strict > 1.0 -> identically zero
    ffo = slin(spk, p["W2"])                     # -> zero
    return cln(x1 + ffo, p["g2"], p["b2"])


# ----------------------------- main --------------------------------------------
if __name__ == "__main__":
    key = jax.random.PRNGKey(0)
    keys = jax.random.split(key, 8)

    def lin_weight(k_, out_f, in_f):
        bound = 1.0 / (in_f ** 0.5)        # torch nn.Linear default init range
        return jax.random.uniform(k_, (out_f, in_f), jnp.float32, -bound, bound)

    params = dict(
        Wq=lin_weight(keys[0], E, E),
        Wk=lin_weight(keys[1], E, E),
        Wv=lin_weight(keys[2], E, E),
        Wo=lin_weight(keys[3], E, E),
        W1=lin_weight(keys[4], HIDDEN, E),   # reference-only (dead FFN path)
        W2=lin_weight(keys[5], E, HIDDEN),   # reference-only (dead FFN path)
        g1=jnp.ones((E,), jnp.float32),
        b1=jnp.zeros((E,), jnp.float32),
        g2=jnp.ones((E,), jnp.float32),
        b2=jnp.zeros((E,), jnp.float32),
    )

    # scale inputs so a reasonable number of LIF neurons cross the threshold
    x = 2.0 * jax.random.normal(keys[6], (B, S, E, F), jnp.float32)

    run = jax.jit(spiking_transformer_layer)
    out = run(x, params)
    jax.block_until_ready(out)

    assert out.shape == (B, S, E, F), out.shape
    assert out.dtype == jnp.float32
    assert bool(jnp.all(jnp.isfinite(out)))

    # Cross-check against the plain-JAX reference (which still evaluates the
    # full, mathematically-zero FFN path).  Hard-threshold spikes whose
    # pre-activation sits within float rounding of 1.0 can in principle flip
    # between the two implementations and corrupt whole LayerNorm rows, so the
    # check is flip-robust: a tight median absolute error (covers the
    # overwhelming non-flipped majority) plus a high element-match fraction.
    ref = jax.jit(reference_forward)(x, params)
    diff = jnp.abs(out - ref)
    med = float(jnp.median(diff))
    match = float(jnp.mean((diff <= 1e-3).astype(jnp.float32)))
    assert med < 1e-3, f"median |kernel - reference| too high: {med}"
    assert match > 0.9, f"kernel/reference element match too low: {match}"

    print("KERNEL_OK")
</pallas_src>

<mosaic_0001>
module attributes {stable_mosaic.version = 11 : i64} {
  func.func @_fused_layer_kernel(%arg0: i32, %arg1: memref<256x32xf32, #tpu.memory_space<vmem>>, %arg2: memref<32x32xf32, #tpu.memory_space<vmem>>, %arg3: memref<32x32xf32, #tpu.memory_space<vmem>>, %arg4: memref<32x32xf32, #tpu.memory_space<vmem>>, %arg5: memref<32x32xf32, #tpu.memory_space<vmem>>, %arg6: memref<1x32xf32, #tpu.memory_space<vmem>>, %arg7: memref<1x32xf32, #tpu.memory_space<vmem>>, %arg8: memref<1x32xf32, #tpu.memory_space<vmem>>, %arg9: memref<1x32xf32, #tpu.memory_space<vmem>>, %arg10: memref<256x16xbf16, #tpu.memory_space<vmem>>, %arg11: memref<16x256xbf16, #tpu.memory_space<vmem>>, %arg12: memref<64x1024xbf16, #tpu.memory_space<vmem>>, %arg13: memref<256x1024xbf16, #tpu.memory_space<vmem>>, %arg14: memref<1024x32xbf16, #tpu.memory_space<vmem>>, %arg15: memref<256x32xf32, #tpu.memory_space<vmem>>) attributes {dimension_semantics = [#tpu.dimension_semantics<arbitrary>], iteration_bounds = array<i64: 1>, scalar_prefetch = 0 : i64, scratch_operands = 0 : i64, tpu.core_type = #tpu.core_type<tc>, window_params = [{pipeline_mode = #tpu.pipeline_mode<synchronous>, transform_indices = @transform_0, window_bounds = array<i64: 256, 32>}, {pipeline_mode = #tpu.pipeline_mode<synchronous>, transform_indices = @transform_1, window_bounds = array<i64: 32, 32>}, {pipeline_mode = #tpu.pipeline_mode<synchronous>, transform_indices = @transform_2, window_bounds = array<i64: 32, 32>}, {pipeline_mode = #tpu.pipeline_mode<synchronous>, transform_indices = @transform_3, window_bounds = array<i64: 32, 32>}, {pipeline_mode = #tpu.pipeline_mode<synchronous>, transform_indices = @transform_4, window_bounds = array<i64: 32, 32>}, {pipeline_mode = #tpu.pipeline_mode<synchronous>, transform_indices = @transform_5, window_bounds = array<i64: 1, 32>}, {pipeline_mode = #tpu.pipeline_mode<synchronous>, transform_indices = @transform_6, window_bounds = array<i64: 1, 32>}, {pipeline_mode = #tpu.pipeline_mode<synchronous>, transform_indices = @transform_7, window_bounds = array<i64: 1, 32>}, {pipeline_mode = #tpu.pipeline_mode<synchronous>, transform_indices = @transform_8, window_bounds = array<i64: 1, 32>}, {pipeline_mode = #tpu.pipeline_mode<synchronous>, transform_indices = @transform_9, window_bounds = array<i64: 256, 16>}, {pipeline_mode = #tpu.pipeline_mode<synchronous>, transform_indices = @transform_10, window_bounds = array<i64: 16, 256>}, {pipeline_mode = #tpu.pipeline_mode<synchronous>, transform_indices = @transform_11, window_bounds = array<i64: 64, 1024>}, {pipeline_mode = #tpu.pipeline_mode<synchronous>, transform_indices = @transform_12, window_bounds = array<i64: 256, 1024>}, {pipeline_mode = #tpu.pipeline_mode<synchronous>, transform_indices = @transform_13, window_bounds = array<i64: 1024, 32>}, {pipeline_mode = #tpu.pipeline_mode<synchronous>, transform_indices = @transform_14, window_bounds = array<i64: 256, 32>}]} {
    %c0 = arith.constant 0 : index
    %c0_0 = arith.constant 0 : index
    %0 = vector.load %arg1[%c0, %c0_0] : memref<256x32xf32, #tpu.memory_space<vmem>>, vector<256x32xf32>
    %c0_1 = arith.constant 0 : index
    %c0_2 = arith.constant 0 : index
    %1 = vector.load %arg2[%c0_1, %c0_2] : memref<32x32xf32, #tpu.memory_space<vmem>>, vector<32x32xf32>
    %cst = arith.constant dense<0.000000e+00> : vector<256x32xf32>
    %2 = tpu.matmul %0, %1, %cst {dimension_numbers = #tpu.dot_dimension_numbers<[1], [1], [0], [0], [0, 0, 1, 0], [], []>} : vector<256x32xf32>, vector<32x32xf32>, vector<256x32xf32> -> vector<256x32xf32>
    %cst_3 = arith.constant 1.000000e+00 : f32
    %3 = vector.broadcast %cst_3 : f32 to vector<256x32xf32>
    %4 = arith.cmpf ogt, %2, %3 : vector<256x32xf32>
    %5 = arith.extui %4 : vector<256x32xi1> to vector<256x32xi32>
    %6 = arith.sitofp %5 : vector<256x32xi32> to vector<256x32xf32>
    %7 = arith.truncf %6 : vector<256x32xf32> to vector<256x32xbf16>
    %c0_4 = arith.constant 0 : index
    %c0_5 = arith.constant 0 : index
    %8 = vector.load %arg3[%c0_4, %c0_5] : memref<32x32xf32, #tpu.memory_space<vmem>>, vector<32x32xf32>
    %cst_6 = arith.constant dense<0.000000e+00> : vector<256x32xf32>
    %9 = tpu.matmul %0, %8, %cst_6 {dimension_numbers = #tpu.dot_dimension_numbers<[1], [1], [0], [0], [0, 0, 1, 0], [], []>} : vector<256x32xf32>, vector<32x32xf32>, vector<256x32xf32> -> vector<256x32xf32>
    %cst_7 = arith.constant 1.000000e+00 : f32
    %10 = vector.broadcast %cst_7 : f32 to vector<256x32xf32>
    %11 = arith.cmpf ogt, %9, %10 : vector<256x32xf32>
    %12 = arith.extui %11 : vector<256x32xi1> to vector<256x32xi32>
    %13 = arith.sitofp %12 : vector<256x32xi32> to vector<256x32xf32>
    %14 = arith.truncf %13 : vector<256x32xf32> to vector<256x32xbf16>
    %c0_8 = arith.constant 0 : index
    %c0_9 = arith.constant 0 : index
    %15 = vector.load %arg4[%c0_8, %c0_9] : memref<32x32xf32, #tpu.memory_space<vmem>>, vector<32x32xf32>
    %cst_10 = arith.constant dense<0.000000e+00> : vector<256x32xf32>
    %16 = tpu.matmul %0, %15, %cst_10 {dimension_numbers = #tpu.dot_dimension_numbers<[1], [1], [0], [0], [0, 0, 1, 0], [], []>} : vector<256x32xf32>, vector<32x32xf32>, vector<256x32xf32> -> vector<256x32xf32>
    %cst_11 = arith.constant 1.000000e+00 : f32
    %17 = vector.broadcast %cst_11 : f32 to vector<256x32xf32>
    %18 = arith.cmpf ogt, %16, %17 : vector<256x32xf32>
    %19 = arith.extui %18 : vector<256x32xi1> to vector<256x32xi32>
    %20 = arith.sitofp %19 : vector<256x32xi32> to vector<256x32xf32>
    %21 = arith.truncf %20 : vector<256x32xf32> to vector<256x32xbf16>
    %c0_12 = arith.constant 0 : index
    %c0_13 = arith.constant 0 : index
    %22 = vector.load %arg14[%c0_12, %c0_13] : memref<1024x32xbf16, #tpu.memory_space<vmem>>, vector<1024x32xbf16>
    %23 = tpu.concatenate %14, %14, %14, %14 in 0 : vector<256x32xbf16>, vector<256x32xbf16>, vector<256x32xbf16>, vector<256x32xbf16> -> vector<1024x32xbf16>
    %24 = arith.mulf %23, %22 : vector<1024x32xbf16>
    %25 = tpu.concatenate %21, %21, %21, %21 in 0 : vector<256x32xbf16>, vector<256x32xbf16>, vector<256x32xbf16>, vector<256x32xbf16> -> vector<1024x32xbf16>
    %26 = arith.mulf %25, %22 : vector<1024x32xbf16>
    %c0_14 = arith.constant 0 : index
    %c0_15 = arith.constant 0 : index
    %27 = vector.load %arg13[%c0_14, %c0_15] : memref<256x1024xbf16, #tpu.memory_space<vmem>>, vector<256x1024xbf16>
    %cst_16 = arith.constant dense<0.000000e+00> : vector<256x1024xf32>
    %28 = tpu.matmul %7, %24, %cst_16 {dimension_numbers = #tpu.dot_dimension_numbers<[1], [1], [0], [0], [0, 0, 1, 0], [], []>} : vector<256x32xbf16>, vector<1024x32xbf16>, vector<256x1024xf32> -> vector<256x1024xf32>
    %29 = arith.truncf %28 : vector<256x1024xf32> to vector<256x1024xbf16>
    %30 = arith.mulf %29, %27 : vector<256x1024xbf16>
    %c0_17 = arith.constant 0 : index
    %c0_18 = arith.constant 0 : index
    %31 = vector.load %arg11[%c0_17, %c0_18] : memref<16x256xbf16, #tpu.memory_space<vmem>>, vector<16x256xbf16>
    %cst_19 = arith.constant dense<0.000000e+00> : vector<16x1024xf32>
    %32 = tpu.matmul %31, %30, %cst_19 {dimension_numbers = #tpu.dot_dimension_numbers<[1], [0], [0], [1], [0, 0, 1, 1], [], []>} : vector<16x256xbf16>, vector<256x1024xbf16>, vector<16x1024xf32> -> vector<16x1024xf32>
    %33 = arith.truncf %32 : vector<16x1024xf32> to vector<16x1024xbf16>
    %c0_20 = arith.constant 0 : index
    %c0_21 = arith.constant 0 : index
    %34 = vector.load %arg12[%c0_20, %c0_21] : memref<64x1024xbf16, #tpu.memory_space<vmem>>, vector<64x1024xbf16>
    %cst_22 = arith.constant dense<0.000000e+00> : vector<16x64xf32>
    %35 = tpu.matmul %33, %34, %cst_22 {dimension_numbers = #tpu.dot_dimension_numbers<[1], [1], [0], [0], [0, 0, 1, 0], [], []>} : vector<16x1024xbf16>, vector<64x1024xbf16>, vector<16x64xf32> -> vector<16x64xf32>
    %36 = arith.truncf %35 : vector<16x64xf32> to vector<16x64xbf16>
    %c0_23 = arith.constant 0 : index
    %c0_24 = arith.constant 0 : index
    %37 = vector.load %arg10[%c0_23, %c0_24] : memref<256x16xbf16, #tpu.memory_space<vmem>>, vector<256x16xbf16>
    %cst_25 = arith.constant dense<0.000000e+00> : vector<256x64xf32>
    %38 = tpu.matmul %37, %36, %cst_25 {dimension_numbers = #tpu.dot_dimension_numbers<[1], [0], [0], [1], [0, 0, 1, 1], [], []>} : vector<256x16xbf16>, vector<16x64xbf16>, vector<256x64xf32> -> vector<256x64xf32>
    %39 = arith.truncf %38 : vector<256x64xf32> to vector<256x64xbf16>
    %c0_26 = arith.constant 0 : index
    %c0_27 = arith.constant 0 : index
    %40 = vector.load %arg12[%c0_26, %c0_27] : memref<64x1024xbf16, #tpu.memory_space<vmem>>, vector<64x1024xbf16>
    %cst_28 = arith.constant dense<0.000000e+00> : vector<256x1024xf32>
    %41 = tpu.matmul %39, %40, %cst_28 {dimension_numbers = #tpu.dot_dimension_numbers<[1], [0], [0], [1], [0, 0, 1, 1], [], []>} : vector<256x64xbf16>, vector<64x1024xbf16>, vector<256x1024xf32> -> vector<256x1024xf32>
    %42 = arith.truncf %41 : vector<256x1024xf32> to vector<256x1024xbf16>
    %43 = arith.mulf %42, %27 : vector<256x1024xbf16>
    %cst_29 = arith.constant dense<0.000000e+00> : vector<256x32xf32>
    %44 = tpu.matmul %43, %26, %cst_29 {dimension_numbers = #tpu.dot_dimension_numbers<[1], [0], [0], [1], [0, 0, 1, 1], [], []>} : vector<256x1024xbf16>, vector<1024x32xbf16>, vector<256x32xf32> -> vector<256x32xf32>
    %c0_30 = arith.constant 0 : index
    %c0_31 = arith.constant 0 : index
    %45 = vector.load %arg5[%c0_30, %c0_31] : memref<32x32xf32, #tpu.memory_space<vmem>>, vector<32x32xf32>
    %cst_32 = arith.constant dense<0.000000e+00> : vector<256x32xf32>
    %46 = tpu.matmul %44, %45, %cst_32 {dimension_numbers = #tpu.dot_dimension_numbers<[1], [1], [0], [0], [0, 0, 1, 0], [], []>} : vector<256x32xf32>, vector<32x32xf32>, vector<256x32xf32> -> vector<256x32xf32>
    %cst_33 = arith.constant 1.000000e+00 : f32
    %47 = vector.broadcast %cst_33 : f32 to vector<256x32xf32>
    %48 = arith.cmpf ogt, %46, %47 : vector<256x32xf32>
    %49 = arith.extui %48 : vector<256x32xi1> to vector<256x32xi32>
    %50 = arith.sitofp %49 : vector<256x32xi32> to vector<256x32xf32>
    %51 = arith.addf %0, %50 : vector<256x32xf32>
    %c0_34 = arith.constant 0 : index
    %c0_35 = arith.constant 0 : index
    %52 = vector.load %arg6[%c0_34, %c0_35] : memref<1x32xf32, #tpu.memory_space<vmem>>, vector<1x32xf32>
    %c0_36 = arith.constant 0 : index
    %c0_37 = arith.constant 0 : index
    %53 = vector.load %arg7[%c0_36, %c0_37] : memref<1x32xf32, #tpu.memory_space<vmem>>, vector<1x32xf32>
    %cst_38 = arith.constant dense<0.000000e+00> : vector<256xf32>
    %54 = vector.multi_reduction <add>, %51, %cst_38 [1] : vector<256x32xf32> to vector<256xf32>
    %55 = vector.shape_cast %54 : vector<256xf32> to vector<256x1xf32>
    %cst_39 = arith.constant 3.200000e+01 : f32
    %56 = vector.broadcast %cst_39 : f32 to vector<256x1xf32>
    %57 = arith.divf %55, %56 : vector<256x1xf32>
    %58 = vector.broadcast %57 : vector<256x1xf32> to vector<256x32xf32>
    %59 = arith.subf %51, %58 : vector<256x32xf32>
    %60 = arith.mulf %59, %59 : vector<256x32xf32>
    %cst_40 = arith.constant dense<0.000000e+00> : vector<256xf32>
    %61 = vector.multi_reduction <add>, %60, %cst_40 [1] : vector<256x32xf32> to vector<256xf32>
    %62 = vector.shape_cast %61 : vector<256xf32> to vector<256x1xf32>
    %cst_41 = arith.constant 3.200000e+01 : f32
    %63 = vector.broadcast %cst_41 : f32 to vector<256x1xf32>
    %64 = arith.divf %62, %63 : vector<256x1xf32>
    %cst_42 = arith.constant 9.99999974E-6 : f32
    %65 = vector.broadcast %cst_42 : f32 to vector<256x1xf32>
    %66 = arith.addf %64, %65 : vector<256x1xf32>
    %67 = math.rsqrt %66 : vector<256x1xf32>
    %68 = vector.broadcast %67 : vector<256x1xf32> to vector<256x32xf32>
    %69 = arith.mulf %59, %68 : vector<256x32xf32>
    %70 = vector.broadcast %52 : vector<1x32xf32> to vector<256x32xf32>
    %71 = arith.mulf %69, %70 : vector<256x32xf32>
    %72 = vector.broadcast %53 : vector<1x32xf32> to vector<256x32xf32>
    %73 = arith.addf %71, %72 : vector<256x32xf32>
    %c0_43 = arith.constant 0 : index
    %c0_44 = arith.constant 0 : index
    %74 = vector.load %arg8[%c0_43, %c0_44] : memref<1x32xf32, #tpu.memory_space<vmem>>, vector<1x32xf32>
    %c0_45 = arith.constant 0 : index
    %c0_46 = arith.constant 0 : index
    %75 = vector.load %arg9[%c0_45, %c0_46] : memref<1x32xf32, #tpu.memory_space<vmem>>, vector<1x32xf32>
    %cst_47 = arith.constant dense<0.000000e+00> : vector<256xf32>
    %76 = vector.multi_reduction <add>, %73, %cst_47 [1] : vector<256x32xf32> to vector<256xf32>
    %77 = vector.shape_cast %76 : vector<256xf32> to vector<256x1xf32>
    %cst_48 = arith.constant 3.200000e+01 : f32
    %78 = vector.broadcast %cst_48 : f32 to vector<256x1xf32>
    %79 = arith.divf %77, %78 : vector<256x1xf32>
    %80 = vector.broadcast %79 : vector<256x1xf32> to vector<256x32xf32>
    %81 = arith.subf %73, %80 : vector<256x32xf32>
    %82 = arith.mulf %81, %81 : vector<256x32xf32>
    %cst_49 = arith.constant dense<0.000000e+00> : vector<256xf32>
    %83 = vector.multi_reduction <add>, %82, %cst_49 [1] : vector<256x32xf32> to vector<256xf32>
    %84 = vector.shape_cast %83 : vector<256xf32> to vector<256x1xf32>
    %cst_50 = arith.constant 3.200000e+01 : f32
    %85 = vector.broadcast %cst_50 : f32 to vector<256x1xf32>
    %86 = arith.divf %84, %85 : vector<256x1xf32>
    %cst_51 = arith.constant 9.99999974E-6 : f32
    %87 = vector.broadcast %cst_51 : f32 to vector<256x1xf32>
    %88 = arith.addf %86, %87 : vector<256x1xf32>
    %89 = math.rsqrt %88 : vector<256x1xf32>
    %90 = vector.broadcast %89 : vector<256x1xf32> to vector<256x32xf32>
    %91 = arith.mulf %81, %90 : vector<256x32xf32>
    %92 = vector.broadcast %74 : vector<1x32xf32> to vector<256x32xf32>
    %93 = arith.mulf %91, %92 : vector<256x32xf32>
    %94 = vector.broadcast %75 : vector<1x32xf32> to vector<256x32xf32>
    %95 = arith.addf %93, %94 : vector<256x32xf32>
    %c0_52 = arith.constant 0 : index
    %c0_53 = arith.constant 0 : index
    %96 = vector.load %arg15[%c0_52, %c0_53] : memref<256x32xf32, #tpu.memory_space<vmem>>, vector<256x32xf32>
    tpu.vector_store %arg15[%c0_52, %c0_53], %95 {strides = array<i32>} : memref<256x32xf32, #tpu.memory_space<vmem>>, vector<256x32xf32>,
    return
  }
  func.func @transform_0(%arg0: i32) -> (i32, i32) {
    %c0_i32 = arith.constant 0 : i32
    %c0_i32_0 = arith.constant 0 : i32
    %c0_i32_1 = arith.constant 0 : i32
    return %c0_i32, %c0_i32_0 : i32, i32
  }
  func.func @transform_1(%arg0: i32) -> (i32, i32) {
    %c0_i32 = arith.constant 0 : i32
    %c0_i32_0 = arith.constant 0 : i32
    %c0_i32_1 = arith.constant 0 : i32
    return %c0_i32, %c0_i32_0 : i32, i32
  }
  func.func @transform_2(%arg0: i32) -> (i32, i32) {
    %c0_i32 = arith.constant 0 : i32
    %c0_i32_0 = arith.constant 0 : i32
    %c0_i32_1 = arith.constant 0 : i32
    return %c0_i32, %c0_i32_0 : i32, i32
  }
  func.func @transform_3(%arg0: i32) -> (i32, i32) {
    %c0_i32 = arith.constant 0 : i32
    %c0_i32_0 = arith.constant 0 : i32
    %c0_i32_1 = arith.constant 0 : i32
    return %c0_i32, %c0_i32_0 : i32, i32
  }
  func.func @transform_4(%arg0: i32) -> (i32, i32) {
    %c0_i32 = arith.constant 0 : i32
    %c0_i32_0 = arith.constant 0 : i32
    %c0_i32_1 = arith.constant 0 : i32
    return %c0_i32, %c0_i32_0 : i32, i32
  }
  func.func @transform_5(%arg0: i32) -> (i32, i32) {
    %c0_i32 = arith.constant 0 : i32
    %c0_i32_0 = arith.constant 0 : i32
    %c0_i32_1 = arith.constant 0 : i32
    return %c0_i32, %c0_i32_0 : i32, i32
  }
  func.func @transform_6(%arg0: i32) -> (i32, i32) {
    %c0_i32 = arith.constant 0 : i32
    %c0_i32_0 = arith.constant 0 : i32
    %c0_i32_1 = arith.constant 0 : i32
    return %c0_i32, %c0_i32_0 : i32, i32
  }
  func.func @transform_7(%arg0: i32) -> (i32, i32) {
    %c0_i32 = arith.constant 0 : i32
    %c0_i32_0 = arith.constant 0 : i32
    %c0_i32_1 = arith.constant 0 : i32
    return %c0_i32, %c0_i32_0 : i32, i32
  }
  func.func @transform_8(%arg0: i32) -> (i32, i32) {
    %c0_i32 = arith.constant 0 : i32
    %c0_i32_0 = arith.constant 0 : i32
    %c0_i32_1 = arith.constant 0 : i32
    return %c0_i32, %c0_i32_0 : i32, i32
  }
  func.func @transform_9(%arg0: i32) -> (i32, i32) {
    %c0_i32 = arith.constant 0 : i32
    %c0_i32_0 = arith.constant 0 : i32
    %c0_i32_1 = arith.constant 0 : i32
    return %c0_i32, %c0_i32_0 : i32, i32
  }
  func.func @transform_10(%arg0: i32) -> (i32, i32) {
    %c0_i32 = arith.constant 0 : i32
    %c0_i32_0 = arith.constant 0 : i32
    %c0_i32_1 = arith.constant 0 : i32
    return %c0_i32, %c0_i32_0 : i32, i32
  }
  func.func @transform_11(%arg0: i32) -> (i32, i32) {
    %c0_i32 = arith.constant 0 : i32
    %c0_i32_0 = arith.constant 0 : i32
    %c0_i32_1 = arith.constant 0 : i32
    return %c0_i32, %c0_i32_0 : i32, i32
  }
  func.func @transform_12(%arg0: i32) -> (i32, i32) {
    %c0_i32 = arith.constant 0 : i32
    %c0_i32_0 = arith.constant 0 : i32
    %c0_i32_1 = arith.constant 0 : i32
    return %c0_i32, %c0_i32_0 : i32, i32
  }
  func.func @transform_13(%arg0: i32) -> (i32, i32) {
    %c0_i32 = arith.constant 0 : i32
    %c0_i32_0 = arith.constant 0 : i32
    %c0_i32_1 = arith.constant 0 : i32
    return %c0_i32, %c0_i32_0 : i32, i32
  }
  func.func @transform_14(%arg0: i32) -> (i32, i32) {
    %c0_i32 = arith.constant 0 : i32
    %c0_i32_0 = arith.constant 0 : i32
    %c0_i32_1 = arith.constant 0 : i32
    return %c0_i32, %c0_i32_0 : i32, i32
  }
}

</mosaic_0001>

<bundles_post_ra>
// kernel: spiking_transformer_layer.1
= control target key start
LH: loop header
LB: loop body
LE: loop exit
PB: predicated region body
PF: predicated region fallthrough
CT: control target
= control target key end

     0   :  { %vm85_vm0 = vcmask 261120   ;;  %v15572_v3 = vmov 0  ;;  %s15423_s0 = inlined_call_operand.vmem [shape: f32[256,32], index: 0, kind: input, shape index: {}]   ;;  %s15424_s1 = inlined_call_operand.vmem [shape: f32[32,32], index: 1, kind: input, shape index: {}]   ;;  %s15425_s2 = inlined_call_operand.vmem [shape: f32[32,32], index: 2, kind: input, shape index: {}]   ;;  %s15426_s3 = inlined_call_operand.vmem [shape: f32[32,32], index: 3, kind: input, shape index: {}]   ;;  %s15427_s4 = inlined_call_operand.vmem [shape: f32[32,32], index: 4, kind: input, shape index: {}]   ;;  %s15428_s5 = inlined_call_operand.vmem [shape: f32[1,32], index: 5, kind: input, shape index: {}]   ;;  %s15429_s6 = inlined_call_operand.vmem [shape: f32[1,32], index: 6, kind: input, shape index: {}]   ;;  %s15430_s7 = inlined_call_operand.vmem [shape: f32[1,32], index: 7, kind: input, shape index: {}]   ;;  %s15431_s8 = inlined_call_operand.vmem [shape: f32[1,32], index: 8, kind: input, shape index: {}]   ;;  %s15432_s9 = inlined_call_operand.vmem [shape: bf16[256,16], index: 9, kind: input, shape index: {}]   ;;  %s15433_s10 = inlined_call_operand.vmem [shape: bf16[16,256], index: 10, kind: input, shape index: {}]   ;;  %s15434_s11 = inlined_call_operand.vmem [shape: bf16[64,1024], index: 11, kind: input, shape index: {}]   ;;  %s15435_s12 = inlined_call_operand.vmem [shape: bf16[256,1024], index: 12, kind: input, shape index: {}]   ;;  %s15436_s13 = inlined_call_operand.vmem [shape: bf16[1024,32], index: 13, kind: input, shape index: {}]   ;;  %s15437_s14 = inlined_call_operand.hbm [shape: f32[256,32], index: 14, kind: output, shape index: {}]  }
   0x1   :  { %v531_v0 = vld [vmem:[%s15425_s2] sm:$0xff]  ;;  %v532_v1 = vld [vmem:[%s15425_s2 + $0x8] sm:$0xff]  ;;  %v533_v2 = vld [vmem:[%s15425_s2 + $0x10] sm:$0xff] }
   0x2   :  { %vm10265_vm1 = vmpackc.low %vm85_vm0, %vm85_vm0  ;;  %v9756_v4 = vpack.c.bf16 %v532_v1, %v531_v0  ;;  %v534_v5 = vld [vmem:[%s15425_s2 + $0x18] sm:$0xff]  ;;  %v10275_v6 = vld [vmem:[%s15423_s0] sm:$0xff] }
   0x3   :  { %v15573_v3 = vsel %vm10265_vm1, 4294967295, %v15572_v3  ;;  %v9762_v7 = vpack.c.bf16 %v534_v5, %v533_v2  ;;  %9550 = vmatprep.mubr.msk.f32.mxu1 %vm85_vm0, %v10275_v6  ;;  %9494 = vmatprep.mubr.msk.f32.mxu0 %vm85_vm0, %v10275_v6  ;;  %v81_v8 = vld [vmem:[%s15424_s1] sm:$0xff]  ;;  %v82_v9 = vld [vmem:[%s15424_s1 + $0x8] sm:$0xff]  ;;  %v83_v11 = vld [vmem:[%s15424_s1 + $0x10] sm:$0xff] }
   0x4   :  { %15574 = vst [vmem:[#allocation5_spill] sm:$0xff] %v15573_v3  ;;  %9758 = vmatprep.subr.msk.bf16.mxu1 %vm10265_vm1, %v9756_v4  ;;  %v9744_v10 = vpack.c.bf16 %v82_v9, %v81_v8  ;;  %v84_v12 = vld [vmem:[%s15424_s1 + $0x18] sm:$0xff]  ;;  %v10304_v13 = vld [vmem:[%s15423_s0 + $0x8] sm:$0xff]  ;;  %v10309_v15 = vld [vmem:[%s15423_s0 + $0x10] sm:$0xff] }
   0x5   :  { %9761 = vmatpush3.bf16.xpose.msk.msra.mxu1 %vm10265_vm1, %v9756_v4  ;;  %v9750_v14 = vpack.c.bf16 %v84_v12, %v83_v11  ;;  %v10320_v16 = vld [vmem:[%s15423_s0 + $0x18] sm:$0xff]  ;;  %v10327_v17 = vld [vmem:[%s15423_s0 + $0x20] sm:$0xff]  ;;  %v10334_v18 = vld [vmem:[%s15423_s0 + $0x28] sm:$0xff] }
   0x6   :  { %9764 = vmatprep.subr.msk.bf16.mxu1 %vm10265_vm1, %v9762_v7  ;;  %9746 = vmatprep.subr.msk.bf16.mxu0 %vm10265_vm1, %v9744_v10  ;;  %v10341_v19 = vld [vmem:[%s15423_s0 + $0x30] sm:$0xff]  ;;  %v10350_v20 = vld [vmem:[%s15423_s0 + $0x38] sm:$0xff]  ;;  %v10357_v21 = vld [vmem:[%s15423_s0 + $0x40] sm:$0xff] }
   0x7   :  { %9749 = vmatpush3.bf16.xpose.msk.msra.mxu0 %vm10265_vm1, %v9744_v10  ;;  %v10364_v22 = vld [vmem:[%s15423_s0 + $0x48] sm:$0xff]  ;;  %v10371_v23 = vld [vmem:[%s15423_s0 + $0x50] sm:$0xff]  ;;  %v10382_v24 = vld [vmem:[%s15423_s0 + $0x58] sm:$0xff] }
   0x8   :  { %9752 = vmatprep.subr.msk.bf16.mxu0 %vm10265_vm1, %v9750_v14  ;;  %v10389_v25 = vld [vmem:[%s15423_s0 + $0x60] sm:$0xff]  ;;  %v10400_v26 = vld [vmem:[%s15423_s0 + $0x68] sm:$0xff]  ;;  %v10407_v27 = vld [vmem:[%s15423_s0 + $0x70] sm:$0xff] }
   0x9   :  { %v10418_v28 = vld [vmem:[%s15423_s0 + $0x78] sm:$0xff]  ;;  %v10425_v29 = vld [vmem:[%s15423_s0 + $0x80] sm:$0xff]  ;;  %v10436_v30 = vld [vmem:[%s15423_s0 + $0x88] sm:$0xff] }
   0xa   :  { %v10443_v31 = vld [vmem:[%s15423_s0 + $0x90] sm:$0xff]  ;;  %v10454_v32 = vld [vmem:[%s15423_s0 + $0x98] sm:$0xff]  ;;  %v10461_v33 = vld [vmem:[%s15423_s0 + $0xa0] sm:$0xff] }
   0xb   :  { %v10472_v34 = vld [vmem:[%s15423_s0 + $0xa8] sm:$0xff]  ;;  %v10479_v35 = vld [vmem:[%s15423_s0 + $0xb0] sm:$0xff]  ;;  %v10490_v36 = vld [vmem:[%s15423_s0 + $0xb8] sm:$0xff] }
   0xc   :  { %v10497_v37 = vld [vmem:[%s15423_s0 + $0xc0] sm:$0xff]  ;;  %v10508_v38 = vld [vmem:[%s15423_s0 + $0xc8] sm:$0xff]  ;;  %v10515_v39 = vld [vmem:[%s15423_s0 + $0xd0] sm:$0xff] }
   0xd   :  { %9767 = vmatpush3.bf16.xpose.msk.msra.mxu1 %vm10265_vm1, %v9762_v7 }
   0xf   :  { %9755 = vmatpush3.bf16.xpose.msk.msra.mxu0 %vm10265_vm1, %v9750_v14 }
  0x14   :  { %9551 = vmatmul.mubr.msk.f32.vlgmr.msra.gmra.mrb[0].mxu1 %vm85_vm0, %v10304_v13 }
  0x15   :  { %9553 = vmatprep.mubr.msk.f32.mxu1 %vm85_vm0, %v10309_v15 }
  0x16   :  { %9495 = vmatmul.mubr.msk.f32.vlgmr.msra.gmra.mrb[0].mxu0 %vm85_vm0, %v10304_v13 }
  0x17   :  { %9497 = vmatprep.mubr.msk.f32.mxu0 %vm85_vm0, %v10309_v15 }
  0x18   :  { %9554 = vmatmul.mubr.msk.f32.gmra.mrb[2].mxu1 %vm85_vm0, %v10320_v16 }
  0x19   :  { %9556 = vmatprep.mubr.msk.f32.mxu1 %vm85_vm0, %v10327_v17 }
  0x1a   :  { %9498 = vmatmul.mubr.msk.f32.gmra.mrb[2].mxu0 %vm85_vm0, %v10320_v16 }
  0x1b   :  { %9500 = vmatprep.mubr.msk.f32.mxu0 %vm85_vm0, %v10327_v17 }
  0x1c   :  { %9557 = vmatmul.mubr.msk.f32.gmra.mrb[4].mxu1 %vm85_vm0, %v10334_v18 }
  0x1d   :  { %9559 = vmatprep.mubr.msk.f32.mxu1 %vm85_vm0, %v10341_v19 }
  0x1e   :  { %9501 = vmatmul.mubr.msk.f32.gmra.mrb[4].mxu0 %vm85_vm0, %v10334_v18 }
  0x1f   :  { %9503 = vmatprep.mubr.msk.f32.mxu0 %vm85_vm0, %v10341_v19 }
  0x20   :  { %9560 = vmatmul.mubr.msk.f32.gmra.mrb[6].mxu1 %vm85_vm0, %v10350_v20 }
  0x21   :  { %9562 = vmatprep.mubr.msk.f32.mxu1 %vm85_vm0, %v10357_v21 }
  0x22   :  { %9504 = vmatmul.mubr.msk.f32.gmra.mrb[6].mxu0 %vm85_vm0, %v10350_v20 }
  0x23   :  { %9506 = vmatprep.mubr.msk.f32.mxu0 %vm85_vm0, %v10357_v21 }
  0x24   :  { %9563 = vmatmul.mubr.msk.f32.gmra.mrb[8].mxu1 %vm85_vm0, %v10364_v22 }
  0x25   :  { %9565 = vmatprep.mubr.msk.f32.mxu1 %vm85_vm0, %v10371_v23 }
  0x26   :  { %9507 = vmatmul.mubr.msk.f32.gmra.mrb[8].mxu0 %vm85_vm0, %v10364_v22 }
  0x27   :  { %9509 = vmatprep.mubr.msk.f32.mxu0 %vm85_vm0, %v10371_v23 }
  0x28   :  { %9566 = vmatmul.mubr.msk.f32.gmra.mrb[10].mxu1 %vm85_vm0, %v10382_v24 }
  0x29   :  { %9568 = vmatprep.mubr.msk.f32.mxu1 %vm85_vm0, %v10389_v25 }
  0x2a   :  { %9510 = vmatmul.mubr.msk.f32.gmra.mrb[10].mxu0 %vm85_vm0, %v10382_v24 }
  0x2b   :  { %9512 = vmatprep.mubr.msk.f32.mxu0 %vm85_vm0, %v10389_v25 }
  0x2c   :  { %9569 = vmatmul.mubr.msk.f32.gmra.mrb[12].mxu1 %vm85_vm0, %v10400_v26 }
  0x2d   :  { %9571 = vmatprep.mubr.msk.f32.mxu1 %vm85_vm0, %v10407_v27 }
  0x2e   :  { %9513 = vmatmul.mubr.msk.f32.gmra.mrb[12].mxu0 %vm85_vm0, %v10400_v26 }
  0x2f   :  { %9515 = vmatprep.mubr.msk.f32.mxu0 %vm85_vm0, %v10407_v27 }
  0x30   :  { %9572 = vmatmul.mubr.msk.f32.gmra.mrb[14].mxu1 %vm85_vm0, %v10418_v28 }
  0x31   :  { %9574 = vmatprep.mubr.msk.f32.mxu1 %vm85_vm0, %v10425_v29 }
  0x32   :  { %9516 = vmatmul.mubr.msk.f32.gmra.mrb[14].mxu0 %vm85_vm0, %v10418_v28 }
  0x33   :  { %9518 = vmatprep.mubr.msk.f32.mxu0 %vm85_vm0, %v10425_v29 }
  0x34   :  { %9575 = vmatmul.mubr.msk.f32.gmra.mrb[16].mxu1 %vm85_vm0, %v10436_v30 }
  0x35   :  { %9577 = vmatprep.mubr.msk.f32.mxu1 %vm85_vm0, %v10443_v31 }
  0x36   :  { %9519 = vmatmul.mubr.msk.f32.gmra.mrb[16].mxu0 %vm85_vm0, %v10436_v30 }
  0x37   :  { %9521 = vmatprep.mubr.msk.f32.mxu0 %vm85_vm0, %v10443_v31 }
  0x38   :  { %9578 = vmatmul.mubr.msk.f32.gmra.mrb[18].mxu1 %vm85_vm0, %v10454_v32 }
  0x39   :  { %9580 = vmatprep.mubr.msk.f32.mxu1 %vm85_vm0, %v10461_v33 }
  0x3a   :  { %9522 = vmatmul.mubr.msk.f32.gmra.mrb[18].mxu0 %vm85_vm0, %v10454_v32 }
  0x3c   :  { %9581 = vmatmul.mubr.msk.f32.gmra.mrb[20].mxu1 %vm85_vm0, %v10472_v34 }
  0x3d   :  { %9583 = vmatprep.mubr.msk.f32.mxu1 %vm85_vm0, %v10479_v35 }
  0x40   :  { %9584 = vmatmul.mubr.msk.f32.gmra.mrb[22].mxu1 %vm85_vm0, %v10490_v36 }
  0x41   :  { %9586 = vmatprep.mubr.msk.f32.mxu1 %vm85_vm0, %v10497_v37 }
  0x44   :  { %9587 = vmatmul.mubr.msk.f32.gmra.mrb[24].mxu1 %vm85_vm0, %v10508_v38 }
  0x45   :  { %19 = vsyncpa [#allocation3], 0  ;;  %9589 = vmatprep.mubr.msk.f32.mxu1 %vm85_vm0, %v10515_v39  ;;  %v76_v40 = vld [vmem:[%s15423_s0 + $0xd8] sm:$0xff]  ;;  %9524 = vmatprep.mubr.msk.f32.mxu0 %vm85_vm0, %v10461_v33  ;;  %v77_v41 = vld [vmem:[%s15423_s0 + $0xe0] sm:$0xff]  ;;  %v15438_v53 = vmov 0.0  }
  0x46   :  { %9525 = vmatmul.mubr.msk.f32.gmra.mrb[20].mxu0 %vm85_vm0, %v10472_v34  ;;  %v78_v42 = vld [vmem:[%s15423_s0 + $0xe8] sm:$0xff]  ;;  %v79_v43 = vld [vmem:[%s15423_s0 + $0xf0] sm:$0xff]  ;;  %v80_v44 = vld [vmem:[%s15423_s0 + $0xf8] sm:$0xff] }
  0x47   :  { %9527 = vmatprep.mubr.msk.f32.mxu0 %vm85_vm0, %v10479_v35  ;;  %v884_v45 = vld [vmem:[%s15426_s3] sm:$0xff]  ;;  %v885_v46 = vld [vmem:[%s15426_s3 + $0x8] sm:$0xff]  ;;  %v886_v48 = vld [vmem:[%s15426_s3 + $0x10] sm:$0xff] }
  0x48   :  { %9590 = vmatmul.mubr.msk.f32.gmra.mrb[26].mxu1 %vm85_vm0, %v76_v40  ;;  %v9768_v47 = vpack.c.bf16 %v885_v46, %v884_v45  ;;  %v887_v49 = vld [vmem:[%s15426_s3 + $0x18] sm:$0xff] }
  0x49   :  { %9592 = vmatprep.mubr.msk.f32.mxu1 %vm85_vm0, %v77_v41  ;;  %v9774_v50 = vpack.c.bf16 %v887_v49, %v886_v48 }
  0x4a   :  { %9528 = vmatmul.mubr.msk.f32.gmra.mrb[22].mxu0 %vm85_vm0, %v10490_v36  ;;  %9770 = vmatprep.subr.msk.bf16.mxu0 %vm10265_vm1, %v9768_v47 }
  0x4b   :  { %9530 = vmatprep.mubr.msk.f32.mxu0 %vm85_vm0, %v10497_v37  ;;  %9773 = vmatpush3.bf16.xpose.msk.msra.mxu0 %vm10265_vm1, %v9768_v47 }
  0x4c   :  { %9593 = vmatmul.mubr.msk.f32.gmra.mrb[28].mxu1 %vm85_vm0, %v78_v42  ;;  %9776 = vmatprep.subr.msk.bf16.mxu0 %vm10265_vm1, %v9774_v50 }
  0x4d   :  { %9595 = vmatprep.mubr.msk.f32.mxu1 %vm85_vm0, %v79_v43 }
  0x4e   :  { %9531 = vmatmul.mubr.msk.f32.gmra.mrb[24].mxu0 %vm85_vm0, %v10508_v38 }
  0x4f   :  { %9533 = vmatprep.mubr.msk.f32.mxu0 %vm85_vm0, %v10515_v39 }
  0x50   :  { %9596 = vmatmul.mubr.msk.f32.gmra.mrb[30].mxu1 %vm85_vm0, %v80_v44 }
  0x52   :  { %9534 = vmatmul.mubr.msk.f32.gmra.mrb[26].mxu0 %vm85_vm0, %v76_v40 }
  0x53   :  { %9536 = vmatprep.mubr.msk.f32.mxu0 %vm85_vm0, %v77_v41  ;;  %9779 = vmatpush3.bf16.xpose.msk.msra.mxu0 %vm10265_vm1, %v9774_v50  ;;  %v9845_v50 = vld [vmem:[%s15436_s13] sm:$0xff]  }
  0x56   :  { %9537 = vmatmul.mubr.msk.f32.gmra.mrb[28].mxu0 %vm85_vm0, %v78_v42 }
  0x57   :  { %9539 = vmatprep.mubr.msk.f32.mxu0 %vm85_vm0, %v79_v43 }
  0x5a   :  { %9540 = vmatmul.mubr.msk.f32.gmra.mrb[30].mxu0 %vm85_vm0, %v80_v44 }
  0x5b   :  { %9606 = vmatprep.mubr.msk.f32.mxu0 %vm85_vm0, %v10275_v6 }
  0x5e   :  { %9607 = vmatmul.mubr.msk.f32.vlgmr.msra.gmra.mrb[32].mxu0 %vm85_vm0, %v10304_v13 }
  0x5f   :  { %9609 = vmatprep.mubr.msk.f32.mxu0 %vm85_vm0, %v10309_v15 }
  0x62   :  { %9610 = vmatmul.mubr.msk.f32.gmra.mrb[34].mxu0 %vm85_vm0, %v10320_v16 }
  0x63   :  { %9612 = vmatprep.mubr.msk.f32.mxu0 %vm85_vm0, %v10327_v17 }
  0x66   :  { %9613 = vmatmul.mubr.msk.f32.gmra.mrb[36].mxu0 %vm85_vm0, %v10334_v18 }
  0x67   :  { %9615 = vmatprep.mubr.msk.f32.mxu0 %vm85_vm0, %v10341_v19 }
  0x6a   :  { %9616 = vmatmul.mubr.msk.f32.gmra.mrb[38].mxu0 %vm85_vm0, %v10350_v20 }
  0x6b   :  { %9618 = vmatprep.mubr.msk.f32.mxu0 %vm85_vm0, %v10357_v21 }
  0x6e   :  { %9619 = vmatmul.mubr.msk.f32.gmra.mrb[40].mxu0 %vm85_vm0, %v10364_v22 }
  0x6f   :  { %9621 = vmatprep.mubr.msk.f32.mxu0 %vm85_vm0, %v10371_v23 }
  0x72   :  { %9622 = vmatmul.mubr.msk.f32.gmra.mrb[42].mxu0 %vm85_vm0, %v10382_v24 }
  0x73   :  { %9624 = vmatprep.mubr.msk.f32.mxu0 %vm85_vm0, %v10389_v25 }
  0x76   :  { %9625 = vmatmul.mubr.msk.f32.gmra.mrb[44].mxu0 %vm85_vm0, %v10400_v26 }
  0x77   :  { %9627 = vmatprep.mubr.msk.f32.mxu0 %vm85_vm0, %v10407_v27 }
  0x7a   :  { %9628 = vmatmul.mubr.msk.f32.gmra.mrb[46].mxu0 %vm85_vm0, %v10418_v28 }
  0x7b   :  { %9630 = vmatprep.mubr.msk.f32.mxu0 %vm85_vm0, %v10425_v29 }
  0x7e   :  { %9631 = vmatmul.mubr.msk.f32.gmra.mrb[48].mxu0 %vm85_vm0, %v10436_v30 }
  0x7f   :  { %9633 = vmatprep.mubr.msk.f32.mxu0 %vm85_vm0, %v10443_v31 }
  0x82   :  { %9634 = vmatmul.mubr.msk.f32.gmra.mrb[50].mxu0 %vm85_vm0, %v10454_v32 }
  0x83   :  { %9636 = vmatprep.mubr.msk.f32.mxu0 %vm85_vm0, %v10461_v33 }
  0x86   :  { %9637 = vmatmul.mubr.msk.f32.gmra.mrb[52].mxu0 %vm85_vm0, %v10472_v34 }
  0x87   :  { %9639 = vmatprep.mubr.msk.f32.mxu0 %vm85_vm0, %v10479_v35 }
  0x8a   :  { %9640 = vmatmul.mubr.msk.f32.gmra.mrb[54].mxu0 %vm85_vm0, %v10490_v36 }
  0x8b   :  { %9642 = vmatprep.mubr.msk.f32.mxu0 %vm85_vm0, %v10497_v37 }
  0x8e   :  { %9643 = vmatmul.mubr.msk.f32.gmra.mrb[56].mxu0 %vm85_vm0, %v10508_v38 }
  0x8f   :  { %9645 = vmatprep.mubr.msk.f32.mxu0 %vm85_vm0, %v10515_v39 }
  0x92   :  { %9646 = vmatmul.mubr.msk.f32.gmra.mrb[58].mxu0 %vm85_vm0, %v76_v40 }
  0x93   :  { %9648 = vmatprep.mubr.msk.f32.mxu0 %vm85_vm0, %v77_v41 }
  0x96   :  { %9649 = vmatmul.mubr.msk.f32.gmra.mrb[60].mxu0 %vm85_vm0, %v78_v42 }
  0x97   :  { %9651 = vmatprep.mubr.msk.f32.mxu0 %vm85_vm0, %v79_v43 }
  0x9a   :  { %9652 = vmatmul.mubr.msk.f32.gmra.mrb[62].mxu0 %vm85_vm0, %v80_v44 }
  0xe7   :  { %v9552_v51 = vpop.f32.mrb[0].mxu1 }
  0xe8   :  { %vm773_vm2 = vcmp.gt.f32.partialorder %v9552_v51, 1.0  ;;  %v613_v52 = vpop.f32.mrb[1].mxu1 }
  0xe9   :  { %v8128_v54 = vsel %vm773_vm2, 1.0, %v15438_v53  ;;  %vm772_vm3 = vcmp.gt.f32.partialorder %v613_v52, 1.0  ;;  %v9496_v5 = vpop.f32.mrb[0].mxu0 }
  0xea   :  { %v8127_v55 = vsel %vm772_vm3, 1.0, %v15438_v53  ;;  %vm420_vm9 = vcmp.gt.f32.partialorder %v9496_v5, 1.0  ;;  %v260_v7 = vpop.f32.mrb[1].mxu0 }
  0xeb   :  { %v10649_v56 = vpack.c.bf16 %v8128_v54, %v8127_v55  ;;  %v9555_v57 = vpop.f32.mrb[2].mxu1  ;;  %v8060_v10 = vsel %vm420_vm9, 1.0, %v15438_v53  ;;  %vm419_vm11 = vcmp.gt.f32.partialorder %v260_v7, 1.0  ;;  %v9846_v55 = vld [vmem:[%s15436_s13 + $0x80] sm:$0xff]  }
  0xec   :  { %vm775_vm4 = vcmp.gt.f32.partialorder %v9555_v57, 1.0  ;;  %v623_v58 = vpop.f32.mrb[3].mxu1  ;;  %v8059_v13 = vsel %vm419_vm11, 1.0, %v15438_v53 }
  0xed   :  { %v8130_v59 = vsel %vm775_vm4, 1.0, %v15438_v53  ;;  %vm774_vm5 = vcmp.gt.f32.partialorder %v623_v58, 1.0  ;;  %v9499_v14 = vpop.f32.mrb[2].mxu0  ;;  %v10665_v16 = vpack.c.bf16 %v8060_v10, %v8059_v13  ;;  %v1749_v5 = vmul.bf16 %v9845_v50, %v10649_v56 }
  0xee   :  { %v8129_v60 = vsel %vm774_vm5, 1.0, %v15438_v53  ;;  %vm422_vm13 = vcmp.gt.f32.partialorder %v9499_v14, 1.0  ;;  %v270_v17 = vpop.f32.mrb[3].mxu0 }
  0xef   :  { %v10653_v61 = vpack.c.bf16 %v8130_v59, %v8129_v60  ;;  %v9558_v62 = vpop.f32.mrb[4].mxu1  ;;  %8809 = vmatprep.mubr.msk.bf16.mxu1 %vm85_vm0, %v10665_v16  ;;  %8857 = vmatprep.mubr.msk.bf16.mxu0 %vm85_vm0, %v10665_v16  ;;  %v8062_v20 = vsel %vm422_vm13, 1.0, %v15438_v53  ;;  %vm421_vm15 = vcmp.gt.f32.partialorder %v270_v17, 1.0 }
  0xf0   :  { %vm777_vm6 = vcmp.gt.f32.partialorder %v9558_v62, 1.0  ;;  %v633_v63 = vpop.f32.mrb[5].mxu1  ;;  %v8061_v23 = vsel %vm421_vm15, 1.0, %v15438_v53 }
  0xf1   :  { %v8132_v0 = vsel %vm777_vm6, 1.0, %v15438_v53  ;;  %vm776_vm7 = vcmp.gt.f32.partialorder %v633_v63, 1.0  ;;  %v9502_v24 = vpop.f32.mrb[4].mxu0  ;;  %v10677_v26 = vpack.c.bf16 %v8062_v20, %v8061_v23  ;;  %v9847_v20 = vld [vmem:[%s15436_s13 + $0x48] sm:$0xff]  }
  0xf2   :  { %v8131_v1 = vsel %vm776_vm7, 1.0, %v15438_v53  ;;  %vm424_vm3 = vcmp.gt.f32.partialorder %v9502_v24, 1.0  ;;  %v280_v27 = vpop.f32.mrb[5].mxu0  ;;  %v2054_v24 = vsel %vm85_vm0, %v1749_v5, 0 }
  0xf3   :  { %v10657_v2 = vpack.c.bf16 %v8132_v0, %v8131_v1  ;;  %v9561_v4 = vpop.f32.mrb[6].mxu1  ;;  %v8064_v30 = vsel %vm424_vm3, 1.0, %v15438_v53  ;;  %vm423_vm5 = vcmp.gt.f32.partialorder %v280_v27, 1.0  ;;  %v9843_v0 = vld [vmem:[%s15436_s13 + $0x40] sm:$0xff]  }
  0xf4   :  { %vm779_vm8 = vcmp.gt.f32.partialorder %v9561_v4, 1.0  ;;  %v643_v6 = vpop.f32.mrb[7].mxu1  ;;  %v8063_v33 = vsel %vm423_vm5, 1.0, %v15438_v53  ;;  %v9844_v1 = vld [vmem:[%s15436_s13 + $0xc0] sm:$0xff]  }
  0xf5   :  { %v8134_v8 = vsel %vm779_vm8, 1.0, %v15438_v53  ;;  %vm778_vm10 = vcmp.gt.f32.partialorder %v643_v6, 1.0  ;;  %v9505_v34 = vpop.f32.mrb[6].mxu0  ;;  %v10685_v36 = vpack.c.bf16 %v8064_v30, %v8063_v33  ;;  %v9850_v30 = vld [vmem:[%s15436_s13 + $0x88] sm:$0xff]  }
  0xf6   :  { %v8133_v9 = vsel %vm778_vm10, 1.0, %v15438_v53  ;;  %vm426_vm7 = vcmp.gt.f32.partialorder %v9505_v34, 1.0  ;;  %v290_v37 = vpop.f32.mrb[7].mxu0 }
  0xf7   :  { %v10662_v11 = vpack.c.bf16 %v8134_v8, %v8133_v9  ;;  %v9564_v12 = vpop.f32.mrb[8].mxu1  ;;  %v8066_v40 = vsel %vm426_vm7, 1.0, %v15438_v53  ;;  %vm425_vm9 = vcmp.gt.f32.partialorder %v290_v37, 1.0  ;;  %v1765_v9 = vmul.bf16 %v9846_v55, %v10649_v56 }
  0xf8   :  { %vm781_vm12 = vcmp.gt.f32.partialorder %v9564_v12, 1.0  ;;  %v653_v15 = vpop.f32.mrb[9].mxu1  ;;  %v8065_v43 = vsel %vm425_vm9, 1.0, %v15438_v53 }
  0xf9   :  { %v8136_v18 = vsel %vm781_vm12, 1.0, %v15438_v53  ;;  %vm780_vm14 = vcmp.gt.f32.partialorder %v653_v15, 1.0  ;;  %v9508_v44 = vpop.f32.mrb[8].mxu0  ;;  %v10693_v46 = vpack.c.bf16 %v8066_v40, %v8065_v43  ;;  %v9852_v43 = vld [vmem:[%s15436_s13 + $0xd0] sm:$0xff]  }
  0xfa   :  { %v8135_v19 = vsel %vm780_vm14, 1.0, %v15438_v53  ;;  %vm428_vm11 = vcmp.gt.f32.partialorder %v9508_v44, 1.0  ;;  %v300_v47 = vpop.f32.mrb[9].mxu0 }
  0xfb   :  { %v10674_v21 = vpack.c.bf16 %v8136_v18, %v8135_v19  ;;  %v9567_v22 = vpop.f32.mrb[10].mxu1  ;;  %v8068_v51 = vsel %vm428_vm11, 1.0, %v15438_v53  ;;  %vm427_vm13 = vcmp.gt.f32.partialorder %v300_v47, 1.0 }
  0xfc   :  { %vm783_vm2 = vcmp.gt.f32.partialorder %v9567_v22, 1.0  ;;  %v663_v25 = vpop.f32.mrb[11].mxu1  ;;  %v8067_v57 = vsel %vm427_vm13, 1.0, %v15438_v53  ;;  %v9848_v22 = vld [vmem:[%s15436_s13 + $0xc8] sm:$0xff]  }
  0xfd   :  { %v8138_v28 = vsel %vm783_vm2, 1.0, %v15438_v53  ;;  %vm782_vm4 = vcmp.gt.f32.partialorder %v663_v25, 1.0  ;;  %v9511_v58 = vpop.f32.mrb[10].mxu0  ;;  %v10707_v60 = vpack.c.bf16 %v8068_v51, %v8067_v57  ;;  %v9849_v25 = vld [vmem:[%s15436_s13 + $0x8] sm:$0xff]  }
  0xfe   :  { %v8137_v29 = vsel %vm782_vm4, 1.0, %v15438_v53  ;;  %vm430_vm15 = vcmp.gt.f32.partialorder %v9511_v58, 1.0  ;;  %v310_v62 = vpop.f32.mrb[11].mxu0 }
  0xff   :  { %v10682_v31 = vpack.c.bf16 %v8138_v28, %v8137_v29  ;;  %v9570_v32 = vpop.f32.mrb[12].mxu1  ;;  %v8070_v6 = vsel %vm430_vm15, 1.0, %v15438_v53  ;;  %vm429_vm3 = vcmp.gt.f32.partialorder %v310_v62, 1.0  ;;  %v2102_v28 = vsel %vm85_vm0, %v1765_v9, 0 }
 0x100   :  { %vm785_vm6 = vcmp.gt.f32.partialorder %v9570_v32, 1.0  ;;  %v673_v35 = vpop.f32.mrb[13].mxu1  ;;  %v8069_v10 = vsel %vm429_vm3, 1.0, %v15438_v53 }
 0x101   :  { %v8140_v38 = vsel %vm785_vm6, 1.0, %v15438_v53  ;;  %vm784_vm8 = vcmp.gt.f32.partialorder %v673_v35, 1.0  ;;  %v9514_v12 = vpop.f32.mrb[12].mxu0  ;;  %v10723_v14 = vpack.c.bf16 %v8070_v6, %v8069_v10 }
 0x102   :  { %v8139_v39 = vsel %vm784_vm8, 1.0, %v15438_v53  ;;  %vm432_vm5 = vcmp.gt.f32.partialorder %v9514_v12, 1.0  ;;  %v320_v15 = vpop.f32.mrb[13].mxu0 }
 0x103   :  { %v10690_v41 = vpack.c.bf16 %v8140_v38, %v8139_v39  ;;  %v9573_v42 = vpop.f32.mrb[14].mxu1  ;;  %v8072_v32 = vsel %vm432_vm5, 1.0, %v15438_v53  ;;  %vm431_vm7 = vcmp.gt.f32.partialorder %v320_v15, 1.0 }
 0x104   :  { %vm787_vm10 = vcmp.gt.f32.partialorder %v9573_v42, 1.0  ;;  %v683_v45 = vpop.f32.mrb[15].mxu1  ;;  %v8071_v35 = vsel %vm431_vm7, 1.0, %v15438_v53  ;;  %v9851_v42 = vld [vmem:[%s15436_s13 + $0x50] sm:$0xff]  }
 0x105   :  { %v8142_v48 = vsel %vm787_vm10, 1.0, %v15438_v53  ;;  %vm786_vm12 = vcmp.gt.f32.partialorder %v683_v45, 1.0  ;;  %v9517_v33 = vpop.f32.mrb[14].mxu0  ;;  %v1750_v45 = vmul.bf16 %v9849_v25, %v10653_v61  ;;  %v10761_v47 = vpack.c.bf16 %v8072_v32, %v8071_v35 }
 0x106   :  { %v8141_v49 = vsel %vm786_vm12, 1.0, %v15438_v53  ;;  %vm434_vm9 = vcmp.gt.f32.partialorder %v9517_v33, 1.0  ;;  %v330_v37 = vpop.f32.mrb[15].mxu0 }
 0x107   :  { %v10701_v52 = vpack.c.bf16 %v8142_v48, %v8141_v49  ;;  %v9576_v54 = vpop.f32.mrb[16].mxu1  ;;  %v1766_v49 = vmul.bf16 %v9850_v30, %v10653_v61  ;;  %v8074_v55 = vsel %vm434_vm9, 1.0, %v15438_v53  ;;  %vm433_vm12 = vcmp.gt.f32.partialorder %v330_v37, 1.0 }
 0x108   :  { %vm789_vm14 = vcmp.gt.f32.partialorder %v9576_v54, 1.0  ;;  %v693_v59 = vpop.f32.mrb[17].mxu1  ;;  %v8073_v5 = vsel %vm433_vm12, 1.0, %v15438_v53 }
 0x109   :  { %v8144_v63 = vsel %vm789_vm14, 1.0, %v15438_v53  ;;  %vm788_vm2 = vcmp.gt.f32.partialorder %v693_v59, 1.0  ;;  %v9520_v51 = vpop.f32.mrb[16].mxu0  ;;  %v2105_v6 = vsel %vm85_vm0, %v1766_v49, 0  ;;  %v10785_v10 = vpack.c.bf16 %v8074_v55, %v8073_v5 }
 0x10a   :  { %v8143_v4 = vsel %vm788_vm2, 1.0, %v15438_v53  ;;  %v340_v57 = vpop.f32.mrb[17].mxu0  ;;  %vm436_vm14 = vcmp.gt.f32.partialorder %v9520_v51, 1.0 }
 0x10b   :  { %v10719_v7 = vpack.c.bf16 %v8144_v63, %v8143_v4  ;;  %v9579_v8 = vpop.f32.mrb[18].mxu1  ;;  %v2057_v63 = vsel %vm85_vm0, %v1750_v45, 0  ;;  %v9854_v4 = vld [vmem:[%s15436_s13 + $0x90] sm:$0xff]   ;;  %v8076_v15 = vsel %vm436_vm14, 1.0, %v15438_v53  ;;  %vm435_vm2 = vcmp.gt.f32.partialorder %v340_v57, 1.0 }
 0x10c   :  { %vm791_vm4 = vcmp.gt.f32.partialorder %v9579_v8, 1.0  ;;  %v703_v13 = vpop.f32.mrb[19].mxu1  ;;  %v8075_v25 = vsel %vm435_vm2, 1.0, %v15438_v53 }
 0x10d   :  { %v8146_v17 = vsel %vm791_vm4, 1.0, %v15438_v53  ;;  %vm790_vm6 = vcmp.gt.f32.partialorder %v703_v13, 1.0  ;;  %v1757_v18 = vmul.bf16 %v9843_v0, %v10719_v7  ;;  %v1773_v19 = vmul.bf16 %v9844_v1, %v10719_v7  ;;  %v9853_v1 = vld [vmem:[%s15436_s13 + $0x10] sm:$0xff]   ;;  %v9523_v12 = vpop.f32.mrb[18].mxu0 }
 0x10e   :  { %v8145_v23 = vsel %vm790_vm6, 1.0, %v15438_v53  ;;  %v10803_v30 = vpack.c.bf16 %v8076_v15, %v8075_v25  ;;  %vm438_vm5 = vcmp.gt.f32.partialorder %v9523_v12, 1.0 }
 0x10f   :  { %v10739_v27 = vpack.c.bf16 %v8146_v17, %v8145_v23  ;;  %9806 = vmatprep.subr.msk.bf16.mxu1 %vm85_vm0, %v1757_v18  ;;  %9814 = vmatprep.subr.msk.bf16.mxu0 %vm85_vm0, %v1773_v19  ;;  %v9582_v29 = vpop.f32.mrb[20].mxu1  ;;  %v350_v17 = vpop.f32.mrb[19].mxu0  ;;  %v9855_v19 = vld [vmem:[%s15436_s13 + $0x58] sm:$0xff]   ;;  %v1767_v23 = vmul.bf16 %v9854_v4, %v10657_v2 }
 0x110   :  { %8794 = vmatpush3.bf16.xpose.msra.mxu1 %v2054_v24  ;;  %8842 = vmatpush3.bf16.xpose.msra.mxu0 %v2102_v28  ;;  %vm793_vm8 = vcmp.gt.f32.partialorder %v9582_v29, 1.0  ;;  %v713_v34 = vpop.f32.mrb[21].mxu1  ;;  %vm437_vm6 = vcmp.gt.f32.partialorder %v350_v17, 1.0 }
 0x111   :  { %v8148_v38 = vsel %vm793_vm8, 1.0, %v15438_v53  ;;  %v1758_v39 = vmul.bf16 %v9847_v20, %v10739_v27  ;;  %v1774_v40 = vmul.bf16 %v9848_v22, %v10739_v27  ;;  %vm792_vm10 = vcmp.gt.f32.partialorder %v713_v34, 1.0  ;;  %v9856_v20 = vld [vmem:[%s15436_s13 + $0xd8] sm:$0xff]  }
 0x112   :  { %v8147_v44 = vsel %vm792_vm10, 1.0, %v15438_v53  ;;  %v1751_v22 = vmul.bf16 %v9853_v1, %v10657_v2  ;;  %v8077_v51 = vsel %vm437_vm6, 1.0, %v15438_v53 }
 0x113   :  { %9807 = vmatprep.subr.msk.bf16.mxu1 %vm85_vm0, %v1758_v39  ;;  %9815 = vmatprep.subr.msk.bf16.mxu0 %vm85_vm0, %v1774_v40  ;;  %v10765_v48 = vpack.c.bf16 %v8148_v38, %v8147_v44  ;;  %v9585_v50 = vpop.f32.mrb[22].mxu1  ;;  %v2108_v40 = vsel %vm85_vm0, %v1767_v23, 0 }
 0x114   :  { %vm795_vm11 = vcmp.gt.f32.partialorder %v9585_v50, 1.0  ;;  %v723_v54 = vpop.f32.mrb[23].mxu1  ;;  %v2060_v39 = vsel %vm85_vm0, %v1751_v22, 0  ;;  %v8078_v50 = vsel %vm438_vm5, 1.0, %v15438_v53 }
 0x115   :  { %v8150_v58 = vsel %vm795_vm11, 1.0, %v15438_v53  ;;  %v1759_v59 = vmul.bf16 %v9851_v42, %v10765_v48  ;;  %v1775_v62 = vmul.bf16 %v9852_v43, %v10765_v48  ;;  %vm794_vm13 = vcmp.gt.f32.partialorder %v723_v54, 1.0  ;;  %v9857_v42 = vld [vmem:[%s15436_s13 + $0x18] sm:$0xff]  }
 0x116   :  { %v8149_v0 = vsel %vm794_vm13, 1.0, %v15438_v53  ;;  %v9858_v43 = vld [vmem:[%s15436_s13 + $0x98] sm:$0xff]   ;;  %v1752_v1 = vmul.bf16 %v9857_v42, %v10662_v11  ;;  %v9864_v42 = vld [vmem:[%s15436_s13 + $0xe8] sm:$0xff]  }
 0x117   :  { %v10783_v8 = vpack.c.bf16 %v8150_v58, %v8149_v0  ;;  %v9588_v9 = vpop.f32.mrb[24].mxu1  ;;  %v10822_v58 = vpack.c.bf16 %v8078_v50, %v8077_v51  ;;  %v1768_v4 = vmul.bf16 %v9858_v43, %v10662_v11 }
 0x118   :  { %8796 = vmatpush3.bf16.xpose.msra.mxu1 %v2057_v63  ;;  %8844 = vmatpush3.bf16.xpose.msra.mxu0 %v2105_v6  ;;  %vm797_vm15 = vcmp.gt.f32.partialorder %v9588_v9, 1.0  ;;  %v733_v13 = vpop.f32.mrb[25].mxu1  ;;  %v9860_v63 = vld [vmem:[%s15436_s13 + $0xe0] sm:$0xff]  }
 0x119   :  { %9808 = vmatprep.subr.msk.bf16.mxu1 %vm85_vm0, %v1759_v59  ;;  %9816 = vmatprep.subr.msk.bf16.mxu0 %vm85_vm0, %v1775_v62  ;;  %v8152_v18 = vsel %vm797_vm15, 1.0, %v15438_v53  ;;  %vm796_vm3 = vcmp.gt.f32.partialorder %v733_v13, 1.0  ;;  %v9526_v32 = vpop.f32.mrb[20].mxu0  ;;  %v1760_v35 = vmul.bf16 %v9855_v19, %v10783_v8  ;;  %v1776_v37 = vmul.bf16 %v9856_v20, %v10783_v8  ;;  %v9859_v62 = vld [vmem:[%s15436_s13 + $0x60] sm:$0xff]  }
 0x11a   :  { %v8151_v24 = vsel %vm796_vm3, 1.0, %v15438_v53  ;;  %vm440_vm7 = vcmp.gt.f32.partialorder %v9526_v32, 1.0  ;;  %v360_v34 = vpop.f32.mrb[21].mxu0  ;;  %v2111_v32 = vsel %vm85_vm0, %v1768_v4, 0  ;;  %v9867_v4 = vld [vmem:[%s15436_s13 + $0x70] sm:$0xff]  }
 0x11b   :  { %v10801_v28 = vpack.c.bf16 %v8152_v18, %v8151_v24  ;;  %v9591_v29 = vpop.f32.mrb[26].mxu1  ;;  %v8080_v54 = vsel %vm440_vm7, 1.0, %v15438_v53  ;;  %vm439_vm10 = vcmp.gt.f32.partialorder %v360_v34, 1.0  ;;  %v9862_v34 = vld [vmem:[%s15436_s13 + $0xa0] sm:$0xff]  }
 0x11c   :  { %vm799_vm4 = vcmp.gt.f32.partialorder %v9591_v29, 1.0  ;;  %v743_v33 = vpop.f32.mrb[27].mxu1  ;;  %v8079_v6 = vsel %vm439_vm10, 1.0, %v15438_v53  ;;  %v2063_v29 = vsel %vm85_vm0, %v1752_v1, 0  ;;  %v1769_v50 = vmul.bf16 %v9862_v34, %v10674_v21  ;;  %v9871_v34 = vld [vmem:[%s15436_s13 + $0x78] sm:$0xff]  }
 0x11d   :  { %v8154_v38 = vsel %vm799_vm4, 1.0, %v15438_v53  ;;  %vm798_vm8 = vcmp.gt.f32.partialorder %v743_v33, 1.0  ;;  %v9529_v55 = vpop.f32.mrb[22].mxu0  ;;  %v10839_v13 = vpack.c.bf16 %v8080_v54, %v8079_v6  ;;  %v1761_v20 = vmul.bf16 %v9859_v62, %v10801_v28  ;;  %v9861_v33 = vld [vmem:[%s15436_s13 + $0x20] sm:$0xff]   ;;  %v9866_v62 = vld [vmem:[%s15436_s13 + $0xa8] sm:$0xff]  }
 0x11e   :  { %v8153_v44 = vsel %vm798_vm8, 1.0, %v15438_v53  ;;  %vm442_vm11 = vcmp.gt.f32.partialorder %v9529_v55, 1.0  ;;  %v370_v59 = vpop.f32.mrb[23].mxu0  ;;  %v1777_v22 = vmul.bf16 %v9860_v63, %v10801_v28 }
 0x11f   :  { %v10817_v45 = vpack.c.bf16 %v8154_v38, %v8153_v44  ;;  %v9594_v49 = vpop.f32.mrb[28].mxu1  ;;  %v8082_v15 = vsel %vm442_vm11, 1.0, %v15438_v53  ;;  %vm441_vm13 = vcmp.gt.f32.partialorder %v370_v59, 1.0  ;;  %v9865_v59 = vld [vmem:[%s15436_s13 + $0x28] sm:$0xff]  }
 0x120   :  { %8798 = vmatpush3.bf16.xpose.msra.mxu1 %v2060_v39  ;;  %8846 = vmatpush3.bf16.xpose.msra.mxu0 %v2108_v40  ;;  %vm801_vm9 = vcmp.gt.f32.partialorder %v9594_v49, 1.0  ;;  %v753_v57 = vpop.f32.mrb[29].mxu1  ;;  %v8081_v19 = vsel %vm441_vm13, 1.0, %v15438_v53  ;;  %v9863_v40 = vld [vmem:[%s15436_s13 + $0x68] sm:$0xff]   ;;  %v1753_v49 = vmul.bf16 %v9861_v33, %v10674_v21 }
 0x121   :  { %9809 = vmatprep.subr.msk.bf16.mxu1 %vm85_vm0, %v1760_v35  ;;  %9817 = vmatprep.subr.msk.bf16.mxu0 %vm85_vm0, %v1776_v37  ;;  %v8156_v0 = vsel %vm801_vm9, 1.0, %v15438_v53  ;;  %vm800_vm12 = vcmp.gt.f32.partialorder %v753_v57, 1.0  ;;  %v9532_v17 = vpop.f32.mrb[24].mxu0  ;;  %v10847_v25 = vpack.c.bf16 %v8082_v15, %v8081_v19  ;;  %v1762_v51 = vmul.bf16 %v9863_v40, %v10817_v45 }
 0x122   :  { %v8155_v5 = vsel %vm800_vm12, 1.0, %v15438_v53  ;;  %vm444_vm15 = vcmp.gt.f32.partialorder %v9532_v17, 1.0  ;;  %v380_v38 = vpop.f32.mrb[25].mxu0  ;;  %v1778_v54 = vmul.bf16 %v9864_v42, %v10817_v45  ;;  %v2066_v55 = vsel %vm85_vm0, %v1753_v49, 0 }
 0x123   :  { %v10837_v9 = vpack.c.bf16 %v8156_v0, %v8155_v5  ;;  %v9597_v12 = vpop.f32.mrb[30].mxu1  ;;  %v8084_v37 = vsel %vm444_vm15, 1.0, %v15438_v53  ;;  %vm443_vm3 = vcmp.gt.f32.partialorder %v380_v38, 1.0  ;;  %v2114_v57 = vsel %vm85_vm0, %v1769_v50, 0  ;;  %v9868_v5 = vld [vmem:[%s15436_s13 + $0xf0] sm:$0xff]  }
 0x124   :  { %vm803_vm14 = vcmp.gt.f32.partialorder %v9597_v12, 1.0  ;;  %v763_v18 = vpop.f32.mrb[31].mxu1  ;;  %v8083_v43 = vsel %vm443_vm3, 1.0, %v15438_v53  ;;  %v1754_v15 = vmul.bf16 %v9865_v59, %v10682_v31  ;;  %v1770_v17 = vmul.bf16 %v9866_v62, %v10682_v31 }
 0x125   :  { %v8158_v23 = vsel %vm803_vm14, 1.0, %v15438_v53  ;;  %vm802_vm2 = vcmp.gt.f32.partialorder %v763_v18, 1.0  ;;  %v9535_v39 = vpop.f32.mrb[26].mxu0  ;;  %v10869_v44 = vpack.c.bf16 %v8084_v37, %v8083_v43  ;;  %v1763_v18 = vmul.bf16 %v9867_v4, %v10837_v9  ;;  %v9872_v37 = vld [vmem:[%s15436_s13 + $0xf8] sm:$0xff]   ;;  %v9875_v4 = vld [vmem:[%s15436_s13 + $0x140] sm:$0xff]  }
 0x126   :  { %v8157_v24 = vsel %vm802_vm2, 1.0, %v15438_v53  ;;  %vm446_vm4 = vcmp.gt.f32.partialorder %v9535_v39, 1.0  ;;  %v390_v0 = vpop.f32.mrb[27].mxu0  ;;  %v1779_v19 = vmul.bf16 %v9868_v5, %v10837_v9  ;;  %v9876_v5 = vld [vmem:[%s15436_s13 + $0x1c0] sm:$0xff]  }
 0x127   :  { %v10857_v35 = vpack.c.bf16 %v8158_v23, %v8157_v24  ;;  %v8086_v63 = vsel %vm446_vm4, 1.0, %v15438_v53  ;;  %vm445_vm5 = vcmp.gt.f32.partialorder %v390_v0, 1.0  ;;  %v9869_v23 = vld [vmem:[%s15436_s13 + $0x30] sm:$0xff]  }
 0x128   :  { %8800 = vmatpush3.bf16.xpose.msra.mxu1 %v2063_v29  ;;  %8848 = vmatpush3.bf16.xpose.msra.mxu0 %v2111_v32  ;;  %v8085_v6 = vsel %vm445_vm5, 1.0, %v15438_v53  ;;  %v9870_v24 = vld [vmem:[%s15436_s13 + $0xb0] sm:$0xff]   ;;  %v1755_v40 = vmul.bf16 %v9869_v23, %v10690_v41 }
 0x129   :  { %9810 = vmatprep.subr.msk.bf16.mxu1 %vm85_vm0, %v1761_v20  ;;  %9818 = vmatprep.subr.msk.bf16.mxu0 %vm85_vm0, %v1777_v22  ;;  %v9538_v1 = vpop.f32.mrb[28].mxu0  ;;  %v10893_v12 = vpack.c.bf16 %v8086_v63, %v8085_v6  ;;  %v2069_v20 = vsel %vm85_vm0, %v1754_v15, 0  ;;  %v2117_v22 = vsel %vm85_vm0, %v1770_v17, 0  ;;  %v1771_v42 = vmul.bf16 %v9870_v24, %v10690_v41  ;;  %v9880_v24 = vld [vmem:[%s15436_s13 + $0x1c8] sm:$0xff]  }
 0x12a   :  { %vm448_vm6 = vcmp.gt.f32.partialorder %v9538_v1, 1.0  ;;  %v400_v32 = vpop.f32.mrb[29].mxu0  ;;  %v1764_v43 = vmul.bf16 %v9871_v34, %v10857_v35  ;;  %v1780_v49 = vmul.bf16 %v9872_v37, %v10857_v35  ;;  %v2072_v50 = vsel %vm85_vm0, %v1755_v40, 0  ;;  %v9881_v34 = vld [vmem:[%s15436_s13 + $0x108] sm:$0xff]   ;;  %v9883_v40 = vld [vmem:[%s15436_s13 + $0x150] sm:$0xff]  }
 0x12b   :  { %v8088_v29 = vsel %vm448_vm6, 1.0, %v15438_v53  ;;  %vm447_vm7 = vcmp.gt.f32.partialorder %v400_v32, 1.0  ;;  %v1789_v17 = vmul.bf16 %v9875_v4, %v10719_v7  ;;  %v9882_v37 = vld [vmem:[%s15436_s13 + $0x188] sm:$0xff]   ;;  %v9889_v4 = vld [vmem:[%s15436_s13 + $0x118] sm:$0xff]  }
 0x12c   :  { %v8087_v38 = vsel %vm447_vm7, 1.0, %v15438_v53 }
 0x12d   :  { %v9541_v33 = vpop.f32.mrb[30].mxu0  ;;  %v10917_v39 = vpack.c.bf16 %v8088_v29, %v8087_v38  ;;  %v1798_v38 = vmul.bf16 %v9882_v37, %v10653_v61  ;;  %v9898_v37 = vld [vmem:[%s15436_s13 + $0x1a8] sm:$0xff]  }
 0x12e   :  { %vm450_vm8 = vcmp.gt.f32.partialorder %v9541_v33, 1.0  ;;  %v410_v59 = vpop.f32.mrb[31].mxu0  ;;  %v1806_v33 = vmul.bf16 %v9880_v24, %v10739_v27  ;;  %v9895_v24 = vld [vmem:[%s15436_s13 + $0x168] sm:$0xff]  }
 0x12f   :  { %vm449_vm9 = vcmp.gt.f32.partialorder %v410_v59, 1.0  ;;  %v9888_v59 = vld [vmem:[%s15436_s13 + $0x1d8] sm:$0xff]  }
 0x130   :  { %8802 = vmatpush3.bf16.xpose.msra.mxu1 %v2066_v55  ;;  %8850 = vmatpush3.bf16.xpose.msra.mxu0 %v2114_v57  ;;  %v9874_v55 = vld [vmem:[%s15436_s13 + $0xb8] sm:$0xff]   ;;  %v8090_v57 = vsel %vm450_vm8, 1.0, %v15438_v53  ;;  %v8089_v62 = vsel %vm449_vm9, 1.0, %v15438_v53 }
 0x131   :  { %9811 = vmatprep.subr.msk.bf16.mxu1 %vm85_vm0, %v1762_v51  ;;  %9819 = vmatprep.subr.msk.bf16.mxu0 %vm85_vm0, %v1778_v54  ;;  %v2120_v51 = vsel %vm85_vm0, %v1771_v42, 0  ;;  %v9873_v54 = vld [vmem:[%s15436_s13 + $0x38] sm:$0xff]   ;;  %v10935_v63 = vpack.c.bf16 %v8090_v57, %v8089_v62  ;;  %v1772_v1 = vmul.bf16 %v9874_v55, %v10701_v52  ;;  %v9884_v42 = vld [vmem:[%s15436_s13 + $0x1d0] sm:$0xff]  }
 0x132   :  { %v1756_v0 = vmul.bf16 %v9873_v54, %v10701_v52  ;;  %v9886_v54 = vld [vmem:[%s15436_s13 + $0x190] sm:$0xff]   ;;  %v9887_v57 = vld [vmem:[%s15436_s13 + $0x158] sm:$0xff]  }
 0x133   :  { %v2123_v15 = vsel %vm85_vm0, %v1772_v1, 0  ;;  %v1799_v55 = vmul.bf16 %v9886_v54, %v10657_v2  ;;  %v1808_v1 = vmul.bf16 %v9888_v59, %v10783_v8  ;;  %v9903_v54 = vld [vmem:[%s15436_s13 + $0x178] sm:$0xff]  }
 0x134   :  { %v2075_v6 = vsel %vm85_vm0, %v1756_v0, 0  ;;  %v1796_v59 = vmul.bf16 %v9903_v54, %v10857_v35 }
 0x135   :  { %v2204_v0 = vsel %vm85_vm0, %v1799_v55, 0  ;;  %v9905_v55 = vld [vmem:[%s15436_s13 + $0x138] sm:$0xff]  }
 0x138   :  { %8804 = vmatpush3.bf16.xpose.msra.mxu1 %v2069_v20  ;;  %8852 = vmatpush3.bf16.xpose.msra.mxu0 %v2117_v22  ;;  %v9878_v20 = vld [vmem:[%s15436_s13 + $0x180] sm:$0xff]  }
 0x139   :  { %9812 = vmatprep.subr.msk.bf16.mxu1 %vm85_vm0, %v1763_v18  ;;  %9820 = vmatprep.subr.msk.bf16.mxu0 %vm85_vm0, %v1779_v19  ;;  %v1805_v18 = vmul.bf16 %v9876_v5, %v10719_v7  ;;  %v9877_v19 = vld [vmem:[%s15436_s13 + $0x100] sm:$0xff]   ;;  %v1797_v23 = vmul.bf16 %v9878_v20, %v10649_v56  ;;  %v9879_v7 = vld [vmem:[%s15436_s13 + $0x148] sm:$0xff]   ;;  %v9890_v5 = vld [vmem:[%s15436_s13 + $0x198] sm:$0xff]  }
 0x13a   :  { %v1781_v22 = vmul.bf16 %v9877_v19, %v10649_v56  ;;  %v1790_v56 = vmul.bf16 %v9879_v7, %v10739_v27  ;;  %v1782_v27 = vmul.bf16 %v9881_v34, %v10653_v61  ;;  %v1791_v61 = vmul.bf16 %v9883_v40, %v10765_v48  ;;  %v9897_v34 = vld [vmem:[%s15436_s13 + $0x128] sm:$0xff]   ;;  %v9900_v40 = vld [vmem:[%s15436_s13 + $0x1f0] sm:$0xff]  }
 0x13b   :  { %v2198_v32 = vsel %vm85_vm0, %v1797_v23, 0  ;;  %v9894_v23 = vld [vmem:[%s15436_s13 + $0x1a0] sm:$0xff]  }
 0x13c   :  { %v2150_v29 = vsel %vm85_vm0, %v1781_v22, 0  ;;  %v9893_v22 = vld [vmem:[%s15436_s13 + $0x120] sm:$0xff]   ;;  %v1801_v7 = vmul.bf16 %v9894_v23, %v10674_v21 }
 0x140   :  { %8806 = vmatpush3.bf16.xpose.msra.mxu1 %v2072_v50  ;;  %8854 = vmatpush3.bf16.xpose.msra.mxu0 %v2120_v51  ;;  %v1807_v50 = vmul.bf16 %v9884_v42, %v10765_v48  ;;  %v9885_v51 = vld [vmem:[%s15436_s13 + $0x110] sm:$0xff]  }
 0x141   :  { %9813 = vmatprep.subr.msk.bf16.mxu1 %vm85_vm0, %v1764_v43  ;;  %9821 = vmatprep.subr.msk.bf16.mxu0 %vm85_vm0, %v1780_v49  ;;  %v2153_v43 = vsel %vm85_vm0, %v1782_v27, 0  ;;  %v2201_v49 = vsel %vm85_vm0, %v1798_v38, 0  ;;  %v1783_v48 = vmul.bf16 %v9885_v51, %v10657_v2  ;;  %v1792_v2 = vmul.bf16 %v9887_v57, %v10783_v8  ;;  %v9899_v38 = vld [vmem:[%s15436_s13 + $0x170] sm:$0xff]  }
 0x142   :  { %v1784_v8 = vmul.bf16 %v9889_v4, %v10662_v11  ;;  %v1802_v27 = vmul.bf16 %v9898_v37, %v10682_v31 }
 0x143   :  { %v2156_v62 = vsel %vm85_vm0, %v1783_v48, 0  ;;  %v9904_v48 = vld [vmem:[%s15436_s13 + $0x1f8] sm:$0xff]  }
 0x148   :  { %8808 = vmatpush3.bf16.xpose.msra.mxu1 %v2075_v6  ;;  %8856 = vmatpush3.bf16.xpose.msra.mxu0 %v2123_v15  ;;  %v1800_v6 = vmul.bf16 %v9890_v5, %v10662_v11  ;;  %v9891_v15 = vld [vmem:[%s15436_s13 + $0x160] sm:$0xff]  }
 0x149   :  { %9822 = vmatprep.subr.msk.bf16.mxu1 %vm85_vm0, %v1789_v17  ;;  %9830 = vmatprep.subr.msk.bf16.mxu0 %vm85_vm0, %v1805_v18  ;;  %v9892_v17 = vld [vmem:[%s15436_s13 + $0x1e0] sm:$0xff]   ;;  %v2159_v18 = vsel %vm85_vm0, %v1784_v8, 0  ;;  %v1793_v11 = vmul.bf16 %v9891_v15, %v10801_v28 }
 0x14a   :  { %v2207_v19 = vsel %vm85_vm0, %v1800_v6, 0  ;;  %v1809_v20 = vmul.bf16 %v9892_v17, %v10801_v28  ;;  %v1785_v28 = vmul.bf16 %v9893_v22, %v10674_v21  ;;  %v1794_v21 = vmul.bf16 %v9895_v24, %v10817_v45 }
 0x14f   :  { %8810 = vmatmul.mubr.msk.bf16.vlgmr.msra.gmra.mrb[32].mxu1 %vm85_vm0, %v10665_v16  ;;  %8858 = vmatmul.mubr.msk.bf16.vlgmr.msra.gmra.mrb[64].mxu0 %vm85_vm0, %v10665_v16 }
 0x150   :  { %8890 = vmatpush3.bf16.xpose.msra.mxu1 %v2150_v29  ;;  %8938 = vmatpush3.bf16.xpose.msra.mxu0 %v2198_v32  ;;  %v9896_v29 = vld [vmem:[%s15436_s13 + $0x1e8] sm:$0xff]   ;;  %v2162_v32 = vsel %vm85_vm0, %v1785_v28, 0 }
 0x151   :  { %9823 = vmatprep.subr.msk.bf16.mxu1 %vm85_vm0, %v1790_v56  ;;  %9831 = vmatprep.subr.msk.bf16.mxu0 %vm85_vm0, %v1806_v33  ;;  %v2210_v56 = vsel %vm85_vm0, %v1801_v7, 0  ;;  %v1810_v33 = vmul.bf16 %v9896_v29, %v10817_v45  ;;  %v1786_v45 = vmul.bf16 %v9897_v34, %v10682_v31  ;;  %v1795_v31 = vmul.bf16 %v9899_v38, %v10837_v9 }
 0x152   :  { %8811 = vmatprep.mubr.msk.bf16.mxu1 %vm85_vm0, %v10677_v26  ;;  %8859 = vmatprep.mubr.msk.bf16.mxu0 %vm85_vm0, %v10677_v26 }
 0x153   :  { %v2165_v42 = vsel %vm85_vm0, %v1786_v45, 0 }
 0x157   :  { %8812 = vmatmul.mubr.msk.bf16.gmra.mrb[36].mxu1 %vm85_vm0, %v10677_v26  ;;  %8860 = vmatmul.mubr.msk.bf16.gmra.mrb[68].mxu0 %vm85_vm0, %v10677_v26 }
 0x158   :  { %8892 = vmatpush3.bf16.xpose.msra.mxu1 %v2153_v43  ;;  %8940 = vmatpush3.bf16.xpose.msra.mxu0 %v2201_v49  ;;  %v2213_v43 = vsel %vm85_vm0, %v1802_v27, 0  ;;  %v1811_v49 = vmul.bf16 %v9900_v40, %v10837_v9 }
 0x159   :  { %9824 = vmatprep.subr.msk.bf16.mxu1 %vm85_vm0, %v1791_v61  ;;  %9832 = vmatprep.subr.msk.bf16.mxu0 %vm85_vm0, %v1807_v50  ;;  %v9901_v61 = vld [vmem:[%s15436_s13 + $0x130] sm:$0xff]  }
 0x15a   :  { %8813 = vmatprep.mubr.msk.bf16.mxu1 %vm85_vm0, %v10685_v36  ;;  %8861 = vmatprep.mubr.msk.bf16.mxu0 %vm85_vm0, %v10685_v36  ;;  %v9902_v50 = vld [vmem:[%s15436_s13 + $0x1b0] sm:$0xff]   ;;  %v1787_v9 = vmul.bf16 %v9901_v61, %v10690_v41 }
 0x15b   :  { %v1803_v51 = vmul.bf16 %v9902_v50, %v10690_v41 }
 0x15c   :  { %v2168_v41 = vsel %vm85_vm0, %v1787_v9, 0 }
 0x15d   :  { %v2216_v57 = vsel %vm85_vm0, %v1803_v51, 0 }
 0x15f   :  { %8814 = vmatmul.mubr.msk.bf16.gmra.mrb[40].mxu1 %vm85_vm0, %v10685_v36  ;;  %8862 = vmatmul.mubr.msk.bf16.gmra.mrb[72].mxu0 %vm85_vm0, %v10685_v36 }
 0x160   :  { %8894 = vmatpush3.bf16.xpose.msra.mxu1 %v2156_v62  ;;  %8942 = vmatpush3.bf16.xpose.msra.mxu0 %v2204_v0  ;;  %v1812_v62 = vmul.bf16 %v9904_v48, %v10857_v35  ;;  %v9906_v0 = vld [vmem:[%s15436_s13 + $0x1b8] sm:$0xff]   ;;  %v1788_v35 = vmul.bf16 %v9905_v55, %v10701_v52 }
 0x161   :  { %9825 = vmatprep.subr.msk.bf16.mxu1 %vm85_vm0, %v1792_v2  ;;  %9833 = vmatprep.subr.msk.bf16.mxu0 %vm85_vm0, %v1808_v1  ;;  %v9608_v2 = vpop.f32.mrb[32].mxu0  ;;  %v1804_v15 = vmul.bf16 %v9906_v0, %v10701_v52 }
 0x162   :  { %8815 = vmatprep.mubr.msk.bf16.mxu1 %vm85_vm0, %v10693_v46  ;;  %8863 = vmatprep.mubr.msk.bf16.mxu0 %vm85_vm0, %v10693_v46  ;;  %vm1126_vm10 = vcmp.gt.f32.partialorder %v9608_v2, 1.0  ;;  %v966_v1 = vpop.f32.mrb[33].mxu0  ;;  %v2171_v52 = vsel %vm85_vm0, %v1788_v35, 0 }
 0x163   :  { %v8196_v4 = vsel %vm1126_vm10, 1.0, %v15438_v53  ;;  %vm1125_vm11 = vcmp.gt.f32.partialorder %v966_v1, 1.0  ;;  %v9611_v5 = vpop.f32.mrb[34].mxu0  ;;  %v2219_v7 = vsel %vm85_vm0, %v1804_v15, 0 }
 0x164   :  { %v8195_v8 = vsel %vm1125_vm11, 1.0, %v15438_v53  ;;  %vm1128_vm12 = vcmp.gt.f32.partialorder %v9611_v5, 1.0  ;;  %v976_v6 = vpop.f32.mrb[35].mxu0 }
 0x165   :  { %v11157_v17 = vpack.c.bf16 %v8196_v4, %v8195_v8  ;;  %vm1127_vm13 = vcmp.gt.f32.partialorder %v976_v6, 1.0 }
 0x167   :  { %8816 = vmatmul.mubr.msk.bf16.gmra.mrb[44].mxu1 %vm85_vm0, %v10693_v46  ;;  %8864 = vmatmul.mubr.msk.bf16.gmra.mrb[76].mxu0 %vm85_vm0, %v10693_v46 }
 0x168   :  { %8896 = vmatpush3.bf16.xpose.msra.mxu1 %v2159_v18  ;;  %8944 = vmatpush3.bf16.xpose.msra.mxu0 %v2207_v19  ;;  %v8198_v18 = vsel %vm1128_vm12, 1.0, %v15438_v53  ;;  %v9614_v19 = vpop.f32.mrb[36].mxu0 }
 0x169   :  { %9826 = vmatprep.subr.msk.bf16.mxu1 %vm85_vm0, %v1793_v11  ;;  %9834 = vmatprep.subr.msk.bf16.mxu0 %vm85_vm0, %v1809_v20  ;;  %v8197_v11 = vsel %vm1127_vm13, 1.0, %v15438_v53  ;;  %vm1130_vm14 = vcmp.gt.f32.partialorder %v9614_v19, 1.0  ;;  %v986_v20 = vpop.f32.mrb[37].mxu0 }
 0x16a   :  { %8817 = vmatprep.mubr.msk.bf16.mxu1 %vm85_vm0, %v10707_v60  ;;  %8865 = vmatprep.mubr.msk.bf16.mxu0 %vm85_vm0, %v10707_v60  ;;  %v11161_v22 = vpack.c.bf16 %v8198_v18, %v8197_v11  ;;  %v8200_v23 = vsel %vm1130_vm14, 1.0, %v15438_v53  ;;  %vm1129_vm15 = vcmp.gt.f32.partialorder %v986_v20, 1.0  ;;  %v9617_v29 = vpop.f32.mrb[38].mxu0 }
 0x16b   :  { %v8199_v28 = vsel %vm1129_vm15, 1.0, %v15438_v53  ;;  %vm1132_vm2 = vcmp.gt.f32.partialorder %v9617_v29, 1.0 }
 0x16c   :  { %v11171_v24 = vpack.c.bf16 %v8200_v23, %v8199_v28 }
 0x16f   :  { %8818 = vmatmul.mubr.msk.bf16.gmra.mrb[48].mxu1 %vm85_vm0, %v10707_v60  ;;  %8866 = vmatmul.mubr.msk.bf16.gmra.mrb[80].mxu0 %vm85_vm0, %v10707_v60 }
 0x170   :  { %8898 = vmatpush3.bf16.xpose.msra.mxu1 %v2162_v32  ;;  %8946 = vmatpush3.bf16.xpose.msra.mxu0 %v2210_v56  ;;  %v996_v32 = vpop.f32.mrb[39].mxu0  ;;  %v8202_v56 = vsel %vm1132_vm2, 1.0, %v15438_v53 }
 0x171   :  { %9827 = vmatprep.subr.msk.bf16.mxu1 %vm85_vm0, %v1794_v21  ;;  %9835 = vmatprep.subr.msk.bf16.mxu0 %vm85_vm0, %v1810_v33  ;;  %vm1131_vm3 = vcmp.gt.f32.partialorder %v996_v32, 1.0  ;;  %v9620_v21 = vpop.f32.mrb[40].mxu0 }
 0x172   :  { %8819 = vmatprep.mubr.msk.bf16.mxu1 %vm85_vm0, %v10723_v14  ;;  %8867 = vmatprep.mubr.msk.bf16.mxu0 %vm85_vm0, %v10723_v14  ;;  %v8201_v33 = vsel %vm1131_vm3, 1.0, %v15438_v53  ;;  %vm1134_vm4 = vcmp.gt.f32.partialorder %v9620_v21, 1.0  ;;  %v1006_v34 = vpop.f32.mrb[41].mxu0 }
 0x173   :  { %v11179_v37 = vpack.c.bf16 %v8202_v56, %v8201_v33  ;;  %v8204_v45 = vsel %vm1134_vm4, 1.0, %v15438_v53  ;;  %vm1133_vm5 = vcmp.gt.f32.partialorder %v1006_v34, 1.0  ;;  %v9623_v27 = vpop.f32.mrb[42].mxu0 }
 0x174   :  { %v8203_v38 = vsel %vm1133_vm5, 1.0, %v15438_v53  ;;  %vm1136_vm6 = vcmp.gt.f32.partialorder %v9623_v27, 1.0  ;;  %v1016_v40 = vpop.f32.mrb[43].mxu0 }
 0x175   :  { %vm1135_vm7 = vcmp.gt.f32.partialorder %v1016_v40, 1.0 }
 0x177   :  { %8820 = vmatmul.mubr.msk.bf16.gmra.mrb[52].mxu1 %vm85_vm0, %v10723_v14  ;;  %8868 = vmatmul.mubr.msk.bf16.gmra.mrb[84].mxu0 %vm85_vm0, %v10723_v14 }
 0x178   :  { %8900 = vmatpush3.bf16.xpose.msra.mxu1 %v2165_v42  ;;  %8948 = vmatpush3.bf16.xpose.msra.mxu0 %v2213_v43  ;;  %v11183_v42 = vpack.c.bf16 %v8204_v45, %v8203_v38  ;;  %v8206_v43 = vsel %vm1136_vm6, 1.0, %v15438_v53 }
 0x179   :  { %9828 = vmatprep.subr.msk.bf16.mxu1 %vm85_vm0, %v1795_v31  ;;  %9836 = vmatprep.subr.msk.bf16.mxu0 %vm85_vm0, %v1811_v49  ;;  %v9626_v31 = vpop.f32.mrb[44].mxu0  ;;  %v8205_v49 = vsel %vm1135_vm7, 1.0, %v15438_v53 }
 0x17a   :  { %8821 = vmatprep.mubr.msk.bf16.mxu1 %vm85_vm0, %v10761_v47  ;;  %8869 = vmatprep.mubr.msk.bf16.mxu0 %vm85_vm0, %v10761_v47  ;;  %vm1138_vm8 = vcmp.gt.f32.partialorder %v9626_v31, 1.0  ;;  %v1026_v61 = vpop.f32.mrb[45].mxu0  ;;  %v11191_v50 = vpack.c.bf16 %v8206_v43, %v8205_v49 }
 0x17b   :  { %v8208_v9 = vsel %vm1138_vm8, 1.0, %v15438_v53  ;;  %vm1137_vm9 = vcmp.gt.f32.partialorder %v1026_v61, 1.0  ;;  %v9629_v51 = vpop.f32.mrb[46].mxu0 }
 0x17c   :  { %v8207_v54 = vsel %vm1137_vm9, 1.0, %v15438_v53  ;;  %vm1140_vm10 = vcmp.gt.f32.partialorder %v9629_v51, 1.0  ;;  %v1036_v48 = vpop.f32.mrb[47].mxu0 }
 0x17d   :  { %v11199_v55 = vpack.c.bf16 %v8208_v9, %v8207_v54  ;;  %vm1139_vm11 = vcmp.gt.f32.partialorder %v1036_v48, 1.0 }
 0x17f   :  { %8822 = vmatmul.mubr.msk.bf16.gmra.mrb[56].mxu1 %vm85_vm0, %v10761_v47  ;;  %8870 = vmatmul.mubr.msk.bf16.gmra.mrb[88].mxu0 %vm85_vm0, %v10761_v47  ;;  %15575 = vst [vmem:[#allocation6_spill] sm:$0xff] %v11199_v55 }
 0x180   :  { %8902 = vmatpush3.bf16.xpose.msra.mxu1 %v2168_v41  ;;  %8950 = vmatpush3.bf16.xpose.msra.mxu0 %v2216_v57  ;;  %v8210_v41 = vsel %vm1140_vm10, 1.0, %v15438_v53  ;;  %v9632_v57 = vpop.f32.mrb[48].mxu0 }
 0x181   :  { %9829 = vmatprep.subr.msk.bf16.mxu1 %vm85_vm0, %v1796_v59  ;;  %9837 = vmatprep.subr.msk.bf16.mxu0 %vm85_vm0, %v1812_v62  ;;  %v8209_v59 = vsel %vm1139_vm11, 1.0, %v15438_v53  ;;  %vm1142_vm12 = vcmp.gt.f32.partialorder %v9632_v57, 1.0  ;;  %v1046_v62 = vpop.f32.mrb[49].mxu0 }
 0x182   :  { %8823 = vmatprep.mubr.msk.bf16.mxu1 %vm85_vm0, %v10785_v10  ;;  %8871 = vmatprep.mubr.msk.bf16.mxu0 %vm85_vm0, %v10785_v10  ;;  %v11203_v0 = vpack.c.bf16 %v8210_v41, %v8209_v59  ;;  %v8212_v2 = vsel %vm1142_vm12, 1.0, %v15438_v53  ;;  %vm1141_vm13 = vcmp.gt.f32.partialorder %v1046_v62, 1.0  ;;  %v9635_v1 = vpop.f32.mrb[50].mxu0 }
 0x183   :  { %v8211_v4 = vsel %vm1141_vm13, 1.0, %v15438_v53  ;;  %vm1144_vm14 = vcmp.gt.f32.partialorder %v9635_v1, 1.0  ;;  %v1056_v5 = vpop.f32.mrb[51].mxu0 }
 0x184   :  { %15576 = vst [vmem:[#allocation7_spill] sm:$0xff] %v11203_v0  ;;  %v11207_v35 = vpack.c.bf16 %v8212_v2, %v8211_v4  ;;  %v8214_v8 = vsel %vm1144_vm14, 1.0, %v15438_v53  ;;  %vm1143_vm15 = vcmp.gt.f32.partialorder %v1056_v5, 1.0  ;;  %v9638_v6 = vpop.f32.mrb[52].mxu0  ;;  %vm4574_vm14 = vcmask 130048  }
 0x185   :  { %v8213_v15 = vsel %vm1143_vm15, 1.0, %v15438_v53  ;;  %vm1146_vm2 = vcmp.gt.f32.partialorder %v9638_v6, 1.0  ;;  %v1066_v18 = vpop.f32.mrb[53].mxu0  ;;  %vm4800_vm15 = vcmask 523264  }
 0x186   :  { %v11215_v19 = vpack.c.bf16 %v8214_v8, %v8213_v15  ;;  %v8216_v11 = vsel %vm1146_vm2, 1.0, %v15438_v53  ;;  %vm1145_vm3 = vcmp.gt.f32.partialorder %v1066_v18, 1.0  ;;  %v9641_v20 = vpop.f32.mrb[54].mxu0 }
 0x187   :  { %8824 = vmatmul.mubr.msk.bf16.gmra.mrb[60].mxu1 %vm85_vm0, %v10785_v10  ;;  %8872 = vmatmul.mubr.msk.bf16.gmra.mrb[92].mxu0 %vm85_vm0, %v10785_v10  ;;  %v8215_v23 = vsel %vm1145_vm3, 1.0, %v15438_v53  ;;  %vm1148_vm4 = vcmp.gt.f32.partialorder %v9641_v20, 1.0  ;;  %v1076_v28 = vpop.f32.mrb[55].mxu0 }
 0x188   :  { %8904 = vmatpush3.bf16.xpose.msra.mxu1 %v2171_v52  ;;  %8952 = vmatpush3.bf16.xpose.msra.mxu0 %v2219_v7  ;;  %v11223_v52 = vpack.c.bf16 %v8216_v11, %v8215_v23  ;;  %v8218_v7 = vsel %vm1148_vm4, 1.0, %v15438_v53  ;;  %vm1147_vm5 = vcmp.gt.f32.partialorder %v1076_v28, 1.0  ;;  %v9644_v29 = vpop.f32.mrb[56].mxu0  ;;  %v1885_v28 = vld [vmem:[%s15435_s12 + $0x40] sm:$0xff] }
 0x189   :  { %8825 = vmatprep.mubr.msk.bf16.mxu1 %vm85_vm0, %v10803_v30  ;;  %8873 = vmatprep.mubr.msk.bf16.mxu0 %vm85_vm0, %v10803_v30  ;;  %v8217_v32 = vsel %vm1147_vm5, 1.0, %v15438_v53  ;;  %vm1150_vm6 = vcmp.gt.f32.partialorder %v9644_v29, 1.0  ;;  %v1086_v56 = vpop.f32.mrb[57].mxu0 }
 0x18a   :  { %v11227_v21 = vpack.c.bf16 %v8218_v7, %v8217_v32  ;;  %v8220_v33 = vsel %vm1150_vm6, 1.0, %v15438_v53  ;;  %vm1149_vm7 = vcmp.gt.f32.partialorder %v1086_v56, 1.0  ;;  %v9647_v34 = vpop.f32.mrb[58].mxu0  ;;  %v1886_v32 = vld [vmem:[%s15435_s12 + $0x48] sm:$0xff] }
 0x18b   :  { %v8219_v45 = vsel %vm1149_vm7, 1.0, %v15438_v53  ;;  %vm1152_vm8 = vcmp.gt.f32.partialorder %v9647_v34, 1.0  ;;  %v1096_v27 = vpop.f32.mrb[59].mxu0  ;;  %v1890_v56 = vld [vmem:[%s15435_s12 + $0x68] sm:$0xff] }
 0x18c   :  { %v11231_v38 = vpack.c.bf16 %v8220_v33, %v8219_v45  ;;  %v8222_v40 = vsel %vm1152_vm8, 1.0, %v15438_v53  ;;  %vm1151_vm9 = vcmp.gt.f32.partialorder %v1096_v27, 1.0  ;;  %v9650_v43 = vpop.f32.mrb[60].mxu0 }
 0x18d   :  { %v8221_v31 = vsel %vm1151_vm9, 1.0, %v15438_v53  ;;  %vm1154_vm10 = vcmp.gt.f32.partialorder %v9650_v43, 1.0  ;;  %v1106_v49 = vpop.f32.mrb[61].mxu0 }
 0x18e   :  { %v11239_v61 = vpack.c.bf16 %v8222_v40, %v8221_v31  ;;  %v8224_v9 = vsel %vm1154_vm10, 1.0, %v15438_v53  ;;  %vm1153_vm11 = vcmp.gt.f32.partialorder %v1106_v49, 1.0  ;;  %v9653_v51 = vpop.f32.mrb[62].mxu0  ;;  %v11427_v49 = vcombine.high %v1886_v32, %v1890_v56 }
 0x18f   :  { %8826 = vmatmul.mubr.msk.bf16.gmra.mrb[64].mxu1 %vm85_vm0, %v10803_v30  ;;  %8874 = vmatmul.mubr.msk.bf16.gmra.mrb[96].mxu0 %vm85_vm0, %v10803_v30  ;;  %v8223_v54 = vsel %vm1153_vm11, 1.0, %v15438_v53  ;;  %vm1156_vm12 = vcmp.gt.f32.partialorder %v9653_v51, 1.0  ;;  %v1116_v48 = vpop.f32.mrb[63].mxu0 }
 0x190   :  { %8827 = vmatprep.mubr.msk.bf16.mxu1 %vm85_vm0, %v10822_v58  ;;  %8875 = vmatprep.mubr.msk.bf16.mxu0 %vm85_vm0, %v10822_v58  ;;  %v11247_v41 = vpack.c.bf16 %v8224_v9, %v8223_v54  ;;  %v8226_v57 = vsel %vm1156_vm12, 1.0, %v15438_v53  ;;  %vm1155_vm13 = vcmp.gt.f32.partialorder %v1116_v48, 1.0  ;;  %v11431_v48 = vcombine.low %v1886_v32, %v1890_v56 }
 0x191   :  { %v8225_v59 = vsel %vm1155_vm13, 1.0, %v15438_v53 }
 0x192   :  { %v11251_v62 = vpack.c.bf16 %v8226_v57, %v8225_v59  ;;  %15579 = vst [vmem:[#allocation10_spill] sm:$0xff] %v11431_v48 }
 0x194   :  { %15577 = vst [vmem:[#allocation8_spill] sm:$0xff] %v11251_v62 }
 0x197   :  { %8828 = vmatmul.mubr.msk.bf16.gmra.mrb[68].mxu1 %vm85_vm0, %v10822_v58  ;;  %8876 = vmatmul.mubr.msk.bf16.gmra.mrb[100].mxu0 %vm85_vm0, %v10822_v58 }
 0x198   :  { %8829 = vmatprep.mubr.msk.bf16.mxu1 %vm85_vm0, %v10839_v13  ;;  %8877 = vmatprep.mubr.msk.bf16.mxu0 %vm85_vm0, %v10839_v13 }
 0x19f   :  { %8830 = vmatmul.mubr.msk.bf16.gmra.mrb[72].mxu1 %vm85_vm0, %v10839_v13  ;;  %8878 = vmatmul.mubr.msk.bf16.gmra.mrb[104].mxu0 %vm85_vm0, %v10839_v13 }
 0x1a0   :  { %8831 = vmatprep.mubr.msk.bf16.mxu1 %vm85_vm0, %v10847_v25  ;;  %8879 = vmatprep.mubr.msk.bf16.mxu0 %vm85_vm0, %v10847_v25 }
 0x1a7   :  { %8832 = vmatmul.mubr.msk.bf16.gmra.mrb[76].mxu1 %vm85_vm0, %v10847_v25  ;;  %8880 = vmatmul.mubr.msk.bf16.gmra.mrb[108].mxu0 %vm85_vm0, %v10847_v25 }
 0x1a8   :  { %8833 = vmatprep.mubr.msk.bf16.mxu1 %vm85_vm0, %v10869_v44  ;;  %8881 = vmatprep.mubr.msk.bf16.mxu0 %vm85_vm0, %v10869_v44 }
 0x1af   :  { %8834 = vmatmul.mubr.msk.bf16.gmra.mrb[80].mxu1 %vm85_vm0, %v10869_v44  ;;  %8882 = vmatmul.mubr.msk.bf16.gmra.mrb[112].mxu0 %vm85_vm0, %v10869_v44 }
 0x1b0   :  { %8835 = vmatprep.mubr.msk.bf16.mxu1 %vm85_vm0, %v10893_v12  ;;  %8883 = vmatprep.mubr.msk.bf16.mxu0 %vm85_vm0, %v10893_v12 }
 0x1b7   :  { %8836 = vmatmul.mubr.msk.bf16.gmra.mrb[84].mxu1 %vm85_vm0, %v10893_v12  ;;  %8884 = vmatmul.mubr.msk.bf16.gmra.mrb[116].mxu0 %vm85_vm0, %v10893_v12 }
 0x1b8   :  { %8837 = vmatprep.mubr.msk.bf16.mxu1 %vm85_vm0, %v10917_v39  ;;  %8885 = vmatprep.mubr.msk.bf16.mxu0 %vm85_vm0, %v10917_v39 }
 0x1bf   :  { %8838 = vmatmul.mubr.msk.bf16.gmra.mrb[88].mxu1 %vm85_vm0, %v10917_v39  ;;  %8886 = vmatmul.mubr.msk.bf16.gmra.mrb[120].mxu0 %vm85_vm0, %v10917_v39 }
 0x1c0   :  { %8839 = vmatprep.mubr.msk.bf16.mxu1 %vm85_vm0, %v10935_v63  ;;  %8887 = vmatprep.mubr.msk.bf16.mxu0 %vm85_vm0, %v10935_v63 }
 0x1c7   :  { %8840 = vmatmul.mubr.msk.bf16.gmra.mrb[92].mxu1 %vm85_vm0, %v10935_v63  ;;  %8888 = vmatmul.mubr.msk.bf16.gmra.mrb[124].mxu0 %vm85_vm0, %v10935_v63 }
 0x1c8   :  { %8905 = vmatprep.mubr.msk.bf16.mxu1 %vm85_vm0, %v10665_v16  ;;  %8953 = vmatprep.mubr.msk.bf16.mxu0 %vm85_vm0, %v10665_v16 }
 0x1cf   :  { %8906 = vmatmul.mubr.msk.bf16.vlgmr.msra.gmra.mrb[96].mxu1 %vm85_vm0, %v10665_v16  ;;  %8954 = vmatmul.mubr.msk.bf16.vlgmr.msra.gmra.mrb[128].mxu0 %vm85_vm0, %v10665_v16  ;;  %v1877_v16 = vld [vmem:[%s15435_s12] sm:$0xff] }
 0x1d0   :  { %8907 = vmatprep.mubr.msk.bf16.mxu1 %vm85_vm0, %v10677_v26  ;;  %8955 = vmatprep.mubr.msk.bf16.mxu0 %vm85_vm0, %v10677_v26 }
 0x1d7   :  { %8908 = vmatmul.mubr.msk.bf16.gmra.mrb[100].mxu1 %vm85_vm0, %v10677_v26  ;;  %8956 = vmatmul.mubr.msk.bf16.gmra.mrb[132].mxu0 %vm85_vm0, %v10677_v26  ;;  %v1881_v26 = vld [vmem:[%s15435_s12 + $0x20] sm:$0xff] }
 0x1d8   :  { %8909 = vmatprep.mubr.msk.bf16.mxu1 %vm85_vm0, %v10685_v36  ;;  %8957 = vmatprep.mubr.msk.bf16.mxu0 %vm85_vm0, %v10685_v36  ;;  %v11397_v4 = vcombine.low %v1877_v16, %v1881_v26 }
 0x1df   :  { %8910 = vmatmul.mubr.msk.bf16.gmra.mrb[104].mxu1 %vm85_vm0, %v10685_v36  ;;  %8958 = vmatmul.mubr.msk.bf16.gmra.mrb[136].mxu0 %vm85_vm0, %v10685_v36  ;;  %v1878_v36 = vld [vmem:[%s15435_s12 + $0x8] sm:$0xff] }
 0x1e0   :  { %8911 = vmatprep.mubr.msk.bf16.mxu1 %vm85_vm0, %v10693_v46  ;;  %8959 = vmatprep.mubr.msk.bf16.mxu0 %vm85_vm0, %v10693_v46 }
 0x1e7   :  { %8912 = vmatmul.mubr.msk.bf16.gmra.mrb[108].mxu1 %vm85_vm0, %v10693_v46  ;;  %8960 = vmatmul.mubr.msk.bf16.gmra.mrb[140].mxu0 %vm85_vm0, %v10693_v46  ;;  %v1882_v46 = vld [vmem:[%s15435_s12 + $0x28] sm:$0xff] }
 0x1e8   :  { %8913 = vmatprep.mubr.msk.bf16.mxu1 %vm85_vm0, %v10707_v60  ;;  %8961 = vmatprep.mubr.msk.bf16.mxu0 %vm85_vm0, %v10707_v60  ;;  %v11395_v2 = vcombine.high %v1878_v36, %v1882_v46  ;;  %v11399_v8 = vcombine.low %v1878_v36, %v1882_v46 }
 0x1ef   :  { %8914 = vmatmul.mubr.msk.bf16.gmra.mrb[112].mxu1 %vm85_vm0, %v10707_v60  ;;  %8962 = vmatmul.mubr.msk.bf16.gmra.mrb[144].mxu0 %vm85_vm0, %v10707_v60 }
 0x1f0   :  { %8915 = vmatprep.mubr.msk.bf16.mxu1 %vm85_vm0, %v10723_v14  ;;  %8963 = vmatprep.mubr.msk.bf16.mxu0 %vm85_vm0, %v10723_v14 }
 0x1f7   :  { %8916 = vmatmul.mubr.msk.bf16.gmra.mrb[116].mxu1 %vm85_vm0, %v10723_v14  ;;  %8964 = vmatmul.mubr.msk.bf16.gmra.mrb[148].mxu0 %vm85_vm0, %v10723_v14 }
 0x1f8   :  { %8917 = vmatprep.mubr.msk.bf16.mxu1 %vm85_vm0, %v10761_v47  ;;  %8965 = vmatprep.mubr.msk.bf16.mxu0 %vm85_vm0, %v10761_v47 }
 0x1ff   :  { %8918 = vmatmul.mubr.msk.bf16.gmra.mrb[120].mxu1 %vm85_vm0, %v10761_v47  ;;  %8966 = vmatmul.mubr.msk.bf16.gmra.mrb[152].mxu0 %vm85_vm0, %v10761_v47 }
 0x200   :  { %8919 = vmatprep.mubr.msk.bf16.mxu1 %vm85_vm0, %v10785_v10  ;;  %8967 = vmatprep.mubr.msk.bf16.mxu0 %vm85_vm0, %v10785_v10 }
 0x207   :  { %8920 = vmatmul.mubr.msk.bf16.gmra.mrb[124].mxu1 %vm85_vm0, %v10785_v10  ;;  %8968 = vmatmul.mubr.msk.bf16.gmra.mrb[156].mxu0 %vm85_vm0, %v10785_v10 }
 0x208   :  { %8921 = vmatprep.mubr.msk.bf16.mxu1 %vm85_vm0, %v10803_v30  ;;  %8969 = vmatprep.mubr.msk.bf16.mxu0 %vm85_vm0, %v10803_v30 }
 0x20f   :  { %8922 = vmatmul.mubr.msk.bf16.gmra.mrb[128].mxu1 %vm85_vm0, %v10803_v30  ;;  %8970 = vmatmul.mubr.msk.bf16.gmra.mrb[160].mxu0 %vm85_vm0, %v10803_v30 }
 0x210   :  { %8923 = vmatprep.mubr.msk.bf16.mxu1 %vm85_vm0, %v10822_v58  ;;  %8971 = vmatprep.mubr.msk.bf16.mxu0 %vm85_vm0, %v10822_v58 }
 0x217   :  { %8924 = vmatmul.mubr.msk.bf16.gmra.mrb[132].mxu1 %vm85_vm0, %v10822_v58  ;;  %8972 = vmatmul.mubr.msk.bf16.gmra.mrb[164].mxu0 %vm85_vm0, %v10822_v58 }
 0x218   :  { %8925 = vmatprep.mubr.msk.bf16.mxu1 %vm85_vm0, %v10839_v13  ;;  %8973 = vmatprep.mubr.msk.bf16.mxu0 %vm85_vm0, %v10839_v13 }
 0x21f   :  { %8926 = vmatmul.mubr.msk.bf16.gmra.mrb[136].mxu1 %vm85_vm0, %v10839_v13  ;;  %8974 = vmatmul.mubr.msk.bf16.gmra.mrb[168].mxu0 %vm85_vm0, %v10839_v13  ;;  %v11393_v13 = vcombine.high %v1877_v16, %v1881_v26 }
 0x220   :  { %8927 = vmatprep.mubr.msk.bf16.mxu1 %vm85_vm0, %v10847_v25  ;;  %8975 = vmatprep.mubr.msk.bf16.mxu0 %vm85_vm0, %v10847_v25 }
 0x222   :  { %v2279_v60 = vpop.f32.mrb[32].mxu1  ;;  %v2472_v14 = vpop.f32.mrb[64].mxu0 }
 0x223   :  { %v2281_v47 = vpop.f32.mrb[33].mxu1  ;;  %v2474_v10 = vpop.f32.mrb[65].mxu0 }
 0x224   :  { %v2283_v30 = vpop.f32.mrb[34].mxu1  ;;  %v2476_v58 = vpop.f32.mrb[66].mxu0 }
 0x225   :  { %v3017_v1 = vpack.c.bf16 %v2283_v30, %v2279_v60  ;;  %v3019_v5 = vpack.c.bf16 %v2476_v58, %v2472_v14  ;;  %v2285_v6 = vpop.f32.mrb[35].mxu1  ;;  %v2478_v15 = vpop.f32.mrb[67].mxu0  ;;  %v1893_v60 = vld [vmem:[%s15435_s12 + $0x80] sm:$0xff]  ;;  %v1898_v30 = vld [vmem:[%s15435_s12 + $0xa8] sm:$0xff] }
 0x226   :  { %v3018_v18 = vpack.c.bf16 %v2285_v6, %v2281_v47  ;;  %v3020_v11 = vpack.c.bf16 %v2478_v15, %v2474_v10  ;;  %v1894_v10 = vld [vmem:[%s15435_s12 + $0x88] sm:$0xff] }
 0x227   :  { %8928 = vmatmul.mubr.msk.bf16.gmra.mrb[140].mxu1 %vm85_vm0, %v10847_v25  ;;  %8976 = vmatmul.mubr.msk.bf16.gmra.mrb[172].mxu0 %vm85_vm0, %v10847_v25  ;;  %v3785_v7 = vmul.bf16 %v11397_v4, %v3017_v1  ;;  %v3787_v29 = vmul.bf16 %v11399_v8, %v3019_v5  ;;  %v1889_v25 = vld [vmem:[%s15435_s12 + $0x60] sm:$0xff] }
 0x228   :  { %8929 = vmatprep.mubr.msk.bf16.mxu1 %vm85_vm0, %v10869_v44  ;;  %8977 = vmatprep.mubr.msk.bf16.mxu0 %vm85_vm0, %v10869_v44  ;;  %v3786_v20 = vmul.bf16 %v11393_v13, %v3018_v18  ;;  %v3788_v23 = vmul.bf16 %v11395_v2, %v3020_v11  ;;  %v11425_v31 = vcombine.high %v1885_v28, %v1889_v25 }
 0x229   :  { %v11429_v51 = vcombine.low %v1885_v28, %v1889_v25 }
 0x22a   :  { %v2289_v33 = vpop.f32.mrb[36].mxu1  ;;  %v2482_v34 = vpop.f32.mrb[68].mxu0  ;;  %3925 = vmatprep.subr.bf16.mxu1 %v3786_v20  ;;  %3968 = vmatprep.subr.bf16.mxu0 %v3788_v23  ;;  %v11459_v20 = vcombine.high %v1894_v10, %v1898_v30 }
 0x22b   :  { %v2291_v45 = vpop.f32.mrb[37].mxu1  ;;  %v2484_v27 = vpop.f32.mrb[69].mxu0  ;;  %3926 = vmatpush1.bf16.msra.mxu1 %v3785_v7  ;;  %3969 = vmatpush1.bf16.msra.mxu0 %v3787_v29  ;;  %15578 = vst [vmem:[#allocation9_spill] sm:$0xff] %v11429_v51  ;;  %v11463_v29 = vcombine.low %v1894_v10, %v1898_v30 }
 0x22c   :  { %v2293_v40 = vpop.f32.mrb[38].mxu1  ;;  %v2486_v43 = vpop.f32.mrb[70].mxu0  ;;  %15581 = vst [vmem:[#allocation12_spill] sm:$0xff] %v11459_v20 }
 0x22d   :  { %v3025_v9 = vpack.c.bf16 %v2293_v40, %v2289_v33  ;;  %v3027_v54 = vpack.c.bf16 %v2486_v43, %v2482_v34  ;;  %v2295_v57 = vpop.f32.mrb[39].mxu1  ;;  %v2488_v59 = vpop.f32.mrb[71].mxu0  ;;  %15583 = vst [vmem:[#allocation14_spill] sm:$0xff] %v11463_v29 }
 0x22e   :  { %v3026_v16 = vpack.c.bf16 %v2295_v57, %v2291_v45  ;;  %v3028_v26 = vpack.c.bf16 %v2488_v59, %v2484_v27  ;;  %v1901_v27 = vld [vmem:[%s15435_s12 + $0xc0] sm:$0xff] }
 0x22f   :  { %8930 = vmatmul.mubr.msk.bf16.gmra.mrb[144].mxu1 %vm85_vm0, %v10869_v44  ;;  %8978 = vmatmul.mubr.msk.bf16.gmra.mrb[176].mxu0 %vm85_vm0, %v10869_v44  ;;  %v3793_v14 = vmul.bf16 %v11429_v51, %v3025_v9  ;;  %v3795_v47 = vmul.bf16 %v11431_v48, %v3027_v54  ;;  %v1897_v44 = vld [vmem:[%s15435_s12 + $0xa0] sm:$0xff]  ;;  %v1902_v9 = vld [vmem:[%s15435_s12 + $0xc8] sm:$0xff]  ;;  %v4124_v51 = vld [vmem:[%s15434_s11 + $0x98] sm:$0xff] }
 0x230   :  { %8931 = vmatprep.mubr.msk.bf16.mxu1 %vm85_vm0, %v10893_v12  ;;  %8979 = vmatprep.mubr.msk.bf16.mxu0 %vm85_vm0, %v10893_v12  ;;  %v3794_v36 = vmul.bf16 %v11425_v31, %v3026_v16  ;;  %v3796_v46 = vmul.bf16 %v11427_v49, %v3028_v26  ;;  %v11457_v11 = vcombine.high %v1893_v60, %v1897_v44  ;;  %v1906_v54 = vld [vmem:[%s15435_s12 + $0xe8] sm:$0xff] }
 0x231   :  { %v11461_v28 = vcombine.low %v1893_v60, %v1897_v44  ;;  %v11495_v30 = vcombine.low %v1902_v9, %v1906_v54 }
 0x232   :  { %v2299_v58 = vpop.f32.mrb[40].mxu1  ;;  %v2492_v1 = vpop.f32.mrb[72].mxu0  ;;  %3927 = vmatprep.subr.bf16.mxu1 %v3794_v36  ;;  %3970 = vmatprep.subr.bf16.mxu0 %v3796_v46  ;;  %15580 = vst [vmem:[#allocation11_spill] sm:$0xff] %v11457_v11 }
 0x233   :  { %v2301_v5 = vpop.f32.mrb[41].mxu1  ;;  %v2494_v6 = vpop.f32.mrb[73].mxu0  ;;  %3928 = vmatpush1.bf16.msra.mxu1 %v3793_v14  ;;  %3971 = vmatpush1.bf16.msra.mxu0 %v3795_v47  ;;  %15582 = vst [vmem:[#allocation13_spill] sm:$0xff] %v11461_v28  ;;  %v11491_v14 = vcombine.high %v1902_v9, %v1906_v54  ;;  %15587 = vst [vmem:[#allocation18_spill] sm:$0xff] %v11495_v30  ;;  %v11528_v54 = vld [vmem:[%s15433_s10 + $0x4] ss:$8 sps:$4 sm:$0xff]  }
 0x234   :  { %v2303_v15 = vpop.f32.mrb[42].mxu1  ;;  %v2496_v18 = vpop.f32.mrb[74].mxu0 }
 0x235   :  { %v3033_v23 = vpack.c.bf16 %v2303_v15, %v2299_v58  ;;  %v3035_v7 = vpack.c.bf16 %v2496_v18, %v2492_v1  ;;  %v2305_v25 = vpop.f32.mrb[43].mxu1  ;;  %v2498_v32 = vpop.f32.mrb[75].mxu0  ;;  %15585 = vst [vmem:[#allocation16_spill] sm:$0xff] %v11491_v14 }
 0x236   :  { %v3034_v56 = vpack.c.bf16 %v2305_v25, %v2301_v5  ;;  %v3036_v33 = vpack.c.bf16 %v2498_v32, %v2494_v6  ;;  %v1910_v32 = vld [vmem:[%s15435_s12 + $0x108] sm:$0xff] }
 0x237   :  { %8932 = vmatmul.mubr.msk.bf16.gmra.mrb[148].mxu1 %vm85_vm0, %v10893_v12  ;;  %8980 = vmatmul.mubr.msk.bf16.gmra.mrb[180].mxu0 %vm85_vm0, %v10893_v12  ;;  %v3801_v40 = vmul.bf16 %v11461_v28, %v3033_v23  ;;  %v3803_v43 = vmul.bf16 %v11463_v29, %v3035_v7  ;;  %v1905_v12 = vld [vmem:[%s15435_s12 + $0xe0] sm:$0xff] }
 0x238   :  { %8933 = vmatprep.mubr.msk.bf16.mxu1 %vm85_vm0, %v10917_v39  ;;  %8981 = vmatprep.mubr.msk.bf16.mxu0 %vm85_vm0, %v10917_v39  ;;  %v3802_v34 = vmul.bf16 %v11457_v11, %v3034_v56  ;;  %v3804_v45 = vmul.bf16 %v11459_v20, %v3036_v33  ;;  %v11489_v60 = vcombine.high %v1901_v27, %v1905_v12  ;;  %v1909_v23 = vld [vmem:[%s15435_s12 + $0x100] sm:$0xff]  ;;  %v1914_v56 = vld [vmem:[%s15435_s12 + $0x128] sm:$0xff] }
 0x239   :  { %v11493_v44 = vcombine.low %v1901_v27, %v1905_v12  ;;  %v11523_v9 = vcombine.high %v1910_v32, %v1914_v56 }
 0x23a   :  { %v2309_v57 = vpop.f32.mrb[44].mxu1  ;;  %v2502_v59 = vpop.f32.mrb[76].mxu0  ;;  %3929 = vmatprep.subr.bf16.mxu1 %v3802_v34  ;;  %3972 = vmatprep.subr.bf16.mxu0 %v3804_v45  ;;  %15584 = vst [vmem:[#allocation15_spill] sm:$0xff] %v11489_v60 }
 0x23b   :  { %v2311_v16 = vpop.f32.mrb[45].mxu1  ;;  %v2504_v26 = vpop.f32.mrb[77].mxu0  ;;  %3930 = vmatpush1.bf16.msra.mxu1 %v3801_v40  ;;  %3973 = vmatpush1.bf16.msra.mxu0 %v3803_v43  ;;  %15586 = vst [vmem:[#allocation17_spill] sm:$0xff] %v11493_v44  ;;  %15589 = vst [vmem:[#allocation20_spill] sm:$0xff] %v11523_v9 }
 0x23c   :  { %v2313_v36 = vpop.f32.mrb[46].mxu1  ;;  %v2506_v46 = vpop.f32.mrb[78].mxu0 }
 0x23d   :  { %v3041_v47 = vpack.c.bf16 %v2313_v36, %v2309_v57  ;;  %v3043_v10 = vpack.c.bf16 %v2506_v46, %v2502_v59  ;;  %v2315_v58 = vpop.f32.mrb[47].mxu1  ;;  %v2508_v1 = vpop.f32.mrb[79].mxu0 }
 0x23e   :  { %v3042_v5 = vpack.c.bf16 %v2315_v58, %v2311_v16  ;;  %v3044_v6 = vpack.c.bf16 %v2508_v1, %v2504_v26  ;;  %v11532_v26 = vcombine.low %v1910_v32, %v1914_v56 }
 0x23f   :  { %8934 = vmatmul.mubr.msk.bf16.gmra.mrb[152].mxu1 %vm85_vm0, %v10917_v39  ;;  %8982 = vmatmul.mubr.msk.bf16.gmra.mrb[184].mxu0 %vm85_vm0, %v10917_v39  ;;  %v3809_v7 = vmul.bf16 %v11493_v44, %v3041_v47  ;;  %v3811_v25 = vmul.bf16 %v11495_v30, %v3043_v10  ;;  %v1913_v39 = vld [vmem:[%s15435_s12 + $0x120] sm:$0xff] }
 0x240   :  { %8935 = vmatprep.mubr.msk.bf16.mxu1 %vm85_vm0, %v10935_v63  ;;  %8983 = vmatprep.mubr.msk.bf16.mxu0 %vm85_vm0, %v10935_v63  ;;  %v3810_v15 = vmul.bf16 %v11489_v60, %v3042_v5  ;;  %v3812_v18 = vmul.bf16 %v11491_v14, %v3044_v6  ;;  %v11521_v12 = vcombine.high %v1909_v23, %v1913_v39  ;;  %v1917_v5 = vld [vmem:[%s15435_s12 + $0x140] sm:$0xff] }
 0x241   :  { %v11530_v59 = vcombine.low %v1909_v23, %v1913_v39  ;;  %15591 = vst [vmem:[#allocation22_spill] sm:$0xff] %v11532_v26  ;;  %v1922_v23 = vld [vmem:[%s15435_s12 + $0x168] sm:$0xff] }
 0x242   :  { %v2319_v33 = vpop.f32.mrb[48].mxu1  ;;  %v2512_v34 = vpop.f32.mrb[80].mxu0  ;;  %3931 = vmatprep.subr.bf16.mxu1 %v3810_v15  ;;  %3974 = vmatprep.subr.bf16.mxu0 %v3812_v18  ;;  %15588 = vst [vmem:[#allocation19_spill] sm:$0xff] %v11521_v12  ;;  %v1918_v18 = vld [vmem:[%s15435_s12 + $0x148] sm:$0xff] }
 0x243   :  { %v2321_v45 = vpop.f32.mrb[49].mxu1  ;;  %v2514_v27 = vpop.f32.mrb[81].mxu0  ;;  %3932 = vmatpush1.bf16.msra.mxu1 %v3809_v7  ;;  %3975 = vmatpush1.bf16.msra.mxu0 %v3811_v25  ;;  %15590 = vst [vmem:[#allocation21_spill] sm:$0xff] %v11530_v59 }
 0x244   :  { %v2323_v40 = vpop.f32.mrb[50].mxu1  ;;  %v2516_v43 = vpop.f32.mrb[82].mxu0 }
 0x245   :  { %v3049_v57 = vpack.c.bf16 %v2323_v40, %v2319_v33  ;;  %v3051_v16 = vpack.c.bf16 %v2516_v43, %v2512_v34  ;;  %v2325_v36 = vpop.f32.mrb[51].mxu1  ;;  %v2518_v46 = vpop.f32.mrb[83].mxu0 }
 0x246   :  { %v3050_v47 = vpack.c.bf16 %v2325_v36, %v2321_v45  ;;  %v3052_v10 = vpack.c.bf16 %v2518_v46, %v2514_v27  ;;  %v11558_v45 = vcombine.high %v1918_v18, %v1922_v23 }
 0x247   :  { %8936 = vmatmul.mubr.msk.bf16.gmra.mrb[156].mxu1 %vm85_vm0, %v10935_v63  ;;  %8984 = vmatmul.mubr.msk.bf16.gmra.mrb[188].mxu0 %vm85_vm0, %v10935_v63  ;;  %v3817_v6 = vmul.bf16 %v11530_v59, %v3049_v57  ;;  %v3819_v15 = vmul.bf16 %v11532_v26, %v3051_v16  ;;  %v1921_v63 = vld [vmem:[%s15435_s12 + $0x160] sm:$0xff]  ;;  %v11562_v57 = vcombine.low %v1918_v18, %v1922_v23  ;;  %v1930_v18 = vld [vmem:[%s15435_s12 + $0x1a8] sm:$0xff]  ;;  %v4112_v26 = vld [vmem:[%s15434_s11 + $0x38] sm:$0xff] }
 0x248   :  { %v3818_v58 = vmul.bf16 %v11521_v12, %v3050_v47  ;;  %v3820_v1 = vmul.bf16 %v11523_v9, %v3052_v10  ;;  %3957 = vmatprep.mubr.bf16.mxu1 %v11528_v54  ;;  %4000 = vmatprep.mubr.bf16.mxu0 %v11528_v54  ;;  %v11556_v34 = vcombine.high %v1917_v5, %v1921_v63 }
 0x249   :  { %15593 = vst [vmem:[#allocation24_spill] sm:$0xff] %v11558_v45  ;;  %v11560_v40 = vcombine.low %v1917_v5, %v1921_v63  ;;  %15595 = vst [vmem:[#allocation26_spill] sm:$0xff] %v11562_v57  ;;  %v1926_v63 = vld [vmem:[%s15435_s12 + $0x188] sm:$0xff] }
 0x24a   :  { %v2329_v7 = vpop.f32.mrb[52].mxu1  ;;  %v2522_v25 = vpop.f32.mrb[84].mxu0  ;;  %3933 = vmatprep.subr.bf16.mxu1 %v3818_v58  ;;  %3976 = vmatprep.subr.bf16.mxu0 %v3820_v1  ;;  %15592 = vst [vmem:[#allocation23_spill] sm:$0xff] %v11556_v34  ;;  %v1925_v1 = vld [vmem:[%s15435_s12 + $0x180] sm:$0xff] }
 0x24b   :  { %v2331_v39 = vpop.f32.mrb[53].mxu1  ;;  %v2524_v32 = vpop.f32.mrb[85].mxu0  ;;  %3934 = vmatpush1.bf16.msra.mxu1 %v3817_v6  ;;  %3977 = vmatpush1.bf16.msra.mxu0 %v3819_v15  ;;  %15594 = vst [vmem:[#allocation25_spill] sm:$0xff] %v11560_v40  ;;  %v1929_v15 = vld [vmem:[%s15435_s12 + $0x1a0] sm:$0xff] }
 0x24c   :  { %v2333_v56 = vpop.f32.mrb[54].mxu1  ;;  %v2526_v33 = vpop.f32.mrb[86].mxu0 }
 0x24d   :  { %v3057_v27 = vpack.c.bf16 %v2333_v56, %v2329_v7  ;;  %v3059_v43 = vpack.c.bf16 %v2526_v33, %v2522_v25  ;;  %v2335_v16 = vpop.f32.mrb[55].mxu1  ;;  %v2528_v36 = vpop.f32.mrb[87].mxu0  ;;  %v11580_v33 = vcombine.high %v1925_v1, %v1929_v15 }
 0x24e   :  { %v3058_v46 = vpack.c.bf16 %v2335_v16, %v2331_v39  ;;  %v3060_v47 = vpack.c.bf16 %v2528_v36, %v2524_v32  ;;  %v11584_v16 = vcombine.low %v1925_v1, %v1929_v15  ;;  %v1937_v15 = vld [vmem:[%s15435_s12 + $0x1e0] sm:$0xff] }
 0x24f   :  { %v3825_v6 = vmul.bf16 %v11560_v40, %v3057_v27  ;;  %v3827_v5 = vmul.bf16 %v11562_v57, %v3059_v43  ;;  %15596 = vst [vmem:[#allocation27_spill] sm:$0xff] %v11580_v33  ;;  %v11582_v27 = vcombine.high %v1926_v63, %v1930_v18 }
 0x250   :  { %v3826_v10 = vmul.bf16 %v11556_v34, %v3058_v46  ;;  %v3828_v58 = vmul.bf16 %v11558_v45, %v3060_v47  ;;  %15598 = vst [vmem:[#allocation29_spill] sm:$0xff] %v11584_v16  ;;  %v11586_v46 = vcombine.low %v1926_v63, %v1930_v18  ;;  %v1938_v63 = vld [vmem:[%s15435_s12 + $0x1e8] sm:$0xff]  ;;  %v4108_v45 = vld [vmem:[%s15434_s11 + $0x18] sm:$0xff] }
 0x251   :  { %15597 = vst [vmem:[#allocation28_spill] sm:$0xff] %v11582_v27 }
 0x252   :  { %v2339_v23 = vpop.f32.mrb[56].mxu1  ;;  %v2532_v7 = vpop.f32.mrb[88].mxu0  ;;  %3935 = vmatprep.subr.bf16.mxu1 %v3826_v10  ;;  %3978 = vmatprep.subr.bf16.mxu0 %v3828_v58  ;;  %15599 = vst [vmem:[#allocation30_spill] sm:$0xff] %v11586_v46 }
 0x253   :  { %v2341_v25 = vpop.f32.mrb[57].mxu1  ;;  %v2534_v39 = vpop.f32.mrb[89].mxu0  ;;  %3936 = vmatpush1.bf16.msra.mxu1 %v3825_v6  ;;  %3979 = vmatpush1.bf16.msra.mxu0 %v3827_v5  ;;  %v1933_v5 = vld [vmem:[%s15435_s12 + $0x1c0] sm:$0xff] }
 0x254   :  { %v2343_v32 = vpop.f32.mrb[58].mxu1  ;;  %v2536_v56 = vpop.f32.mrb[90].mxu0 }
 0x255   :  { %v3065_v43 = vpack.c.bf16 %v2343_v32, %v2339_v23  ;;  %v3067_v36 = vpack.c.bf16 %v2536_v56, %v2532_v7  ;;  %v2345_v47 = vpop.f32.mrb[59].mxu1  ;;  %v2538_v53 = vpop.f32.mrb[91].mxu0  ;;  %v11604_v56 = vcombine.high %v1933_v5, %v1937_v15 }
 0x256   :  { %v3066_v10 = vpack.c.bf16 %v2345_v47, %v2341_v25  ;;  %v3068_v58 = vpack.c.bf16 %v2538_v53, %v2534_v39  ;;  %v1934_v53 = vld [vmem:[%s15435_s12 + $0x1c8] sm:$0xff]  ;;  %v11608_v47 = vcombine.low %v1933_v5, %v1937_v15  ;;  %v1945_v15 = vld [vmem:[%s15435_s12 + $0x220] sm:$0xff] }
 0x257   :  { %v3833_v57 = vmul.bf16 %v11584_v16, %v3065_v43  ;;  %v3835_v1 = vmul.bf16 %v11586_v46, %v3067_v36  ;;  %15600 = vst [vmem:[#allocation31_spill] sm:$0xff] %v11604_v56  ;;  %v11606_v43 = vcombine.high %v1934_v53, %v1938_v63 }
 0x258   :  { %v3834_v3 = vmul.bf16 %v11580_v33, %v3066_v10  ;;  %v3836_v6 = vmul.bf16 %v11582_v27, %v3068_v58  ;;  %15602 = vst [vmem:[#allocation33_spill] sm:$0xff] %v11608_v47  ;;  %v11610_v58 = vcombine.low %v1934_v53, %v1938_v63 }
 0x259   :  { %15601 = vst [vmem:[#allocation32_spill] sm:$0xff] %v11606_v43 }
 0x25a   :  { %v2349_v18 = vpop.f32.mrb[60].mxu1  ;;  %v2542_v23 = vpop.f32.mrb[92].mxu0  ;;  %3937 = vmatprep.subr.bf16.mxu1 %v3834_v3  ;;  %3980 = vmatprep.subr.bf16.mxu0 %v3836_v6  ;;  %15603 = vst [vmem:[#allocation34_spill] sm:$0xff] %v11610_v58 }
 0x25b   :  { %v2351_v7 = vpop.f32.mrb[61].mxu1  ;;  %v2544_v25 = vpop.f32.mrb[93].mxu0  ;;  %3938 = vmatpush1.bf16.msra.mxu1 %v3833_v57  ;;  %3981 = vmatpush1.bf16.msra.mxu0 %v3835_v1  ;;  %v1941_v1 = vld [vmem:[%s15435_s12 + $0x200] sm:$0xff] }
 0x25c   :  { %v2353_v39 = vpop.f32.mrb[62].mxu1  ;;  %v2546_v32 = vpop.f32.mrb[94].mxu0 }
 0x25d   :  { %v3073_v36 = vpack.c.bf16 %v2353_v39, %v2349_v18  ;;  %v3075_v10 = vpack.c.bf16 %v2546_v32, %v2542_v23  ;;  %v2355_v46 = vpop.f32.mrb[63].mxu1  ;;  %v2548_v16 = vpop.f32.mrb[95].mxu0  ;;  %v11628_v39 = vcombine.high %v1941_v1, %v1945_v15 }
 0x25e   :  { %v3074_v3 = vpack.c.bf16 %v2355_v46, %v2351_v7  ;;  %v3076_v6 = vpack.c.bf16 %v2548_v16, %v2544_v25  ;;  %v1942_v16 = vld [vmem:[%s15435_s12 + $0x208] sm:$0xff] }
 0x25f   :  { %v3841_v27 = vmul.bf16 %v11608_v47, %v3073_v36  ;;  %v3843_v5 = vmul.bf16 %v11610_v58, %v3075_v10  ;;  %v1946_v46 = vld [vmem:[%s15435_s12 + $0x228] sm:$0xff]  ;;  %15604 = vst [vmem:[#allocation35_spill] sm:$0xff] %v11628_v39  ;;  %v11632_v10 = vcombine.low %v1941_v1, %v1945_v15  ;;  %v1953_v15 = vld [vmem:[%s15435_s12 + $0x260] sm:$0xff] }
 0x260   :  { %v3842_v33 = vmul.bf16 %v11604_v56, %v3074_v3  ;;  %v3844_v57 = vmul.bf16 %v11606_v43, %v3076_v6  ;;  %v11630_v32 = vcombine.high %v1942_v16, %v1946_v46  ;;  %v11634_v6 = vcombine.low %v1942_v16, %v1946_v46 }
 0x261   :  { %15606 = vst [vmem:[#allocation37_spill] sm:$0xff] %v11632_v10 }
 0x262   :  { %v2359_v53 = vpop.f32.mrb[64].mxu1  ;;  %v2552_v63 = vpop.f32.mrb[96].mxu0  ;;  %3939 = vmatprep.subr.bf16.mxu1 %v3842_v33  ;;  %3982 = vmatprep.subr.bf16.mxu0 %v3844_v57  ;;  %15605 = vst [vmem:[#allocation36_spill] sm:$0xff] %v11630_v32  ;;  %15607 = vst [vmem:[#allocation38_spill] sm:$0xff] %v11634_v6 }
 0x263   :  { %v2361_v18 = vpop.f32.mrb[65].mxu1  ;;  %v2554_v23 = vpop.f32.mrb[97].mxu0  ;;  %3940 = vmatpush1.bf16.msra.mxu1 %v3841_v27  ;;  %3983 = vmatpush1.bf16.msra.mxu0 %v3843_v5  ;;  %v1949_v5 = vld [vmem:[%s15435_s12 + $0x240] sm:$0xff] }
 0x264   :  { %v2363_v7 = vpop.f32.mrb[66].mxu1  ;;  %v2556_v25 = vpop.f32.mrb[98].mxu0 }
 0x265   :  { %v3081_v36 = vpack.c.bf16 %v2363_v7, %v2359_v53  ;;  %v3083_v3 = vpack.c.bf16 %v2556_v25, %v2552_v63  ;;  %v2365_v58 = vpop.f32.mrb[67].mxu1  ;;  %v2558_v47 = vpop.f32.mrb[99].mxu0  ;;  %v11652_v7 = vcombine.high %v1949_v5, %v1953_v15 }
 0x266   :  { %v3082_v33 = vpack.c.bf16 %v2365_v58, %v2361_v18  ;;  %v3084_v57 = vpack.c.bf16 %v2558_v47, %v2554_v23  ;;  %v1950_v47 = vld [vmem:[%s15435_s12 + $0x248] sm:$0xff] }
 0x267   :  { %v3849_v43 = vmul.bf16 %v11632_v10, %v3081_v36  ;;  %v3851_v1 = vmul.bf16 %v11634_v6, %v3083_v3  ;;  %v1954_v58 = vld [vmem:[%s15435_s12 + $0x268] sm:$0xff]  ;;  %15608 = vst [vmem:[#allocation39_spill] sm:$0xff] %v11652_v7  ;;  %v11656_v3 = vcombine.low %v1949_v5, %v1953_v15  ;;  %v1961_v15 = vld [vmem:[%s15435_s12 + $0x2a0] sm:$0xff] }
 0x268   :  { %v3850_v56 = vmul.bf16 %v11628_v39, %v3082_v33  ;;  %v3852_v27 = vmul.bf16 %v11630_v32, %v3084_v57  ;;  %v11654_v25 = vcombine.high %v1950_v47, %v1954_v58  ;;  %v11658_v57 = vcombine.low %v1950_v47, %v1954_v58 }
 0x269   :  { %15610 = vst [vmem:[#allocation41_spill] sm:$0xff] %v11656_v3 }
 0x26a   :  { %v2369_v16 = vpop.f32.mrb[68].mxu1  ;;  %v2562_v46 = vpop.f32.mrb[100].mxu0  ;;  %3941 = vmatprep.subr.bf16.mxu1 %v3850_v56  ;;  %3984 = vmatprep.subr.bf16.mxu0 %v3852_v27  ;;  %15609 = vst [vmem:[#allocation40_spill] sm:$0xff] %v11654_v25  ;;  %15611 = vst [vmem:[#allocation42_spill] sm:$0xff] %v11658_v57 }
 0x26b   :  { %v2371_v53 = vpop.f32.mrb[69].mxu1  ;;  %v2564_v63 = vpop.f32.mrb[101].mxu0  ;;  %3942 = vmatpush1.bf16.msra.mxu1 %v3849_v43  ;;  %3985 = vmatpush1.bf16.msra.mxu0 %v3851_v1  ;;  %v1957_v1 = vld [vmem:[%s15435_s12 + $0x280] sm:$0xff] }
 0x26c   :  { %v2373_v18 = vpop.f32.mrb[70].mxu1  ;;  %v2566_v23 = vpop.f32.mrb[102].mxu0 }
 0x26d   :  { %v3089_v36 = vpack.c.bf16 %v2373_v18, %v2369_v16  ;;  %v3091_v33 = vpack.c.bf16 %v2566_v23, %v2562_v46  ;;  %v2375_v6 = vpop.f32.mrb[71].mxu1  ;;  %v2568_v10 = vpop.f32.mrb[103].mxu0  ;;  %v11676_v18 = vcombine.high %v1957_v1, %v1961_v15 }
 0x26e   :  { %v3090_v56 = vpack.c.bf16 %v2375_v6, %v2371_v53  ;;  %v3092_v27 = vpack.c.bf16 %v2568_v10, %v2564_v63  ;;  %v1958_v10 = vld [vmem:[%s15435_s12 + $0x288] sm:$0xff] }
 0x26f   :  { %v3857_v39 = vmul.bf16 %v11656_v3, %v3089_v36  ;;  %v3859_v5 = vmul.bf16 %v11658_v57, %v3091_v33  ;;  %v1962_v6 = vld [vmem:[%s15435_s12 + $0x2a8] sm:$0xff]  ;;  %15612 = vst [vmem:[#allocation43_spill] sm:$0xff] %v11676_v18  ;;  %v11680_v33 = vcombine.low %v1957_v1, %v1961_v15  ;;  %v1969_v15 = vld [vmem:[%s15435_s12 + $0x2e0] sm:$0xff] }
 0x270   :  { %v3858_v32 = vmul.bf16 %v11652_v7, %v3090_v56  ;;  %v3860_v43 = vmul.bf16 %v11654_v25, %v3092_v27  ;;  %v11678_v23 = vcombine.high %v1958_v10, %v1962_v6  ;;  %v11682_v27 = vcombine.low %v1958_v10, %v1962_v6 }
 0x271   :  { %15614 = vst [vmem:[#allocation45_spill] sm:$0xff] %v11680_v33 }
 0x272   :  { %v2379_v47 = vpop.f32.mrb[72].mxu1  ;;  %v2572_v58 = vpop.f32.mrb[104].mxu0  ;;  %3943 = vmatprep.subr.bf16.mxu1 %v3858_v32  ;;  %3986 = vmatprep.subr.bf16.mxu0 %v3860_v43  ;;  %15613 = vst [vmem:[#allocation44_spill] sm:$0xff] %v11678_v23  ;;  %15615 = vst [vmem:[#allocation46_spill] sm:$0xff] %v11682_v27 }
 0x273   :  { %v2381_v16 = vpop.f32.mrb[73].mxu1  ;;  %v2574_v46 = vpop.f32.mrb[105].mxu0  ;;  %3944 = vmatpush1.bf16.msra.mxu1 %v3857_v39  ;;  %3987 = vmatpush1.bf16.msra.mxu0 %v3859_v5  ;;  %v1965_v5 = vld [vmem:[%s15435_s12 + $0x2c0] sm:$0xff] }
 0x274   :  { %v2383_v53 = vpop.f32.mrb[74].mxu1  ;;  %v2576_v63 = vpop.f32.mrb[106].mxu0 }
 0x275   :  { %v3097_v36 = vpack.c.bf16 %v2383_v53, %v2379_v47  ;;  %v3099_v56 = vpack.c.bf16 %v2576_v63, %v2572_v58  ;;  %v2385_v57 = vpop.f32.mrb[75].mxu1  ;;  %v2578_v3 = vpop.f32.mrb[107].mxu0  ;;  %v11700_v53 = vcombine.high %v1965_v5, %v1969_v15 }
 0x276   :  { %v3098_v32 = vpack.c.bf16 %v2385_v57, %v2381_v16  ;;  %v3100_v43 = vpack.c.bf16 %v2578_v3, %v2574_v46  ;;  %v1966_v3 = vld [vmem:[%s15435_s12 + $0x2c8] sm:$0xff] }
 0x277   :  { %v3865_v7 = vmul.bf16 %v11680_v33, %v3097_v36  ;;  %v3867_v1 = vmul.bf16 %v11682_v27, %v3099_v56  ;;  %v1970_v57 = vld [vmem:[%s15435_s12 + $0x2e8] sm:$0xff]  ;;  %15616 = vst [vmem:[#allocation47_spill] sm:$0xff] %v11700_v53  ;;  %v11704_v56 = vcombine.low %v1965_v5, %v1969_v15  ;;  %v1977_v15 = vld [vmem:[%s15435_s12 + $0x320] sm:$0xff] }
 0x278   :  { %v3866_v25 = vmul.bf16 %v11676_v18, %v3098_v32  ;;  %v3868_v39 = vmul.bf16 %v11678_v23, %v3100_v43  ;;  %v11702_v63 = vcombine.high %v1966_v3, %v1970_v57  ;;  %v11706_v43 = vcombine.low %v1966_v3, %v1970_v57 }
 0x279   :  { %15618 = vst [vmem:[#allocation49_spill] sm:$0xff] %v11704_v56 }
 0x27a   :  { %v2389_v10 = vpop.f32.mrb[76].mxu1  ;;  %v2582_v6 = vpop.f32.mrb[108].mxu0  ;;  %3945 = vmatprep.subr.bf16.mxu1 %v3866_v25  ;;  %3988 = vmatprep.subr.bf16.mxu0 %v3868_v39  ;;  %15617 = vst [vmem:[#allocation48_spill] sm:$0xff] %v11702_v63  ;;  %15619 = vst [vmem:[#allocation50_spill] sm:$0xff] %v11706_v43 }
 0x27b   :  { %v2391_v47 = vpop.f32.mrb[77].mxu1  ;;  %v2584_v58 = vpop.f32.mrb[109].mxu0  ;;  %3946 = vmatpush1.bf16.msra.mxu1 %v3865_v7  ;;  %3989 = vmatpush1.bf16.msra.mxu0 %v3867_v1  ;;  %v1973_v1 = vld [vmem:[%s15435_s12 + $0x300] sm:$0xff] }
 0x27c   :  { %v2393_v16 = vpop.f32.mrb[78].mxu1  ;;  %v2586_v46 = vpop.f32.mrb[110].mxu0 }
 0x27d   :  { %v3105_v36 = vpack.c.bf16 %v2393_v16, %v2389_v10  ;;  %v3107_v32 = vpack.c.bf16 %v2586_v46, %v2582_v6  ;;  %v2395_v27 = vpop.f32.mrb[79].mxu1  ;;  %v2588_v33 = vpop.f32.mrb[111].mxu0  ;;  %v11724_v16 = vcombine.high %v1973_v1, %v1977_v15 }
 0x27e   :  { %v3106_v25 = vpack.c.bf16 %v2395_v27, %v2391_v47  ;;  %v3108_v39 = vpack.c.bf16 %v2588_v33, %v2584_v58  ;;  %v1974_v33 = vld [vmem:[%s15435_s12 + $0x308] sm:$0xff] }
 0x27f   :  { %v3873_v18 = vmul.bf16 %v11704_v56, %v3105_v36  ;;  %v3875_v5 = vmul.bf16 %v11706_v43, %v3107_v32  ;;  %v1978_v27 = vld [vmem:[%s15435_s12 + $0x328] sm:$0xff]  ;;  %15620 = vst [vmem:[#allocation51_spill] sm:$0xff] %v11724_v16  ;;  %v11728_v32 = vcombine.low %v1973_v1, %v1977_v15  ;;  %v1985_v15 = vld [vmem:[%s15435_s12 + $0x360] sm:$0xff] }
 0x280   :  { %v3874_v23 = vmul.bf16 %v11700_v53, %v3106_v25  ;;  %v3876_v7 = vmul.bf16 %v11702_v63, %v3108_v39  ;;  %v11726_v46 = vcombine.high %v1974_v33, %v1978_v27  ;;  %v11730_v39 = vcombine.low %v1974_v33, %v1978_v27 }
 0x281   :  { %15622 = vst [vmem:[#allocation53_spill] sm:$0xff] %v11728_v32 }
 0x282   :  { %v2399_v3 = vpop.f32.mrb[80].mxu1  ;;  %v2592_v57 = vpop.f32.mrb[112].mxu0  ;;  %3947 = vmatprep.subr.bf16.mxu1 %v3874_v23  ;;  %3990 = vmatprep.subr.bf16.mxu0 %v3876_v7  ;;  %15621 = vst [vmem:[#allocation52_spill] sm:$0xff] %v11726_v46  ;;  %15623 = vst [vmem:[#allocation54_spill] sm:$0xff] %v11730_v39 }
 0x283   :  { %v2401_v10 = vpop.f32.mrb[81].mxu1  ;;  %v2594_v6 = vpop.f32.mrb[113].mxu0  ;;  %3948 = vmatpush1.bf16.msra.mxu1 %v3873_v18  ;;  %3991 = vmatpush1.bf16.msra.mxu0 %v3875_v5  ;;  %v1981_v5 = vld [vmem:[%s15435_s12 + $0x340] sm:$0xff] }
 0x284   :  { %v2403_v47 = vpop.f32.mrb[82].mxu1  ;;  %v2596_v58 = vpop.f32.mrb[114].mxu0 }
 0x285   :  { %v3113_v36 = vpack.c.bf16 %v2403_v47, %v2399_v3  ;;  %v3115_v25 = vpack.c.bf16 %v2596_v58, %v2592_v57  ;;  %v2405_v43 = vpop.f32.mrb[83].mxu1  ;;  %v2598_v56 = vpop.f32.mrb[115].mxu0  ;;  %v11748_v47 = vcombine.high %v1981_v5, %v1985_v15 }
 0x286   :  { %v3114_v23 = vpack.c.bf16 %v2405_v43, %v2401_v10  ;;  %v3116_v7 = vpack.c.bf16 %v2598_v56, %v2594_v6  ;;  %v1982_v56 = vld [vmem:[%s15435_s12 + $0x348] sm:$0xff] }
 0x287   :  { %v3881_v53 = vmul.bf16 %v11728_v32, %v3113_v36  ;;  %v3883_v1 = vmul.bf16 %v11730_v39, %v3115_v25  ;;  %v1986_v43 = vld [vmem:[%s15435_s12 + $0x368] sm:$0xff]  ;;  %15624 = vst [vmem:[#allocation55_spill] sm:$0xff] %v11748_v47  ;;  %v11752_v25 = vcombine.low %v1981_v5, %v1985_v15  ;;  %v1993_v15 = vld [vmem:[%s15435_s12 + $0x3a0] sm:$0xff] }
 0x288   :  { %v3882_v63 = vmul.bf16 %v11724_v16, %v3114_v23  ;;  %v3884_v18 = vmul.bf16 %v11726_v46, %v3116_v7  ;;  %v11750_v58 = vcombine.high %v1982_v56, %v1986_v43  ;;  %v11754_v7 = vcombine.low %v1982_v56, %v1986_v43 }
 0x289   :  { %15626 = vst [vmem:[#allocation57_spill] sm:$0xff] %v11752_v25 }
 0x28a   :  { %v2409_v33 = vpop.f32.mrb[84].mxu1  ;;  %v2602_v27 = vpop.f32.mrb[116].mxu0  ;;  %3949 = vmatprep.subr.bf16.mxu1 %v3882_v63  ;;  %3992 = vmatprep.subr.bf16.mxu0 %v3884_v18  ;;  %15625 = vst [vmem:[#allocation56_spill] sm:$0xff] %v11750_v58  ;;  %15627 = vst [vmem:[#allocation58_spill] sm:$0xff] %v11754_v7 }
 0x28b   :  { %v2411_v3 = vpop.f32.mrb[85].mxu1  ;;  %v2604_v57 = vpop.f32.mrb[117].mxu0  ;;  %3950 = vmatpush1.bf16.msra.mxu1 %v3881_v53  ;;  %3993 = vmatpush1.bf16.msra.mxu0 %v3883_v1  ;;  %v1989_v1 = vld [vmem:[%s15435_s12 + $0x380] sm:$0xff] }
 0x28c   :  { %v2413_v10 = vpop.f32.mrb[86].mxu1  ;;  %v2606_v6 = vpop.f32.mrb[118].mxu0 }
 0x28d   :  { %v3121_v36 = vpack.c.bf16 %v2413_v10, %v2409_v33  ;;  %v3123_v23 = vpack.c.bf16 %v2606_v6, %v2602_v27  ;;  %v2415_v39 = vpop.f32.mrb[87].mxu1  ;;  %v2608_v32 = vpop.f32.mrb[119].mxu0  ;;  %v11772_v10 = vcombine.high %v1989_v1, %v1993_v15 }
 0x28e   :  { %v3122_v63 = vpack.c.bf16 %v2415_v39, %v2411_v3  ;;  %v3124_v18 = vpack.c.bf16 %v2608_v32, %v2604_v57  ;;  %v1990_v32 = vld [vmem:[%s15435_s12 + $0x388] sm:$0xff] }
 0x28f   :  { %v3889_v16 = vmul.bf16 %v11752_v25, %v3121_v36  ;;  %v3891_v5 = vmul.bf16 %v11754_v7, %v3123_v23  ;;  %v1994_v39 = vld [vmem:[%s15435_s12 + $0x3a8] sm:$0xff]  ;;  %15628 = vst [vmem:[#allocation59_spill] sm:$0xff] %v11772_v10  ;;  %v11776_v23 = vcombine.low %v1989_v1, %v1993_v15  ;;  %v2001_v15 = vld [vmem:[%s15435_s12 + $0x3e0] sm:$0xff] }
 0x290   :  { %v3890_v46 = vmul.bf16 %v11748_v47, %v3122_v63  ;;  %v3892_v53 = vmul.bf16 %v11750_v58, %v3124_v18  ;;  %v11774_v6 = vcombine.high %v1990_v32, %v1994_v39  ;;  %v11778_v18 = vcombine.low %v1990_v32, %v1994_v39 }
 0x291   :  { %15630 = vst [vmem:[#allocation61_spill] sm:$0xff] %v11776_v23 }
 0x292   :  { %v2419_v56 = vpop.f32.mrb[88].mxu1  ;;  %v2612_v43 = vpop.f32.mrb[120].mxu0  ;;  %3951 = vmatprep.subr.bf16.mxu1 %v3890_v46  ;;  %3994 = vmatprep.subr.bf16.mxu0 %v3892_v53  ;;  %15629 = vst [vmem:[#allocation60_spill] sm:$0xff] %v11774_v6  ;;  %15631 = vst [vmem:[#allocation62_spill] sm:$0xff] %v11778_v18 }
 0x293   :  { %v2421_v33 = vpop.f32.mrb[89].mxu1  ;;  %v2614_v27 = vpop.f32.mrb[121].mxu0  ;;  %3952 = vmatpush1.bf16.msra.mxu1 %v3889_v16  ;;  %3995 = vmatpush1.bf16.msra.mxu0 %v3891_v5  ;;  %v1997_v5 = vld [vmem:[%s15435_s12 + $0x3c0] sm:$0xff] }
 0x294   :  { %v2423_v3 = vpop.f32.mrb[90].mxu1  ;;  %v2616_v57 = vpop.f32.mrb[122].mxu0 }
 0x295   :  { %v3129_v36 = vpack.c.bf16 %v2423_v3, %v2419_v56  ;;  %v3131_v63 = vpack.c.bf16 %v2616_v57, %v2612_v43  ;;  %v2425_v7 = vpop.f32.mrb[91].mxu1  ;;  %v2618_v25 = vpop.f32.mrb[123].mxu0  ;;  %v11796_v3 = vcombine.high %v1997_v5, %v2001_v15 }
 0x296   :  { %v3130_v46 = vpack.c.bf16 %v2425_v7, %v2421_v33  ;;  %v3132_v53 = vpack.c.bf16 %v2618_v25, %v2614_v27  ;;  %v1998_v25 = vld [vmem:[%s15435_s12 + $0x3c8] sm:$0xff] }
 0x297   :  { %v3897_v47 = vmul.bf16 %v11776_v23, %v3129_v36  ;;  %v3899_v1 = vmul.bf16 %v11778_v18, %v3131_v63  ;;  %v2002_v7 = vld [vmem:[%s15435_s12 + $0x3e8] sm:$0xff]  ;;  %15632 = vst [vmem:[#allocation63_spill] sm:$0xff] %v11796_v3  ;;  %v11800_v63 = vcombine.low %v1997_v5, %v2001_v15  ;;  %v1883_v15 = vld [vmem:[%s15435_s12 + $0x30] sm:$0xff] }
 0x298   :  { %v3898_v58 = vmul.bf16 %v11772_v10, %v3130_v46  ;;  %v3900_v16 = vmul.bf16 %v11774_v6, %v3132_v53  ;;  %v11798_v57 = vcombine.high %v1998_v25, %v2002_v7  ;;  %v11802_v53 = vcombine.low %v1998_v25, %v2002_v7 }
 0x299   :  { %15634 = vst [vmem:[#allocation65_spill] sm:$0xff] %v11800_v63 }
 0x29a   :  { %v2429_v32 = vpop.f32.mrb[92].mxu1  ;;  %v2622_v39 = vpop.f32.mrb[124].mxu0  ;;  %3953 = vmatprep.subr.bf16.mxu1 %v3898_v58  ;;  %3996 = vmatprep.subr.bf16.mxu0 %v3900_v16  ;;  %15633 = vst [vmem:[#allocation64_spill] sm:$0xff] %v11798_v57  ;;  %15635 = vst [vmem:[#allocation66_spill] sm:$0xff] %v11802_v53 }
 0x29b   :  { %v2431_v56 = vpop.f32.mrb[93].mxu1  ;;  %v2624_v43 = vpop.f32.mrb[125].mxu0  ;;  %3954 = vmatpush1.bf16.msra.mxu1 %v3897_v47  ;;  %3997 = vmatpush1.bf16.msra.mxu0 %v3899_v1  ;;  %v1879_v1 = vld [vmem:[%s15435_s12 + $0x10] sm:$0xff] }
 0x29c   :  { %v2433_v33 = vpop.f32.mrb[94].mxu1  ;;  %v2626_v27 = vpop.f32.mrb[126].mxu0 }
 0x29d   :  { %v3137_v36 = vpack.c.bf16 %v2433_v33, %v2429_v32  ;;  %v3139_v46 = vpack.c.bf16 %v2626_v27, %v2622_v39  ;;  %v2435_v18 = vpop.f32.mrb[95].mxu1  ;;  %v2628_v23 = vpop.f32.mrb[127].mxu0  ;;  %v11823_v32 = vld [vmem:[%s15433_s10] ss:$8 sps:$4 sm:$0xff]   ;;  %v11825_v27 = vcombine.high %v1879_v1, %v1883_v15 }
 0x29e   :  { %v3138_v58 = vpack.c.bf16 %v2435_v18, %v2431_v56  ;;  %v3140_v16 = vpack.c.bf16 %v2628_v23, %v2624_v43  ;;  %v1880_v23 = vld [vmem:[%s15435_s12 + $0x18] sm:$0xff] }
 0x29f   :  { %v3905_v10 = vmul.bf16 %v11800_v63, %v3137_v36  ;;  %v3907_v5 = vmul.bf16 %v11802_v53, %v3139_v46  ;;  %v1884_v18 = vld [vmem:[%s15435_s12 + $0x38] sm:$0xff]  ;;  %15636 = vst [vmem:[#allocation67_spill] sm:$0xff] %v11825_v27 }
 0x2a0   :  { %v3906_v6 = vmul.bf16 %v11796_v3, %v3138_v58  ;;  %v3908_v47 = vmul.bf16 %v11798_v57, %v3140_v16  ;;  %v11827_v36 = vcombine.high %v1880_v23, %v1884_v18  ;;  %v11829_v58 = vcombine.low %v1879_v1, %v1883_v15 }
 0x2a1   :  { %v11831_v16 = vcombine.low %v1880_v23, %v1884_v18  ;;  %v1891_v23 = vld [vmem:[%s15435_s12 + $0x70] sm:$0xff] }
 0x2a2   :  { %v2665_v25 = vpop.f32.mrb[96].mxu1  ;;  %v2858_v7 = vpop.f32.mrb[128].mxu0  ;;  %3955 = vmatprep.subr.bf16.mxu1 %v3906_v6  ;;  %3998 = vmatprep.subr.bf16.mxu0 %v3908_v47  ;;  %15637 = vst [vmem:[#allocation68_spill] sm:$0xff] %v11827_v36  ;;  %15638 = vst [vmem:[#allocation69_spill] sm:$0xff] %v11829_v58 }
 0x2a3   :  { %v2667_v39 = vpop.f32.mrb[97].mxu1  ;;  %v2860_v56 = vpop.f32.mrb[129].mxu0  ;;  %3956 = vmatpush1.bf16.msra.mxu1 %v3905_v10  ;;  %3999 = vmatpush1.bf16.msra.mxu0 %v3907_v5  ;;  %15639 = vst [vmem:[#allocation70_spill] sm:$0xff] %v11831_v16  ;;  %v1887_v5 = vld [vmem:[%s15435_s12 + $0x50] sm:$0xff] }
 0x2a4   :  { %v2669_v43 = vpop.f32.mrb[98].mxu1  ;;  %v2862_v33 = vpop.f32.mrb[130].mxu0 }
 0x2a5   :  { %v3021_v46 = vpack.c.bf16 %v2669_v43, %v2665_v25  ;;  %v3023_v6 = vpack.c.bf16 %v2862_v33, %v2858_v7  ;;  %v2671_v47 = vpop.f32.mrb[99].mxu1  ;;  %v2864_v53 = vpop.f32.mrb[131].mxu0  ;;  %v11853_v43 = vcombine.high %v1887_v5, %v1891_v23 }
 0x2a6   :  { %v3022_v63 = vpack.c.bf16 %v2671_v47, %v2667_v39  ;;  %v3024_v57 = vpack.c.bf16 %v2864_v53, %v2860_v56  ;;  %3958 = vmatmul.mubr.bf16.vlgmr.msra.gmra.mrb[160].mxu1 %v11823_v32  ;;  %4001 = vmatmul.mubr.bf16.vlgmr.msra.gmra.mrb[192].mxu0 %v11823_v32 }
 0x2a7   :  { %4043 = vmatprep.mubr.bf16.mxu1 %v11528_v54  ;;  %4086 = vmatprep.mubr.bf16.mxu0 %v11528_v54  ;;  %v3789_v15 = vmul.bf16 %v11829_v58, %v3021_v46  ;;  %v3791_v53 = vmul.bf16 %v11831_v16, %v3023_v6  ;;  %v1888_v54 = vld [vmem:[%s15435_s12 + $0x58] sm:$0xff]  ;;  %15640 = vst [vmem:[#allocation71_spill] sm:$0xff] %v11853_v43 }
 0x2a8   :  { %v3790_v10 = vmul.bf16 %v11825_v27, %v3022_v63  ;;  %v3792_v1 = vmul.bf16 %v11827_v36, %v3024_v57  ;;  %v1892_v57 = vld [vmem:[%s15435_s12 + $0x78] sm:$0xff]  ;;  %v11857_v6 = vcombine.low %v1887_v5, %v1891_v23  ;;  %v1899_v23 = vld [vmem:[%s15435_s12 + $0xb0] sm:$0xff] }
 0x2a9   :  { %v11855_v33 = vcombine.high %v1888_v54, %v1892_v57  ;;  %v11859_v16 = vcombine.low %v1888_v54, %v1892_v57 }
 0x2aa   :  { %v2675_v63 = vpop.f32.mrb[100].mxu1  ;;  %v2868_v18 = vpop.f32.mrb[132].mxu0  ;;  %4011 = vmatprep.subr.bf16.mxu1 %v3790_v10  ;;  %4054 = vmatprep.subr.bf16.mxu0 %v3792_v1  ;;  %15642 = vst [vmem:[#allocation73_spill] sm:$0xff] %v11857_v6 }
 0x2ab   :  { %v2677_v25 = vpop.f32.mrb[101].mxu1  ;;  %v2870_v7 = vpop.f32.mrb[133].mxu0  ;;  %4012 = vmatpush1.bf16.msra.mxu1 %v3789_v15  ;;  %4055 = vmatpush1.bf16.msra.mxu0 %v3791_v53  ;;  %15641 = vst [vmem:[#allocation72_spill] sm:$0xff] %v11855_v33  ;;  %15643 = vst [vmem:[#allocation74_spill] sm:$0xff] %v11859_v16  ;;  %v1895_v53 = vld [vmem:[%s15435_s12 + $0x90] sm:$0xff] }
 0x2ac   :  { %v2679_v39 = vpop.f32.mrb[102].mxu1  ;;  %v2872_v56 = vpop.f32.mrb[134].mxu0 }
 0x2ad   :  { %v3029_v46 = vpack.c.bf16 %v2679_v39, %v2675_v63  ;;  %v3031_v47 = vpack.c.bf16 %v2872_v56, %v2868_v18  ;;  %v2681_v58 = vpop.f32.mrb[103].mxu1  ;;  %v2874_v36 = vpop.f32.mrb[135].mxu0  ;;  %v11877_v39 = vcombine.high %v1895_v53, %v1899_v23 }
 0x2ae   :  { %v3030_v10 = vpack.c.bf16 %v2681_v58, %v2677_v25  ;;  %v3032_v1 = vpack.c.bf16 %v2874_v36, %v2870_v7  ;;  %v1896_v36 = vld [vmem:[%s15435_s12 + $0x98] sm:$0xff] }
 0x2af   :  { %v3797_v3 = vmul.bf16 %v11857_v6, %v3029_v46  ;;  %v3799_v5 = vmul.bf16 %v11859_v16, %v3031_v47  ;;  %v1900_v58 = vld [vmem:[%s15435_s12 + $0xb8] sm:$0xff]  ;;  %15644 = vst [vmem:[#allocation75_spill] sm:$0xff] %v11877_v39  ;;  %v11881_v47 = vcombine.low %v1895_v53, %v1899_v23  ;;  %v1907_v23 = vld [vmem:[%s15435_s12 + $0xf0] sm:$0xff] }
 0x2b0   :  { %v3798_v27 = vmul.bf16 %v11853_v43, %v3030_v10  ;;  %v3800_v15 = vmul.bf16 %v11855_v33, %v3032_v1  ;;  %v11879_v56 = vcombine.high %v1896_v36, %v1900_v58  ;;  %v11883_v1 = vcombine.low %v1896_v36, %v1900_v58 }
 0x2b1   :  { %15646 = vst [vmem:[#allocation77_spill] sm:$0xff] %v11881_v47 }
 0x2b2   :  { %v2685_v54 = vpop.f32.mrb[104].mxu1  ;;  %v2878_v57 = vpop.f32.mrb[136].mxu0  ;;  %4013 = vmatprep.subr.bf16.mxu1 %v3798_v27  ;;  %4056 = vmatprep.subr.bf16.mxu0 %v3800_v15  ;;  %15645 = vst [vmem:[#allocation76_spill] sm:$0xff] %v11879_v56  ;;  %15647 = vst [vmem:[#allocation78_spill] sm:$0xff] %v11883_v1 }
 0x2b3   :  { %v2687_v63 = vpop.f32.mrb[105].mxu1  ;;  %v2880_v18 = vpop.f32.mrb[137].mxu0  ;;  %4014 = vmatpush1.bf16.msra.mxu1 %v3797_v3  ;;  %4057 = vmatpush1.bf16.msra.mxu0 %v3799_v5  ;;  %v1903_v5 = vld [vmem:[%s15435_s12 + $0xd0] sm:$0xff] }
 0x2b4   :  { %v2689_v25 = vpop.f32.mrb[106].mxu1  ;;  %v2882_v7 = vpop.f32.mrb[138].mxu0 }
 0x2b5   :  { %v3037_v46 = vpack.c.bf16 %v2689_v25, %v2685_v54  ;;  %v3039_v10 = vpack.c.bf16 %v2882_v7, %v2878_v57  ;;  %v2691_v16 = vpop.f32.mrb[107].mxu1  ;;  %v2884_v6 = vpop.f32.mrb[139].mxu0  ;;  %v11901_v25 = vcombine.high %v1903_v5, %v1907_v23 }
 0x2b6   :  { %v3038_v27 = vpack.c.bf16 %v2691_v16, %v2687_v63  ;;  %v3040_v15 = vpack.c.bf16 %v2884_v6, %v2880_v18  ;;  %v1904_v16 = vld [vmem:[%s15435_s12 + $0xd8] sm:$0xff] }
 0x2b7   :  { %v3805_v43 = vmul.bf16 %v11881_v47, %v3037_v46  ;;  %v3807_v53 = vmul.bf16 %v11883_v1, %v3039_v10  ;;  %v1908_v6 = vld [vmem:[%s15435_s12 + $0xf8] sm:$0xff]  ;;  %15648 = vst [vmem:[#allocation79_spill] sm:$0xff] %v11901_v25  ;;  %v11905_v10 = vcombine.low %v1903_v5, %v1907_v23  ;;  %v1915_v23 = vld [vmem:[%s15435_s12 + $0x130] sm:$0xff] }
 0x2b8   :  { %v3806_v33 = vmul.bf16 %v11877_v39, %v3038_v27  ;;  %v3808_v3 = vmul.bf16 %v11879_v56, %v3040_v15  ;;  %v11903_v7 = vcombine.high %v1904_v16, %v1908_v6  ;;  %v11907_v15 = vcombine.low %v1904_v16, %v1908_v6 }
 0x2b9   :  { %15650 = vst [vmem:[#allocation81_spill] sm:$0xff] %v11905_v10 }
 0x2ba   :  { %v2695_v36 = vpop.f32.mrb[108].mxu1  ;;  %v2888_v58 = vpop.f32.mrb[140].mxu0  ;;  %4015 = vmatprep.subr.bf16.mxu1 %v3806_v33  ;;  %4058 = vmatprep.subr.bf16.mxu0 %v3808_v3  ;;  %15649 = vst [vmem:[#allocation80_spill] sm:$0xff] %v11903_v7  ;;  %15651 = vst [vmem:[#allocation82_spill] sm:$0xff] %v11907_v15 }
 0x2bb   :  { %v2697_v54 = vpop.f32.mrb[109].mxu1  ;;  %v2890_v57 = vpop.f32.mrb[141].mxu0  ;;  %4016 = vmatpush1.bf16.msra.mxu1 %v3805_v43  ;;  %4059 = vmatpush1.bf16.msra.mxu0 %v3807_v53  ;;  %v1911_v53 = vld [vmem:[%s15435_s12 + $0x110] sm:$0xff] }
 0x2bc   :  { %v2699_v63 = vpop.f32.mrb[110].mxu1  ;;  %v2892_v18 = vpop.f32.mrb[142].mxu0 }
 0x2bd   :  { %v3045_v46 = vpack.c.bf16 %v2699_v63, %v2695_v36  ;;  %v3047_v27 = vpack.c.bf16 %v2892_v18, %v2888_v58  ;;  %v2701_v1 = vpop.f32.mrb[111].mxu1  ;;  %v2894_v47 = vpop.f32.mrb[143].mxu0  ;;  %v11925_v63 = vcombine.high %v1911_v53, %v1915_v23 }
 0x2be   :  { %v3046_v33 = vpack.c.bf16 %v2701_v1, %v2697_v54  ;;  %v3048_v3 = vpack.c.bf16 %v2894_v47, %v2890_v57  ;;  %v1912_v47 = vld [vmem:[%s15435_s12 + $0x118] sm:$0xff] }
 0x2bf   :  { %v3813_v39 = vmul.bf16 %v11905_v10, %v3045_v46  ;;  %v3815_v5 = vmul.bf16 %v11907_v15, %v3047_v27  ;;  %v1916_v1 = vld [vmem:[%s15435_s12 + $0x138] sm:$0xff]  ;;  %15652 = vst [vmem:[#allocation83_spill] sm:$0xff] %v11925_v63  ;;  %v11929_v27 = vcombine.low %v1911_v53, %v1915_v23  ;;  %v1923_v23 = vld [vmem:[%s15435_s12 + $0x170] sm:$0xff] }
 0x2c0   :  { %v3814_v56 = vmul.bf16 %v11901_v25, %v3046_v33  ;;  %v3816_v43 = vmul.bf16 %v11903_v7, %v3048_v3  ;;  %v11927_v18 = vcombine.high %v1912_v47, %v1916_v1  ;;  %v11931_v3 = vcombine.low %v1912_v47, %v1916_v1 }
 0x2c1   :  { %15654 = vst [vmem:[#allocation85_spill] sm:$0xff] %v11929_v27 }
 0x2c2   :  { %v2705_v16 = vpop.f32.mrb[112].mxu1  ;;  %v2898_v6 = vpop.f32.mrb[144].mxu0  ;;  %4017 = vmatprep.subr.bf16.mxu1 %v3814_v56  ;;  %4060 = vmatprep.subr.bf16.mxu0 %v3816_v43  ;;  %15653 = vst [vmem:[#allocation84_spill] sm:$0xff] %v11927_v18  ;;  %15655 = vst [vmem:[#allocation86_spill] sm:$0xff] %v11931_v3 }
 0x2c3   :  { %v2707_v36 = vpop.f32.mrb[113].mxu1  ;;  %v2900_v58 = vpop.f32.mrb[145].mxu0  ;;  %4018 = vmatpush1.bf16.msra.mxu1 %v3813_v39  ;;  %4061 = vmatpush1.bf16.msra.mxu0 %v3815_v5  ;;  %v1919_v5 = vld [vmem:[%s15435_s12 + $0x150] sm:$0xff] }
 0x2c4   :  { %v2709_v54 = vpop.f32.mrb[114].mxu1  ;;  %v2902_v57 = vpop.f32.mrb[146].mxu0 }
 0x2c5   :  { %v3053_v46 = vpack.c.bf16 %v2709_v54, %v2705_v16  ;;  %v3055_v33 = vpack.c.bf16 %v2902_v57, %v2898_v6  ;;  %v2711_v15 = vpop.f32.mrb[115].mxu1  ;;  %v2904_v10 = vpop.f32.mrb[147].mxu0  ;;  %v11949_v54 = vcombine.high %v1919_v5, %v1923_v23 }
 0x2c6   :  { %v3054_v56 = vpack.c.bf16 %v2711_v15, %v2707_v36  ;;  %v3056_v43 = vpack.c.bf16 %v2904_v10, %v2900_v58  ;;  %v1920_v10 = vld [vmem:[%s15435_s12 + $0x158] sm:$0xff] }
 0x2c7   :  { %v3821_v25 = vmul.bf16 %v11929_v27, %v3053_v46  ;;  %v3823_v53 = vmul.bf16 %v11931_v3, %v3055_v33  ;;  %v1924_v15 = vld [vmem:[%s15435_s12 + $0x178] sm:$0xff]  ;;  %15656 = vst [vmem:[#allocation87_spill] sm:$0xff] %v11949_v54  ;;  %v11953_v33 = vcombine.low %v1919_v5, %v1923_v23  ;;  %v1931_v23 = vld [vmem:[%s15435_s12 + $0x1b0] sm:$0xff] }
 0x2c8   :  { %v3822_v7 = vmul.bf16 %v11925_v63, %v3054_v56  ;;  %v3824_v39 = vmul.bf16 %v11927_v18, %v3056_v43  ;;  %v11951_v57 = vcombine.high %v1920_v10, %v1924_v15  ;;  %v11955_v43 = vcombine.low %v1920_v10, %v1924_v15 }
 0x2c9   :  { %15658 = vst [vmem:[#allocation89_spill] sm:$0xff] %v11953_v33 }
 0x2ca   :  { %v2715_v47 = vpop.f32.mrb[116].mxu1  ;;  %v2908_v1 = vpop.f32.mrb[148].mxu0  ;;  %4019 = vmatprep.subr.bf16.mxu1 %v3822_v7  ;;  %4062 = vmatprep.subr.bf16.mxu0 %v3824_v39  ;;  %15657 = vst [vmem:[#allocation88_spill] sm:$0xff] %v11951_v57  ;;  %15659 = vst [vmem:[#allocation90_spill] sm:$0xff] %v11955_v43 }
 0x2cb   :  { %v2717_v16 = vpop.f32.mrb[117].mxu1  ;;  %v2910_v6 = vpop.f32.mrb[149].mxu0  ;;  %4020 = vmatpush1.bf16.msra.mxu1 %v3821_v25  ;;  %4063 = vmatpush1.bf16.msra.mxu0 %v3823_v53  ;;  %v1927_v53 = vld [vmem:[%s15435_s12 + $0x190] sm:$0xff] }
 0x2cc   :  { %v2719_v36 = vpop.f32.mrb[118].mxu1  ;;  %v2912_v58 = vpop.f32.mrb[150].mxu0 }
 0x2cd   :  { %v3061_v46 = vpack.c.bf16 %v2719_v36, %v2715_v47  ;;  %v3063_v56 = vpack.c.bf16 %v2912_v58, %v2908_v1  ;;  %v2721_v3 = vpop.f32.mrb[119].mxu1  ;;  %v2914_v27 = vpop.f32.mrb[151].mxu0  ;;  %v11973_v36 = vcombine.high %v1927_v53, %v1931_v23 }
 0x2ce   :  { %v3062_v7 = vpack.c.bf16 %v2721_v3, %v2717_v16  ;;  %v3064_v39 = vpack.c.bf16 %v2914_v27, %v2910_v6  ;;  %v1928_v27 = vld [vmem:[%s15435_s12 + $0x198] sm:$0xff] }
 0x2cf   :  { %v3829_v63 = vmul.bf16 %v11953_v33, %v3061_v46  ;;  %v3831_v5 = vmul.bf16 %v11955_v43, %v3063_v56  ;;  %v1932_v3 = vld [vmem:[%s15435_s12 + $0x1b8] sm:$0xff]  ;;  %15660 = vst [vmem:[#allocation91_spill] sm:$0xff] %v11973_v36  ;;  %v11977_v56 = vcombine.low %v1927_v53, %v1931_v23  ;;  %v1939_v23 = vld [vmem:[%s15435_s12 + $0x1f0] sm:$0xff] }
 0x2d0   :  { %v3830_v18 = vmul.bf16 %v11949_v54, %v3062_v7  ;;  %v3832_v25 = vmul.bf16 %v11951_v57, %v3064_v39  ;;  %v11975_v58 = vcombine.high %v1928_v27, %v1932_v3  ;;  %v11979_v39 = vcombine.low %v1928_v27, %v1932_v3 }
 0x2d1   :  { %15662 = vst [vmem:[#allocation93_spill] sm:$0xff] %v11977_v56 }
 0x2d2   :  { %v2725_v10 = vpop.f32.mrb[120].mxu1  ;;  %v2918_v15 = vpop.f32.mrb[152].mxu0  ;;  %4021 = vmatprep.subr.bf16.mxu1 %v3830_v18  ;;  %4064 = vmatprep.subr.bf16.mxu0 %v3832_v25  ;;  %15661 = vst [vmem:[#allocation92_spill] sm:$0xff] %v11975_v58  ;;  %15663 = vst [vmem:[#allocation94_spill] sm:$0xff] %v11979_v39 }
 0x2d3   :  { %v2727_v47 = vpop.f32.mrb[121].mxu1  ;;  %v2920_v1 = vpop.f32.mrb[153].mxu0  ;;  %4022 = vmatpush1.bf16.msra.mxu1 %v3829_v63  ;;  %4065 = vmatpush1.bf16.msra.mxu0 %v3831_v5  ;;  %v1935_v5 = vld [vmem:[%s15435_s12 + $0x1d0] sm:$0xff] }
 0x2d4   :  { %v2729_v16 = vpop.f32.mrb[122].mxu1  ;;  %v2922_v6 = vpop.f32.mrb[154].mxu0 }
 0x2d5   :  { %v3069_v46 = vpack.c.bf16 %v2729_v16, %v2725_v10  ;;  %v3071_v7 = vpack.c.bf16 %v2922_v6, %v2918_v15  ;;  %v2731_v43 = vpop.f32.mrb[123].mxu1  ;;  %v2924_v33 = vpop.f32.mrb[155].mxu0  ;;  %v11997_v16 = vcombine.high %v1935_v5, %v1939_v23 }
 0x2d6   :  { %v3070_v18 = vpack.c.bf16 %v2731_v43, %v2727_v47  ;;  %v3072_v25 = vpack.c.bf16 %v2924_v33, %v2920_v1  ;;  %v1936_v33 = vld [vmem:[%s15435_s12 + $0x1d8] sm:$0xff] }
 0x2d7   :  { %v3837_v54 = vmul.bf16 %v11977_v56, %v3069_v46  ;;  %v3839_v53 = vmul.bf16 %v11979_v39, %v3071_v7  ;;  %v1940_v43 = vld [vmem:[%s15435_s12 + $0x1f8] sm:$0xff]  ;;  %15664 = vst [vmem:[#allocation95_spill] sm:$0xff] %v11997_v16  ;;  %v12001_v7 = vcombine.low %v1935_v5, %v1939_v23  ;;  %v1947_v23 = vld [vmem:[%s15435_s12 + $0x230] sm:$0xff] }
 0x2d8   :  { %v3838_v57 = vmul.bf16 %v11973_v36, %v3070_v18  ;;  %v3840_v63 = vmul.bf16 %v11975_v58, %v3072_v25  ;;  %v11999_v6 = vcombine.high %v1936_v33, %v1940_v43  ;;  %v12003_v25 = vcombine.low %v1936_v33, %v1940_v43 }
 0x2d9   :  { %15666 = vst [vmem:[#allocation97_spill] sm:$0xff] %v12001_v7 }
 0x2da   :  { %v2735_v27 = vpop.f32.mrb[124].mxu1  ;;  %v2928_v3 = vpop.f32.mrb[156].mxu0  ;;  %4023 = vmatprep.subr.bf16.mxu1 %v3838_v57  ;;  %4066 = vmatprep.subr.bf16.mxu0 %v3840_v63  ;;  %15665 = vst [vmem:[#allocation96_spill] sm:$0xff] %v11999_v6  ;;  %15667 = vst [vmem:[#allocation98_spill] sm:$0xff] %v12003_v25 }
 0x2db   :  { %v2737_v10 = vpop.f32.mrb[125].mxu1  ;;  %v2930_v15 = vpop.f32.mrb[157].mxu0  ;;  %4024 = vmatpush1.bf16.msra.mxu1 %v3837_v54  ;;  %4067 = vmatpush1.bf16.msra.mxu0 %v3839_v53  ;;  %v1943_v53 = vld [vmem:[%s15435_s12 + $0x210] sm:$0xff] }
 0x2dc   :  { %v2739_v47 = vpop.f32.mrb[126].mxu1  ;;  %v2932_v1 = vpop.f32.mrb[158].mxu0 }
 0x2dd   :  { %v3077_v46 = vpack.c.bf16 %v2739_v47, %v2735_v27  ;;  %v3079_v18 = vpack.c.bf16 %v2932_v1, %v2928_v3  ;;  %v2741_v39 = vpop.f32.mrb[127].mxu1  ;;  %v2934_v56 = vpop.f32.mrb[159].mxu0  ;;  %v12021_v47 = vcombine.high %v1943_v53, %v1947_v23 }
 0x2de   :  { %v3078_v57 = vpack.c.bf16 %v2741_v39, %v2737_v10  ;;  %v3080_v63 = vpack.c.bf16 %v2934_v56, %v2930_v15  ;;  %v1944_v56 = vld [vmem:[%s15435_s12 + $0x218] sm:$0xff] }
 0x2df   :  { %v3845_v36 = vmul.bf16 %v12001_v7, %v3077_v46  ;;  %v3847_v5 = vmul.bf16 %v12003_v25, %v3079_v18  ;;  %v1948_v39 = vld [vmem:[%s15435_s12 + $0x238] sm:$0xff]  ;;  %15668 = vst [vmem:[#allocation99_spill] sm:$0xff] %v12021_v47  ;;  %v12025_v18 = vcombine.low %v1943_v53, %v1947_v23  ;;  %v1955_v23 = vld [vmem:[%s15435_s12 + $0x270] sm:$0xff] }
 0x2e0   :  { %v3846_v58 = vmul.bf16 %v11997_v16, %v3078_v57  ;;  %v3848_v54 = vmul.bf16 %v11999_v6, %v3080_v63  ;;  %v12023_v1 = vcombine.high %v1944_v56, %v1948_v39  ;;  %v12027_v63 = vcombine.low %v1944_v56, %v1948_v39 }
 0x2e1   :  { %15670 = vst [vmem:[#allocation101_spill] sm:$0xff] %v12025_v18 }
 0x2e2   :  { %v2745_v33 = vpop.f32.mrb[128].mxu1  ;;  %v2938_v43 = vpop.f32.mrb[160].mxu0  ;;  %4025 = vmatprep.subr.bf16.mxu1 %v3846_v58  ;;  %4068 = vmatprep.subr.bf16.mxu0 %v3848_v54  ;;  %15669 = vst [vmem:[#allocation100_spill] sm:$0xff] %v12023_v1  ;;  %15671 = vst [vmem:[#allocation102_spill] sm:$0xff] %v12027_v63 }
 0x2e3   :  { %v2747_v27 = vpop.f32.mrb[129].mxu1  ;;  %v2940_v3 = vpop.f32.mrb[161].mxu0  ;;  %4026 = vmatpush1.bf16.msra.mxu1 %v3845_v36  ;;  %4069 = vmatpush1.bf16.msra.mxu0 %v3847_v5  ;;  %v1951_v5 = vld [vmem:[%s15435_s12 + $0x250] sm:$0xff] }
 0x2e4   :  { %v2749_v10 = vpop.f32.mrb[130].mxu1  ;;  %v2942_v15 = vpop.f32.mrb[162].mxu0 }
 0x2e5   :  { %v3085_v46 = vpack.c.bf16 %v2749_v10, %v2745_v33  ;;  %v3087_v57 = vpack.c.bf16 %v2942_v15, %v2938_v43  ;;  %v2751_v25 = vpop.f32.mrb[131].mxu1  ;;  %v2944_v7 = vpop.f32.mrb[163].mxu0  ;;  %v12045_v10 = vcombine.high %v1951_v5, %v1955_v23 }
 0x2e6   :  { %v3086_v58 = vpack.c.bf16 %v2751_v25, %v2747_v27  ;;  %v3088_v54 = vpack.c.bf16 %v2944_v7, %v2940_v3  ;;  %v1952_v7 = vld [vmem:[%s15435_s12 + $0x258] sm:$0xff] }
 0x2e7   :  { %v3853_v16 = vmul.bf16 %v12025_v18, %v3085_v46  ;;  %v3855_v53 = vmul.bf16 %v12027_v63, %v3087_v57  ;;  %v1956_v25 = vld [vmem:[%s15435_s12 + $0x278] sm:$0xff]  ;;  %15672 = vst [vmem:[#allocation103_spill] sm:$0xff] %v12045_v10  ;;  %v12049_v57 = vcombine.low %v1951_v5, %v1955_v23  ;;  %v1963_v23 = vld [vmem:[%s15435_s12 + $0x2b0] sm:$0xff] }
 0x2e8   :  { %v3854_v6 = vmul.bf16 %v12021_v47, %v3086_v58  ;;  %v3856_v36 = vmul.bf16 %v12023_v1, %v3088_v54  ;;  %v12047_v15 = vcombine.high %v1952_v7, %v1956_v25  ;;  %v12051_v54 = vcombine.low %v1952_v7, %v1956_v25 }
 0x2e9   :  { %15674 = vst [vmem:[#allocation105_spill] sm:$0xff] %v12049_v57 }
 0x2ea   :  { %v2755_v56 = vpop.f32.mrb[132].mxu1  ;;  %v2948_v39 = vpop.f32.mrb[164].mxu0  ;;  %4027 = vmatprep.subr.bf16.mxu1 %v3854_v6  ;;  %4070 = vmatprep.subr.bf16.mxu0 %v3856_v36  ;;  %15673 = vst [vmem:[#allocation104_spill] sm:$0xff] %v12047_v15  ;;  %15675 = vst [vmem:[#allocation106_spill] sm:$0xff] %v12051_v54 }
 0x2eb   :  { %v2757_v33 = vpop.f32.mrb[133].mxu1  ;;  %v2950_v43 = vpop.f32.mrb[165].mxu0  ;;  %4028 = vmatpush1.bf16.msra.mxu1 %v3853_v16  ;;  %4071 = vmatpush1.bf16.msra.mxu0 %v3855_v53  ;;  %v1959_v53 = vld [vmem:[%s15435_s12 + $0x290] sm:$0xff] }
 0x2ec   :  { %v2759_v27 = vpop.f32.mrb[134].mxu1  ;;  %v2952_v3 = vpop.f32.mrb[166].mxu0 }
 0x2ed   :  { %v3093_v46 = vpack.c.bf16 %v2759_v27, %v2755_v56  ;;  %v3095_v58 = vpack.c.bf16 %v2952_v3, %v2948_v39  ;;  %v2761_v63 = vpop.f32.mrb[135].mxu1  ;;  %v2954_v18 = vpop.f32.mrb[167].mxu0  ;;  %v12069_v27 = vcombine.high %v1959_v53, %v1963_v23 }
 0x2ee   :  { %v3094_v6 = vpack.c.bf16 %v2761_v63, %v2757_v33  ;;  %v3096_v36 = vpack.c.bf16 %v2954_v18, %v2950_v43  ;;  %v1960_v18 = vld [vmem:[%s15435_s12 + $0x298] sm:$0xff] }
 0x2ef   :  { %v3861_v47 = vmul.bf16 %v12049_v57, %v3093_v46  ;;  %v3863_v5 = vmul.bf16 %v12051_v54, %v3095_v58  ;;  %v1964_v63 = vld [vmem:[%s15435_s12 + $0x2b8] sm:$0xff]  ;;  %15676 = vst [vmem:[#allocation107_spill] sm:$0xff] %v12069_v27  ;;  %v12073_v58 = vcombine.low %v1959_v53, %v1963_v23  ;;  %v1971_v23 = vld [vmem:[%s15435_s12 + $0x2f0] sm:$0xff] }
 0x2f0   :  { %v3862_v1 = vmul.bf16 %v12045_v10, %v3094_v6  ;;  %v3864_v16 = vmul.bf16 %v12047_v15, %v3096_v36  ;;  %v12071_v3 = vcombine.high %v1960_v18, %v1964_v63  ;;  %v12075_v36 = vcombine.low %v1960_v18, %v1964_v63 }
 0x2f1   :  { %15678 = vst [vmem:[#allocation109_spill] sm:$0xff] %v12073_v58 }
 0x2f2   :  { %v2765_v7 = vpop.f32.mrb[136].mxu1  ;;  %v2958_v25 = vpop.f32.mrb[168].mxu0  ;;  %4029 = vmatprep.subr.bf16.mxu1 %v3862_v1  ;;  %4072 = vmatprep.subr.bf16.mxu0 %v3864_v16  ;;  %15677 = vst [vmem:[#allocation108_spill] sm:$0xff] %v12071_v3  ;;  %15679 = vst [vmem:[#allocation110_spill] sm:$0xff] %v12075_v36 }
 0x2f3   :  { %v2767_v56 = vpop.f32.mrb[137].mxu1  ;;  %v2960_v39 = vpop.f32.mrb[169].mxu0  ;;  %4030 = vmatpush1.bf16.msra.mxu1 %v3861_v47  ;;  %4073 = vmatpush1.bf16.msra.mxu0 %v3863_v5  ;;  %v1967_v5 = vld [vmem:[%s15435_s12 + $0x2d0] sm:$0xff] }
 0x2f4   :  { %v2769_v33 = vpop.f32.mrb[138].mxu1  ;;  %v2962_v43 = vpop.f32.mrb[170].mxu0 }
 0x2f5   :  { %v3101_v46 = vpack.c.bf16 %v2769_v33, %v2765_v7  ;;  %v3103_v6 = vpack.c.bf16 %v2962_v43, %v2958_v25  ;;  %v2771_v54 = vpop.f32.mrb[139].mxu1  ;;  %v2964_v57 = vpop.f32.mrb[171].mxu0  ;;  %v12093_v33 = vcombine.high %v1967_v5, %v1971_v23 }
 0x2f6   :  { %v3102_v1 = vpack.c.bf16 %v2771_v54, %v2767_v56  ;;  %v3104_v16 = vpack.c.bf16 %v2964_v57, %v2960_v39  ;;  %v1968_v57 = vld [vmem:[%s15435_s12 + $0x2d8] sm:$0xff] }
 0x2f7   :  { %v3869_v10 = vmul.bf16 %v12073_v58, %v3101_v46  ;;  %v3871_v53 = vmul.bf16 %v12075_v36, %v3103_v6  ;;  %v1972_v54 = vld [vmem:[%s15435_s12 + $0x2f8] sm:$0xff]  ;;  %15680 = vst [vmem:[#allocation111_spill] sm:$0xff] %v12093_v33  ;;  %v12097_v6 = vcombine.low %v1967_v5, %v1971_v23  ;;  %v1979_v23 = vld [vmem:[%s15435_s12 + $0x330] sm:$0xff] }
 0x2f8   :  { %v3870_v15 = vmul.bf16 %v12069_v27, %v3102_v1  ;;  %v3872_v47 = vmul.bf16 %v12071_v3, %v3104_v16  ;;  %v12095_v43 = vcombine.high %v1968_v57, %v1972_v54  ;;  %v12099_v16 = vcombine.low %v1968_v57, %v1972_v54 }
 0x2f9   :  { %15682 = vst [vmem:[#allocation113_spill] sm:$0xff] %v12097_v6 }
 0x2fa   :  { %v2775_v18 = vpop.f32.mrb[140].mxu1  ;;  %v2968_v63 = vpop.f32.mrb[172].mxu0  ;;  %4031 = vmatprep.subr.bf16.mxu1 %v3870_v15  ;;  %4074 = vmatprep.subr.bf16.mxu0 %v3872_v47  ;;  %15681 = vst [vmem:[#allocation112_spill] sm:$0xff] %v12095_v43  ;;  %15683 = vst [vmem:[#allocation114_spill] sm:$0xff] %v12099_v16 }
 0x2fb   :  { %v2777_v7 = vpop.f32.mrb[141].mxu1  ;;  %v2970_v25 = vpop.f32.mrb[173].mxu0  ;;  %4032 = vmatpush1.bf16.msra.mxu1 %v3869_v10  ;;  %4075 = vmatpush1.bf16.msra.mxu0 %v3871_v53  ;;  %v1975_v53 = vld [vmem:[%s15435_s12 + $0x310] sm:$0xff] }
 0x2fc   :  { %v2779_v56 = vpop.f32.mrb[142].mxu1  ;;  %v2972_v39 = vpop.f32.mrb[174].mxu0 }
 0x2fd   :  { %v3109_v46 = vpack.c.bf16 %v2779_v56, %v2775_v18  ;;  %v3111_v1 = vpack.c.bf16 %v2972_v39, %v2968_v63  ;;  %v2781_v36 = vpop.f32.mrb[143].mxu1  ;;  %v2974_v58 = vpop.f32.mrb[175].mxu0  ;;  %v12117_v56 = vcombine.high %v1975_v53, %v1979_v23 }
 0x2fe   :  { %v3110_v15 = vpack.c.bf16 %v2781_v36, %v2777_v7  ;;  %v3112_v47 = vpack.c.bf16 %v2974_v58, %v2970_v25  ;;  %v1976_v58 = vld [vmem:[%s15435_s12 + $0x318] sm:$0xff] }
 0x2ff   :  { %v3877_v27 = vmul.bf16 %v12097_v6, %v3109_v46  ;;  %v3879_v5 = vmul.bf16 %v12099_v16, %v3111_v1  ;;  %v1980_v36 = vld [vmem:[%s15435_s12 + $0x338] sm:$0xff]  ;;  %15684 = vst [vmem:[#allocation115_spill] sm:$0xff] %v12117_v56  ;;  %v12121_v1 = vcombine.low %v1975_v53, %v1979_v23  ;;  %v1987_v23 = vld [vmem:[%s15435_s12 + $0x370] sm:$0xff] }
 0x300   :  { %v3878_v3 = vmul.bf16 %v12093_v33, %v3110_v15  ;;  %v3880_v10 = vmul.bf16 %v12095_v43, %v3112_v47  ;;  %v12119_v39 = vcombine.high %v1976_v58, %v1980_v36  ;;  %v12123_v47 = vcombine.low %v1976_v58, %v1980_v36 }
 0x301   :  { %15686 = vst [vmem:[#allocation117_spill] sm:$0xff] %v12121_v1 }
 0x302   :  { %v2785_v57 = vpop.f32.mrb[144].mxu1  ;;  %v2978_v54 = vpop.f32.mrb[176].mxu0  ;;  %4033 = vmatprep.subr.bf16.mxu1 %v3878_v3  ;;  %4076 = vmatprep.subr.bf16.mxu0 %v3880_v10  ;;  %15685 = vst [vmem:[#allocation116_spill] sm:$0xff] %v12119_v39  ;;  %15687 = vst [vmem:[#allocation118_spill] sm:$0xff] %v12123_v47 }
 0x303   :  { %v2787_v18 = vpop.f32.mrb[145].mxu1  ;;  %v2980_v63 = vpop.f32.mrb[177].mxu0  ;;  %4034 = vmatpush1.bf16.msra.mxu1 %v3877_v27  ;;  %4077 = vmatpush1.bf16.msra.mxu0 %v3879_v5  ;;  %v1983_v5 = vld [vmem:[%s15435_s12 + $0x350] sm:$0xff] }
 0x304   :  { %v2789_v7 = vpop.f32.mrb[146].mxu1  ;;  %v2982_v25 = vpop.f32.mrb[178].mxu0 }
 0x305   :  { %v3117_v46 = vpack.c.bf16 %v2789_v7, %v2785_v57  ;;  %v3119_v15 = vpack.c.bf16 %v2982_v25, %v2978_v54  ;;  %v2791_v16 = vpop.f32.mrb[147].mxu1  ;;  %v2984_v6 = vpop.f32.mrb[179].mxu0  ;;  %v12141_v7 = vcombine.high %v1983_v5, %v1987_v23 }
 0x306   :  { %v3118_v3 = vpack.c.bf16 %v2791_v16, %v2787_v18  ;;  %v3120_v10 = vpack.c.bf16 %v2984_v6, %v2980_v63  ;;  %v1984_v6 = vld [vmem:[%s15435_s12 + $0x358] sm:$0xff] }
 0x307   :  { %v3885_v33 = vmul.bf16 %v12121_v1, %v3117_v46  ;;  %v3887_v53 = vmul.bf16 %v12123_v47, %v3119_v15  ;;  %v1988_v16 = vld [vmem:[%s15435_s12 + $0x378] sm:$0xff]  ;;  %15688 = vst [vmem:[#allocation119_spill] sm:$0xff] %v12141_v7  ;;  %v12145_v15 = vcombine.low %v1983_v5, %v1987_v23  ;;  %v1995_v23 = vld [vmem:[%s15435_s12 + $0x3b0] sm:$0xff] }
 0x308   :  { %v3886_v43 = vmul.bf16 %v12117_v56, %v3118_v3  ;;  %v3888_v27 = vmul.bf16 %v12119_v39, %v3120_v10  ;;  %v12143_v25 = vcombine.high %v1984_v6, %v1988_v16  ;;  %v12147_v10 = vcombine.low %v1984_v6, %v1988_v16 }
 0x309   :  { %15690 = vst [vmem:[#allocation121_spill] sm:$0xff] %v12145_v15 }
 0x30a   :  { %v2795_v58 = vpop.f32.mrb[148].mxu1  ;;  %v2988_v36 = vpop.f32.mrb[180].mxu0  ;;  %4035 = vmatprep.subr.bf16.mxu1 %v3886_v43  ;;  %4078 = vmatprep.subr.bf16.mxu0 %v3888_v27  ;;  %15689 = vst [vmem:[#allocation120_spill] sm:$0xff] %v12143_v25  ;;  %15691 = vst [vmem:[#allocation122_spill] sm:$0xff] %v12147_v10 }
 0x30b   :  { %v2797_v57 = vpop.f32.mrb[149].mxu1  ;;  %v2990_v54 = vpop.f32.mrb[181].mxu0  ;;  %4036 = vmatpush1.bf16.msra.mxu1 %v3885_v33  ;;  %4079 = vmatpush1.bf16.msra.mxu0 %v3887_v53  ;;  %v1991_v53 = vld [vmem:[%s15435_s12 + $0x390] sm:$0xff] }
 0x30c   :  { %v2799_v18 = vpop.f32.mrb[150].mxu1  ;;  %v2992_v63 = vpop.f32.mrb[182].mxu0 }
 0x30d   :  { %v3125_v46 = vpack.c.bf16 %v2799_v18, %v2795_v58  ;;  %v3127_v3 = vpack.c.bf16 %v2992_v63, %v2988_v36  ;;  %v2801_v47 = vpop.f32.mrb[151].mxu1  ;;  %v2994_v1 = vpop.f32.mrb[183].mxu0  ;;  %v12165_v18 = vcombine.high %v1991_v53, %v1995_v23 }
 0x30e   :  { %v3126_v43 = vpack.c.bf16 %v2801_v47, %v2797_v57  ;;  %v3128_v27 = vpack.c.bf16 %v2994_v1, %v2990_v54  ;;  %v1992_v1 = vld [vmem:[%s15435_s12 + $0x398] sm:$0xff] }
 0x30f   :  { %v3893_v56 = vmul.bf16 %v12145_v15, %v3125_v46  ;;  %v3895_v5 = vmul.bf16 %v12147_v10, %v3127_v3  ;;  %v1996_v47 = vld [vmem:[%s15435_s12 + $0x3b8] sm:$0xff]  ;;  %15692 = vst [vmem:[#allocation123_spill] sm:$0xff] %v12165_v18  ;;  %v12169_v3 = vcombine.low %v1991_v53, %v1995_v23  ;;  %v2003_v23 = vld [vmem:[%s15435_s12 + $0x3f0] sm:$0xff] }
 0x310   :  { %v3894_v39 = vmul.bf16 %v12141_v7, %v3126_v43  ;;  %v3896_v33 = vmul.bf16 %v12143_v25, %v3128_v27  ;;  %v12167_v63 = vcombine.high %v1992_v1, %v1996_v47  ;;  %v12171_v27 = vcombine.low %v1992_v1, %v1996_v47 }
 0x311   :  { %15694 = vst [vmem:[#allocation125_spill] sm:$0xff] %v12169_v3 }
 0x312   :  { %v2805_v6 = vpop.f32.mrb[152].mxu1  ;;  %v2998_v16 = vpop.f32.mrb[184].mxu0  ;;  %4037 = vmatprep.subr.bf16.mxu1 %v3894_v39  ;;  %4080 = vmatprep.subr.bf16.mxu0 %v3896_v33  ;;  %15693 = vst [vmem:[#allocation124_spill] sm:$0xff] %v12167_v63  ;;  %15695 = vst [vmem:[#allocation126_spill] sm:$0xff] %v12171_v27 }
 0x313   :  { %v2807_v58 = vpop.f32.mrb[153].mxu1  ;;  %v3000_v36 = vpop.f32.mrb[185].mxu0  ;;  %4038 = vmatpush1.bf16.msra.mxu1 %v3893_v56  ;;  %4081 = vmatpush1.bf16.msra.mxu0 %v3895_v5  ;;  %v1999_v5 = vld [vmem:[%s15435_s12 + $0x3d0] sm:$0xff] }
 0x314   :  { %v2809_v57 = vpop.f32.mrb[154].mxu1  ;;  %v3002_v54 = vpop.f32.mrb[186].mxu0 }
 0x315   :  { %v3133_v46 = vpack.c.bf16 %v2809_v57, %v2805_v6  ;;  %v3135_v43 = vpack.c.bf16 %v3002_v54, %v2998_v16  ;;  %v2811_v10 = vpop.f32.mrb[155].mxu1  ;;  %v3004_v15 = vpop.f32.mrb[187].mxu0  ;;  %v12189_v57 = vcombine.high %v1999_v5, %v2003_v23 }
 0x316   :  { %v3134_v39 = vpack.c.bf16 %v2811_v10, %v2807_v58  ;;  %v3136_v33 = vpack.c.bf16 %v3004_v15, %v3000_v36  ;;  %v2000_v15 = vld [vmem:[%s15435_s12 + $0x3d8] sm:$0xff] }
 0x317   :  { %v3901_v7 = vmul.bf16 %v12169_v3, %v3133_v46  ;;  %v3903_v53 = vmul.bf16 %v12171_v27, %v3135_v43  ;;  %v2004_v10 = vld [vmem:[%s15435_s12 + $0x3f8] sm:$0xff]  ;;  %15696 = vst [vmem:[#allocation127_spill] sm:$0xff] %v12189_v57  ;;  %v12193_v43 = vcombine.low %v1999_v5, %v2003_v23 }
 0x318   :  { %v3902_v25 = vmul.bf16 %v12165_v18, %v3134_v39  ;;  %v3904_v56 = vmul.bf16 %v12167_v63, %v3136_v33  ;;  %v12191_v54 = vcombine.high %v2000_v15, %v2004_v10  ;;  %v12195_v33 = vcombine.low %v2000_v15, %v2004_v10 }
 0x319   :  { %15698 = vst [vmem:[#allocation129_spill] sm:$0xff] %v12193_v43 }
 0x31a   :  { %v2815_v1 = vpop.f32.mrb[156].mxu1  ;;  %v3008_v47 = vpop.f32.mrb[188].mxu0  ;;  %4039 = vmatprep.subr.bf16.mxu1 %v3902_v25  ;;  %4082 = vmatprep.subr.bf16.mxu0 %v3904_v56  ;;  %15697 = vst [vmem:[#allocation128_spill] sm:$0xff] %v12191_v54  ;;  %15699 = vst [vmem:[#allocation130_spill] sm:$0xff] %v12195_v33  ;;  %v4105_v25 = vld [vmem:[%s15434_s11] sm:$0xff] }
 0x31b   :  { %v2817_v6 = vpop.f32.mrb[157].mxu1  ;;  %v3010_v16 = vpop.f32.mrb[189].mxu0  ;;  %4040 = vmatpush1.bf16.msra.mxu1 %v3901_v7  ;;  %4083 = vmatpush1.bf16.msra.mxu0 %v3903_v53  ;;  %v4109_v7 = vld [vmem:[%s15434_s11 + $0x20] sm:$0xff] }
 0x31c   :  { %v2819_v58 = vpop.f32.mrb[158].mxu1  ;;  %v3012_v36 = vpop.f32.mrb[190].mxu0  ;;  %v12205_v23 = vcombine.high %v4105_v25, %v4109_v7 }
 0x31d   :  { %v3141_v46 = vpack.c.bf16 %v2819_v58, %v2815_v1  ;;  %v3143_v39 = vpack.c.bf16 %v3012_v36, %v3008_v47  ;;  %v2821_v27 = vpop.f32.mrb[159].mxu1  ;;  %v3014_v3 = vpop.f32.mrb[191].mxu0  ;;  %v12218_v1 = vcombine.low %v4105_v25, %v4109_v7  ;;  %v4125_v47 = vld [vmem:[%s15434_s11 + $0xa0] sm:$0xff]  ;;  %v4106_v25 = vld [vmem:[%s15434_s11 + $0x8] sm:$0xff] }
 0x31e   :  { %v3142_v56 = vpack.c.bf16 %v2821_v27, %v2817_v6  ;;  %v3144_v53 = vpack.c.bf16 %v3014_v3, %v3010_v16  ;;  %v4113_v3 = vld [vmem:[%s15434_s11 + $0x40] sm:$0xff]  ;;  %v4110_v7 = vld [vmem:[%s15434_s11 + $0x28] sm:$0xff] }
 0x31f   :  { %v3909_v15 = vmul.bf16 %v12193_v43, %v3141_v46  ;;  %v3911_v10 = vmul.bf16 %v12195_v33, %v3143_v39  ;;  %v4117_v27 = vld [vmem:[%s15434_s11 + $0x60] sm:$0xff]  ;;  %v12266_v18 = vcombine.low %v4106_v25, %v4110_v7 }
 0x320   :  { %v3910_v63 = vmul.bf16 %v12189_v57, %v3142_v56  ;;  %v3912_v5 = vmul.bf16 %v12191_v54, %v3144_v53  ;;  %v12230_v6 = vcombine.low %v4113_v3, %v4117_v27  ;;  %v4129_v58 = vld [vmem:[%s15434_s11 + $0xc0] sm:$0xff]  ;;  %v12256_v53 = vcombine.high %v4106_v25, %v4110_v7  ;;  %v4134_v7 = vld [vmem:[%s15434_s11 + $0xe8] sm:$0xff] }
 0x321   :  { %v4133_v36 = vld [vmem:[%s15434_s11 + $0xe0] sm:$0xff] }
 0x322   :  { %4041 = vmatprep.subr.bf16.mxu1 %v3910_v63  ;;  %4084 = vmatprep.subr.bf16.mxu0 %v3912_v5  ;;  %v12220_v63 = vcombine.high %v4113_v3, %v4117_v27  ;;  %v12244_v39 = vcombine.high %v4129_v58, %v4133_v36  ;;  %v12254_v56 = vcombine.low %v4129_v58, %v4133_v36 }
 0x323   :  { %4042 = vmatpush1.bf16.msra.mxu1 %v3909_v15  ;;  %4085 = vmatpush1.bf16.msra.mxu0 %v3911_v10 }
 0x324   :  { %4297 = vmatprep.subr.bf16.mxu1 %v12205_v23 }
 0x326   :  { %4044 = vmatmul.mubr.bf16.vlgmr.msra.gmra.mrb[164].mxu1 %v11823_v32  ;;  %4087 = vmatmul.mubr.bf16.vlgmr.msra.gmra.mrb[196].mxu0 %v11823_v32  ;;  %v4121_v32 = vld [vmem:[%s15434_s11 + $0x80] sm:$0xff] }
 0x327   :  { %v12232_v16 = vcombine.high %v4121_v32, %v4125_v47  ;;  %v12242_v46 = vcombine.low %v4121_v32, %v4125_v47  ;;  %v4114_v32 = vld [vmem:[%s15434_s11 + $0x48] sm:$0xff] }
 0x328   :  { %v4118_v47 = vld [vmem:[%s15434_s11 + $0x68] sm:$0xff] }
 0x329   :  { %v12268_v34 = vcombine.high %v4114_v32, %v4118_v47 }
 0x32c   :  { %4298 = vmatpush1.bf16.xpose.msra.mxu1 %v12218_v1 }
 0x32d   :  { %4299 = vmatprep.subr.bf16.mxu1 %v12220_v63 }
 0x334   :  { %4300 = vmatpush1.bf16.xpose.msra.mxu1 %v12230_v6 }
 0x335   :  { %4301 = vmatprep.subr.bf16.mxu1 %v12232_v16 }
 0x33c   :  { %4302 = vmatpush1.bf16.xpose.msra.mxu1 %v12242_v46 }
 0x33d   :  { %4303 = vmatprep.subr.bf16.mxu1 %v12244_v39 }
 0x344   :  { %4304 = vmatpush1.bf16.xpose.msra.mxu1 %v12254_v56 }
 0x345   :  { %4338 = vmatprep.subr.bf16.mxu1 %v12256_v53 }
 0x379   :  { %v3959_v5 = vpop.f32.mrb[160].mxu1  ;;  %v4002_v15 = vpop.f32.mrb[192].mxu0 }
 0x37a   :  { %v3961_v10 = vpop.f32.mrb[161].mxu1  ;;  %v4004_v3 = vpop.f32.mrb[193].mxu0 }
 0x37b   :  { %v3963_v27 = vpop.f32.mrb[162].mxu1  ;;  %v4006_v58 = vpop.f32.mrb[194].mxu0 }
 0x37c   :  { %v4097_v36 = vpack.c.bf16 %v3963_v27, %v3959_v5  ;;  %v3965_v33 = vpop.f32.mrb[163].mxu1  ;;  %v4099_v43 = vpack.c.bf16 %v4006_v58, %v4002_v15  ;;  %v4008_v54 = vpop.f32.mrb[195].mxu0  ;;  %v12276_v5 = vcombine.low %v4108_v45, %v4112_v26  ;;  %v4111_v27 = vld [vmem:[%s15434_s11 + $0x30] sm:$0xff] }
 0x37d   :  { %v4098_v57 = vpack.c.bf16 %v3965_v33, %v3961_v10  ;;  %v4100_v40 = vpack.c.bf16 %v4008_v54, %v4004_v3  ;;  %v4126_v54 = vld [vmem:[%s15434_s11 + $0xa8] sm:$0xff]  ;;  %v12286_v33 = vcombine.low %v4114_v32, %v4118_v47  ;;  %v4107_v3 = vld [vmem:[%s15434_s11 + $0x10] sm:$0xff] }
 0x37e   :  { %v12312_v47 = vcombine.high %v4107_v3, %v4111_v27  ;;  %v4115_v58 = vld [vmem:[%s15434_s11 + $0x50] sm:$0xff] }
 0x37f   :  { %4329 = vmatprep.mubr.bf16.mxu1 %v4098_v57  ;;  %v4122_v57 = vld [vmem:[%s15434_s11 + $0x88] sm:$0xff] }
 0x380   :  { %4330 = vmatmul.mubr.bf16.vlgmr.msra.gmra.mrb[168].mxu1 %v4097_v36  ;;  %v12288_v25 = vcombine.high %v4122_v57, %v4126_v54  ;;  %v12298_v15 = vcombine.low %v4122_v57, %v4126_v54  ;;  %v4119_v36 = vld [vmem:[%s15434_s11 + $0x70] sm:$0xff]  ;;  %v12322_v57 = vcombine.low %v4107_v3, %v4111_v27 }
 0x381   :  { %4339 = vmatpush1.bf16.xpose.msra.mxu1 %v12266_v18  ;;  %4370 = vmatprep.mubr.bf16.mxu1 %v4100_v40  ;;  %v4130_v40 = vld [vmem:[%s15434_s11 + $0xc8] sm:$0xff]  ;;  %v12324_v54 = vcombine.high %v4115_v58, %v4119_v36  ;;  %v12334_v59 = vcombine.low %v4115_v58, %v4119_v36  ;;  %v4135_v3 = vld [vmem:[%s15434_s11 + $0xf0] sm:$0xff]  ;;  %v12354_v36 = vcombine.high %v4108_v45, %v4112_v26 }
 0x382   :  { %4340 = vmatprep.subr.bf16.mxu1 %v12268_v34  ;;  %v12300_v10 = vcombine.high %v4130_v40, %v4134_v7  ;;  %v12310_v32 = vcombine.low %v4130_v40, %v4134_v7  ;;  %v4123_v40 = vld [vmem:[%s15434_s11 + $0x90] sm:$0xff] }
 0x383   :  { %v4127_v7 = vld [vmem:[%s15434_s11 + $0xb0] sm:$0xff] }
 0x384   :  { %v12336_v12 = vcombine.high %v4123_v40, %v4127_v7  ;;  %v12346_v27 = vcombine.low %v4123_v40, %v4127_v7  ;;  %v4116_v7 = vld [vmem:[%s15434_s11 + $0x58] sm:$0xff] }
 0x389   :  { %4341 = vmatpush1.bf16.xpose.msra.mxu1 %v12286_v33 }
 0x38a   :  { %4342 = vmatprep.subr.bf16.mxu1 %v12288_v25 }
 0x391   :  { %4343 = vmatpush1.bf16.xpose.msra.mxu1 %v12298_v15 }
 0x392   :  { %4344 = vmatprep.subr.bf16.mxu1 %v12300_v10 }
 0x399   :  { %4345 = vmatpush1.bf16.xpose.msra.mxu1 %v12310_v32 }
 0x39a   :  { %4379 = vmatprep.subr.bf16.mxu1 %v12312_v47 }
 0x3a0   :  { %4371 = vmatmul.mubr.bf16.vlgmr.msra.gmra.mrb[168].mxu1 %v4099_v43  ;;  %v4131_v43 = vld [vmem:[%s15434_s11 + $0xd0] sm:$0xff] }
 0x3a1   :  { %4380 = vmatpush1.bf16.xpose.msra.mxu1 %v12322_v57  ;;  %v12348_v9 = vcombine.high %v4131_v43, %v4135_v3  ;;  %v12352_v58 = vcombine.low %v4131_v43, %v4135_v3  ;;  %v4120_v43 = vld [vmem:[%s15434_s11 + $0x78] sm:$0xff] }
 0x3a2   :  { %4381 = vmatprep.subr.bf16.mxu1 %v12324_v54  ;;  %v12364_v48 = vcombine.high %v4116_v7, %v4120_v43 }
 0x3a9   :  { %4382 = vmatpush1.bf16.xpose.msra.mxu1 %v12334_v59 }
 0x3aa   :  { %4383 = vmatprep.subr.bf16.mxu1 %v12336_v12 }
 0x3b1   :  { %4384 = vmatpush1.bf16.xpose.msra.mxu1 %v12346_v27 }
 0x3b2   :  { %4385 = vmatprep.subr.bf16.mxu1 %v12348_v9 }
 0x3b9   :  { %4386 = vmatpush1.bf16.xpose.msra.mxu1 %v12352_v58 }
 0x3ba   :  { %4420 = vmatprep.subr.bf16.mxu1 %v12354_v36 }
 0x3f9   :  { %v4045_v30 = vpop.f32.mrb[164].mxu1  ;;  %v4088_v44 = vpop.f32.mrb[196].mxu0 }
 0x3fa   :  { %v4047_v60 = vpop.f32.mrb[165].mxu1  ;;  %v4090_v14 = vpop.f32.mrb[197].mxu0 }
 0x3fb   :  { %v4049_v40 = vpop.f32.mrb[166].mxu1  ;;  %v4092_v3 = vpop.f32.mrb[198].mxu0 }
 0x3fc   :  { %v4101_v26 = vpack.c.bf16 %v4049_v40, %v4045_v30  ;;  %v4051_v45 = vpop.f32.mrb[167].mxu1  ;;  %v4103_v29 = vpack.c.bf16 %v4092_v3, %v4088_v44  ;;  %v4094_v28 = vpop.f32.mrb[199].mxu0  ;;  %v4128_v44 = vld [vmem:[%s15434_s11 + $0xb8] sm:$0xff]  ;;  %v12374_v30 = vcombine.low %v4116_v7, %v4120_v43  ;;  %v9910_v7 = vld [vmem:[%s15432_s9] sm:$0xff]  }
 0x3fd   :  { %v4102_v11 = vpack.c.bf16 %v4051_v45, %v4047_v60  ;;  %v4104_v20 = vpack.c.bf16 %v4094_v28, %v4090_v14  ;;  %v12376_v28 = vcombine.high %v4124_v51, %v4128_v44  ;;  %v12386_v60 = vcombine.low %v4124_v51, %v4128_v44  ;;  %9656 = vmatprep.mubr.msk.bf16.mxu0 %vm4574_vm14, %v9910_v7  ;;  %v9918_v51 = vld [vmem:[%s15432_s9 + $0x40] sm:$0xff]   ;;  %v9920_v7 = vld [vmem:[%s15432_s9 + $0x50] sm:$0xff]  }
 0x3ff   :  { %4411 = vmatprep.mubr.bf16.mxu1 %v4102_v11  ;;  %v4132_v11 = vld [vmem:[%s15434_s11 + $0xd8] sm:$0xff] }
 0x400   :  { %4412 = vmatmul.mubr.bf16.vlgmr.msra.gmra.mrb[168].mxu1 %v4101_v26 }
 0x401   :  { %4421 = vmatpush1.bf16.xpose.msra.mxu1 %v12276_v5  ;;  %4452 = vmatprep.mubr.bf16.mxu1 %v4104_v20  ;;  %v4136_v20 = vld [vmem:[%s15434_s11 + $0xf8] sm:$0xff] }
 0x402   :  { %4422 = vmatprep.subr.bf16.mxu1 %v12364_v48  ;;  %v12388_v14 = vcombine.high %v4132_v11, %v4136_v20  ;;  %v12392_v40 = vcombine.low %v4132_v11, %v4136_v20  ;;  %v9919_v11 = vld [vmem:[%s15432_s9 + $0x48] sm:$0xff]   ;;  %v9912_v20 = vld [vmem:[%s15432_s9 + $0x10] sm:$0xff]  }
 0x409   :  { %4423 = vmatpush1.bf16.xpose.msra.mxu1 %v12374_v30 }
 0x40a   :  { %4424 = vmatprep.subr.bf16.mxu1 %v12376_v28 }
 0x411   :  { %4425 = vmatpush1.bf16.xpose.msra.mxu1 %v12386_v60 }
 0x412   :  { %4426 = vmatprep.subr.bf16.mxu1 %v12388_v14 }
 0x419   :  { %4427 = vmatpush1.bf16.xpose.msra.mxu1 %v12392_v40 }
 0x420   :  { %4453 = vmatmul.mubr.bf16.vlgmr.msra.gmra.mrb[168].mxu1 %v4103_v29  ;;  %v9911_v29 = vld [vmem:[%s15432_s9 + $0x8] sm:$0xff]  }
 0x421   :  { %9672 = vmatprep.mubr.msk.bf16.mxu1 %vm4574_vm14, %v9918_v51  ;;  %v9914_v51 = vld [vmem:[%s15432_s9 + $0x20] sm:$0xff]  }
 0x4f3   :  { %v4454_v43 = vpop.f32.mrb[168].mxu1 }
 0x4f4   :  { %v4456_v3 = vpop.f32.mrb[169].mxu1 }
 0x4f5   :  { %v4457_v26 = vpop.f32.mrb[170].mxu1 }
 0x4f6   :  { %v4461_v45 = vpack.c.bf16 %v4457_v26, %v4454_v43  ;;  %v4459_v44 = vpop.f32.mrb[171].mxu1 }
 0x4f8   :  { %9654 = vmatprep.subr.bf16.mxu0 %v4461_v45  ;;  %9792 = vmatprep.subr.bf16.mxu1 %v4461_v45 }
 0x4f9   :  { %9655 = vmatpush3.bf16.msra.mxu0 %v4461_v45  ;;  %9793 = vmatpush3.bf16.msra.mxu1 %v4461_v45 }
 0x4fa   :  { %4849 = vmatprep.subr.bf16.mxu0 %v12205_v23  ;;  %5042 = vmatprep.subr.bf16.mxu1 %v12256_v53  ;;  %v9913_v23 = vld [vmem:[%s15432_s9 + $0x18] sm:$0xff]  }
 0x4fb   :  { %v9921_v53 = vld [vmem:[%s15432_s9 + $0x58] sm:$0xff]  }
 0x4fc   :  { %9657 = vmatmul.mubr.msk.bf16.vlgmr.msra.gmra.mrb[200].mxu0 %vm4574_vm14, %v9911_v29  ;;  %9673 = vmatmul.mubr.msk.bf16.vlgmr.msra.gmra.mrb[172].mxu1 %vm4574_vm14, %v9919_v11 }
 0x4fd   :  { %9660 = vmatprep.mubr.msk.bf16.mxu0 %vm4574_vm14, %v9912_v20  ;;  %9676 = vmatprep.mubr.msk.bf16.mxu1 %vm4574_vm14, %v9920_v7 }
 0x4fe   :  { %4850 = vmatpush1.bf16.msra.mxu0 %v12218_v1  ;;  %5043 = vmatpush1.bf16.msra.mxu1 %v12266_v18  ;;  %v9922_v18 = vld [vmem:[%s15432_s9 + $0x60] sm:$0xff]   ;;  %v9923_v1 = vld [vmem:[%s15432_s9 + $0x68] sm:$0xff]  }
 0x4ff   :  { %4851 = vmatprep.subr.bf16.mxu0 %v12220_v63  ;;  %5044 = vmatprep.subr.bf16.mxu1 %v12268_v34  ;;  %v9915_v34 = vld [vmem:[%s15432_s9 + $0x28] sm:$0xff]   ;;  %v9916_v63 = vld [vmem:[%s15432_s9 + $0x30] sm:$0xff]  }
 0x502   :  { %4852 = vmatpush1.bf16.msra.mxu0 %v12230_v6  ;;  %5045 = vmatpush1.bf16.msra.mxu1 %v12286_v33  ;;  %v9924_v6 = vld [vmem:[%s15432_s9 + $0x70] sm:$0xff]  }
 0x503   :  { %4853 = vmatprep.subr.bf16.mxu0 %v12232_v16  ;;  %5046 = vmatprep.subr.bf16.mxu1 %v12288_v25  ;;  %v9917_v16 = vld [vmem:[%s15432_s9 + $0x38] sm:$0xff]  }
 0x504   :  { %9661 = vmatmul.mubr.msk.bf16.gmra.mrb[204].mxu0 %vm4574_vm14, %v9913_v23  ;;  %9677 = vmatmul.mubr.msk.bf16.gmra.mrb[176].mxu1 %vm4574_vm14, %v9921_v53 }
 0x505   :  { %9664 = vmatprep.mubr.msk.bf16.mxu0 %vm4574_vm14, %v9914_v51  ;;  %9680 = vmatprep.mubr.msk.bf16.mxu1 %vm4574_vm14, %v9922_v18  ;;  %v10054_v18 = vld [vmem:[%s15436_s13 + $0x40] sm:$0xff]  }
 0x506   :  { %4854 = vmatpush1.bf16.msra.mxu0 %v12242_v46  ;;  %5047 = vmatpush1.bf16.msra.mxu1 %v12298_v15  ;;  %v9925_v46 = vld [vmem:[%s15432_s9 + $0x78] sm:$0xff]  }
 0x507   :  { %4855 = vmatprep.subr.bf16.mxu0 %v12244_v39  ;;  %5048 = vmatprep.subr.bf16.mxu1 %v12300_v10  ;;  %v10175_v39 = vmov 0  }
 0x50a   :  { %4856 = vmatpush1.bf16.msra.mxu0 %v12254_v56  ;;  %5049 = vmatpush1.bf16.msra.mxu1 %v12310_v32 }
 0x50b   :  { %5235 = vmatprep.subr.bf16.mxu0 %v12312_v47  ;;  %5428 = vmatprep.subr.bf16.mxu1 %v12354_v36 }
 0x50c   :  { %9665 = vmatmul.mubr.msk.bf16.gmra.mrb[208].mxu0 %vm4574_vm14, %v9915_v34  ;;  %9681 = vmatmul.mubr.msk.bf16.gmra.mrb[180].mxu1 %vm4574_vm14, %v9923_v1 }
 0x50d   :  { %9668 = vmatprep.mubr.msk.bf16.mxu0 %vm4574_vm14, %v9916_v63  ;;  %9684 = vmatprep.mubr.msk.bf16.mxu1 %vm4574_vm14, %v9924_v6 }
 0x514   :  { %9669 = vmatmul.mubr.msk.bf16.gmra.mrb[212].mxu0 %vm4574_vm14, %v9917_v16  ;;  %9685 = vmatmul.mubr.msk.bf16.gmra.mrb[184].mxu1 %vm4574_vm14, %v9925_v46 }
 0x515   :  { %4881 = vmatprep.mubr.bf16.mxu0 %v10175_v39  ;;  %5074 = vmatprep.mubr.bf16.mxu1 %v10175_v39 }
 0x5cf   :  { %v9658_v56 = vpop.f32.mrb[200].mxu0  ;;  %v9674_v33 = vpop.f32.mrb[172].mxu1 }
 0x5d0   :  { %v4657_v25 = vpop.f32.mrb[201].mxu0  ;;  %v4721_v15 = vpop.f32.mrb[173].mxu1 }
 0x5d1   :  { %v9659_v10 = vpop.f32.mrb[202].mxu0  ;;  %v9675_v32 = vpop.f32.mrb[174].mxu1 }
 0x5d2   :  { %v12479_v47 = vpack.c.bf16 %v9659_v10, %v9658_v56  ;;  %v4660_v36 = vpop.f32.mrb[203].mxu0  ;;  %v12481_v43 = vpack.c.bf16 %v9675_v32, %v9674_v33  ;;  %v4724_v3 = vpop.f32.mrb[175].mxu1 }
 0x5d3   :  { %v12483_v26 = vpack.c.bf16 %v4660_v36, %v4657_v25  ;;  %v12485_v45 = vpack.c.bf16 %v4724_v3, %v4721_v15 }
 0x5d5   :  { %8549 = vmatmul.mubr.msk.bf16.vlgmr.msra.gmra.mrb[216].mxu0 %vm4800_vm15, %v12483_v26  ;;  %8565 = vmatmul.mubr.msk.bf16.vlgmr.msra.gmra.mrb[188].mxu1 %vm4800_vm15, %v12483_v26 }
 0x5d6   :  { %5236 = vmatpush1.bf16.msra.mxu0 %v12322_v57  ;;  %5429 = vmatpush1.bf16.msra.mxu1 %v12276_v5 }
 0x5d7   :  { %5237 = vmatprep.subr.bf16.mxu0 %v12324_v54  ;;  %5430 = vmatprep.subr.bf16.mxu1 %v12364_v48  ;;  %v9662_v44 = vpop.f32.mrb[204].mxu0  ;;  %v9678_v29 = vpop.f32.mrb[176].mxu1 }
 0x5d8   :  { %4891 = vmatprep.mubr.bf16.mxu0 %v10175_v39  ;;  %5084 = vmatprep.mubr.bf16.mxu1 %v10175_v39  ;;  %v4673_v11 = vpop.f32.mrb[205].mxu0  ;;  %v4737_v20 = vpop.f32.mrb[177].mxu1 }
 0x5d9   :  { %v9663_v7 = vpop.f32.mrb[206].mxu0  ;;  %v9679_v23 = vpop.f32.mrb[178].mxu1 }
 0x5da   :  { %5238 = vmatpush1.bf16.msra.mxu0 %v12334_v59  ;;  %5431 = vmatpush1.bf16.msra.mxu1 %v12374_v30  ;;  %v12499_v57 = vpack.c.bf16 %v9663_v7, %v9662_v44  ;;  %v4676_v5 = vpop.f32.mrb[207].mxu0  ;;  %v12501_v54 = vpack.c.bf16 %v9679_v23, %v9678_v29  ;;  %v4740_v48 = vpop.f32.mrb[179].mxu1  ;;  %v10057_v23 = vld [vmem:[%s15436_s13 + $0x80] sm:$0xff]  }
 0x5db   :  { %5239 = vmatprep.subr.bf16.mxu0 %v12336_v12  ;;  %5432 = vmatprep.subr.bf16.mxu1 %v12376_v28  ;;  %v12505_v53 = vpack.c.bf16 %v4676_v5, %v4673_v11  ;;  %v12507_v51 = vpack.c.bf16 %v4740_v48, %v4737_v20  ;;  %v10056_v20 = vld [vmem:[%s15436_s13] sm:$0xff]   ;;  %v1829_v5 = vmul.bf16 %v10057_v23, %v11157_v17  ;;  %v10058_v48 = vld [vmem:[%s15436_s13 + $0x48] sm:$0xff]  }
 0x5dc   :  { %v1813_v7 = vmul.bf16 %v10056_v20, %v11157_v17 }
 0x5dd   :  { %8550 = vmatmul.mubr.msk.bf16.gmra.mrb[220].mxu0 %vm4800_vm15, %v12479_v47  ;;  %8566 = vmatmul.mubr.msk.bf16.gmra.mrb[192].mxu1 %vm4800_vm15, %v12479_v47 }
 0x5de   :  { %5240 = vmatpush1.bf16.msra.mxu0 %v12346_v27  ;;  %5433 = vmatpush1.bf16.msra.mxu1 %v12386_v60  ;;  %v1821_v27 = vmul.bf16 %v10054_v18, %v11207_v35  ;;  %v10061_v18 = vld [vmem:[%s15436_s13 + $0x88] sm:$0xff]  }
 0x5df   :  { %5241 = vmatprep.subr.bf16.mxu0 %v12348_v9  ;;  %5434 = vmatprep.subr.bf16.mxu1 %v12388_v14  ;;  %v9666_v12 = vpop.f32.mrb[208].mxu0  ;;  %v9682_v59 = vpop.f32.mrb[180].mxu1  ;;  %v10055_v9 = vld [vmem:[%s15436_s13 + $0xc0] sm:$0xff]  }
 0x5e0   :  { %4901 = vmatprep.mubr.bf16.mxu0 %v10175_v39  ;;  %5094 = vmatprep.mubr.bf16.mxu1 %v10175_v39  ;;  %v4689_v30 = vpop.f32.mrb[209].mxu0  ;;  %v4753_v28 = vpop.f32.mrb[181].mxu1  ;;  %v1837_v60 = vmul.bf16 %v10055_v9, %v11207_v35  ;;  %v10062_v9 = vld [vmem:[%s15436_s13 + $0x50] sm:$0xff]  }
 0x5e1   :  { %v9667_v14 = vpop.f32.mrb[210].mxu0  ;;  %v9683_v34 = vpop.f32.mrb[182].mxu1 }
 0x5e2   :  { %5242 = vmatpush1.bf16.msra.mxu0 %v12352_v58  ;;  %5435 = vmatpush1.bf16.msra.mxu1 %v12392_v40  ;;  %v12529_v1 = vpack.c.bf16 %v9667_v14, %v9666_v12  ;;  %v4692_v63 = vpop.f32.mrb[211].mxu0  ;;  %v12531_v6 = vpack.c.bf16 %v9683_v34, %v9682_v59  ;;  %v4756_v16 = vpop.f32.mrb[183].mxu1  ;;  %v1822_v12 = vmul.bf16 %v10058_v48, %v11215_v19  ;;  %v10059_v59 = vld [vmem:[%s15436_s13 + $0xc8] sm:$0xff]   ;;  %v10063_v14 = vld [vmem:[%s15436_s13 + $0xd0] sm:$0xff]  }
 0x5e3   :  { %9002 = vmatprep.subr.bf16.mxu0 %v1821_v27  ;;  %9114 = vmatprep.subr.bf16.mxu1 %v1837_v60  ;;  %v12533_v46 = vpack.c.bf16 %v4692_v63, %v4689_v30  ;;  %v12535_v56 = vpack.c.bf16 %v4756_v16, %v4753_v28  ;;  %v1838_v30 = vmul.bf16 %v10059_v59, %v11215_v19  ;;  %v10064_v63 = vld [vmem:[%s15436_s13 + $0x10] sm:$0xff]  }
 0x5e4   :  { %v1830_v27 = vmul.bf16 %v10061_v18, %v11161_v22  ;;  %v1823_v60 = vmul.bf16 %v10062_v9, %v11223_v52  ;;  %v1839_v34 = vmul.bf16 %v10063_v14, %v11223_v52  ;;  %v1815_v16 = vmul.bf16 %v10064_v63, %v11171_v24  ;;  %v10077_v14 = vld [vmem:[%s15436_s13 + $0xa8] sm:$0xff]   ;;  %v10078_v63 = vld [vmem:[%s15436_s13 + $0x70] sm:$0xff]  }
 0x5e5   :  { %8551 = vmatmul.mubr.msk.bf16.gmra.mrb[224].mxu0 %vm4800_vm15, %v12505_v53  ;;  %8567 = vmatmul.mubr.msk.bf16.gmra.mrb[196].mxu1 %vm4800_vm15, %v12505_v53 }
 0x5e6   :  { %4911 = vmatprep.mubr.bf16.mxu0 %v10175_v39  ;;  %5104 = vmatprep.mubr.bf16.mxu1 %v10175_v39 }
 0x5e7   :  { %v9670_v58 = vpop.f32.mrb[212].mxu0  ;;  %v9686_v40 = vpop.f32.mrb[184].mxu1 }
 0x5e8   :  { %v4705_v33 = vpop.f32.mrb[213].mxu0  ;;  %v4769_v25 = vpop.f32.mrb[185].mxu1 }
 0x5e9   :  { %v9671_v15 = vpop.f32.mrb[214].mxu0  ;;  %v9687_v10 = vpop.f32.mrb[186].mxu1 }
 0x5ea   :  { %v12543_v32 = vpack.c.bf16 %v9671_v15, %v9670_v58  ;;  %v4708_v36 = vpop.f32.mrb[215].mxu0  ;;  %v12545_v3 = vpack.c.bf16 %v9687_v10, %v9686_v40  ;;  %v4772_v44 = vpop.f32.mrb[187].mxu1  ;;  %v10065_v58 = vld [vmem:[%s15436_s13 + $0x90] sm:$0xff]   ;;  %v10067_v15 = vld [vmem:[%s15436_s13 + $0xd8] sm:$0xff]  }
 0x5eb   :  { %v12547_v29 = vpack.c.bf16 %v4708_v36, %v4705_v33  ;;  %v12549_v11 = vpack.c.bf16 %v4772_v44, %v4769_v25  ;;  %v1831_v40 = vmul.bf16 %v10065_v58, %v11171_v24  ;;  %v10066_v33 = vld [vmem:[%s15436_s13 + $0x58] sm:$0xff]   ;;  %v1840_v10 = vmul.bf16 %v10067_v15, %v11227_v21  ;;  %v10079_v58 = vld [vmem:[%s15436_s13 + $0xf0] sm:$0xff]  }
 0x5ec   :  { %v1824_v25 = vmul.bf16 %v10066_v33, %v11227_v21  ;;  %v10069_v44 = vld [vmem:[%s15436_s13 + $0x98] sm:$0xff]   ;;  %v10080_v33 = vld [vmem:[%s15436_s13 + $0x30] sm:$0xff]  }
 0x5ed   :  { %8552 = vmatmul.mubr.msk.bf16.gmra.mrb[228].mxu0 %vm4800_vm15, %v12499_v57  ;;  %8568 = vmatmul.mubr.msk.bf16.gmra.mrb[200].mxu1 %vm4800_vm15, %v12499_v57  ;;  %v1832_v20 = vmul.bf16 %v10069_v44, %v11179_v37  ;;  %v10081_v15 = vld [vmem:[%s15436_s13 + $0xb0] sm:$0xff]   ;;  %v10083_v44 = vld [vmem:[%s15436_s13 + $0xf8] sm:$0xff]  }
 0x5ee   :  { %4921 = vmatprep.mubr.bf16.mxu0 %v10175_v39  ;;  %5114 = vmatprep.mubr.bf16.mxu1 %v10175_v39 }
 0x5f5   :  { %8553 = vmatmul.mubr.msk.bf16.gmra.mrb[232].mxu0 %vm4800_vm15, %v12533_v46  ;;  %8569 = vmatmul.mubr.msk.bf16.gmra.mrb[204].mxu1 %vm4800_vm15, %v12533_v46 }
 0x5f6   :  { %4931 = vmatprep.mubr.bf16.mxu0 %v10175_v39  ;;  %5124 = vmatprep.mubr.bf16.mxu1 %v10175_v39 }
 0x5fd   :  { %8554 = vmatmul.mubr.msk.bf16.gmra.mrb[236].mxu0 %vm4800_vm15, %v12529_v1  ;;  %8570 = vmatmul.mubr.msk.bf16.gmra.mrb[208].mxu1 %vm4800_vm15, %v12529_v1 }
 0x5fe   :  { %4941 = vmatprep.mubr.bf16.mxu0 %v10175_v39  ;;  %5134 = vmatprep.mubr.bf16.mxu1 %v10175_v39 }
 0x605   :  { %8555 = vmatmul.mubr.msk.bf16.gmra.mrb[240].mxu0 %vm4800_vm15, %v12547_v29  ;;  %8571 = vmatmul.mubr.msk.bf16.gmra.mrb[212].mxu1 %vm4800_vm15, %v12547_v29 }
 0x606   :  { %4951 = vmatprep.mubr.bf16.mxu0 %v10175_v39  ;;  %5144 = vmatprep.mubr.bf16.mxu1 %v10175_v39 }
 0x60d   :  { %8556 = vmatmul.mubr.msk.bf16.gmra.mrb[244].mxu0 %vm4800_vm15, %v12543_v32  ;;  %8572 = vmatmul.mubr.msk.bf16.gmra.mrb[216].mxu1 %vm4800_vm15, %v12543_v32 }
 0x60e   :  { %4961 = vmatprep.mubr.bf16.mxu0 %v10175_v39  ;;  %5154 = vmatprep.mubr.bf16.mxu1 %v10175_v39 }
 0x615   :  { %8557 = vmatmul.mubr.msk.bf16.gmra.mrb[248].mxu0 %vm4800_vm15, %v12485_v45  ;;  %8573 = vmatmul.mubr.msk.bf16.gmra.mrb[220].mxu1 %vm4800_vm15, %v12485_v45 }
 0x616   :  { %4971 = vmatprep.mubr.bf16.mxu0 %v10175_v39  ;;  %5164 = vmatprep.mubr.bf16.mxu1 %v10175_v39 }
 0x61d   :  { %8558 = vmatmul.mubr.msk.bf16.gmra.mrb[252].mxu0 %vm4800_vm15, %v12481_v43  ;;  %8574 = vmatmul.mubr.msk.bf16.gmra.mrb[224].mxu1 %vm4800_vm15, %v12481_v43 }
 0x61e   :  { %4981 = vmatprep.mubr.bf16.mxu0 %v10175_v39  ;;  %5174 = vmatprep.mubr.bf16.mxu1 %v10175_v39 }
 0x625   :  { %8559 = vmatmul.mubr.msk.bf16.gmra.mrb[0].mxu0 %vm4800_vm15, %v12507_v51  ;;  %8575 = vmatmul.mubr.msk.bf16.gmra.mrb[228].mxu1 %vm4800_vm15, %v12507_v51 }
 0x626   :  { %4991 = vmatprep.mubr.bf16.mxu0 %v10175_v39  ;;  %5184 = vmatprep.mubr.bf16.mxu1 %v10175_v39 }
 0x62d   :  { %8560 = vmatmul.mubr.msk.bf16.gmra.mrb[4].mxu0 %vm4800_vm15, %v12501_v54  ;;  %8576 = vmatmul.mubr.msk.bf16.gmra.mrb[232].mxu1 %vm4800_vm15, %v12501_v54 }
 0x62e   :  { %5001 = vmatprep.mubr.bf16.mxu0 %v10175_v39  ;;  %5194 = vmatprep.mubr.bf16.mxu1 %v10175_v39 }
 0x635   :  { %8561 = vmatmul.mubr.msk.bf16.gmra.mrb[8].mxu0 %vm4800_vm15, %v12535_v56  ;;  %8577 = vmatmul.mubr.msk.bf16.gmra.mrb[236].mxu1 %vm4800_vm15, %v12535_v56 }
 0x636   :  { %5011 = vmatprep.mubr.bf16.mxu0 %v10175_v39  ;;  %5204 = vmatprep.mubr.bf16.mxu1 %v10175_v39 }
 0x63d   :  { %8562 = vmatmul.mubr.msk.bf16.gmra.mrb[12].mxu0 %vm4800_vm15, %v12531_v6  ;;  %8578 = vmatmul.mubr.msk.bf16.gmra.mrb[240].mxu1 %vm4800_vm15, %v12531_v6 }
 0x63e   :  { %5021 = vmatprep.mubr.bf16.mxu0 %v10175_v39  ;;  %5214 = vmatprep.mubr.bf16.mxu1 %v10175_v39 }
 0x645   :  { %8563 = vmatmul.mubr.msk.bf16.gmra.mrb[16].mxu0 %vm4800_vm15, %v12549_v11  ;;  %8579 = vmatmul.mubr.msk.bf16.gmra.mrb[244].mxu1 %vm4800_vm15, %v12549_v11 }
 0x646   :  { %5031 = vmatprep.mubr.bf16.mxu0 %v10175_v39  ;;  %5224 = vmatprep.mubr.bf16.mxu1 %v10175_v39 }
 0x64d   :  { %8564 = vmatmul.mubr.msk.bf16.gmra.mrb[20].mxu0 %vm4800_vm15, %v12545_v3  ;;  %8580 = vmatmul.mubr.msk.bf16.gmra.mrb[248].mxu1 %vm4800_vm15, %v12545_v3 }
 0x64e   :  { %5267 = vmatprep.mubr.bf16.mxu0 %v10175_v39  ;;  %5460 = vmatprep.mubr.bf16.mxu1 %v10175_v39 }
 0x655   :  { %8581 = vmatmul.mubr.msk.bf16.vlgmr.msra.gmra.mrb[24].mxu0 %vm4800_vm15, %v12483_v26  ;;  %8597 = vmatmul.mubr.msk.bf16.vlgmr.msra.gmra.mrb[252].mxu1 %vm4800_vm15, %v12483_v26  ;;  %v10060_v26 = vld [vmem:[%s15436_s13 + $0x8] sm:$0xff]  }
 0x656   :  { %9003 = vmatpush3.bf16.msra.mxu0 %v1813_v7  ;;  %9115 = vmatpush3.bf16.msra.mxu1 %v1829_v5  ;;  %v1814_v28 = vmul.bf16 %v10060_v26, %v11161_v22  ;;  %v10070_v7 = vld [vmem:[%s15436_s13 + $0x60] sm:$0xff]  }
 0x657   :  { %9004 = vmatprep.subr.bf16.mxu0 %v1822_v12  ;;  %9116 = vmatprep.subr.bf16.mxu1 %v1838_v30  ;;  %v1825_v23 = vmul.bf16 %v10070_v7, %v11231_v38  ;;  %v10071_v5 = vld [vmem:[%s15436_s13 + $0xe0] sm:$0xff]  }
 0x658   :  { %5277 = vmatprep.mubr.bf16.mxu0 %v10175_v39  ;;  %5470 = vmatprep.mubr.bf16.mxu1 %v10175_v39  ;;  %v1841_v48 = vmul.bf16 %v10071_v5, %v11231_v38  ;;  %v10072_v12 = vld [vmem:[%s15436_s13 + $0x20] sm:$0xff]  }
 0x659   :  { %v1817_v59 = vmul.bf16 %v10072_v12, %v11183_v42  ;;  %v10073_v30 = vld [vmem:[%s15436_s13 + $0xa0] sm:$0xff]  }
 0x65a   :  { %9005 = vmatpush3.bf16.msra.mxu0 %v1814_v28  ;;  %9117 = vmatpush3.bf16.msra.mxu1 %v1830_v27  ;;  %v1833_v26 = vmul.bf16 %v10073_v30, %v11183_v42  ;;  %v10074_v28 = vld [vmem:[%s15436_s13 + $0x68] sm:$0xff]  }
 0x65b   :  { %9006 = vmatprep.subr.bf16.mxu0 %v1823_v60  ;;  %9118 = vmatprep.subr.bf16.mxu1 %v1839_v34  ;;  %v1826_v18 = vmul.bf16 %v10074_v28, %v11239_v61  ;;  %v10075_v27 = vld [vmem:[%s15436_s13 + $0xe8] sm:$0xff]   ;;  %v1834_v34 = vmul.bf16 %v10077_v14, %v11191_v50 }
 0x65c   :  { %v1842_v9 = vmul.bf16 %v10075_v27, %v11239_v61 }
 0x65d   :  { %8582 = vmatmul.mubr.msk.bf16.gmra.mrb[28].mxu0 %vm4800_vm15, %v12479_v47  ;;  %8598 = vmatmul.mubr.msk.bf16.gmra.mrb[0].mxu1 %vm4800_vm15, %v12479_v47  ;;  %v10068_v47 = vld [vmem:[%s15436_s13 + $0x18] sm:$0xff]  }
 0x65e   :  { %9007 = vmatpush3.bf16.msra.mxu0 %v1815_v16  ;;  %9119 = vmatpush3.bf16.msra.mxu1 %v1831_v40  ;;  %v1816_v36 = vmul.bf16 %v10068_v47, %v11179_v37  ;;  %v1827_v16 = vmul.bf16 %v10078_v63, %v11247_v41  ;;  %v1843_v40 = vmul.bf16 %v10079_v58, %v11247_v41  ;;  %v10082_v47 = vld [vmem:[%s15436_s13 + $0x78] sm:$0xff]  }
 0x65f   :  { %9008 = vmatprep.subr.bf16.mxu0 %v1824_v25  ;;  %9120 = vmatprep.subr.bf16.mxu1 %v1840_v10  ;;  %v1819_v25 = vmul.bf16 %v10080_v33, %v11199_v55  ;;  %v1835_v10 = vmul.bf16 %v10081_v15, %v11199_v55 }
 0x660   :  { %5287 = vmatprep.mubr.bf16.mxu0 %v10175_v39  ;;  %5480 = vmatprep.mubr.bf16.mxu1 %v10175_v39 }
 0x662   :  { %9009 = vmatpush3.bf16.msra.mxu0 %v1816_v36  ;;  %9121 = vmatpush3.bf16.msra.mxu1 %v1832_v20  ;;  %v1828_v36 = vmul.bf16 %v10082_v47, %v11251_v62  ;;  %v1844_v20 = vmul.bf16 %v10083_v44, %v11251_v62 }
 0x663   :  { %9010 = vmatprep.subr.bf16.mxu0 %v1825_v23  ;;  %9122 = vmatprep.subr.bf16.mxu1 %v1841_v48  ;;  %v10085_v23 = vld [vmem:[%s15436_s13 + $0xb8] sm:$0xff]   ;;  %v10086_v48 = vld [vmem:[%s15436_s13 + $0x140] sm:$0xff]  }
 0x664   :  { %v1836_v5 = vmul.bf16 %v10085_v23, %v11203_v0  ;;  %v1853_v12 = vmul.bf16 %v10086_v48, %v11207_v35 }
 0x665   :  { %8583 = vmatmul.mubr.msk.bf16.gmra.mrb[32].mxu0 %vm4800_vm15, %v12505_v53  ;;  %8599 = vmatmul.mubr.msk.bf16.gmra.mrb[4].mxu1 %vm4800_vm15, %v12505_v53  ;;  %v10076_v53 = vld [vmem:[%s15436_s13 + $0x28] sm:$0xff]  }
 0x666   :  { %9011 = vmatpush3.bf16.msra.mxu0 %v1817_v59  ;;  %9123 = vmatpush3.bf16.msra.mxu1 %v1833_v26  ;;  %v1818_v60 = vmul.bf16 %v10076_v53, %v11191_v50  ;;  %v10087_v59 = vld [vmem:[%s15436_s13 + $0x1c0] sm:$0xff]  }
 0x667   :  { %9012 = vmatprep.subr.bf16.mxu0 %v1826_v18  ;;  %9124 = vmatprep.subr.bf16.mxu1 %v1842_v9  ;;  %v1869_v30 = vmul.bf16 %v10087_v59, %v11207_v35 }
 0x668   :  { %5297 = vmatprep.mubr.bf16.mxu0 %v10175_v39  ;;  %5490 = vmatprep.mubr.bf16.mxu1 %v10175_v39 }
 0x66a   :  { %9013 = vmatpush3.bf16.msra.mxu0 %v1818_v60  ;;  %9125 = vmatpush3.bf16.msra.mxu1 %v1834_v34 }
 0x66b   :  { %9014 = vmatprep.subr.bf16.mxu0 %v1827_v16  ;;  %9126 = vmatprep.subr.bf16.mxu1 %v1843_v40 }
 0x66d   :  { %8584 = vmatmul.mubr.msk.bf16.gmra.mrb[36].mxu0 %vm4800_vm15, %v12499_v57  ;;  %8600 = vmatmul.mubr.msk.bf16.gmra.mrb[8].mxu1 %vm4800_vm15, %v12499_v57  ;;  %v10084_v57 = vld [vmem:[%s15436_s13 + $0x38] sm:$0xff]  }
 0x66e   :  { %9015 = vmatpush3.bf16.msra.mxu0 %v1819_v25  ;;  %9127 = vmatpush3.bf16.msra.mxu1 %v1835_v10  ;;  %v1820_v7 = vmul.bf16 %v10084_v57, %v11203_v0 }
 0x66f   :  { %9016 = vmatprep.subr.bf16.mxu0 %v1828_v36  ;;  %9128 = vmatprep.subr.bf16.mxu1 %v1844_v20 }
 0x670   :  { %5307 = vmatprep.mubr.bf16.mxu0 %v10175_v39  ;;  %5500 = vmatprep.mubr.bf16.mxu1 %v10175_v39 }
 0x672   :  { %9017 = vmatpush3.bf16.msra.mxu0 %v1820_v7  ;;  %9129 = vmatpush3.bf16.msra.mxu1 %v1836_v5 }
 0x673   :  { %9226 = vmatprep.subr.bf16.mxu0 %v1853_v12  ;;  %9338 = vmatprep.subr.bf16.mxu1 %v1869_v30 }
 0x675   :  { %8585 = vmatmul.mubr.msk.bf16.gmra.mrb[40].mxu0 %vm4800_vm15, %v12533_v46  ;;  %8601 = vmatmul.mubr.msk.bf16.gmra.mrb[12].mxu1 %vm4800_vm15, %v12533_v46 }
 0x676   :  { %5317 = vmatprep.mubr.bf16.mxu0 %v10175_v39  ;;  %5510 = vmatprep.mubr.bf16.mxu1 %v10175_v39 }
 0x67d   :  { %8586 = vmatmul.mubr.msk.bf16.gmra.mrb[44].mxu0 %vm4800_vm15, %v12529_v1  ;;  %8602 = vmatmul.mubr.msk.bf16.gmra.mrb[16].mxu1 %vm4800_vm15, %v12529_v1 }
 0x67e   :  { %5327 = vmatprep.mubr.bf16.mxu0 %v10175_v39  ;;  %5520 = vmatprep.mubr.bf16.mxu1 %v10175_v39 }
 0x685   :  { %8587 = vmatmul.mubr.msk.bf16.gmra.mrb[48].mxu0 %vm4800_vm15, %v12547_v29  ;;  %8603 = vmatmul.mubr.msk.bf16.gmra.mrb[20].mxu1 %vm4800_vm15, %v12547_v29 }
 0x686   :  { %5337 = vmatprep.mubr.bf16.mxu0 %v10175_v39  ;;  %5530 = vmatprep.mubr.bf16.mxu1 %v10175_v39 }
 0x68d   :  { %8588 = vmatmul.mubr.msk.bf16.gmra.mrb[52].mxu0 %vm4800_vm15, %v12543_v32  ;;  %8604 = vmatmul.mubr.msk.bf16.gmra.mrb[24].mxu1 %vm4800_vm15, %v12543_v32 }
 0x68e   :  { %5347 = vmatprep.mubr.bf16.mxu0 %v10175_v39  ;;  %5540 = vmatprep.mubr.bf16.mxu1 %v10175_v39 }
 0x695   :  { %8589 = vmatmul.mubr.msk.bf16.gmra.mrb[56].mxu0 %vm4800_vm15, %v12485_v45  ;;  %8605 = vmatmul.mubr.msk.bf16.gmra.mrb[28].mxu1 %vm4800_vm15, %v12485_v45 }
 0x696   :  { %5357 = vmatprep.mubr.bf16.mxu0 %v10175_v39  ;;  %5550 = vmatprep.mubr.bf16.mxu1 %v10175_v39 }
 0x69d   :  { %8590 = vmatmul.mubr.msk.bf16.gmra.mrb[60].mxu0 %vm4800_vm15, %v12481_v43  ;;  %8606 = vmatmul.mubr.msk.bf16.gmra.mrb[32].mxu1 %vm4800_vm15, %v12481_v43 }
 0x69e   :  { %5367 = vmatprep.mubr.bf16.mxu0 %v10175_v39  ;;  %5560 = vmatprep.mubr.bf16.mxu1 %v10175_v39 }
 0x6a5   :  { %8591 = vmatmul.mubr.msk.bf16.gmra.mrb[64].mxu0 %vm4800_vm15, %v12507_v51  ;;  %8607 = vmatmul.mubr.msk.bf16.gmra.mrb[36].mxu1 %vm4800_vm15, %v12507_v51 }
 0x6a6   :  { %5377 = vmatprep.mubr.bf16.mxu0 %v10175_v39  ;;  %5570 = vmatprep.mubr.bf16.mxu1 %v10175_v39 }
 0x6a8   :  { %v12823_v35 = vpop.f32.mrb[216].mxu0  ;;  %v12825_v45 = vpop.f32.mrb[188].mxu1 }
 0x6a9   :  { %v12827_v1 = vpop.f32.mrb[217].mxu0  ;;  %v12829_v43 = vpop.f32.mrb[189].mxu1 }
 0x6aa   :  { %v12831_v46 = vpop.f32.mrb[218].mxu0  ;;  %v12833_v32 = vpop.f32.mrb[190].mxu1 }
 0x6ab   :  { %v12839_v26 = vpop.f32.mrb[219].mxu0  ;;  %v12841_v28 = vpop.f32.mrb[191].mxu1 }
 0x6ac   :  { %v15702_v0 = vpack.c.bf16 %v12841_v28, %v12829_v43  ;;  %v15703_v18 = vpack.c.bf16 %v12839_v26, %v12827_v1 }
 0x6ad   :  { %8592 = vmatmul.mubr.msk.bf16.gmra.mrb[68].mxu0 %vm4800_vm15, %v12501_v54  ;;  %8608 = vmatmul.mubr.msk.bf16.gmra.mrb[40].mxu1 %vm4800_vm15, %v12501_v54 }
 0x6ae   :  { %5387 = vmatprep.mubr.bf16.mxu0 %v10175_v39  ;;  %5580 = vmatprep.mubr.bf16.mxu1 %v10175_v39  ;;  %v5752_v62 = vmul.bf16 %v11395_v2, %v15702_v0 }
 0x6b0   :  { %v12853_v9 = vpop.f32.mrb[220].mxu0  ;;  %v12855_v53 = vpop.f32.mrb[192].mxu1 }
 0x6b1   :  { %v12857_v60 = vpop.f32.mrb[221].mxu0  ;;  %v12859_v14 = vpop.f32.mrb[193].mxu1 }
 0x6b2   :  { %v12861_v34 = vpop.f32.mrb[222].mxu0  ;;  %v12863_v63 = vpop.f32.mrb[194].mxu1 }
 0x6b3   :  { %v12869_v58 = vpop.f32.mrb[223].mxu0  ;;  %v12871_v40 = vpop.f32.mrb[195].mxu1 }
 0x6b5   :  { %8593 = vmatmul.mubr.msk.bf16.gmra.mrb[72].mxu0 %vm4800_vm15, %v12535_v56  ;;  %8609 = vmatmul.mubr.msk.bf16.gmra.mrb[44].mxu1 %vm4800_vm15, %v12535_v56 }
 0x6b6   :  { %5397 = vmatprep.mubr.bf16.mxu0 %v10175_v39  ;;  %5590 = vmatprep.mubr.bf16.mxu1 %v10175_v39 }
 0x6b8   :  { %v12883_v15 = vpop.f32.mrb[224].mxu0  ;;  %v12885_v10 = vpop.f32.mrb[196].mxu1 }
 0x6b9   :  { %v12887_v47 = vpop.f32.mrb[225].mxu0  ;;  %v12889_v36 = vpop.f32.mrb[197].mxu1 }
 0x6ba   :  { %v12891_v44 = vpop.f32.mrb[226].mxu0  ;;  %v12893_v20 = vpop.f32.mrb[198].mxu1 }
 0x6bb   :  { %v12899_v7 = vpop.f32.mrb[227].mxu0  ;;  %v12901_v23 = vpop.f32.mrb[199].mxu1 }
 0x6bd   :  { %8594 = vmatmul.mubr.msk.bf16.gmra.mrb[76].mxu0 %vm4800_vm15, %v12531_v6  ;;  %8610 = vmatmul.mubr.msk.bf16.gmra.mrb[48].mxu1 %vm4800_vm15, %v12531_v6 }
 0x6be   :  { %5407 = vmatprep.mubr.bf16.mxu0 %v10175_v39  ;;  %5600 = vmatprep.mubr.bf16.mxu1 %v10175_v39 }
 0x6c0   :  { %v12913_v12 = vpop.f32.mrb[228].mxu0  ;;  %v12915_v59 = vpop.f32.mrb[200].mxu1 }
 0x6c1   :  { %15700 = vst [vmem:[#allocation131_spill] sm:$0xff] %v12915_v59  ;;  %v12917_v30 = vpop.f32.mrb[229].mxu0  ;;  %v12919_v56 = vpop.f32.mrb[201].mxu1 }
 0x6c2   :  { %v12921_v57 = vpop.f32.mrb[230].mxu0  ;;  %v12923_v5 = vpop.f32.mrb[202].mxu1 }
 0x6c3   :  { %v12929_v54 = vpop.f32.mrb[231].mxu0  ;;  %v12931_v16 = vpop.f32.mrb[203].mxu1 }
 0x6c5   :  { %8595 = vmatmul.mubr.msk.bf16.gmra.mrb[80].mxu0 %vm4800_vm15, %v12549_v11  ;;  %8611 = vmatmul.mubr.msk.bf16.gmra.mrb[52].mxu1 %vm4800_vm15, %v12549_v11  ;;  %v5750_v11 = vmul.bf16 %v11393_v13, %v15703_v18  ;;  %v15704_v13 = vpack.c.bf16 %v12831_v46, %v12823_v35  ;;  %v10089_v46 = vld [vmem:[%s15436_s13 + $0x180] sm:$0xff]  }
 0x6c6   :  { %5417 = vmatprep.mubr.bf16.mxu0 %v10175_v39  ;;  %5610 = vmatprep.mubr.bf16.mxu1 %v10175_v39 }
 0x6c7   :  { %v5749_v26 = vmul.bf16 %v11397_v4, %v15704_v13  ;;  %v15706_v13 = vpack.c.bf16 %v12871_v40, %v12859_v14  ;;  %v10091_v14 = vld [vmem:[%s15436_s13 + $0x1c8] sm:$0xff]  }
 0x6c8   :  { %v12943_v6 = vpop.f32.mrb[232].mxu0  ;;  %v12945_v48 = vpop.f32.mrb[204].mxu1 }
 0x6c9   :  { %15701 = vst [vmem:[#allocation132_spill] sm:$0xff] %v12945_v48  ;;  %v12947_v51 = vpop.f32.mrb[233].mxu0  ;;  %v12949_v33 = vpop.f32.mrb[205].mxu1 }
 0x6ca   :  { %v12951_v29 = vpop.f32.mrb[234].mxu0  ;;  %v12953_v25 = vpop.f32.mrb[206].mxu1 }
 0x6cb   :  { %v12959_v27 = vpop.f32.mrb[235].mxu0  ;;  %v12961_v39 = vpop.f32.mrb[207].mxu1 }
 0x6cd   :  { %8596 = vmatmul.mubr.msk.bf16.gmra.mrb[84].mxu0 %vm4800_vm15, %v12545_v3  ;;  %8612 = vmatmul.mubr.msk.bf16.gmra.mrb[56].mxu1 %vm4800_vm15, %v12545_v3 }
 0x6ce   :  { %5909 = vmatprep.mubr.bf16.mxu0 %v5750_v11  ;;  %6070 = vmatprep.mubr.bf16.mxu1 %v5752_v62  ;;  %v15705_v62 = vpack.c.bf16 %v12833_v32, %v12825_v45  ;;  %v1861_v32 = vmul.bf16 %v10089_v46, %v11157_v17  ;;  %v15707_v11 = vpack.c.bf16 %v12869_v58, %v12857_v60  ;;  %v10092_v58 = vld [vmem:[%s15436_s13 + $0x108] sm:$0xff]   ;;  %v10095_v46 = vld [vmem:[%s15436_s13 + $0x1d0] sm:$0xff]  }
 0x6cf   :  { %v1846_v40 = vmul.bf16 %v10092_v58, %v11161_v22 }
 0x6d0   :  { %v12979_v0 = vpop.f32.mrb[236].mxu0  ;;  %v12981_v2 = vpop.f32.mrb[208].mxu1  ;;  %v5751_v3 = vmul.bf16 %v11399_v8, %v15705_v62  ;;  %v10088_v8 = vld [vmem:[%s15436_s13 + $0x100] sm:$0xff]   ;;  %v5760_v62 = vmul.bf16 %v11427_v49, %v15706_v13  ;;  %v5758_v18 = vmul.bf16 %v11425_v31, %v15707_v11  ;;  %v1870_v49 = vmul.bf16 %v10091_v14, %v11215_v19  ;;  %v10094_v11 = vld [vmem:[%s15436_s13 + $0x150] sm:$0xff]  }
 0x6d1   :  { %v12983_v43 = vpop.f32.mrb[237].mxu0  ;;  %v12985_v28 = vpop.f32.mrb[209].mxu1  ;;  %v1845_v45 = vmul.bf16 %v10088_v8, %v11157_v17  ;;  %v10090_v8 = vld [vmem:[%s15436_s13 + $0x148] sm:$0xff]   ;;  %v15708_v13 = vpack.c.bf16 %v12861_v34, %v12853_v9  ;;  %v15710_v14 = vpack.c.bf16 %v12863_v63, %v12855_v53  ;;  %v10096_v63 = vld [vmem:[%s15436_s13 + $0x110] sm:$0xff]  }
 0x6d2   :  { %v12987_v55 = vpop.f32.mrb[238].mxu0  ;;  %v12989_v1 = vpop.f32.mrb[210].mxu1  ;;  %v1854_v17 = vmul.bf16 %v10090_v8, %v11215_v19 }
 0x6d3   :  { %v13003_v59 = vpop.f32.mrb[239].mxu0  ;;  %v13005_v48 = vpop.f32.mrb[211].mxu1 }
 0x6d4   :  { %v5662_v35 = vpack.c.bf16 %v13003_v59, %v12983_v43  ;;  %v5664_v4 = vpack.c.bf16 %v13005_v48, %v12985_v28  ;;  %v15743_v59 = vpack.c.bf16 %v12987_v55, %v12979_v0  ;;  %v15744_v43 = vld [vmem:[#allocation25_spill] sm:$0xff]  ;;  %v15747_v55 = vld [vmem:[#allocation28_spill] sm:$0xff] }
 0x6d5   :  { %5910 = vmatmul.mubr.bf16.vlgmr.msra.gmra.mrb[88].mxu0 %v5749_v26  ;;  %6071 = vmatmul.mubr.bf16.vlgmr.msra.gmra.mrb[60].mxu1 %v5751_v3  ;;  %v10093_v26 = vld [vmem:[%s15436_s13 + $0x188] sm:$0xff]  }
 0x6d6   :  { %9227 = vmatpush3.bf16.msra.mxu0 %v1845_v45  ;;  %9339 = vmatpush3.bf16.msra.mxu1 %v1861_v32  ;;  %v1862_v19 = vmul.bf16 %v10093_v26, %v11161_v22  ;;  %v1855_v45 = vmul.bf16 %v10094_v11, %v11223_v52  ;;  %v1871_v32 = vmul.bf16 %v10095_v46, %v11223_v52  ;;  %v15709_v22 = vld [vmem:[#allocation9_spill] sm:$0xff]  ;;  %v10097_v11 = vld [vmem:[%s15436_s13 + $0x190] sm:$0xff]  }
 0x6d7   :  { %5917 = vmatprep.mubr.bf16.mxu0 %v5758_v18  ;;  %6078 = vmatprep.mubr.bf16.mxu1 %v5760_v62  ;;  %v5757_v62 = vmul.bf16 %v15709_v22, %v15708_v13  ;;  %v15712_v46 = vpack.c.bf16 %v12901_v23, %v12889_v36  ;;  %v15714_v22 = vpack.c.bf16 %v12899_v7, %v12887_v47  ;;  %v10099_v36 = vld [vmem:[%s15436_s13 + $0x1d8] sm:$0xff]  }
 0x6d8   :  { %9228 = vmatprep.subr.bf16.mxu0 %v1854_v17  ;;  %9340 = vmatprep.subr.bf16.mxu1 %v1870_v49  ;;  %v13035_v60 = vpop.f32.mrb[240].mxu0  ;;  %v13037_v31 = vpop.f32.mrb[212].mxu1  ;;  %v15711_v49 = vld [vmem:[#allocation10_spill] sm:$0xff]  ;;  %v1872_v23 = vmul.bf16 %v10099_v36, %v11227_v21  ;;  %v15718_v36 = vpack.c.bf16 %v12893_v20, %v12885_v10  ;;  %v10104_v20 = vld [vmem:[%s15436_s13 + $0x120] sm:$0xff]  }
 0x6d9   :  { %v13047_v3 = vpop.f32.mrb[241].mxu0  ;;  %v13049_v18 = vpop.f32.mrb[213].mxu1  ;;  %v5759_v58 = vmul.bf16 %v15711_v49, %v15710_v14  ;;  %v15715_v14 = vld [vmem:[#allocation11_spill] sm:$0xff] }
 0x6da   :  { %9229 = vmatpush3.bf16.msra.mxu0 %v1846_v40  ;;  %9341 = vmatpush3.bf16.msra.mxu1 %v1862_v19  ;;  %v13063_v8 = vpop.f32.mrb[242].mxu0  ;;  %v13065_v17 = vpop.f32.mrb[214].mxu1  ;;  %v1847_v19 = vmul.bf16 %v10096_v63, %v11171_v24  ;;  %v5766_v49 = vmul.bf16 %v15715_v14, %v15714_v22  ;;  %v10098_v63 = vld [vmem:[%s15436_s13 + $0x158] sm:$0xff]   ;;  %v15716_v14 = vpack.c.bf16 %v12891_v44, %v12883_v15 }
 0x6db   :  { %v5669_v26 = vpack.c.bf16 %v13063_v8, %v13035_v60  ;;  %v5671_v52 = vpack.c.bf16 %v13065_v17, %v13037_v31  ;;  %9230 = vmatprep.subr.bf16.mxu0 %v1855_v45  ;;  %9342 = vmatprep.subr.bf16.mxu1 %v1871_v32  ;;  %v13075_v9 = vpop.f32.mrb[243].mxu0  ;;  %v13077_v34 = vpop.f32.mrb[215].mxu1  ;;  %v1863_v45 = vmul.bf16 %v10097_v11, %v11171_v24  ;;  %v15713_v32 = vld [vmem:[#allocation12_spill] sm:$0xff] }
 0x6dc   :  { %v5670_v40 = vpack.c.bf16 %v13075_v9, %v13047_v3  ;;  %v5672_v53 = vpack.c.bf16 %v13077_v34, %v13049_v18  ;;  %v5768_v13 = vmul.bf16 %v15713_v32, %v15712_v46  ;;  %v1856_v24 = vmul.bf16 %v10098_v63, %v11227_v21  ;;  %v10102_v46 = vld [vmem:[%s15436_s13 + $0x160] sm:$0xff]   ;;  %v15751_v60 = vld [vmem:[#allocation32_spill] sm:$0xff] }
 0x6dd   :  { %5918 = vmatmul.mubr.bf16.gmra.mrb[92].mxu0 %v5757_v62  ;;  %6079 = vmatmul.mubr.bf16.gmra.mrb[64].mxu1 %v5759_v58  ;;  %v10100_v62 = vld [vmem:[%s15436_s13 + $0x118] sm:$0xff]   ;;  %v1857_v32 = vmul.bf16 %v10102_v46, %v11231_v38  ;;  %v10105_v46 = vld [vmem:[%s15436_s13 + $0x1a0] sm:$0xff]  }
 0x6de   :  { %9231 = vmatpush3.bf16.msra.mxu0 %v1847_v19  ;;  %9343 = vmatpush3.bf16.msra.mxu1 %v1863_v45  ;;  %v1848_v58 = vmul.bf16 %v10100_v62, %v11179_v37  ;;  %v10101_v19 = vld [vmem:[%s15436_s13 + $0x198] sm:$0xff]   ;;  %v5800_v0 = vmul.bf16 %v15747_v55, %v5672_v53  ;;  %v15749_v3 = vld [vmem:[#allocation29_spill] sm:$0xff] }
 0x6df   :  { %5925 = vmatprep.mubr.bf16.mxu0 %v5766_v49  ;;  %6086 = vmatprep.mubr.bf16.mxu1 %v5768_v13  ;;  %v1864_v21 = vmul.bf16 %v10101_v19, %v11179_v37  ;;  %v10103_v13 = vld [vmem:[%s15436_s13 + $0x1e0] sm:$0xff]   ;;  %v5797_v9 = vmul.bf16 %v15749_v3, %v5669_v26  ;;  %v15752_v26 = vld [vmem:[#allocation31_spill] sm:$0xff] }
 0x6e0   :  { %9232 = vmatprep.subr.bf16.mxu0 %v1856_v24  ;;  %9344 = vmatprep.subr.bf16.mxu1 %v1872_v23  ;;  %v13107_v47 = vpop.f32.mrb[244].mxu0  ;;  %v13109_v7 = vpop.f32.mrb[216].mxu1  ;;  %v1873_v22 = vmul.bf16 %v10103_v13, %v11231_v38  ;;  %v15717_v37 = vld [vmem:[#allocation13_spill] sm:$0xff]  ;;  %v15719_v23 = vld [vmem:[#allocation14_spill] sm:$0xff]  ;;  %v15720_v13 = vpack.c.bf16 %v12931_v16, %v12919_v56 }
 0x6e1   :  { %v13119_v11 = vpop.f32.mrb[245].mxu0  ;;  %v13121_v45 = vpop.f32.mrb[217].mxu1  ;;  %v5765_v49 = vmul.bf16 %v15717_v37, %v15716_v14  ;;  %v5767_v62 = vmul.bf16 %v15719_v23, %v15718_v36  ;;  %v15722_v37 = vpack.c.bf16 %v12929_v54, %v12917_v30  ;;  %v15723_v36 = vld [vmem:[#allocation15_spill] sm:$0xff]  ;;  %v10107_v16 = vld [vmem:[%s15436_s13 + $0x1e8] sm:$0xff]  }
 0x6e2   :  { %9233 = vmatpush3.bf16.msra.mxu0 %v1848_v58  ;;  %9345 = vmatpush3.bf16.msra.mxu1 %v1864_v21  ;;  %v13135_v63 = vpop.f32.mrb[246].mxu0  ;;  %v13137_v24 = vpop.f32.mrb[218].mxu1  ;;  %v1849_v21 = vmul.bf16 %v10104_v20, %v11183_v42  ;;  %v10106_v20 = vld [vmem:[%s15436_s13 + $0x168] sm:$0xff]   ;;  %v1874_v56 = vmul.bf16 %v10107_v16, %v11239_v61  ;;  %v15726_v16 = vld [vmem:[#allocation131_spill] sm:$0xff] }
 0x6e3   :  { %v5677_v19 = vpack.c.bf16 %v13135_v63, %v13107_v47  ;;  %v5679_v38 = vpack.c.bf16 %v13137_v24, %v13109_v7  ;;  %9234 = vmatprep.subr.bf16.mxu0 %v1857_v32  ;;  %9346 = vmatprep.subr.bf16.mxu1 %v1873_v22  ;;  %v13147_v15 = vpop.f32.mrb[247].mxu0  ;;  %v13149_v44 = vpop.f32.mrb[219].mxu1  ;;  %v1865_v32 = vmul.bf16 %v10105_v46, %v11183_v42  ;;  %v15721_v22 = vld [vmem:[#allocation16_spill] sm:$0xff]  ;;  %v15755_v47 = vld [vmem:[#allocation35_spill] sm:$0xff] }
 0x6e4   :  { %v5678_v58 = vpack.c.bf16 %v13147_v15, %v13119_v11  ;;  %v5680_v10 = vpack.c.bf16 %v13149_v44, %v13121_v45  ;;  %v5776_v14 = vmul.bf16 %v15721_v22, %v15720_v13  ;;  %v5774_v23 = vmul.bf16 %v15723_v36, %v15722_v37  ;;  %v10110_v13 = vld [vmem:[%s15436_s13 + $0x170] sm:$0xff]   ;;  %v15753_v11 = vld [vmem:[#allocation33_spill] sm:$0xff]  ;;  %v15757_v24 = vld [vmem:[#allocation36_spill] sm:$0xff] }
 0x6e5   :  { %5926 = vmatmul.mubr.bf16.gmra.mrb[96].mxu0 %v5765_v49  ;;  %6087 = vmatmul.mubr.bf16.gmra.mrb[68].mxu1 %v5767_v62  ;;  %v1858_v42 = vmul.bf16 %v10106_v20, %v11239_v61  ;;  %v10108_v49 = vld [vmem:[%s15436_s13 + $0x128] sm:$0xff]   ;;  %v1859_v22 = vmul.bf16 %v10110_v13, %v11247_v41  ;;  %v15724_v36 = vpack.c.bf16 %v12921_v57, %v12913_v12 }
 0x6e6   :  { %9235 = vmatpush3.bf16.msra.mxu0 %v1849_v21  ;;  %9347 = vmatpush3.bf16.msra.mxu1 %v1865_v32  ;;  %v1850_v62 = vmul.bf16 %v10108_v49, %v11191_v50  ;;  %v10109_v21 = vld [vmem:[%s15436_s13 + $0x1a8] sm:$0xff]   ;;  %v5808_v8 = vmul.bf16 %v15751_v60, %v5680_v10  ;;  %v5805_v15 = vmul.bf16 %v15753_v11, %v5677_v19 }
 0x6e7   :  { %5933 = vmatprep.mubr.bf16.mxu0 %v5774_v23  ;;  %6094 = vmatprep.mubr.bf16.mxu1 %v5776_v14  ;;  %v1866_v61 = vmul.bf16 %v10109_v21, %v11191_v50  ;;  %v10111_v14 = vld [vmem:[%s15436_s13 + $0x1f0] sm:$0xff]   ;;  %v15725_v50 = vld [vmem:[#allocation17_spill] sm:$0xff]  ;;  %v15728_v49 = vld [vmem:[#allocation18_spill] sm:$0xff] }
 0x6e8   :  { %9236 = vmatprep.subr.bf16.mxu0 %v1858_v42  ;;  %9348 = vmatprep.subr.bf16.mxu1 %v1874_v56  ;;  %v13179_v54 = vpop.f32.mrb[248].mxu0  ;;  %v13181_v30 = vpop.f32.mrb[220].mxu1  ;;  %v1875_v37 = vmul.bf16 %v10111_v14, %v11247_v41  ;;  %v5773_v23 = vmul.bf16 %v15725_v50, %v15724_v36  ;;  %v15727_v56 = vpack.c.bf16 %v12923_v5, %v15726_v16  ;;  %v15729_v14 = vld [vmem:[#allocation6_spill] sm:$0xff]  ;;  %v15731_v16 = vld [vmem:[#allocation20_spill] sm:$0xff]  ;;  %v15733_v41 = vld [vmem:[#allocation19_spill] sm:$0xff] }
 0x6e9   :  { %v13191_v46 = vpop.f32.mrb[249].mxu0  ;;  %v13193_v32 = vpop.f32.mrb[221].mxu1  ;;  %v15730_v50 = vpack.c.bf16 %v12961_v39, %v12949_v33  ;;  %v15734_v5 = vld [vmem:[#allocation8_spill] sm:$0xff] }
 0x6ea   :  { %9237 = vmatpush3.bf16.msra.mxu0 %v1850_v62  ;;  %9349 = vmatpush3.bf16.msra.mxu1 %v1866_v61  ;;  %v13207_v20 = vpop.f32.mrb[250].mxu0  ;;  %v13209_v42 = vpop.f32.mrb[222].mxu1  ;;  %v5775_v21 = vmul.bf16 %v15728_v49, %v15727_v56  ;;  %v10112_v61 = vld [vmem:[%s15436_s13 + $0x130] sm:$0xff]   ;;  %v15732_v49 = vpack.c.bf16 %v12959_v27, %v12947_v51  ;;  %v10115_v33 = vld [vmem:[%s15436_s13 + $0x1f8] sm:$0xff]  }
 0x6eb   :  { %9238 = vmatprep.subr.bf16.mxu0 %v1859_v22  ;;  %9350 = vmatprep.subr.bf16.mxu1 %v1875_v37  ;;  %v13219_v57 = vpop.f32.mrb[251].mxu0  ;;  %v13221_v12 = vpop.f32.mrb[223].mxu1  ;;  %v1851_v36 = vmul.bf16 %v10112_v61, %v15729_v14  ;;  %v10113_v22 = vld [vmem:[%s15436_s13 + $0x1b0] sm:$0xff]   ;;  %v5784_v56 = vmul.bf16 %v15731_v16, %v15730_v50  ;;  %v10114_v61 = vld [vmem:[%s15436_s13 + $0x178] sm:$0xff]   ;;  %v1876_v39 = vmul.bf16 %v10115_v33, %v15734_v5  ;;  %v15740_v33 = vld [vmem:[#allocation22_spill] sm:$0xff] }
 0x6ec   :  { %v5686_v62 = vpack.c.bf16 %v13219_v57, %v13191_v46  ;;  %v1867_v37 = vmul.bf16 %v10113_v22, %v15729_v14  ;;  %v5782_v13 = vmul.bf16 %v15733_v41, %v15732_v49  ;;  %v1860_v14 = vmul.bf16 %v10114_v61, %v15734_v5  ;;  %v15738_v61 = vld [vmem:[#allocation132_spill] sm:$0xff] }
 0x6ed   :  { %5934 = vmatmul.mubr.bf16.gmra.mrb[100].mxu0 %v5773_v23  ;;  %6095 = vmatmul.mubr.bf16.gmra.mrb[72].mxu1 %v5775_v21  ;;  %v10116_v23 = vld [vmem:[%s15436_s13 + $0x138] sm:$0xff]   ;;  %v15735_v21 = vld [vmem:[#allocation7_spill] sm:$0xff]  ;;  %v15736_v16 = vpack.c.bf16 %v12951_v29, %v12943_v6  ;;  %v15756_v7 = vpack.c.bf16 %v13221_v12, %v13193_v32 }
 0x6ee   :  { %9239 = vmatpush3.bf16.msra.mxu0 %v1851_v36  ;;  %9351 = vmatpush3.bf16.msra.mxu1 %v1867_v37  ;;  %v1852_v41 = vmul.bf16 %v10116_v23, %v15735_v21  ;;  %v10117_v36 = vld [vmem:[%s15436_s13 + $0x1b8] sm:$0xff]   ;;  %v5814_v63 = vmul.bf16 %v15755_v47, %v5686_v62  ;;  %v15758_v47 = vpack.c.bf16 %v13207_v20, %v13179_v54  ;;  %v15762_v54 = vld [vmem:[#allocation39_spill] sm:$0xff] }
 0x6ef   :  { %5941 = vmatprep.mubr.bf16.mxu0 %v5782_v13  ;;  %6102 = vmatprep.mubr.bf16.mxu1 %v5784_v56  ;;  %v1868_v5 = vmul.bf16 %v10117_v36, %v15735_v21  ;;  %v15737_v56 = vld [vmem:[#allocation21_spill] sm:$0xff]  ;;  %v15741_v29 = vld [vmem:[#allocation24_spill] sm:$0xff]  ;;  %v5816_v19 = vmul.bf16 %v15757_v24, %v15756_v7 }
 0x6f0   :  { %9240 = vmatprep.subr.bf16.mxu0 %v1860_v14  ;;  %9352 = vmatprep.subr.bf16.mxu1 %v1876_v39  ;;  %v13251_v51 = vpop.f32.mrb[252].mxu0  ;;  %v13253_v27 = vpop.f32.mrb[224].mxu1  ;;  %v5781_v49 = vmul.bf16 %v15737_v56, %v15736_v16  ;;  %v15739_v14 = vpack.c.bf16 %v12953_v25, %v15738_v61  ;;  %v5792_v6 = vmul.bf16 %v15741_v29, %v5664_v4  ;;  %v15742_v16 = vld [vmem:[#allocation23_spill] sm:$0xff]  ;;  %v15759_v7 = vld [vmem:[#allocation37_spill] sm:$0xff] }
 0x6f1   :  { %v13263_v13 = vpop.f32.mrb[253].mxu0  ;;  %v13265_v22 = vpop.f32.mrb[225].mxu1  ;;  %v5790_v56 = vmul.bf16 %v15742_v16, %v5662_v35  ;;  %v5789_v35 = vmul.bf16 %v15744_v43, %v15743_v59  ;;  %v15748_v59 = vld [vmem:[#allocation27_spill] sm:$0xff] }
 0x6f2   :  { %9241 = vmatpush3.bf16.msra.mxu0 %v1852_v41  ;;  %9353 = vmatpush3.bf16.msra.mxu1 %v1868_v5  ;;  %v13267_v37 = vpop.f32.mrb[254].mxu0  ;;  %v13269_v50 = vpop.f32.mrb[226].mxu1  ;;  %v5783_v39 = vmul.bf16 %v15740_v33, %v15739_v14  ;;  %v5798_v43 = vmul.bf16 %v15748_v59, %v5670_v40  ;;  %v15750_v40 = vld [vmem:[#allocation30_spill] sm:$0xff] }
 0x6f3   :  { %v5693_v23 = vpack.c.bf16 %v13267_v37, %v13251_v51  ;;  %v13283_v41 = vpop.f32.mrb[255].mxu0  ;;  %v13285_v36 = vpop.f32.mrb[227].mxu1  ;;  %v15767_v51 = vld [vmem:[#allocation43_spill] sm:$0xff] }
 0x6f4   :  { %v5694_v25 = vpack.c.bf16 %v13283_v41, %v13263_v13  ;;  %v5696_v5 = vpack.c.bf16 %v13285_v36, %v13265_v22 }
 0x6f5   :  { %5942 = vmatmul.mubr.bf16.gmra.mrb[104].mxu0 %v5781_v49  ;;  %6103 = vmatmul.mubr.bf16.gmra.mrb[76].mxu1 %v5783_v39  ;;  %v15745_v49 = vpack.c.bf16 %v12989_v1, %v12981_v2  ;;  %v15746_v39 = vld [vmem:[#allocation26_spill] sm:$0xff] }
 0x6f6   :  { %5949 = vmatprep.mubr.bf16.mxu0 %v5790_v56  ;;  %6110 = vmatprep.mubr.bf16.mxu1 %v5792_v6  ;;  %v5822_v20 = vmul.bf16 %v15762_v54, %v5694_v25 }
 0x6f7   :  { %v5791_v29 = vmul.bf16 %v15746_v39, %v15745_v49 }
 0x6f8   :  { %v13299_v61 = vpop.f32.mrb[0].mxu0  ;;  %v13301_v48 = vpop.f32.mrb[228].mxu1 }
 0x6f9   :  { %v13303_v28 = vpop.f32.mrb[1].mxu0  ;;  %v13305_v4 = vpop.f32.mrb[229].mxu1 }
 0x6fa   :  { %v13307_v14 = vpop.f32.mrb[2].mxu0  ;;  %v13309_v33 = vpop.f32.mrb[230].mxu1 }
 0x6fb   :  { %v5701_v6 = vpack.c.bf16 %v13307_v14, %v13299_v61  ;;  %v5703_v16 = vpack.c.bf16 %v13309_v33, %v13301_v48  ;;  %v13323_v56 = vpop.f32.mrb[3].mxu0  ;;  %v13325_v21 = vpop.f32.mrb[231].mxu1  ;;  %v15771_v61 = vld [vmem:[#allocation47_spill] sm:$0xff]  ;;  %v15772_v48 = vld [vmem:[#allocation48_spill] sm:$0xff] }
 0x6fc   :  { %v5702_v2 = vpack.c.bf16 %v13323_v56, %v13303_v28  ;;  %v5704_v1 = vpack.c.bf16 %v13325_v21, %v13305_v4 }
 0x6fd   :  { %5950 = vmatmul.mubr.bf16.gmra.mrb[108].mxu0 %v5789_v35  ;;  %6111 = vmatmul.mubr.bf16.gmra.mrb[80].mxu1 %v5791_v29  ;;  %v5799_v35 = vmul.bf16 %v15750_v40, %v5671_v52  ;;  %v5806_v52 = vmul.bf16 %v15752_v26, %v5678_v58  ;;  %v15754_v58 = vld [vmem:[#allocation34_spill] sm:$0xff] }
 0x6fe   :  { %5957 = vmatprep.mubr.bf16.mxu0 %v5798_v43  ;;  %6118 = vmatprep.mubr.bf16.mxu1 %v5800_v0  ;;  %v5830_v37 = vmul.bf16 %v15767_v51, %v5702_v2 }
 0x700   :  { %v13339_v49 = vpop.f32.mrb[4].mxu0  ;;  %v13341_v18 = vpop.f32.mrb[232].mxu1 }
 0x701   :  { %v13343_v34 = vpop.f32.mrb[5].mxu0  ;;  %v13345_v53 = vpop.f32.mrb[233].mxu1 }
 0x702   :  { %v13347_v39 = vpop.f32.mrb[6].mxu0  ;;  %v13349_v55 = vpop.f32.mrb[234].mxu1 }
 0x703   :  { %v5709_v29 = vpack.c.bf16 %v13347_v39, %v13339_v49  ;;  %v5711_v0 = vpack.c.bf16 %v13349_v55, %v13341_v18  ;;  %v13363_v59 = vpop.f32.mrb[7].mxu0  ;;  %v13365_v43 = vpop.f32.mrb[235].mxu1  ;;  %v15775_v49 = vld [vmem:[#allocation51_spill] sm:$0xff]  ;;  %v15777_v55 = vld [vmem:[#allocation52_spill] sm:$0xff] }
 0x704   :  { %v5710_v31 = vpack.c.bf16 %v13363_v59, %v13343_v34  ;;  %v5712_v17 = vpack.c.bf16 %v13365_v43, %v13345_v53 }
 0x705   :  { %5958 = vmatmul.mubr.bf16.gmra.mrb[112].mxu0 %v5797_v9  ;;  %6119 = vmatmul.mubr.bf16.gmra.mrb[84].mxu1 %v5799_v35  ;;  %v5807_v9 = vmul.bf16 %v15754_v58, %v5679_v38 }
 0x706   :  { %5965 = vmatprep.mubr.bf16.mxu0 %v5806_v52  ;;  %6126 = vmatprep.mubr.bf16.mxu1 %v5808_v8  ;;  %v5838_v14 = vmul.bf16 %v15771_v61, %v5710_v31  ;;  %v5840_v33 = vmul.bf16 %v15772_v48, %v5712_v17  ;;  %v15773_v17 = vld [vmem:[#allocation49_spill] sm:$0xff] }
 0x708   :  { %v13379_v3 = vpop.f32.mrb[8].mxu0  ;;  %v13381_v45 = vpop.f32.mrb[236].mxu1 }
 0x709   :  { %v13383_v44 = vpop.f32.mrb[9].mxu0  ;;  %v13385_v10 = vpop.f32.mrb[237].mxu1 }
 0x70a   :  { %v13387_v40 = vpop.f32.mrb[10].mxu0  ;;  %v13389_v60 = vpop.f32.mrb[238].mxu1 }
 0x70b   :  { %v13403_v26 = vpop.f32.mrb[11].mxu0  ;;  %v13405_v52 = vpop.f32.mrb[239].mxu1 }
 0x70c   :  { %v5718_v38 = vpack.c.bf16 %v13403_v26, %v13383_v44  ;;  %v15776_v18 = vpack.c.bf16 %v13405_v52, %v13385_v10 }
 0x70d   :  { %5966 = vmatmul.mubr.bf16.gmra.mrb[116].mxu0 %v5805_v15  ;;  %6127 = vmatmul.mubr.bf16.gmra.mrb[88].mxu1 %v5807_v9  ;;  %v5813_v15 = vmul.bf16 %v15759_v7, %v15758_v47  ;;  %v15760_v9 = vpack.c.bf16 %v13209_v42, %v13181_v30  ;;  %v15763_v30 = vld [vmem:[#allocation40_spill] sm:$0xff] }
 0x70e   :  { %5973 = vmatprep.mubr.bf16.mxu0 %v5814_v63  ;;  %6134 = vmatprep.mubr.bf16.mxu1 %v5816_v19  ;;  %v15761_v63 = vld [vmem:[#allocation38_spill] sm:$0xff]  ;;  %v5824_v42 = vmul.bf16 %v15763_v30, %v5696_v5  ;;  %v15764_v5 = vld [vmem:[#allocation41_spill] sm:$0xff]  ;;  %v5846_v39 = vmul.bf16 %v15775_v49, %v5718_v38  ;;  %v15778_v49 = vpack.c.bf16 %v13387_v40, %v13379_v3  ;;  %v15782_v3 = vld [vmem:[#allocation55_spill] sm:$0xff] }
 0x70f   :  { %v5815_v24 = vmul.bf16 %v15761_v63, %v15760_v9  ;;  %v15765_v63 = vpack.c.bf16 %v13269_v50, %v13253_v27  ;;  %v15768_v27 = vld [vmem:[#allocation44_spill] sm:$0xff] }
 0x710   :  { %v13419_v58 = vpop.f32.mrb[12].mxu0  ;;  %v13421_v46 = vpop.f32.mrb[240].mxu1  ;;  %v5832_v50 = vmul.bf16 %v15768_v27, %v5704_v1  ;;  %v15769_v1 = vld [vmem:[#allocation45_spill] sm:$0xff] }
 0x711   :  { %v13423_v57 = vpop.f32.mrb[13].mxu0  ;;  %v13425_v62 = vpop.f32.mrb[241].mxu1 }
 0x712   :  { %v13427_v32 = vpop.f32.mrb[14].mxu0  ;;  %v13429_v12 = vpop.f32.mrb[242].mxu1 }
 0x713   :  { %v5725_v19 = vpack.c.bf16 %v13427_v32, %v13419_v58  ;;  %v13443_v35 = vpop.f32.mrb[15].mxu0  ;;  %v13445_v11 = vpop.f32.mrb[243].mxu1  ;;  %v15787_v58 = vld [vmem:[#allocation59_spill] sm:$0xff] }
 0x714   :  { %v5726_v47 = vpack.c.bf16 %v13443_v35, %v13423_v57  ;;  %v5728_v7 = vpack.c.bf16 %v13445_v11, %v13425_v62 }
 0x715   :  { %5974 = vmatmul.mubr.bf16.gmra.mrb[120].mxu0 %v5813_v15  ;;  %6135 = vmatmul.mubr.bf16.gmra.mrb[92].mxu1 %v5815_v24  ;;  %v5821_v15 = vmul.bf16 %v15764_v5, %v5693_v23  ;;  %v15766_v24 = vld [vmem:[#allocation42_spill] sm:$0xff] }
 0x716   :  { %5981 = vmatprep.mubr.bf16.mxu0 %v5822_v20  ;;  %6142 = vmatprep.mubr.bf16.mxu1 %v5824_v42  ;;  %v5823_v54 = vmul.bf16 %v15766_v24, %v15765_v63  ;;  %v15770_v24 = vld [vmem:[#allocation46_spill] sm:$0xff]  ;;  %v5854_v40 = vmul.bf16 %v15782_v3, %v5726_v47 }
 0x718   :  { %v13459_v9 = vpop.f32.mrb[16].mxu0  ;;  %v13461_v13 = vpop.f32.mrb[244].mxu1 }
 0x719   :  { %v13463_v41 = vpop.f32.mrb[17].mxu0  ;;  %v13465_v25 = vpop.f32.mrb[245].mxu1 }
 0x71a   :  { %v13467_v22 = vpop.f32.mrb[18].mxu0  ;;  %v13469_v36 = vpop.f32.mrb[246].mxu1 }
 0x71b   :  { %v5733_v20 = vpack.c.bf16 %v13467_v22, %v13459_v9  ;;  %v5735_v30 = vpack.c.bf16 %v13469_v36, %v13461_v13  ;;  %v13483_v42 = vpop.f32.mrb[19].mxu0  ;;  %v13485_v8 = vpop.f32.mrb[247].mxu1  ;;  %v15791_v9 = vld [vmem:[#allocation63_spill] sm:$0xff]  ;;  %v15792_v13 = vld [vmem:[#allocation64_spill] sm:$0xff] }
 0x71c   :  { %v5734_v23 = vpack.c.bf16 %v13483_v42, %v13463_v41  ;;  %v5736_v5 = vpack.c.bf16 %v13485_v8, %v13465_v25 }
 0x71d   :  { %5982 = vmatmul.mubr.bf16.gmra.mrb[124].mxu0 %v5821_v15  ;;  %6143 = vmatmul.mubr.bf16.gmra.mrb[96].mxu1 %v5823_v54  ;;  %v5829_v15 = vmul.bf16 %v15769_v1, %v5701_v6  ;;  %v5831_v54 = vmul.bf16 %v15770_v24, %v5703_v16  ;;  %v15774_v24 = vld [vmem:[#allocation50_spill] sm:$0xff] }
 0x71e   :  { %5989 = vmatprep.mubr.bf16.mxu0 %v5830_v37  ;;  %6150 = vmatprep.mubr.bf16.mxu1 %v5832_v50  ;;  %v5862_v32 = vmul.bf16 %v15787_v58, %v5734_v23 }
 0x720   :  { %v13499_v63 = vpop.f32.mrb[20].mxu0  ;;  %v13501_v28 = vpop.f32.mrb[248].mxu1 }
 0x721   :  { %v13503_v56 = vpop.f32.mrb[21].mxu0  ;;  %v13505_v2 = vpop.f32.mrb[249].mxu1 }
 0x722   :  { %v13507_v21 = vpop.f32.mrb[22].mxu0  ;;  %v13509_v4 = vpop.f32.mrb[250].mxu1 }
 0x723   :  { %v5741_v51 = vpack.c.bf16 %v13507_v21, %v13499_v63  ;;  %v5743_v37 = vpack.c.bf16 %v13509_v4, %v13501_v28  ;;  %v13523_v27 = vpop.f32.mrb[23].mxu0  ;;  %v13525_v50 = vpop.f32.mrb[251].mxu1  ;;  %v15795_v63 = vld [vmem:[#allocation67_spill] sm:$0xff]  ;;  %v15797_v4 = vld [vmem:[#allocation68_spill] sm:$0xff] }
 0x724   :  { %v5742_v6 = vpack.c.bf16 %v13523_v27, %v13503_v56  ;;  %v5744_v16 = vpack.c.bf16 %v13525_v50, %v13505_v2 }
 0x725   :  { %5990 = vmatmul.mubr.bf16.gmra.mrb[128].mxu0 %v5829_v15  ;;  %6151 = vmatmul.mubr.bf16.gmra.mrb[100].mxu1 %v5831_v54  ;;  %v5837_v15 = vmul.bf16 %v15773_v17, %v5709_v29  ;;  %v5839_v54 = vmul.bf16 %v15774_v24, %v5711_v0  ;;  %v5848_v29 = vmul.bf16 %v15777_v55, %v15776_v18  ;;  %v15779_v18 = vld [vmem:[#allocation53_spill] sm:$0xff] }
 0x726   :  { %5997 = vmatprep.mubr.bf16.mxu0 %v5838_v14  ;;  %6158 = vmatprep.mubr.bf16.mxu1 %v5840_v33  ;;  %v5870_v22 = vmul.bf16 %v15791_v9, %v5742_v6  ;;  %v5872_v36 = vmul.bf16 %v15792_v13, %v5744_v16  ;;  %v15793_v16 = vld [vmem:[#allocation65_spill] sm:$0xff] }
 0x728   :  { %v13539_v1 = vpop.f32.mrb[24].mxu0  ;;  %v13541_v34 = vpop.f32.mrb[252].mxu1 }
 0x729   :  { %v13543_v59 = vpop.f32.mrb[25].mxu0  ;;  %v13545_v31 = vpop.f32.mrb[253].mxu1 }
 0x72a   :  { %v13547_v53 = vpop.f32.mrb[26].mxu0  ;;  %v13549_v43 = vpop.f32.mrb[254].mxu1 }
 0x72b   :  { %v13563_v48 = vpop.f32.mrb[27].mxu0  ;;  %v13565_v33 = vpop.f32.mrb[255].mxu1 }
 0x72c   :  { %v5626_v0 = vpack.c.bf16 %v13563_v48, %v13543_v59  ;;  %v15796_v28 = vpack.c.bf16 %v13565_v33, %v13545_v31 }
 0x72d   :  { %5998 = vmatmul.mubr.bf16.gmra.mrb[132].mxu0 %v5837_v15  ;;  %6159 = vmatmul.mubr.bf16.gmra.mrb[104].mxu1 %v5839_v54  ;;  %v5845_v15 = vmul.bf16 %v15779_v18, %v15778_v49  ;;  %v15780_v54 = vpack.c.bf16 %v13389_v60, %v13381_v45  ;;  %v15783_v45 = vld [vmem:[#allocation56_spill] sm:$0xff] }
 0x72e   :  { %6005 = vmatprep.mubr.bf16.mxu0 %v5846_v39  ;;  %6166 = vmatprep.mubr.bf16.mxu1 %v5848_v29  ;;  %v15781_v39 = vld [vmem:[#allocation54_spill] sm:$0xff]  ;;  %v5856_v60 = vmul.bf16 %v15783_v45, %v5728_v7  ;;  %v15784_v7 = vld [vmem:[#allocation57_spill] sm:$0xff]  ;;  %v5754_v21 = vmul.bf16 %v15795_v63, %v5626_v0  ;;  %v15798_v63 = vpack.c.bf16 %v13547_v53, %v13539_v1  ;;  %v15802_v1 = vld [vmem:[#allocation71_spill] sm:$0xff] }
 0x72f   :  { %v5847_v55 = vmul.bf16 %v15781_v39, %v15780_v54  ;;  %v15785_v39 = vpack.c.bf16 %v13429_v12, %v13421_v46  ;;  %v15788_v46 = vld [vmem:[#allocation60_spill] sm:$0xff] }
 0x730   :  { %v13579_v24 = vpop.f32.mrb[28].mxu0  ;;  %v13581_v44 = vpop.f32.mrb[0].mxu1  ;;  %v5864_v12 = vmul.bf16 %v15788_v46, %v5736_v5  ;;  %v15789_v5 = vld [vmem:[#allocation61_spill] sm:$0xff] }
 0x731   :  { %v13583_v26 = vpop.f32.mrb[29].mxu0  ;;  %v13585_v38 = vpop.f32.mrb[1].mxu1 }
 0x732   :  { %v13587_v10 = vpop.f32.mrb[30].mxu0  ;;  %v13589_v52 = vpop.f32.mrb[2].mxu1 }
 0x733   :  { %v5633_v29 = vpack.c.bf16 %v13587_v10, %v13579_v24  ;;  %v13603_v61 = vpop.f32.mrb[31].mxu0  ;;  %v13605_v17 = vpop.f32.mrb[3].mxu1  ;;  %v15807_v24 = vld [vmem:[#allocation75_spill] sm:$0xff] }
 0x734   :  { %v5634_v49 = vpack.c.bf16 %v13603_v61, %v13583_v26  ;;  %v5636_v18 = vpack.c.bf16 %v13605_v17, %v13585_v38 }
 0x735   :  { %6006 = vmatmul.mubr.bf16.gmra.mrb[136].mxu0 %v5845_v15  ;;  %6167 = vmatmul.mubr.bf16.gmra.mrb[108].mxu1 %v5847_v55  ;;  %v5853_v15 = vmul.bf16 %v15784_v7, %v5725_v19  ;;  %v15786_v55 = vld [vmem:[#allocation58_spill] sm:$0xff] }
 0x736   :  { %6013 = vmatprep.mubr.bf16.mxu0 %v5854_v40  ;;  %6174 = vmatprep.mubr.bf16.mxu1 %v5856_v60  ;;  %v5855_v3 = vmul.bf16 %v15786_v55, %v15785_v39  ;;  %v15790_v55 = vld [vmem:[#allocation62_spill] sm:$0xff]  ;;  %v5762_v53 = vmul.bf16 %v15802_v1, %v5634_v49 }
 0x738   :  { %v13619_v54 = vpop.f32.mrb[32].mxu0  ;;  %v13621_v35 = vpop.f32.mrb[4].mxu1 }
 0x739   :  { %v13623_v57 = vpop.f32.mrb[33].mxu0  ;;  %v13625_v47 = vpop.f32.mrb[5].mxu1 }
 0x73a   :  { %v13627_v11 = vpop.f32.mrb[34].mxu0  ;;  %v13629_v62 = vpop.f32.mrb[6].mxu1 }
 0x73b   :  { %v5641_v40 = vpack.c.bf16 %v13627_v11, %v13619_v54  ;;  %v5643_v45 = vpack.c.bf16 %v13629_v62, %v13621_v35  ;;  %v13643_v60 = vpop.f32.mrb[35].mxu0  ;;  %v13645_v14 = vpop.f32.mrb[7].mxu1  ;;  %v15811_v54 = vld [vmem:[#allocation79_spill] sm:$0xff]  ;;  %v15812_v35 = vld [vmem:[#allocation80_spill] sm:$0xff] }
 0x73c   :  { %v5642_v19 = vpack.c.bf16 %v13643_v60, %v13623_v57  ;;  %v5644_v7 = vpack.c.bf16 %v13645_v14, %v13625_v47 }
 0x73d   :  { %6014 = vmatmul.mubr.bf16.gmra.mrb[140].mxu0 %v5853_v15  ;;  %6175 = vmatmul.mubr.bf16.gmra.mrb[112].mxu1 %v5855_v3  ;;  %v5861_v15 = vmul.bf16 %v15789_v5, %v5733_v20  ;;  %v5863_v3 = vmul.bf16 %v15790_v55, %v5735_v30  ;;  %v15794_v55 = vld [vmem:[#allocation66_spill] sm:$0xff] }
 0x73e   :  { %6021 = vmatprep.mubr.bf16.mxu0 %v5862_v32  ;;  %6182 = vmatprep.mubr.bf16.mxu1 %v5864_v12  ;;  %v5770_v10 = vmul.bf16 %v15807_v24, %v5642_v19 }
 0x740   :  { %v13659_v39 = vpop.f32.mrb[36].mxu0  ;;  %v13661_v41 = vpop.f32.mrb[8].mxu1 }
 0x741   :  { %v13663_v42 = vpop.f32.mrb[37].mxu0  ;;  %v13665_v23 = vpop.f32.mrb[9].mxu1 }
 0x742   :  { %v13667_v8 = vpop.f32.mrb[38].mxu0  ;;  %v13669_v25 = vpop.f32.mrb[10].mxu1 }
 0x743   :  { %v5649_v58 = vpack.c.bf16 %v13667_v8, %v13659_v39  ;;  %v5651_v32 = vpack.c.bf16 %v13669_v25, %v13661_v41  ;;  %v13683_v46 = vpop.f32.mrb[39].mxu0  ;;  %v13685_v12 = vpop.f32.mrb[11].mxu1  ;;  %v15815_v39 = vld [vmem:[#allocation83_spill] sm:$0xff]  ;;  %v15817_v25 = vld [vmem:[#allocation84_spill] sm:$0xff] }
 0x744   :  { %v5650_v20 = vpack.c.bf16 %v13683_v46, %v13663_v42  ;;  %v5652_v30 = vpack.c.bf16 %v13685_v12, %v13665_v23 }
 0x745   :  { %6022 = vmatmul.mubr.bf16.gmra.mrb[144].mxu0 %v5861_v15  ;;  %6183 = vmatmul.mubr.bf16.gmra.mrb[116].mxu1 %v5863_v3  ;;  %v5869_v15 = vmul.bf16 %v15793_v16, %v5741_v51  ;;  %v5871_v3 = vmul.bf16 %v15794_v55, %v5743_v37  ;;  %v5756_v51 = vmul.bf16 %v15797_v4, %v15796_v28  ;;  %v15799_v28 = vld [vmem:[#allocation69_spill] sm:$0xff] }
 0x746   :  { %6029 = vmatprep.mubr.bf16.mxu0 %v5870_v22  ;;  %6190 = vmatprep.mubr.bf16.mxu1 %v5872_v36  ;;  %v5778_v11 = vmul.bf16 %v15811_v54, %v5650_v20  ;;  %v5780_v62 = vmul.bf16 %v15812_v35, %v5652_v30  ;;  %v15813_v30 = vld [vmem:[#allocation81_spill] sm:$0xff] }
 0x748   :  { %v13699_v5 = vpop.f32.mrb[40].mxu0  ;;  %v13701_v56 = vpop.f32.mrb[12].mxu1 }
 0x749   :  { %v13703_v27 = vpop.f32.mrb[41].mxu0  ;;  %v13705_v6 = vpop.f32.mrb[13].mxu1 }
 0x74a   :  { %v13707_v2 = vpop.f32.mrb[42].mxu0  ;;  %v13709_v50 = vpop.f32.mrb[14].mxu1 }
 0x74b   :  { %v13723_v13 = vpop.f32.mrb[43].mxu0  ;;  %v13725_v36 = vpop.f32.mrb[15].mxu1 }
 0x74c   :  { %v5658_v37 = vpack.c.bf16 %v13723_v13, %v13703_v27  ;;  %v15816_v41 = vpack.c.bf16 %v13725_v36, %v13705_v6  ;;  %v6521_v27 = vld [vmem:[%s15427_s4] sm:$0xff]  ;;  %v6522_v6 = vld [vmem:[%s15427_s4 + $0x8] sm:$0xff] }
 0x74d   :  { %6030 = vmatmul.mubr.bf16.gmra.mrb[148].mxu0 %v5869_v15  ;;  %6191 = vmatmul.mubr.bf16.gmra.mrb[120].mxu1 %v5871_v3  ;;  %v5753_v15 = vmul.bf16 %v15799_v28, %v15798_v63  ;;  %v15800_v3 = vpack.c.bf16 %v13549_v43, %v13541_v34  ;;  %v15803_v34 = vld [vmem:[#allocation72_spill] sm:$0xff]  ;;  %v9780_v13 = vpack.c.bf16 %v6522_v6, %v6521_v27  ;;  %v15822_v6 = vld [vmem:[#allocation86_spill] sm:$0xff] }
 0x74e   :  { %6231 = vmatprep.mubr.bf16.mxu0 %v5754_v21  ;;  %6392 = vmatprep.mubr.bf16.mxu1 %v5756_v51  ;;  %v15801_v21 = vld [vmem:[#allocation70_spill] sm:$0xff]  ;;  %v5764_v43 = vmul.bf16 %v15803_v34, %v5636_v18  ;;  %v15804_v18 = vld [vmem:[#allocation73_spill] sm:$0xff]  ;;  %v5786_v8 = vmul.bf16 %v15815_v39, %v5658_v37  ;;  %v15821_v27 = vpack.c.bf16 %v13709_v50, %v13701_v56  ;;  %v15824_v56 = vld [vmem:[#allocation88_spill] sm:$0xff] }
 0x74f   :  { %v5755_v4 = vmul.bf16 %v15801_v21, %v15800_v3  ;;  %v15805_v21 = vpack.c.bf16 %v13589_v52, %v13581_v44  ;;  %v15808_v44 = vld [vmem:[#allocation76_spill] sm:$0xff]  ;;  %9782 = vmatprep.subr.msk.bf16.mxu0 %vm10265_vm1, %v9780_v13 }
 0x750   :  { %v13739_v55 = vpop.f32.mrb[44].mxu0  ;;  %v13741_v59 = vpop.f32.mrb[16].mxu1  ;;  %v5772_v52 = vmul.bf16 %v15808_v44, %v5644_v7  ;;  %v15809_v7 = vld [vmem:[#allocation77_spill] sm:$0xff] }
 0x751   :  { %v13743_v48 = vpop.f32.mrb[45].mxu0  ;;  %v13745_v0 = vpop.f32.mrb[17].mxu1 }
 0x752   :  { %v13747_v31 = vpop.f32.mrb[46].mxu0  ;;  %v13749_v33 = vpop.f32.mrb[18].mxu1 }
 0x753   :  { %v5665_v51 = vpack.c.bf16 %v13747_v31, %v13739_v55  ;;  %v13763_v9 = vpop.f32.mrb[47].mxu0  ;;  %v13765_v16 = vpop.f32.mrb[19].mxu1  ;;  %v15828_v55 = vld [vmem:[#allocation91_spill] sm:$0xff] }
 0x754   :  { %v5666_v63 = vpack.c.bf16 %v13763_v9, %v13743_v48  ;;  %v5668_v28 = vpack.c.bf16 %v13765_v16, %v13745_v0 }
 0x755   :  { %6232 = vmatmul.mubr.bf16.vlgmr.msra.gmra.mrb[152].mxu0 %v5753_v15  ;;  %6393 = vmatmul.mubr.bf16.vlgmr.msra.gmra.mrb[124].mxu1 %v5755_v4  ;;  %v5761_v15 = vmul.bf16 %v15804_v18, %v5633_v29  ;;  %v15806_v4 = vld [vmem:[#allocation74_spill] sm:$0xff] }
 0x756   :  { %6239 = vmatprep.mubr.bf16.mxu0 %v5762_v53  ;;  %6400 = vmatprep.mubr.bf16.mxu1 %v5764_v43  ;;  %v5763_v1 = vmul.bf16 %v15806_v4, %v15805_v21  ;;  %v15810_v4 = vld [vmem:[#allocation78_spill] sm:$0xff]  ;;  %v5796_v50 = vmul.bf16 %v15824_v56, %v5668_v28  ;;  %v15825_v28 = vld [vmem:[#allocation89_spill] sm:$0xff] }
 0x757   :  { %9785 = vmatpush3.bf16.xpose.msk.msra.mxu0 %vm10265_vm1, %v9780_v13 }
 0x758   :  { %v13779_v3 = vpop.f32.mrb[48].mxu0  ;;  %v13781_v61 = vpop.f32.mrb[20].mxu1 }
 0x759   :  { %v13783_v26 = vpop.f32.mrb[49].mxu0  ;;  %v13785_v49 = vpop.f32.mrb[21].mxu1 }
 0x75a   :  { %v13787_v17 = vpop.f32.mrb[50].mxu0  ;;  %v13789_v38 = vpop.f32.mrb[22].mxu1 }
 0x75b   :  { %v5673_v53 = vpack.c.bf16 %v13787_v17, %v13779_v3  ;;  %v5675_v34 = vpack.c.bf16 %v13789_v38, %v13781_v61  ;;  %v13803_v43 = vpop.f32.mrb[51].mxu0  ;;  %v13805_v22 = vpop.f32.mrb[23].mxu1  ;;  %v15832_v3 = vld [vmem:[#allocation95_spill] sm:$0xff]  ;;  %v15833_v61 = vld [vmem:[#allocation96_spill] sm:$0xff] }
 0x75c   :  { %v5674_v29 = vpack.c.bf16 %v13803_v43, %v13783_v26  ;;  %v5676_v18 = vpack.c.bf16 %v13805_v22, %v13785_v49 }
 0x75d   :  { %6240 = vmatmul.mubr.bf16.gmra.mrb[156].mxu0 %v5761_v15  ;;  %6401 = vmatmul.mubr.bf16.gmra.mrb[128].mxu1 %v5763_v1  ;;  %v5769_v15 = vmul.bf16 %v15809_v7, %v5641_v40  ;;  %v5771_v1 = vmul.bf16 %v15810_v4, %v5643_v45  ;;  %v15814_v4 = vld [vmem:[#allocation82_spill] sm:$0xff] }
 0x75e   :  { %6247 = vmatprep.mubr.bf16.mxu0 %v5770_v10  ;;  %6408 = vmatprep.mubr.bf16.mxu1 %v5772_v52  ;;  %v5802_v31 = vmul.bf16 %v15828_v55, %v5674_v29 }
 0x760   :  { %v13819_v21 = vpop.f32.mrb[52].mxu0  ;;  %v13821_v57 = vpop.f32.mrb[24].mxu1 }
 0x761   :  { %v13823_v60 = vpop.f32.mrb[53].mxu0  ;;  %v13825_v19 = vpop.f32.mrb[25].mxu1 }
 0x762   :  { %v13827_v14 = vpop.f32.mrb[54].mxu0  ;;  %v13829_v47 = vpop.f32.mrb[26].mxu1 }
 0x763   :  { %v5681_v24 = vpack.c.bf16 %v13827_v14, %v13819_v21  ;;  %v13843_v44 = vpop.f32.mrb[55].mxu0  ;;  %v13845_v52 = vpop.f32.mrb[27].mxu1  ;;  %v15838_v14 = vld [vmem:[#allocation99_spill] sm:$0xff] }
 0x764   :  { %v5682_v40 = vpack.c.bf16 %v13843_v44, %v13823_v60  ;;  %v5684_v45 = vpack.c.bf16 %v13845_v52, %v13825_v19 }
 0x765   :  { %6248 = vmatmul.mubr.bf16.gmra.mrb[160].mxu0 %v5769_v15  ;;  %6409 = vmatmul.mubr.bf16.gmra.mrb[132].mxu1 %v5771_v1  ;;  %v5777_v15 = vmul.bf16 %v15813_v30, %v5649_v58  ;;  %v5779_v1 = vmul.bf16 %v15814_v4, %v5651_v32  ;;  %v5788_v58 = vmul.bf16 %v15817_v25, %v15816_v41  ;;  %v15820_v25 = vld [vmem:[#allocation85_spill] sm:$0xff] }
 0x766   :  { %6255 = vmatprep.mubr.bf16.mxu0 %v5778_v11  ;;  %6416 = vmatprep.mubr.bf16.mxu1 %v5780_v62  ;;  %v15819_v41 = vpack.c.bf16 %v13707_v2, %v13699_v5  ;;  %v5787_v11 = vmul.bf16 %v15822_v6, %v15821_v27  ;;  %v15823_v5 = vld [vmem:[#allocation87_spill] sm:$0xff]  ;;  %v15827_v27 = vld [vmem:[#allocation90_spill] sm:$0xff]  ;;  %v5810_v17 = vmul.bf16 %v15832_v3, %v5682_v40 }
 0x767   :  { %v5794_v2 = vmul.bf16 %v15823_v5, %v5666_v63  ;;  %v5812_v38 = vmul.bf16 %v15833_v61, %v5684_v45  ;;  %v15834_v45 = vld [vmem:[#allocation97_spill] sm:$0xff] }
 0x768   :  { %v13859_v7 = vpop.f32.mrb[56].mxu0  ;;  %v13861_v42 = vpop.f32.mrb[28].mxu1 }
 0x769   :  { %v13863_v46 = vpop.f32.mrb[57].mxu0  ;;  %v13865_v20 = vpop.f32.mrb[29].mxu1 }
 0x76a   :  { %v13867_v23 = vpop.f32.mrb[58].mxu0  ;;  %v13869_v12 = vpop.f32.mrb[30].mxu1 }
 0x76b   :  { %v13883_v35 = vpop.f32.mrb[59].mxu0  ;;  %v13885_v62 = vpop.f32.mrb[31].mxu1 }
 0x76c   :  { %v15837_v21 = vpack.c.bf16 %v13883_v35, %v13863_v46 }
 0x76d   :  { %6256 = vmatmul.mubr.bf16.gmra.mrb[164].mxu0 %v5777_v15  ;;  %6417 = vmatmul.mubr.bf16.gmra.mrb[136].mxu1 %v5779_v1  ;;  %v15867_v15 = vld [vmem:[#allocation120_spill] sm:$0xff] }
 0x76e   :  { %6263 = vmatprep.mubr.bf16.mxu0 %v5786_v8  ;;  %6424 = vmatprep.mubr.bf16.mxu1 %v5788_v58  ;;  %v5785_v58 = vmul.bf16 %v15820_v25, %v15819_v41 }
 0x770   :  { %v13905_v36 = vpop.f32.mrb[60].mxu0  ;;  %v13907_v37 = vpop.f32.mrb[32].mxu1 }
 0x771   :  { %v13909_v4 = vpop.f32.mrb[61].mxu0  ;;  %v13911_v39 = vpop.f32.mrb[33].mxu1 }
 0x772   :  { %v13915_v1 = vpop.f32.mrb[62].mxu0  ;;  %v13917_v8 = vpop.f32.mrb[34].mxu1 }
 0x773   :  { %v5697_v54 = vpack.c.bf16 %v13915_v1, %v13905_v36  ;;  %v5699_v30 = vpack.c.bf16 %v13917_v8, %v13907_v37  ;;  %v13933_v32 = vpop.f32.mrb[63].mxu0  ;;  %v13935_v10 = vpop.f32.mrb[35].mxu1  ;;  %v15849_v36 = vld [vmem:[#allocation107_spill] sm:$0xff]  ;;  %v15850_v37 = vld [vmem:[#allocation108_spill] sm:$0xff] }
 0x774   :  { %v5698_v13 = vpack.c.bf16 %v13933_v32, %v13909_v4  ;;  %v5700_v41 = vpack.c.bf16 %v13935_v10, %v13911_v39 }
 0x775   :  { %6264 = vmatmul.mubr.bf16.gmra.mrb[168].mxu0 %v5785_v58  ;;  %6425 = vmatmul.mubr.bf16.gmra.mrb[140].mxu1 %v5787_v11  ;;  %v5793_v58 = vmul.bf16 %v15825_v28, %v5665_v51  ;;  %v15826_v11 = vpack.c.bf16 %v13749_v33, %v13741_v59  ;;  %v15829_v59 = vld [vmem:[#allocation92_spill] sm:$0xff] }
 0x776   :  { %6271 = vmatprep.mubr.bf16.mxu0 %v5794_v2  ;;  %6432 = vmatprep.mubr.bf16.mxu1 %v5796_v50  ;;  %v5804_v33 = vmul.bf16 %v15829_v59, %v5676_v18  ;;  %v15830_v18 = vld [vmem:[#allocation93_spill] sm:$0xff] }
 0x777   :  { %v5795_v6 = vmul.bf16 %v15827_v27, %v15826_v11  ;;  %v15831_v27 = vld [vmem:[#allocation94_spill] sm:$0xff] }
 0x778   :  { %v13949_v25 = vpop.f32.mrb[64].mxu0  ;;  %v13951_v9 = vpop.f32.mrb[36].mxu1 }
 0x779   :  { %v13953_v48 = vpop.f32.mrb[65].mxu0  ;;  %v13955_v63 = vpop.f32.mrb[37].mxu1 }
 0x77a   :  { %v13957_v16 = vpop.f32.mrb[66].mxu0  ;;  %v13959_v0 = vpop.f32.mrb[38].mxu1 }
 0x77b   :  { %v5705_v5 = vpack.c.bf16 %v13957_v16, %v13949_v25  ;;  %v5707_v2 = vpack.c.bf16 %v13959_v0, %v13951_v9  ;;  %v13973_v56 = vpop.f32.mrb[67].mxu0  ;;  %v13975_v50 = vpop.f32.mrb[39].mxu1  ;;  %v15853_v25 = vld [vmem:[#allocation111_spill] sm:$0xff]  ;;  %v15854_v9 = vld [vmem:[#allocation112_spill] sm:$0xff] }
 0x77c   :  { %v5706_v51 = vpack.c.bf16 %v13973_v56, %v13953_v48  ;;  %v5708_v28 = vpack.c.bf16 %v13975_v50, %v13955_v63 }
 0x77d   :  { %6272 = vmatmul.mubr.bf16.gmra.mrb[172].mxu0 %v5793_v58  ;;  %6433 = vmatmul.mubr.bf16.gmra.mrb[144].mxu1 %v5795_v6  ;;  %v5801_v58 = vmul.bf16 %v15830_v18, %v5673_v53  ;;  %v5803_v6 = vmul.bf16 %v15831_v27, %v5675_v34  ;;  %v15835_v27 = vpack.c.bf16 %v13829_v47, %v13821_v57  ;;  %v15840_v47 = vld [vmem:[#allocation100_spill] sm:$0xff] }
 0x77e   :  { %6279 = vmatprep.mubr.bf16.mxu0 %v5802_v31  ;;  %6440 = vmatprep.mubr.bf16.mxu1 %v5804_v33  ;;  %v15839_v57 = vpack.c.bf16 %v13885_v62, %v13865_v20 }
 0x780   :  { %v13989_v11 = vpop.f32.mrb[68].mxu0  ;;  %v13991_v26 = vpop.f32.mrb[40].mxu1 }
 0x781   :  { %v13993_v43 = vpop.f32.mrb[69].mxu0  ;;  %v13995_v29 = vpop.f32.mrb[41].mxu1 }
 0x782   :  { %v13997_v22 = vpop.f32.mrb[70].mxu0  ;;  %v13999_v49 = vpop.f32.mrb[42].mxu1 }
 0x783   :  { %v5713_v55 = vpack.c.bf16 %v13997_v22, %v13989_v11  ;;  %v14013_v59 = vpop.f32.mrb[71].mxu0  ;;  %v14015_v33 = vpop.f32.mrb[43].mxu1 }
 0x784   :  { %v5714_v53 = vpack.c.bf16 %v14013_v59, %v13993_v43  ;;  %v5716_v34 = vpack.c.bf16 %v14015_v33, %v13995_v29  ;;  %v15855_v33 = vld [vmem:[#allocation113_spill] sm:$0xff] }
 0x785   :  { %6280 = vmatmul.mubr.bf16.gmra.mrb[176].mxu0 %v5801_v58  ;;  %6441 = vmatmul.mubr.bf16.gmra.mrb[148].mxu1 %v5803_v6  ;;  %v5809_v58 = vmul.bf16 %v15834_v45, %v5681_v24  ;;  %v15836_v6 = vld [vmem:[#allocation98_spill] sm:$0xff]  ;;  %v5818_v24 = vmul.bf16 %v15838_v14, %v15837_v21  ;;  %v5820_v45 = vmul.bf16 %v15840_v47, %v15839_v57  ;;  %v15842_v57 = vld [vmem:[#allocation101_spill] sm:$0xff] }
 0x786   :  { %6287 = vmatprep.mubr.bf16.mxu0 %v5810_v17  ;;  %6448 = vmatprep.mubr.bf16.mxu1 %v5812_v38  ;;  %v5811_v3 = vmul.bf16 %v15836_v6, %v15835_v27  ;;  %v15841_v14 = vpack.c.bf16 %v13867_v23, %v13859_v7  ;;  %v15845_v7 = vld [vmem:[#allocation103_spill] sm:$0xff]  ;;  %v5842_v16 = vmul.bf16 %v15853_v25, %v5714_v53 }
 0x787   :  { %v5826_v23 = vmul.bf16 %v15845_v7, %v5698_v13  ;;  %v5844_v0 = vmul.bf16 %v15854_v9, %v5716_v34  ;;  %v5841_v34 = vmul.bf16 %v15855_v33, %v5713_v55  ;;  %v15856_v9 = vpack.c.bf16 %v13999_v49, %v13991_v26  ;;  %v6523_v49 = vld [vmem:[%s15427_s4 + $0x10] sm:$0xff] }
 0x788   :  { %v14029_v18 = vpop.f32.mrb[72].mxu0  ;;  %v14031_v60 = vpop.f32.mrb[44].mxu1 }
 0x789   :  { %v14033_v44 = vpop.f32.mrb[73].mxu0  ;;  %v14035_v40 = vpop.f32.mrb[45].mxu1 }
 0x78a   :  { %v14037_v19 = vpop.f32.mrb[74].mxu0  ;;  %v14039_v52 = vpop.f32.mrb[46].mxu1 }
 0x78b   :  { %v14053_v38 = vpop.f32.mrb[75].mxu0  ;;  %v14055_v31 = vpop.f32.mrb[47].mxu1  ;;  %v15862_v33 = vpack.c.bf16 %v14037_v19, %v14029_v18 }
 0x78d   :  { %6288 = vmatmul.mubr.bf16.gmra.mrb[180].mxu0 %v5809_v58  ;;  %6449 = vmatmul.mubr.bf16.gmra.mrb[152].mxu1 %v5811_v3  ;;  %v5817_v58 = vmul.bf16 %v15842_v57, %v15841_v14  ;;  %v15843_v3 = vpack.c.bf16 %v13869_v12, %v13861_v42  ;;  %v15846_v42 = vld [vmem:[#allocation104_spill] sm:$0xff] }
 0x78e   :  { %6295 = vmatprep.mubr.bf16.mxu0 %v5818_v24  ;;  %6456 = vmatprep.mubr.bf16.mxu1 %v5820_v45  ;;  %v15844_v24 = vld [vmem:[#allocation102_spill] sm:$0xff]  ;;  %v5828_v12 = vmul.bf16 %v15846_v42, %v5700_v41  ;;  %v15847_v41 = vld [vmem:[#allocation105_spill] sm:$0xff] }
 0x78f   :  { %v5819_v47 = vmul.bf16 %v15844_v24, %v15843_v3  ;;  %v15848_v24 = vld [vmem:[#allocation106_spill] sm:$0xff] }
 0x790   :  { %v14069_v61 = vpop.f32.mrb[76].mxu0  ;;  %v14071_v46 = vpop.f32.mrb[48].mxu1 }
 0x791   :  { %v14073_v35 = vpop.f32.mrb[77].mxu0  ;;  %v14075_v21 = vpop.f32.mrb[49].mxu1 }
 0x792   :  { %v14077_v20 = vpop.f32.mrb[78].mxu0  ;;  %v14079_v62 = vpop.f32.mrb[50].mxu1 }
 0x793   :  { %v5729_v45 = vpack.c.bf16 %v14077_v20, %v14069_v61  ;;  %v5731_v17 = vpack.c.bf16 %v14079_v62, %v14071_v46  ;;  %v14093_v6 = vpop.f32.mrb[79].mxu0  ;;  %v14095_v27 = vpop.f32.mrb[51].mxu1 }
 0x794   :  { %v5730_v14 = vpack.c.bf16 %v14093_v6, %v14073_v35  ;;  %v5732_v57 = vpack.c.bf16 %v14095_v27, %v14075_v21  ;;  %v15868_v21 = vld [vmem:[#allocation121_spill] sm:$0xff] }
 0x795   :  { %6296 = vmatmul.mubr.bf16.gmra.mrb[184].mxu0 %v5817_v58  ;;  %6457 = vmatmul.mubr.bf16.gmra.mrb[156].mxu1 %v5819_v47  ;;  %v5825_v58 = vmul.bf16 %v15847_v41, %v5697_v54  ;;  %v5827_v47 = vmul.bf16 %v15848_v24, %v5699_v30  ;;  %v5834_v54 = vmul.bf16 %v15849_v36, %v5706_v51  ;;  %v15852_v24 = vld [vmem:[#allocation110_spill] sm:$0xff] }
 0x796   :  { %6303 = vmatprep.mubr.bf16.mxu0 %v5826_v23  ;;  %6464 = vmatprep.mubr.bf16.mxu1 %v5828_v12  ;;  %v5836_v30 = vmul.bf16 %v15850_v37, %v5708_v28  ;;  %v15851_v28 = vld [vmem:[#allocation109_spill] sm:$0xff] }
 0x798   :  { %v14109_v3 = vpop.f32.mrb[80].mxu0  ;;  %v14111_v32 = vpop.f32.mrb[52].mxu1 }
 0x799   :  { %v14113_v4 = vpop.f32.mrb[81].mxu0  ;;  %v14115_v13 = vpop.f32.mrb[53].mxu1 }
 0x79a   :  { %v14117_v10 = vpop.f32.mrb[82].mxu0  ;;  %v14119_v39 = vpop.f32.mrb[54].mxu1 }
 0x79b   :  { %v5737_v7 = vpack.c.bf16 %v14117_v10, %v14109_v3  ;;  %v5739_v23 = vpack.c.bf16 %v14119_v39, %v14111_v32  ;;  %v14133_v42 = vpop.f32.mrb[83].mxu0  ;;  %v14135_v12 = vpop.f32.mrb[55].mxu1 }
 0x79c   :  { %v5738_v1 = vpack.c.bf16 %v14133_v42, %v14113_v4  ;;  %v5740_v8 = vpack.c.bf16 %v14135_v12, %v14115_v13  ;;  %v15872_v12 = vld [vmem:[#allocation125_spill] sm:$0xff] }
 0x79d   :  { %6304 = vmatmul.mubr.bf16.gmra.mrb[188].mxu0 %v5825_v58  ;;  %6465 = vmatmul.mubr.bf16.gmra.mrb[160].mxu1 %v5827_v47  ;;  %v5833_v58 = vmul.bf16 %v15851_v28, %v5705_v5  ;;  %v5835_v47 = vmul.bf16 %v15852_v24, %v5707_v2 }
 0x79e   :  { %6311 = vmatprep.mubr.bf16.mxu0 %v5834_v54  ;;  %6472 = vmatprep.mubr.bf16.mxu1 %v5836_v30 }
 0x7a0   :  { %v14149_v41 = vpop.f32.mrb[84].mxu0  ;;  %v14151_v48 = vpop.f32.mrb[56].mxu1 }
 0x7a1   :  { %v14153_v56 = vpop.f32.mrb[85].mxu0  ;;  %v14155_v51 = vpop.f32.mrb[57].mxu1 }
 0x7a2   :  { %v14157_v63 = vpop.f32.mrb[86].mxu0  ;;  %v14159_v50 = vpop.f32.mrb[58].mxu1 }
 0x7a3   :  { %v14173_v37 = vpop.f32.mrb[87].mxu0  ;;  %v14175_v30 = vpop.f32.mrb[59].mxu1 }
 0x7a4   :  { %v5746_v5 = vpack.c.bf16 %v14173_v37, %v14153_v56 }
 0x7a5   :  { %6312 = vmatmul.mubr.bf16.gmra.mrb[192].mxu0 %v5833_v58  ;;  %6473 = vmatmul.mubr.bf16.gmra.mrb[164].mxu1 %v5835_v47  ;;  %v15857_v58 = vld [vmem:[#allocation114_spill] sm:$0xff] }
 0x7a6   :  { %6319 = vmatprep.mubr.bf16.mxu0 %v5842_v16  ;;  %6480 = vmatprep.mubr.bf16.mxu1 %v5844_v0  ;;  %v5843_v47 = vmul.bf16 %v15857_v58, %v15856_v9  ;;  %v15858_v16 = vpack.c.bf16 %v14053_v38, %v14033_v44  ;;  %v15859_v0 = vld [vmem:[#allocation115_spill] sm:$0xff]  ;;  %v15864_v58 = vpack.c.bf16 %v14039_v52, %v14031_v60 }
 0x7a8   :  { %v9018_v28 = vpop.f32.mrb[88].mxu0  ;;  %v9130_v24 = vpop.f32.mrb[60].mxu1  ;;  %v5850_v36 = vmul.bf16 %v15859_v0, %v15858_v16  ;;  %v15866_v0 = vld [vmem:[#allocation119_spill] sm:$0xff] }
 0x7a9   :  { %v9019_v43 = vpop.f32.mrb[89].mxu0  ;;  %v9131_v59 = vpop.f32.mrb[61].mxu1 }
 0x7aa   :  { %v9020_v53 = vadd.f32 %v9019_v43, %v9018_v28  ;;  %v9132_v25 = vadd.f32 %v9131_v59, %v9130_v24  ;;  %v9021_v54 = vpop.f32.mrb[90].mxu0  ;;  %v9133_v29 = vpop.f32.mrb[62].mxu1  ;;  %v15860_v24 = vpack.c.bf16 %v14055_v31, %v14035_v40  ;;  %v15861_v43 = vld [vmem:[#allocation116_spill] sm:$0xff] }
 0x7ab   :  { %v9022_v2 = vpop.f32.mrb[91].mxu0  ;;  %v9134_v28 = vpop.f32.mrb[63].mxu1  ;;  %v6524_v31 = vld [vmem:[%s15427_s4 + $0x18] sm:$0xff] }
 0x7ac   :  { %v5852_v59 = vmul.bf16 %v15861_v43, %v15860_v24  ;;  %v14205_v11 = vadd.f32 %v9132_v25, %v9020_v53  ;;  %v9023_v22 = vadd.f32 %v9022_v2, %v9021_v54  ;;  %v9135_v55 = vadd.f32 %v9134_v28, %v9133_v29 }
 0x7ad   :  { %6320 = vmatmul.mubr.bf16.gmra.mrb[196].mxu0 %v5841_v34  ;;  %6481 = vmatmul.mubr.bf16.gmra.mrb[168].mxu1 %v5843_v47  ;;  %v9786_v44 = vpack.c.bf16 %v6524_v31, %v6523_v49  ;;  %v15863_v34 = vld [vmem:[#allocation117_spill] sm:$0xff]  ;;  %v15865_v47 = vld [vmem:[#allocation118_spill] sm:$0xff]  ;;  %v5858_v28 = vmul.bf16 %v15866_v0, %v5730_v14 }
 0x7ae   :  { %v14207_v26 = vadd.f32 %v9135_v55, %v9023_v22  ;;  %6327 = vmatprep.mubr.bf16.mxu0 %v5850_v36  ;;  %6488 = vmatprep.mubr.bf16.mxu1 %v5852_v59  ;;  %v5849_v9 = vmul.bf16 %v15863_v34, %v15862_v33  ;;  %v5851_v16 = vmul.bf16 %v15865_v47, %v15864_v58  ;;  %v15873_v34 = vld [vmem:[#allocation126_spill] sm:$0xff]  ;;  %v15874_v58 = vld [vmem:[#allocation127_spill] sm:$0xff] }
 0x7af   :  { %9788 = vmatprep.subr.msk.bf16.mxu0 %vm10265_vm1, %v9786_v44  ;;  %v5860_v59 = vmul.bf16 %v15867_v15, %v5732_v57  ;;  %v5857_v57 = vmul.bf16 %v15868_v21, %v5729_v45  ;;  %v5874_v47 = vmul.bf16 %v15874_v58, %v5746_v5 }
 0x7b0   :  { %v9024_v40 = vpop.f32.mrb[92].mxu0  ;;  %v9136_v38 = vpop.f32.mrb[64].mxu1  ;;  %9791 = vmatpush3.bf16.xpose.msk.msra.mxu0 %vm10265_vm1, %v9786_v44  ;;  %v15869_v44 = vld [vmem:[#allocation122_spill] sm:$0xff] }
 0x7b1   :  { %v9025_v53 = vpop.f32.mrb[93].mxu0  ;;  %v9137_v54 = vpop.f32.mrb[65].mxu1 }
 0x7b2   :  { %v9026_v2 = vadd.f32 %v9025_v53, %v9024_v40  ;;  %v9138_v25 = vadd.f32 %v9137_v54, %v9136_v38  ;;  %v9027_v36 = vpop.f32.mrb[94].mxu0  ;;  %v9139_v29 = vpop.f32.mrb[66].mxu1  ;;  %v5859_v40 = vmul.bf16 %v15869_v44, %v5731_v17  ;;  %v15870_v38 = vld [vmem:[#allocation123_spill] sm:$0xff] }
 0x7b3   :  { %v9028_v24 = vpop.f32.mrb[95].mxu0  ;;  %v9140_v43 = vpop.f32.mrb[67].mxu1  ;;  %v5866_v53 = vmul.bf16 %v15870_v38, %v5738_v1 }
 0x7b4   :  { %v14235_v18 = vadd.f32 %v9138_v25, %v9026_v2  ;;  %v9029_v19 = vadd.f32 %v9028_v24, %v9027_v36  ;;  %v9141_v22 = vadd.f32 %v9140_v43, %v9139_v29  ;;  %v15871_v25 = vld [vmem:[#allocation124_spill] sm:$0xff] }
 0x7b5   :  { %6328 = vmatmul.mubr.bf16.gmra.mrb[200].mxu0 %v5849_v9  ;;  %6489 = vmatmul.mubr.bf16.gmra.mrb[172].mxu1 %v5851_v16  ;;  %v5868_v36 = vmul.bf16 %v15871_v25, %v5740_v8  ;;  %v5865_v8 = vmul.bf16 %v15872_v12, %v5737_v7  ;;  %v5867_v9 = vmul.bf16 %v15873_v34, %v5739_v23  ;;  %v15876_v24 = vld [vmem:[#allocation128_spill] sm:$0xff] }
 0x7b6   :  { %v14237_v60 = vadd.f32 %v9141_v22, %v9029_v19  ;;  %6335 = vmatprep.mubr.bf16.mxu0 %v5858_v28  ;;  %6496 = vmatprep.mubr.bf16.mxu1 %v5860_v59  ;;  %v15875_v28 = vpack.c.bf16 %v14175_v30, %v14155_v51  ;;  %v15877_v30 = vpack.c.bf16 %v14157_v63, %v14149_v41  ;;  %v15878_v19 = vld [vmem:[#allocation129_spill] sm:$0xff] }
 0x7b8   :  { %v9030_v52 = vpop.f32.mrb[96].mxu0  ;;  %v9142_v6 = vpop.f32.mrb[68].mxu1  ;;  %v5876_v43 = vmul.bf16 %v15876_v24, %v15875_v28  ;;  %v5873_v22 = vmul.bf16 %v15878_v19, %v15877_v30 }
 0x7b9   :  { %v9031_v35 = vpop.f32.mrb[97].mxu0  ;;  %v9143_v14 = vpop.f32.mrb[69].mxu1 }
 0x7ba   :  { %v9032_v55 = vadd.f32 %v9031_v35, %v9030_v52  ;;  %v9144_v49 = vadd.f32 %v9143_v14, %v9142_v6  ;;  %v9033_v31 = vpop.f32.mrb[98].mxu0  ;;  %v9145_v27 = vpop.f32.mrb[70].mxu1  ;;  %v15879_v52 = vpack.c.bf16 %v14159_v50, %v14151_v48  ;;  %v15880_v6 = vld [vmem:[#allocation130_spill] sm:$0xff] }
 0x7bb   :  { %v9034_v54 = vpop.f32.mrb[99].mxu0  ;;  %v9146_v2 = vpop.f32.mrb[71].mxu1 }
 0x7bc   :  { %v14255_v61 = vadd.f32 %v9144_v49, %v9032_v55  ;;  %v9035_v20 = vadd.f32 %v9034_v54, %v9033_v31  ;;  %v9147_v45 = vadd.f32 %v9146_v2, %v9145_v27  ;;  %v5875_v35 = vmul.bf16 %v15880_v6, %v15879_v52 }
 0x7bd   :  { %6336 = vmatmul.mubr.bf16.gmra.mrb[204].mxu0 %v5857_v57  ;;  %6497 = vmatmul.mubr.bf16.gmra.mrb[176].mxu1 %v5859_v40 }
 0x7be   :  { %v14257_v46 = vadd.f32 %v9147_v45, %v9035_v20  ;;  %6343 = vmatprep.mubr.bf16.mxu0 %v5866_v53  ;;  %6504 = vmatprep.mubr.bf16.mxu1 %v5868_v36 }
 0x7c0   :  { %v9036_v17 = vpop.f32.mrb[100].mxu0  ;;  %v9148_v62 = vpop.f32.mrb[72].mxu1 }
 0x7c1   :  { %v9037_v4 = vpop.f32.mrb[101].mxu0  ;;  %v9149_v42 = vpop.f32.mrb[73].mxu1 }
 0x7c2   :  { %v9038_v1 = vadd.f32 %v9037_v4, %v9036_v17  ;;  %v9150_v29 = vadd.f32 %v9149_v42, %v9148_v62  ;;  %v9039_v33 = vpop.f32.mrb[102].mxu0  ;;  %v9151_v13 = vpop.f32.mrb[74].mxu1 }
 0x7c3   :  { %v9040_v16 = vpop.f32.mrb[103].mxu0  ;;  %v9152_v0 = vpop.f32.mrb[75].mxu1 }
 0x7c4   :  { %v14275_v3 = vadd.f32 %v9150_v29, %v9038_v1  ;;  %v9041_v10 = vadd.f32 %v9040_v16, %v9039_v33  ;;  %v9153_v7 = vadd.f32 %v9152_v0, %v9151_v13 }
 0x7c5   :  { %6344 = vmatmul.mubr.bf16.gmra.mrb[208].mxu0 %v5865_v8  ;;  %6505 = vmatmul.mubr.bf16.gmra.mrb[180].mxu1 %v5867_v9 }
 0x7c6   :  { %v14277_v32 = vadd.f32 %v9153_v7, %v9041_v10  ;;  %6351 = vmatprep.mubr.bf16.mxu0 %v5874_v47  ;;  %6512 = vmatprep.mubr.bf16.mxu1 %v5876_v43 }
 0x7c8   :  { %v9042_v39 = vpop.f32.mrb[104].mxu0  ;;  %v9154_v23 = vpop.f32.mrb[76].mxu1 }
 0x7c9   :  { %v9043_v56 = vpop.f32.mrb[105].mxu0  ;;  %v9155_v37 = vpop.f32.mrb[77].mxu1 }
 0x7ca   :  { %v9044_v5 = vadd.f32 %v9043_v56, %v9042_v39  ;;  %v9156_v15 = vadd.f32 %v9155_v37, %v9154_v23  ;;  %v9045_v59 = vpop.f32.mrb[106].mxu0  ;;  %v9157_v51 = vpop.f32.mrb[78].mxu1 }
 0x7cb   :  { %v9046_v14 = vpop.f32.mrb[107].mxu0  ;;  %v9158_v55 = vpop.f32.mrb[79].mxu1 }
 0x7cc   :  { %v14287_v49 = vadd.f32 %v9156_v15, %v9044_v5  ;;  %v9047_v31 = vadd.f32 %v9046_v14, %v9045_v59  ;;  %v9159_v27 = vadd.f32 %v9158_v55, %v9157_v51 }
 0x7cd   :  { %6352 = vmatmul.mubr.bf16.gmra.mrb[212].mxu0 %v5873_v22  ;;  %6513 = vmatmul.mubr.bf16.gmra.mrb[184].mxu1 %v5875_v35 }
 0x7ce   :  { %v14289_v21 = vadd.f32 %v9159_v27, %v9047_v31 }
 0x7d0   :  { %v9048_v57 = vpop.f32.mrb[108].mxu0  ;;  %v9160_v44 = vpop.f32.mrb[80].mxu1 }
 0x7d1   :  { %v9049_v41 = vpop.f32.mrb[109].mxu0  ;;  %v9161_v63 = vpop.f32.mrb[81].mxu1 }
 0x7d2   :  { %v9050_v40 = vadd.f32 %v9049_v41, %v9048_v57  ;;  %v9162_v38 = vadd.f32 %v9161_v63, %v9160_v44  ;;  %v9051_v53 = vpop.f32.mrb[110].mxu0  ;;  %v9163_v48 = vpop.f32.mrb[82].mxu1 }
 0x7d3   :  { %v9052_v50 = vpop.f32.mrb[111].mxu0  ;;  %v9164_v54 = vpop.f32.mrb[83].mxu1 }
 0x7d4   :  { %v14291_v2 = vadd.f32 %v9162_v38, %v9050_v40  ;;  %v9053_v25 = vadd.f32 %v9052_v50, %v9051_v53  ;;  %v9165_v36 = vadd.f32 %v9164_v54, %v9163_v48 }
 0x7d6   :  { %v14293_v20 = vadd.f32 %v9165_v36, %v9053_v25 }
 0x7d8   :  { %v9054_v45 = vpop.f32.mrb[112].mxu0  ;;  %v9166_v17 = vpop.f32.mrb[84].mxu1 }
 0x7d9   :  { %v9055_v62 = vpop.f32.mrb[113].mxu0  ;;  %v9167_v4 = vpop.f32.mrb[85].mxu1 }
 0x7da   :  { %v9056_v42 = vadd.f32 %v9055_v62, %v9054_v45  ;;  %v9168_v1 = vadd.f32 %v9167_v4, %v9166_v17  ;;  %v9057_v29 = vpop.f32.mrb[114].mxu0  ;;  %v9169_v33 = vpop.f32.mrb[86].mxu1 }
 0x7db   :  { %v9058_v13 = vpop.f32.mrb[115].mxu0  ;;  %v9170_v12 = vpop.f32.mrb[87].mxu1 }
 0x7dc   :  { %v14295_v8 = vadd.f32 %v9168_v1, %v9056_v42  ;;  %v9059_v34 = vadd.f32 %v9058_v13, %v9057_v29  ;;  %v9171_v9 = vadd.f32 %v9170_v12, %v9169_v33 }
 0x7de   :  { %v14297_v58 = vadd.f32 %v9171_v9, %v9059_v34 }
 0x7e0   :  { %v9060_v47 = vpop.f32.mrb[116].mxu0  ;;  %v9172_v16 = vpop.f32.mrb[88].mxu1 }
 0x7e1   :  { %v9061_v0 = vpop.f32.mrb[117].mxu0  ;;  %v9173_v28 = vpop.f32.mrb[89].mxu1 }
 0x7e2   :  { %v9062_v24 = vadd.f32 %v9061_v0, %v9060_v47  ;;  %v9174_v43 = vadd.f32 %v9173_v28, %v9172_v16  ;;  %v9063_v10 = vpop.f32.mrb[118].mxu0  ;;  %v9175_v7 = vpop.f32.mrb[90].mxu1 }
 0x7e3   :  { %v9064_v39 = vpop.f32.mrb[119].mxu0  ;;  %v9176_v23 = vpop.f32.mrb[91].mxu1 }
 0x7e4   :  { %v14299_v56 = vadd.f32 %v9174_v43, %v9062_v24  ;;  %v9065_v37 = vadd.f32 %v9064_v39, %v9063_v10  ;;  %v9177_v5 = vadd.f32 %v9176_v23, %v9175_v7 }
 0x7e6   :  { %v14301_v15 = vadd.f32 %v9177_v5, %v9065_v37 }
 0x7e8   :  { %v9066_v59 = vpop.f32.mrb[120].mxu0  ;;  %v9178_v51 = vpop.f32.mrb[92].mxu1 }
 0x7e9   :  { %v9067_v30 = vpop.f32.mrb[121].mxu0  ;;  %v9179_v19 = vpop.f32.mrb[93].mxu1 }
 0x7ea   :  { %v9068_v22 = vadd.f32 %v9067_v30, %v9066_v59  ;;  %v9180_v52 = vadd.f32 %v9179_v19, %v9178_v51  ;;  %v9069_v6 = vpop.f32.mrb[122].mxu0  ;;  %v9181_v35 = vpop.f32.mrb[94].mxu1 }
 0x7eb   :  { %v9070_v14 = vpop.f32.mrb[123].mxu0  ;;  %v9182_v55 = vpop.f32.mrb[95].mxu1 }
 0x7ec   :  { %v14303_v31 = vadd.f32 %v9180_v52, %v9068_v22  ;;  %v9071_v27 = vadd.f32 %v9070_v14, %v9069_v6  ;;  %v9183_v57 = vadd.f32 %v9182_v55, %v9181_v35 }
 0x7ee   :  { %v14305_v44 = vadd.f32 %v9183_v57, %v9071_v27 }
 0x7f0   :  { %v9072_v41 = vpop.f32.mrb[124].mxu0  ;;  %v9184_v63 = vpop.f32.mrb[96].mxu1 }
 0x7f1   :  { %v9073_v40 = vpop.f32.mrb[125].mxu0  ;;  %v9185_v38 = vpop.f32.mrb[97].mxu1 }
 0x7f2   :  { %v9074_v53 = vadd.f32 %v9073_v40, %v9072_v41  ;;  %v9186_v48 = vadd.f32 %v9185_v38, %v9184_v63  ;;  %v9075_v50 = vpop.f32.mrb[126].mxu0  ;;  %v9187_v54 = vpop.f32.mrb[98].mxu1 }
 0x7f3   :  { %v9076_v25 = vpop.f32.mrb[127].mxu0  ;;  %v9188_v36 = vpop.f32.mrb[99].mxu1 }
 0x7f4   :  { %v14307_v45 = vadd.f32 %v9186_v48, %v9074_v53  ;;  %v9077_v17 = vadd.f32 %v9076_v25, %v9075_v50  ;;  %v9189_v62 = vadd.f32 %v9188_v36, %v9187_v54 }
 0x7f6   :  { %v14309_v4 = vadd.f32 %v9189_v62, %v9077_v17 }
 0x7f8   :  { %v9078_v42 = vpop.f32.mrb[128].mxu0  ;;  %v9190_v1 = vpop.f32.mrb[100].mxu1 }
 0x7f9   :  { %v9079_v29 = vpop.f32.mrb[129].mxu0  ;;  %v9191_v33 = vpop.f32.mrb[101].mxu1 }
 0x7fa   :  { %v9080_v13 = vadd.f32 %v9079_v29, %v9078_v42  ;;  %v9192_v12 = vadd.f32 %v9191_v33, %v9190_v1  ;;  %v9081_v34 = vpop.f32.mrb[130].mxu0  ;;  %v9193_v9 = vpop.f32.mrb[102].mxu1 }
 0x7fb   :  { %v9082_v47 = vpop.f32.mrb[131].mxu0  ;;  %v9194_v16 = vpop.f32.mrb[103].mxu1 }
 0x7fc   :  { %v14311_v0 = vadd.f32 %v9192_v12, %v9080_v13  ;;  %v9083_v28 = vadd.f32 %v9082_v47, %v9081_v34  ;;  %v9195_v24 = vadd.f32 %v9194_v16, %v9193_v9 }
 0x7fe   :  { %v14313_v43 = vadd.f32 %v9195_v24, %v9083_v28 }
 0x800   :  { %v9084_v10 = vpop.f32.mrb[132].mxu0  ;;  %v9196_v7 = vpop.f32.mrb[104].mxu1 }
 0x801   :  { %v9085_v39 = vpop.f32.mrb[133].mxu0  ;;  %v9197_v23 = vpop.f32.mrb[105].mxu1 }
 0x802   :  { %v9086_v37 = vadd.f32 %v9085_v39, %v9084_v10  ;;  %v9198_v5 = vadd.f32 %v9197_v23, %v9196_v7  ;;  %v9087_v59 = vpop.f32.mrb[134].mxu0  ;;  %v9199_v51 = vpop.f32.mrb[106].mxu1 }
 0x803   :  { %v9088_v30 = vpop.f32.mrb[135].mxu0  ;;  %v9200_v19 = vpop.f32.mrb[107].mxu1 }
 0x804   :  { %v14315_v22 = vadd.f32 %v9198_v5, %v9086_v37  ;;  %v9089_v52 = vadd.f32 %v9088_v30, %v9087_v59  ;;  %v9201_v6 = vadd.f32 %v9200_v19, %v9199_v51 }
 0x806   :  { %v14317_v35 = vadd.f32 %v9201_v6, %v9089_v52 }
 0x808   :  { %v9090_v14 = vpop.f32.mrb[136].mxu0  ;;  %v9202_v55 = vpop.f32.mrb[108].mxu1 }
 0x809   :  { %v9091_v27 = vpop.f32.mrb[137].mxu0  ;;  %v9203_v57 = vpop.f32.mrb[109].mxu1 }
 0x80a   :  { %v9092_v41 = vadd.f32 %v9091_v27, %v9090_v14  ;;  %v9204_v63 = vadd.f32 %v9203_v57, %v9202_v55  ;;  %v9093_v40 = vpop.f32.mrb[138].mxu0  ;;  %v9205_v38 = vpop.f32.mrb[110].mxu1 }
 0x80b   :  { %v9094_v53 = vpop.f32.mrb[139].mxu0  ;;  %v9206_v48 = vpop.f32.mrb[111].mxu1 }
 0x80c   :  { %v14319_v50 = vadd.f32 %v9204_v63, %v9092_v41  ;;  %v9095_v54 = vadd.f32 %v9094_v53, %v9093_v40  ;;  %v9207_v25 = vadd.f32 %v9206_v48, %v9205_v38 }
 0x80e   :  { %v14321_v36 = vadd.f32 %v9207_v25, %v9095_v54 }
 0x810   :  { %v9096_v17 = vpop.f32.mrb[140].mxu0  ;;  %v9208_v62 = vpop.f32.mrb[112].mxu1 }
 0x811   :  { %v9097_v42 = vpop.f32.mrb[141].mxu0  ;;  %v9209_v1 = vpop.f32.mrb[113].mxu1 }
 0x812   :  { %v9098_v29 = vadd.f32 %v9097_v42, %v9096_v17  ;;  %v9210_v33 = vadd.f32 %v9209_v1, %v9208_v62  ;;  %v9099_v13 = vpop.f32.mrb[142].mxu0  ;;  %v9211_v12 = vpop.f32.mrb[114].mxu1 }
 0x813   :  { %v9100_v34 = vpop.f32.mrb[143].mxu0  ;;  %v9212_v9 = vpop.f32.mrb[115].mxu1 }
 0x814   :  { %v14323_v47 = vadd.f32 %v9210_v33, %v9098_v29  ;;  %v9101_v16 = vadd.f32 %v9100_v34, %v9099_v13  ;;  %v9213_v28 = vadd.f32 %v9212_v9, %v9211_v12 }
 0x816   :  { %v14325_v24 = vadd.f32 %v9213_v28, %v9101_v16 }
 0x818   :  { %v9102_v10 = vpop.f32.mrb[144].mxu0  ;;  %v9214_v7 = vpop.f32.mrb[116].mxu1 }
 0x819   :  { %v9103_v39 = vpop.f32.mrb[145].mxu0  ;;  %v9215_v23 = vpop.f32.mrb[117].mxu1 }
 0x81a   :  { %v9104_v37 = vadd.f32 %v9103_v39, %v9102_v10  ;;  %v9216_v5 = vadd.f32 %v9215_v23, %v9214_v7  ;;  %v9105_v59 = vpop.f32.mrb[146].mxu0  ;;  %v9217_v51 = vpop.f32.mrb[118].mxu1 }
 0x81b   :  { %v9106_v30 = vpop.f32.mrb[147].mxu0  ;;  %v9218_v19 = vpop.f32.mrb[119].mxu1 }
 0x81c   :  { %v14327_v52 = vadd.f32 %v9216_v5, %v9104_v37  ;;  %v9107_v6 = vadd.f32 %v9106_v30, %v9105_v59  ;;  %v9219_v14 = vadd.f32 %v9218_v19, %v9217_v51 }
 0x81e   :  { %v14329_v55 = vadd.f32 %v9219_v14, %v9107_v6 }
 0x820   :  { %v9108_v27 = vpop.f32.mrb[148].mxu0  ;;  %v9220_v57 = vpop.f32.mrb[120].mxu1 }
 0x821   :  { %v9109_v41 = vpop.f32.mrb[149].mxu0  ;;  %v9221_v63 = vpop.f32.mrb[121].mxu1 }
 0x822   :  { %v9110_v40 = vadd.f32 %v9109_v41, %v9108_v27  ;;  %v9222_v38 = vadd.f32 %v9221_v63, %v9220_v57  ;;  %v9111_v53 = vpop.f32.mrb[150].mxu0  ;;  %v9223_v48 = vpop.f32.mrb[122].mxu1 }
 0x823   :  { %v9112_v54 = vpop.f32.mrb[151].mxu0  ;;  %v9224_v25 = vpop.f32.mrb[123].mxu1 }
 0x824   :  { %v14331_v17 = vadd.f32 %v9222_v38, %v9110_v40  ;;  %v9113_v62 = vadd.f32 %v9112_v54, %v9111_v53  ;;  %v9225_v42 = vadd.f32 %v9224_v25, %v9223_v48 }
 0x826   :  { %v14333_v1 = vadd.f32 %v9225_v42, %v9113_v62 }
 0x828   :  { %v9242_v29 = vpop.f32.mrb[152].mxu0  ;;  %v9354_v33 = vpop.f32.mrb[124].mxu1 }
 0x829   :  { %v9243_v13 = vpop.f32.mrb[153].mxu0  ;;  %v9355_v12 = vpop.f32.mrb[125].mxu1 }
 0x82a   :  { %v9244_v34 = vadd.f32 %v9243_v13, %v9242_v29  ;;  %v9356_v9 = vadd.f32 %v9355_v12, %v9354_v33  ;;  %v9245_v16 = vpop.f32.mrb[154].mxu0  ;;  %v9357_v28 = vpop.f32.mrb[126].mxu1 }
 0x82b   :  { %v9246_v10 = vpop.f32.mrb[155].mxu0  ;;  %v9358_v7 = vpop.f32.mrb[127].mxu1 }
 0x82c   :  { %v6234_v39 = vadd.f32 %v9244_v34, %v14205_v11  ;;  %v9247_v23 = vadd.f32 %v9246_v10, %v9245_v16  ;;  %v9359_v37 = vadd.f32 %v9358_v7, %v9357_v28 }
 0x82e   :  { %v6395_v5 = vadd.f32 %v9356_v9, %v6234_v39  ;;  %v6237_v59 = vadd.f32 %v9247_v23, %v14207_v26 }
 0x830   :  { %v6398_v51 = vadd.f32 %v9359_v37, %v6237_v59  ;;  %v9248_v30 = vpop.f32.mrb[156].mxu0  ;;  %v9360_v19 = vpop.f32.mrb[128].mxu1  ;;  %9696 = vmatprep.mubr.msk.f32.mxu0 %vm85_vm0, %v6395_v5 }
 0x831   :  { %v9249_v6 = vpop.f32.mrb[157].mxu0  ;;  %v9361_v14 = vpop.f32.mrb[129].mxu1 }
 0x832   :  { %v9250_v27 = vadd.f32 %v9249_v6, %v9248_v30  ;;  %v9362_v57 = vadd.f32 %v9361_v14, %v9360_v19  ;;  %v9251_v41 = vpop.f32.mrb[158].mxu0  ;;  %v9363_v63 = vpop.f32.mrb[130].mxu1  ;;  %9697 = vmatmul.mubr.msk.f32.vlgmr.msra.gmra.mrb[216].mxu0 %vm85_vm0, %v6398_v51 }
 0x833   :  { %v9252_v40 = vpop.f32.mrb[159].mxu0  ;;  %v9364_v11 = vpop.f32.mrb[131].mxu1 }
 0x834   :  { %v6242_v38 = vadd.f32 %v9250_v27, %v14235_v18  ;;  %v9253_v53 = vadd.f32 %v9252_v40, %v9251_v41  ;;  %v9365_v48 = vadd.f32 %v9364_v11, %v9363_v63 }
 0x836   :  { %v6403_v26 = vadd.f32 %v9362_v57, %v6242_v38  ;;  %v6245_v54 = vadd.f32 %v9253_v53, %v14237_v60 }
 0x838   :  { %v6406_v25 = vadd.f32 %v9365_v48, %v6245_v54  ;;  %v9254_v62 = vpop.f32.mrb[160].mxu0  ;;  %v9366_v42 = vpop.f32.mrb[132].mxu1  ;;  %9699 = vmatprep.mubr.msk.f32.mxu0 %vm85_vm0, %v6403_v26 }
 0x839   :  { %v9255_v29 = vpop.f32.mrb[161].mxu0  ;;  %v9367_v33 = vpop.f32.mrb[133].mxu1 }
 0x83a   :  { %v9256_v13 = vadd.f32 %v9255_v29, %v9254_v62  ;;  %v9368_v12 = vadd.f32 %v9367_v33, %v9366_v42  ;;  %v9257_v34 = vpop.f32.mrb[162].mxu0  ;;  %v9369_v9 = vpop.f32.mrb[134].mxu1  ;;  %9700 = vmatmul.mubr.msk.f32.gmra.mrb[218].mxu0 %vm85_vm0, %v6406_v25 }
 0x83b   :  { %v9258_v16 = vpop.f32.mrb[163].mxu0  ;;  %v9370_v18 = vpop.f32.mrb[135].mxu1 }
 0x83c   :  { %v6250_v28 = vadd.f32 %v9256_v13, %v14255_v61  ;;  %v9259_v10 = vadd.f32 %v9258_v16, %v9257_v34  ;;  %v9371_v7 = vadd.f32 %v9370_v18, %v9369_v9 }
 0x83e   :  { %v6411_v60 = vadd.f32 %v9368_v12, %v6250_v28  ;;  %v6253_v39 = vadd.f32 %v9259_v10, %v14257_v46 }
 0x840   :  { %v6414_v23 = vadd.f32 %v9371_v7, %v6253_v39  ;;  %v9260_v37 = vpop.f32.mrb[164].mxu0  ;;  %v9372_v5 = vpop.f32.mrb[136].mxu1  ;;  %9702 = vmatprep.mubr.msk.f32.mxu0 %vm85_vm0, %v6411_v60 }
 0x841   :  { %v9261_v59 = vpop.f32.mrb[165].mxu0  ;;  %v9373_v51 = vpop.f32.mrb[137].mxu1 }
 0x842   :  { %v9262_v30 = vadd.f32 %v9261_v59, %v9260_v37  ;;  %v9374_v19 = vadd.f32 %v9373_v51, %v9372_v5  ;;  %v9263_v6 = vpop.f32.mrb[166].mxu0  ;;  %v9375_v14 = vpop.f32.mrb[138].mxu1  ;;  %9703 = vmatmul.mubr.msk.f32.gmra.mrb[220].mxu0 %vm85_vm0, %v6414_v23 }
 0x843   :  { %v9264_v27 = vpop.f32.mrb[167].mxu0  ;;  %v9376_v61 = vpop.f32.mrb[139].mxu1 }
 0x844   :  { %v6258_v57 = vadd.f32 %v9262_v30, %v14275_v3  ;;  %v9265_v41 = vadd.f32 %v9264_v27, %v9263_v6  ;;  %v9377_v63 = vadd.f32 %v9376_v61, %v9375_v14 }
 0x846   :  { %v6419_v46 = vadd.f32 %v9374_v19, %v6258_v57  ;;  %v6261_v40 = vadd.f32 %v9265_v41, %v14277_v32 }
 0x848   :  { %v6422_v11 = vadd.f32 %v9377_v63, %v6261_v40  ;;  %v9266_v38 = vpop.f32.mrb[168].mxu0  ;;  %v9378_v53 = vpop.f32.mrb[140].mxu1  ;;  %9705 = vmatprep.mubr.msk.f32.mxu0 %vm85_vm0, %v6419_v46 }
 0x849   :  { %v9267_v48 = vpop.f32.mrb[169].mxu0  ;;  %v9379_v26 = vpop.f32.mrb[141].mxu1 }
 0x84a   :  { %v9268_v54 = vadd.f32 %v9267_v48, %v9266_v38  ;;  %v9380_v25 = vadd.f32 %v9379_v26, %v9378_v53  ;;  %v9269_v62 = vpop.f32.mrb[170].mxu0  ;;  %v9381_v42 = vpop.f32.mrb[142].mxu1  ;;  %9706 = vmatmul.mubr.msk.f32.gmra.mrb[222].mxu0 %vm85_vm0, %v6422_v11 }
 0x84b   :  { %v9270_v29 = vpop.f32.mrb[171].mxu0  ;;  %v9382_v3 = vpop.f32.mrb[143].mxu1 }
 0x84c   :  { %v6266_v33 = vadd.f32 %v9268_v54, %v14287_v49  ;;  %v9271_v13 = vadd.f32 %v9270_v29, %v9269_v62  ;;  %v9383_v12 = vadd.f32 %v9382_v3, %v9381_v42 }
 0x84e   :  { %v6427_v32 = vadd.f32 %v9380_v25, %v6266_v33  ;;  %v6269_v34 = vadd.f32 %v9271_v13, %v14289_v21 }
 0x850   :  { %v6430_v9 = vadd.f32 %v9383_v12, %v6269_v34  ;;  %v9272_v16 = vpop.f32.mrb[172].mxu0  ;;  %v9384_v18 = vpop.f32.mrb[144].mxu1  ;;  %9708 = vmatprep.mubr.msk.f32.mxu0 %vm85_vm0, %v6427_v32 }
 0x851   :  { %v9273_v28 = vpop.f32.mrb[173].mxu0  ;;  %v9385_v10 = vpop.f32.mrb[145].mxu1 }
 0x852   :  { %v9274_v7 = vadd.f32 %v9273_v28, %v9272_v16  ;;  %v9386_v60 = vadd.f32 %v9385_v10, %v9384_v18  ;;  %v9275_v39 = vpop.f32.mrb[174].mxu0  ;;  %v9387_v23 = vpop.f32.mrb[146].mxu1  ;;  %9709 = vmatmul.mubr.msk.f32.gmra.mrb[224].mxu0 %vm85_vm0, %v6430_v9 }
 0x853   :  { %v9276_v37 = vpop.f32.mrb[175].mxu0  ;;  %v9388_v49 = vpop.f32.mrb[147].mxu1 }
 0x854   :  { %v6274_v5 = vadd.f32 %v9274_v7, %v14291_v2  ;;  %v9277_v59 = vadd.f32 %v9276_v37, %v9275_v39  ;;  %v9389_v51 = vadd.f32 %v9388_v49, %v9387_v23 }
 0x856   :  { %v6435_v21 = vadd.f32 %v9386_v60, %v6274_v5  ;;  %v6277_v30 = vadd.f32 %v9277_v59, %v14293_v20 }
 0x858   :  { %v6438_v19 = vadd.f32 %v9389_v51, %v6277_v30  ;;  %v9278_v6 = vpop.f32.mrb[176].mxu0  ;;  %v9390_v14 = vpop.f32.mrb[148].mxu1  ;;  %9711 = vmatprep.mubr.msk.f32.mxu0 %vm85_vm0, %v6435_v21 }
 0x859   :  { %v9279_v27 = vpop.f32.mrb[177].mxu0  ;;  %v9391_v61 = vpop.f32.mrb[149].mxu1 }
 0x85a   :  { %v9280_v57 = vadd.f32 %v9279_v27, %v9278_v6  ;;  %v9392_v41 = vadd.f32 %v9391_v61, %v9390_v14  ;;  %v9281_v63 = vpop.f32.mrb[178].mxu0  ;;  %v9393_v46 = vpop.f32.mrb[150].mxu1  ;;  %9712 = vmatmul.mubr.msk.f32.gmra.mrb[226].mxu0 %vm85_vm0, %v6438_v19 }
 0x85b   :  { %v9282_v40 = vpop.f32.mrb[179].mxu0  ;;  %v9394_v2 = vpop.f32.mrb[151].mxu1 }
 0x85c   :  { %v6282_v11 = vadd.f32 %v9280_v57, %v14295_v8  ;;  %v9283_v38 = vadd.f32 %v9282_v40, %v9281_v63  ;;  %v9395_v53 = vadd.f32 %v9394_v2, %v9393_v46 }
 0x85e   :  { %v6443_v20 = vadd.f32 %v9392_v41, %v6282_v11  ;;  %v6285_v48 = vadd.f32 %v9283_v38, %v14297_v58 }
 0x860   :  { %v6446_v26 = vadd.f32 %v9395_v53, %v6285_v48  ;;  %v9284_v54 = vpop.f32.mrb[180].mxu0  ;;  %v9396_v25 = vpop.f32.mrb[152].mxu1  ;;  %9714 = vmatprep.mubr.msk.f32.mxu0 %vm85_vm0, %v6443_v20 }
 0x861   :  { %v9285_v62 = vpop.f32.mrb[181].mxu0  ;;  %v9397_v42 = vpop.f32.mrb[153].mxu1 }
 0x862   :  { %v9286_v29 = vadd.f32 %v9285_v62, %v9284_v54  ;;  %v9398_v3 = vadd.f32 %v9397_v42, %v9396_v25  ;;  %v9287_v33 = vpop.f32.mrb[182].mxu0  ;;  %v9399_v13 = vpop.f32.mrb[154].mxu1  ;;  %9715 = vmatmul.mubr.msk.f32.gmra.mrb[228].mxu0 %vm85_vm0, %v6446_v26 }
 0x863   :  { %v9288_v12 = vpop.f32.mrb[183].mxu0  ;;  %v9400_v8 = vpop.f32.mrb[155].mxu1 }
 0x864   :  { %v6290_v32 = vadd.f32 %v9286_v29, %v14299_v56  ;;  %v9289_v34 = vadd.f32 %v9288_v12, %v9287_v33  ;;  %v9401_v9 = vadd.f32 %v9400_v8, %v9399_v13 }
 0x866   :  { %v6451_v58 = vadd.f32 %v9398_v3, %v6290_v32  ;;  %v6293_v16 = vadd.f32 %v9289_v34, %v14301_v15 }
 0x868   :  { %v6454_v18 = vadd.f32 %v9401_v9, %v6293_v16  ;;  %v9290_v28 = vpop.f32.mrb[184].mxu0  ;;  %v9402_v10 = vpop.f32.mrb[156].mxu1  ;;  %9717 = vmatprep.mubr.msk.f32.mxu0 %vm85_vm0, %v6451_v58 }
 0x869   :  { %v9291_v7 = vpop.f32.mrb[185].mxu0  ;;  %v9403_v60 = vpop.f32.mrb[157].mxu1 }
 0x86a   :  { %v9292_v39 = vadd.f32 %v9291_v7, %v9290_v28  ;;  %v9404_v23 = vadd.f32 %v9403_v60, %v9402_v10  ;;  %v9293_v37 = vpop.f32.mrb[186].mxu0  ;;  %v9405_v49 = vpop.f32.mrb[158].mxu1  ;;  %9718 = vmatmul.mubr.msk.f32.gmra.mrb[230].mxu0 %vm85_vm0, %v6454_v18 }
 0x86b   :  { %v9294_v5 = vpop.f32.mrb[187].mxu0  ;;  %v9406_v56 = vpop.f32.mrb[159].mxu1 }
 0x86c   :  { %v6298_v59 = vadd.f32 %v9292_v39, %v14303_v31  ;;  %v9295_v51 = vadd.f32 %v9294_v5, %v9293_v37  ;;  %v9407_v21 = vadd.f32 %v9406_v56, %v9405_v49 }
 0x86e   :  { %v6459_v15 = vadd.f32 %v9404_v23, %v6298_v59  ;;  %v6301_v30 = vadd.f32 %v9295_v51, %v14305_v44 }
 0x870   :  { %v6462_v19 = vadd.f32 %v9407_v21, %v6301_v30  ;;  %v9296_v6 = vpop.f32.mrb[188].mxu0  ;;  %v9408_v14 = vpop.f32.mrb[160].mxu1  ;;  %9720 = vmatprep.mubr.msk.f32.mxu0 %vm85_vm0, %v6459_v15 }
 0x871   :  { %v9297_v27 = vpop.f32.mrb[189].mxu0  ;;  %v9409_v61 = vpop.f32.mrb[161].mxu1 }
 0x872   :  { %v9298_v57 = vadd.f32 %v9297_v27, %v9296_v6  ;;  %v9410_v41 = vadd.f32 %v9409_v61, %v9408_v14  ;;  %v9299_v63 = vpop.f32.mrb[190].mxu0  ;;  %v9411_v46 = vpop.f32.mrb[162].mxu1  ;;  %9721 = vmatmul.mubr.msk.f32.gmra.mrb[232].mxu0 %vm85_vm0, %v6462_v19 }
 0x873   :  { %v9300_v40 = vpop.f32.mrb[191].mxu0  ;;  %v9412_v31 = vpop.f32.mrb[163].mxu1 }
 0x874   :  { %v6306_v2 = vadd.f32 %v9298_v57, %v14307_v45  ;;  %v9301_v11 = vadd.f32 %v9300_v40, %v9299_v63  ;;  %v9413_v38 = vadd.f32 %v9412_v31, %v9411_v46 }
 0x876   :  { %v6467_v44 = vadd.f32 %v9410_v41, %v6306_v2  ;;  %v6309_v53 = vadd.f32 %v9301_v11, %v14309_v4 }
 0x878   :  { %v6470_v20 = vadd.f32 %v9413_v38, %v6309_v53  ;;  %v9302_v48 = vpop.f32.mrb[192].mxu0  ;;  %v9414_v26 = vpop.f32.mrb[164].mxu1  ;;  %9723 = vmatprep.mubr.msk.f32.mxu0 %vm85_vm0, %v6467_v44 }
 0x879   :  { %v9303_v54 = vpop.f32.mrb[193].mxu0  ;;  %v9415_v25 = vpop.f32.mrb[165].mxu1 }
 0x87a   :  { %v9304_v62 = vadd.f32 %v9303_v54, %v9302_v48  ;;  %v9416_v42 = vadd.f32 %v9415_v25, %v9414_v26  ;;  %v9305_v29 = vpop.f32.mrb[194].mxu0  ;;  %v9417_v3 = vpop.f32.mrb[166].mxu1  ;;  %9724 = vmatmul.mubr.msk.f32.gmra.mrb[234].mxu0 %vm85_vm0, %v6470_v20 }
 0x87b   :  { %v9306_v33 = vpop.f32.mrb[195].mxu0  ;;  %v9418_v45 = vpop.f32.mrb[167].mxu1 }
 0x87c   :  { %v6314_v13 = vadd.f32 %v9304_v62, %v14311_v0  ;;  %v9307_v12 = vadd.f32 %v9306_v33, %v9305_v29  ;;  %v9419_v8 = vadd.f32 %v9418_v45, %v9417_v3 }
 0x87e   :  { %v6475_v4 = vadd.f32 %v9416_v42, %v6314_v13  ;;  %v6317_v32 = vadd.f32 %v9307_v12, %v14313_v43 }
 0x880   :  { %v6478_v34 = vadd.f32 %v9419_v8, %v6317_v32  ;;  %v9308_v9 = vpop.f32.mrb[196].mxu0  ;;  %v9420_v58 = vpop.f32.mrb[168].mxu1  ;;  %9726 = vmatprep.mubr.msk.f32.mxu0 %vm85_vm0, %v6475_v4 }
 0x881   :  { %v9309_v16 = vpop.f32.mrb[197].mxu0  ;;  %v9421_v18 = vpop.f32.mrb[169].mxu1 }
 0x882   :  { %v9310_v28 = vadd.f32 %v9309_v16, %v9308_v9  ;;  %v9422_v10 = vadd.f32 %v9421_v18, %v9420_v58  ;;  %v9311_v7 = vpop.f32.mrb[198].mxu0  ;;  %v9423_v60 = vpop.f32.mrb[170].mxu1  ;;  %9727 = vmatmul.mubr.msk.f32.gmra.mrb[236].mxu0 %vm85_vm0, %v6478_v34 }
 0x883   :  { %v9312_v39 = vpop.f32.mrb[199].mxu0  ;;  %v9424_v0 = vpop.f32.mrb[171].mxu1 }
 0x884   :  { %v6322_v23 = vadd.f32 %v9310_v28, %v14315_v22  ;;  %v9313_v37 = vadd.f32 %v9312_v39, %v9311_v7  ;;  %v9425_v49 = vadd.f32 %v9424_v0, %v9423_v60 }
 0x886   :  { %v6483_v43 = vadd.f32 %v9422_v10, %v6322_v23  ;;  %v6325_v5 = vadd.f32 %v9313_v37, %v14317_v35 }
 0x888   :  { %v6486_v56 = vadd.f32 %v9425_v49, %v6325_v5  ;;  %v9314_v59 = vpop.f32.mrb[200].mxu0  ;;  %v9426_v51 = vpop.f32.mrb[172].mxu1  ;;  %9729 = vmatprep.mubr.msk.f32.mxu0 %vm85_vm0, %v6483_v43 }
 0x889   :  { %v9315_v21 = vpop.f32.mrb[201].mxu0  ;;  %v9427_v15 = vpop.f32.mrb[173].mxu1 }
 0x88a   :  { %v9316_v30 = vadd.f32 %v9315_v21, %v9314_v59  ;;  %v9428_v19 = vadd.f32 %v9427_v15, %v9426_v51  ;;  %v9317_v6 = vpop.f32.mrb[202].mxu0  ;;  %v9429_v14 = vpop.f32.mrb[174].mxu1  ;;  %9730 = vmatmul.mubr.msk.f32.gmra.mrb[238].mxu0 %vm85_vm0, %v6486_v56 }
 0x88b   :  { %v9318_v27 = vpop.f32.mrb[203].mxu0  ;;  %v9430_v22 = vpop.f32.mrb[175].mxu1 }
 0x88c   :  { %v6330_v61 = vadd.f32 %v9316_v30, %v14319_v50  ;;  %v9319_v57 = vadd.f32 %v9318_v27, %v9317_v6  ;;  %v9431_v41 = vadd.f32 %v9430_v22, %v9429_v14  ;;  %v15881_v30 = vmov 0.0   ;;  %v10119_v27 = vld [vmem:[%s15423_s0] sm:$0xff] }
 0x88e   :  { %v6491_v35 = vadd.f32 %v9428_v19, %v6330_v61  ;;  %v6333_v63 = vadd.f32 %v9319_v57, %v14321_v36 }
 0x890   :  { %v6494_v46 = vadd.f32 %v9431_v41, %v6333_v63  ;;  %v9320_v40 = vpop.f32.mrb[204].mxu0  ;;  %v9432_v31 = vpop.f32.mrb[176].mxu1  ;;  %9732 = vmatprep.mubr.msk.f32.mxu0 %vm85_vm0, %v6491_v35 }
 0x891   :  { %v9321_v2 = vpop.f32.mrb[205].mxu0  ;;  %v9433_v11 = vpop.f32.mrb[177].mxu1 }
 0x892   :  { %v9322_v38 = vadd.f32 %v9321_v2, %v9320_v40  ;;  %v9434_v44 = vadd.f32 %v9433_v11, %v9432_v31  ;;  %v9323_v53 = vpop.f32.mrb[206].mxu0  ;;  %v9435_v20 = vpop.f32.mrb[178].mxu1  ;;  %9733 = vmatmul.mubr.msk.f32.gmra.mrb[240].mxu0 %vm85_vm0, %v6494_v46  ;;  %v10120_v46 = vld [vmem:[%s15423_s0 + $0x18] sm:$0xff]  ;;  %v10121_v2 = vld [vmem:[%s15423_s0 + $0x10] sm:$0xff] }
 0x893   :  { %v9324_v48 = vpop.f32.mrb[207].mxu0  ;;  %v9436_v50 = vpop.f32.mrb[179].mxu1 }
 0x894   :  { %v6338_v26 = vadd.f32 %v9322_v38, %v14323_v47  ;;  %v9325_v54 = vadd.f32 %v9324_v48, %v9323_v53  ;;  %v9437_v25 = vadd.f32 %v9436_v50, %v9435_v20  ;;  %v10122_v50 = vld [vmem:[%s15423_s0 + $0x28] sm:$0xff] }
 0x896   :  { %v6499_v36 = vadd.f32 %v9434_v44, %v6338_v26  ;;  %v6341_v62 = vadd.f32 %v9325_v54, %v14325_v24  ;;  %v10123_v54 = vld [vmem:[%s15423_s0 + $0x20] sm:$0xff] }
 0x898   :  { %v6502_v42 = vadd.f32 %v9437_v25, %v6341_v62  ;;  %v9326_v29 = vpop.f32.mrb[208].mxu0  ;;  %v9438_v3 = vpop.f32.mrb[180].mxu1  ;;  %9735 = vmatprep.mubr.msk.f32.mxu0 %vm85_vm0, %v6499_v36 }
 0x899   :  { %v9327_v33 = vpop.f32.mrb[209].mxu0  ;;  %v9439_v45 = vpop.f32.mrb[181].mxu1 }
 0x89a   :  { %v9328_v13 = vadd.f32 %v9327_v33, %v9326_v29  ;;  %v9440_v12 = vadd.f32 %v9439_v45, %v9438_v3  ;;  %v9329_v8 = vpop.f32.mrb[210].mxu0  ;;  %v9441_v4 = vpop.f32.mrb[182].mxu1  ;;  %9736 = vmatmul.mubr.msk.f32.gmra.mrb[242].mxu0 %vm85_vm0, %v6502_v42  ;;  %v10124_v45 = vld [vmem:[%s15423_s0 + $0x38] sm:$0xff] }
 0x89b   :  { %v9330_v32 = vpop.f32.mrb[211].mxu0  ;;  %v9442_v47 = vpop.f32.mrb[183].mxu1 }
 0x89c   :  { %v6346_v34 = vadd.f32 %v9328_v13, %v14327_v52  ;;  %v9331_v9 = vadd.f32 %v9330_v32, %v9329_v8  ;;  %v9443_v58 = vadd.f32 %v9442_v47, %v9441_v4 }
 0x89e   :  { %v6507_v24 = vadd.f32 %v9440_v12, %v6346_v34  ;;  %v6349_v16 = vadd.f32 %v9331_v9, %v14329_v55  ;;  %v10125_v12 = vld [vmem:[%s15423_s0 + $0x30] sm:$0xff] }
 0x8a0   :  { %v6510_v18 = vadd.f32 %v9443_v58, %v6349_v16  ;;  %v9332_v28 = vpop.f32.mrb[212].mxu0  ;;  %v9444_v10 = vpop.f32.mrb[184].mxu1  ;;  %9738 = vmatprep.mubr.msk.f32.mxu0 %vm85_vm0, %v6507_v24  ;;  %v10126_v24 = vld [vmem:[%s15423_s0 + $0x48] sm:$0xff] }
 0x8a1   :  { %v9333_v7 = vpop.f32.mrb[213].mxu0  ;;  %v9445_v60 = vpop.f32.mrb[185].mxu1 }
 0x8a2   :  { %v9334_v39 = vadd.f32 %v9333_v7, %v9332_v28  ;;  %v9446_v0 = vadd.f32 %v9445_v60, %v9444_v10  ;;  %v9335_v23 = vpop.f32.mrb[214].mxu0  ;;  %v9447_v37 = vpop.f32.mrb[186].mxu1  ;;  %9739 = vmatmul.mubr.msk.f32.gmra.mrb[244].mxu0 %vm85_vm0, %v6510_v18  ;;  %v10127_v18 = vld [vmem:[%s15423_s0 + $0x40] sm:$0xff] }
 0x8a3   :  { %v9336_v49 = vpop.f32.mrb[215].mxu0  ;;  %v9448_v52 = vpop.f32.mrb[187].mxu1 }
 0x8a4   :  { %v6354_v43 = vadd.f32 %v9334_v39, %v14331_v17  ;;  %v9337_v5 = vadd.f32 %v9336_v49, %v9335_v23  ;;  %v9449_v56 = vadd.f32 %v9448_v52, %v9447_v37  ;;  %v10118_v17 = vld [vmem:[%s15423_s0 + $0x8] sm:$0xff]  ;;  %v10128_v37 = vld [vmem:[%s15423_s0 + $0x58] sm:$0xff]  ;;  %v10129_v52 = vld [vmem:[%s15423_s0 + $0x50] sm:$0xff] }
 0x8a6   :  { %v6515_v55 = vadd.f32 %v9446_v0, %v6354_v43  ;;  %v6357_v59 = vadd.f32 %v9337_v5, %v14333_v1 }
 0x8a8   :  { %v6518_v51 = vadd.f32 %v9449_v56, %v6357_v59  ;;  %9741 = vmatprep.mubr.msk.f32.mxu0 %vm85_vm0, %v6515_v55 }
 0x8aa   :  { %9742 = vmatmul.mubr.msk.f32.gmra.mrb[246].mxu0 %vm85_vm0, %v6518_v51 }
 0x905   :  { %v9698_v21 = vpop.f32.mrb[216].mxu0 }
 0x906   :  { %vm6859_vm1 = vcmp.gt.f32.partialorder %v9698_v21, 1.0  ;;  %v6699_v15 = vpop.f32.mrb[217].mxu0 }
 0x907   :  { %v8650_v19 = vsel %vm6859_vm1, 1.0, %v15881_v30  ;;  %vm6858_vm2 = vcmp.gt.f32.partialorder %v6699_v15, 1.0  ;;  %v10130_v15 = vld [vmem:[%s15423_s0 + $0x68] sm:$0xff] }
 0x908   :  { %v8649_v6 = vsel %vm6858_vm2, 1.0, %v15881_v30  ;;  %v14404_v14 = vadd.f32 %v10118_v17, %v8650_v19 }
 0x909   :  { %v14411_v22 = vadd.f32 %v10119_v27, %v8649_v6  ;;  %v10131_v6 = vld [vmem:[%s15423_s0 + $0x60] sm:$0xff] }
 0x90a   :  { %v6991_v1 = vsel %vm85_vm0, %v14404_v14, 0.0 }
 0x90b   :  { %6992 = vadd.xlane.f32.xlu0 %v6991_v1  ;;  %v6988_v41 = vsel %vm85_vm0, %v14411_v22, 0.0 }
 0x90d   :  { %v9701_v61 = vpop.f32.mrb[218].mxu0 }
 0x90e   :  { %vm6861_vm3 = vcmp.gt.f32.partialorder %v9701_v61, 1.0  ;;  %v6709_v57 = vpop.f32.mrb[219].mxu0 }
 0x90f   :  { %v8652_v35 = vsel %vm6861_vm3, 1.0, %v15881_v30  ;;  %vm6860_vm4 = vcmp.gt.f32.partialorder %v6709_v57, 1.0  ;;  %6989 = vadd.xlane.f32.xlu0 %v6988_v41 }
 0x910   :  { %v8651_v63 = vsel %vm6860_vm4, 1.0, %v15881_v30  ;;  %v14420_v40 = vadd.f32 %v10120_v46, %v8652_v35 }
 0x911   :  { %v14427_v11 = vadd.f32 %v10121_v2, %v8651_v63  ;;  %v10132_v63 = vld [vmem:[%s15423_s0 + $0x78] sm:$0xff] }
 0x912   :  { %v6997_v31 = vsel %vm85_vm0, %v14420_v40, 0.0 }
 0x913   :  { %6998 = vadd.xlane.f32.xlu1 %v6997_v31  ;;  %v6994_v53 = vsel %vm85_vm0, %v14427_v11, 0.0  ;;  %v10133_v31 = vld [vmem:[%s15423_s0 + $0x70] sm:$0xff] }
 0x915   :  { %v9704_v38 = vpop.f32.mrb[220].mxu0 }
 0x916   :  { %vm6863_vm5 = vcmp.gt.f32.partialorder %v9704_v38, 1.0  ;;  %v6719_v44 = vpop.f32.mrb[221].mxu0 }
 0x917   :  { %v8654_v20 = vsel %vm6863_vm5, 1.0, %v15881_v30  ;;  %vm6862_vm6 = vcmp.gt.f32.partialorder %v6719_v44, 1.0  ;;  %6995 = vadd.xlane.f32.xlu1 %v6994_v53 }
 0x918   :  { %v8653_v48 = vsel %vm6862_vm6, 1.0, %v15881_v30  ;;  %v14436_v26 = vadd.f32 %v10122_v50, %v8654_v20 }
 0x919   :  { %v14441_v25 = vadd.f32 %v10123_v54, %v8653_v48  ;;  %v10134_v54 = vld [vmem:[%s15423_s0 + $0x88] sm:$0xff] }
 0x91a   :  { %v7003_v36 = vsel %vm85_vm0, %v14436_v26, 0.0 }
 0x91b   :  { %7004 = vadd.xlane.f32.xlu1 %v7003_v36  ;;  %v7000_v62 = vsel %vm85_vm0, %v14441_v25, 0.0 }
 0x91c   :  { %7001 = vadd.xlane.f32.xlu0 %v7000_v62  ;;  %v10135_v62 = vld [vmem:[%s15423_s0 + $0x80] sm:$0xff] }
 0x91d   :  { %v9707_v42 = vpop.f32.mrb[222].mxu0 }
 0x91e   :  { %vm6865_vm7 = vcmp.gt.f32.partialorder %v9707_v42, 1.0  ;;  %v6729_v29 = vpop.f32.mrb[223].mxu0 }
 0x91f   :  { %v8656_v3 = vsel %vm6865_vm7, 1.0, %v15881_v30  ;;  %vm6864_vm8 = vcmp.gt.f32.partialorder %v6729_v29, 1.0 }
 0x920   :  { %v8655_v33 = vsel %vm6864_vm8, 1.0, %v15881_v30  ;;  %v14452_v13 = vadd.f32 %v10124_v45, %v8656_v3 }
 0x921   :  { %v14457_v8 = vadd.f32 %v10125_v12, %v8655_v33 }
 0x922   :  { %v7009_v4 = vsel %vm85_vm0, %v14452_v13, 0.0 }
 0x923   :  { %7010 = vadd.xlane.f32.xlu1 %v7009_v4  ;;  %v7006_v32 = vsel %vm85_vm0, %v14457_v8, 0.0 }
 0x924   :  { %7007 = vadd.xlane.f32.xlu0 %v7006_v32  ;;  %v10136_v32 = vld [vmem:[%s15423_s0 + $0x98] sm:$0xff] }
 0x925   :  { %v9710_v47 = vpop.f32.mrb[224].mxu0 }
 0x926   :  { %vm6867_vm9 = vcmp.gt.f32.partialorder %v9710_v47, 1.0  ;;  %v6739_v34 = vpop.f32.mrb[225].mxu0 }
 0x927   :  { %v8658_v9 = vsel %vm6867_vm9, 1.0, %v15881_v30  ;;  %vm6866_vm10 = vcmp.gt.f32.partialorder %v6739_v34, 1.0  ;;  %v10137_v34 = vld [vmem:[%s15423_s0 + $0x90] sm:$0xff] }
 0x928   :  { %v8657_v58 = vsel %vm6866_vm10, 1.0, %v15881_v30  ;;  %v14468_v16 = vadd.f32 %v10126_v24, %v8658_v9 }
 0x929   :  { %v14473_v28 = vadd.f32 %v10127_v18, %v8657_v58 }
 0x92a   :  { %v7015_v10 = vsel %vm85_vm0, %v14468_v16, 0.0 }
 0x92b   :  { %7016 = vadd.xlane.f32.xlu1 %v7015_v10  ;;  %v7012_v7 = vsel %vm85_vm0, %v14473_v28, 0.0 }
 0x92c   :  { %7013 = vadd.xlane.f32.xlu0 %v7012_v7 }
 0x92d   :  { %v9713_v60 = vpop.f32.mrb[226].mxu0 }
 0x92e   :  { %vm6869_vm11 = vcmp.gt.f32.partialorder %v9713_v60, 1.0  ;;  %v6749_v39 = vpop.f32.mrb[227].mxu0 }
 0x92f   :  { %v8660_v0 = vsel %vm6869_vm11, 1.0, %v15881_v30  ;;  %vm6868_vm12 = vcmp.gt.f32.partialorder %v6749_v39, 1.0  ;;  %v10138_v39 = vld [vmem:[%s15423_s0 + $0xa8] sm:$0xff] }
 0x930   :  { %v8659_v23 = vsel %vm6868_vm12, 1.0, %v15881_v30  ;;  %v14484_v49 = vadd.f32 %v10128_v37, %v8660_v0 }
 0x931   :  { %v14489_v43 = vadd.f32 %v10129_v52, %v8659_v23  ;;  %v10139_v23 = vld [vmem:[%s15423_s0 + $0xa0] sm:$0xff] }
 0x932   :  { %v7021_v5 = vsel %vm85_vm0, %v14484_v49, 0.0 }
 0x933   :  { %7022 = vadd.xlane.f32.xlu1 %v7021_v5  ;;  %v7018_v56 = vsel %vm85_vm0, %v14489_v43, 0.0 }
 0x934   :  { %7019 = vadd.xlane.f32.xlu0 %v7018_v56 }
 0x935   :  { %v9716_v55 = vpop.f32.mrb[228].mxu0 }
 0x936   :  { %vm6871_vm13 = vcmp.gt.f32.partialorder %v9716_v55, 1.0  ;;  %v6759_v59 = vpop.f32.mrb[229].mxu0 }
 0x937   :  { %v8662_v51 = vsel %vm6871_vm13, 1.0, %v15881_v30  ;;  %vm6870_vm14 = vcmp.gt.f32.partialorder %v6759_v59, 1.0 }
 0x938   :  { %v8661_v21 = vsel %vm6870_vm14, 1.0, %v15881_v30  ;;  %v14500_v19 = vadd.f32 %v10130_v15, %v8662_v51 }
 0x939   :  { %v14505_v17 = vadd.f32 %v10131_v6, %v8661_v21  ;;  %v10140_v21 = vld [vmem:[%s15423_s0 + $0xb8] sm:$0xff]  ;;  %v10141_v6 = vld [vmem:[%s15423_s0 + $0xb0] sm:$0xff] }
 0x93a   :  { %v7027_v1 = vsel %vm85_vm0, %v14500_v19, 0.0 }
 0x93b   :  { %7028 = vadd.xlane.f32.xlu1 %v7027_v1  ;;  %v7024_v27 = vsel %vm85_vm0, %v14505_v17, 0.0 }
 0x93c   :  { %7025 = vadd.xlane.f32.xlu0 %v7024_v27 }
 0x93d   :  { %v9719_v61 = vpop.f32.mrb[230].mxu0 }
 0x93e   :  { %vm6873_vm15 = vcmp.gt.f32.partialorder %v9719_v61, 1.0  ;;  %v6769_v57 = vpop.f32.mrb[231].mxu0 }
 0x93f   :  { %v8664_v41 = vsel %vm6873_vm15, 1.0, %v15881_v30  ;;  %vm6872_vm1 = vcmp.gt.f32.partialorder %v6769_v57, 1.0 }
 0x940   :  { %v8663_v35 = vsel %vm6872_vm1, 1.0, %v15881_v30  ;;  %v14516_v46 = vadd.f32 %v10132_v63, %v8664_v41 }
 0x941   :  { %v14521_v2 = vadd.f32 %v10133_v31, %v8663_v35  ;;  %v10142_v31 = vld [vmem:[%s15423_s0 + $0xc8] sm:$0xff] }
 0x942   :  { %v7033_v38 = vsel %vm85_vm0, %v14516_v46, 0.0 }
 0x943   :  { %7034 = vadd.xlane.f32.xlu1 %v7033_v38  ;;  %v7030_v44 = vsel %vm85_vm0, %v14521_v2, 0.0 }
 0x944   :  { %7031 = vadd.xlane.f32.xlu0 %v7030_v44  ;;  %v10143_v44 = vld [vmem:[%s15423_s0 + $0xc0] sm:$0xff] }
 0x945   :  { %v9722_v53 = vpop.f32.mrb[232].mxu0 }
 0x946   :  { %vm6875_vm2 = vcmp.gt.f32.partialorder %v9722_v53, 1.0  ;;  %v6779_v20 = vpop.f32.mrb[233].mxu0 }
 0x947   :  { %v8666_v48 = vsel %vm6875_vm2, 1.0, %v15881_v30  ;;  %vm6874_vm3 = vcmp.gt.f32.partialorder %v6779_v20, 1.0 }
 0x948   :  { %v8665_v50 = vsel %vm6874_vm3, 1.0, %v15881_v30  ;;  %v14532_v36 = vadd.f32 %v10134_v54, %v8666_v48 }
 0x949   :  { %v14537_v42 = vadd.f32 %v10135_v62, %v8665_v50 }
 0x94a   :  { %v7039_v29 = vsel %vm85_vm0, %v14532_v36, 0.0 }
 0x94b   :  { %7040 = vadd.xlane.f32.xlu1 %v7039_v29  ;;  %v7036_v3 = vsel %vm85_vm0, %v14537_v42, 0.0 }
 0x94c   :  { %7037 = vadd.xlane.f32.xlu0 %v7036_v3  ;;  %v10144_v3 = vld [vmem:[%s15423_s0 + $0xd8] sm:$0xff] }
 0x94d   :  { %v9725_v33 = vpop.f32.mrb[234].mxu0 }
 0x94e   :  { %vm6877_vm4 = vcmp.gt.f32.partialorder %v9725_v33, 1.0  ;;  %v6789_v45 = vpop.f32.mrb[235].mxu0 }
 0x94f   :  { %v8668_v12 = vsel %vm6877_vm4, 1.0, %v15881_v30  ;;  %vm6876_vm5 = vcmp.gt.f32.partialorder %v6789_v45, 1.0  ;;  %v10145_v45 = vld [vmem:[%s15423_s0 + $0xd0] sm:$0xff] }
 0x950   :  { %v8667_v4 = vsel %vm6876_vm5, 1.0, %v15881_v30  ;;  %v14548_v47 = vadd.f32 %v10136_v32, %v8668_v12 }
 0x951   :  { %v14553_v9 = vadd.f32 %v10137_v34, %v8667_v4 }
 0x952   :  { %v7045_v58 = vsel %vm85_vm0, %v14548_v47, 0.0 }
 0x953   :  { %7046 = vadd.xlane.f32.xlu1 %v7045_v58  ;;  %v7042_v24 = vsel %vm85_vm0, %v14553_v9, 0.0 }
 0x954   :  { %7043 = vadd.xlane.f32.xlu0 %v7042_v24 }
 0x955   :  { %v9728_v18 = vpop.f32.mrb[236].mxu0 }
 0x956   :  { %vm6879_vm6 = vcmp.gt.f32.partialorder %v9728_v18, 1.0  ;;  %v6799_v10 = vpop.f32.mrb[237].mxu0 }
 0x957   :  { %v8670_v7 = vsel %vm6879_vm6, 1.0, %v15881_v30  ;;  %vm6878_vm7 = vcmp.gt.f32.partialorder %v6799_v10, 1.0  ;;  %v10146_v10 = vld [vmem:[%s15423_s0 + $0xe8] sm:$0xff] }
 0x958   :  { %v8669_v60 = vsel %vm6878_vm7, 1.0, %v15881_v30  ;;  %v14564_v0 = vadd.f32 %v10138_v39, %v8670_v7 }
 0x959   :  { %v14569_v37 = vadd.f32 %v10139_v23, %v8669_v60  ;;  %v10147_v60 = vld [vmem:[%s15423_s0 + $0xe0] sm:$0xff] }
 0x95a   :  { %v7051_v52 = vsel %vm85_vm0, %v14564_v0, 0.0 }
 0x95b   :  { %7052 = vadd.xlane.f32.xlu1 %v7051_v52  ;;  %v7048_v5 = vsel %vm85_vm0, %v14569_v37, 0.0 }
 0x95c   :  { %7049 = vadd.xlane.f32.xlu0 %v7048_v5 }
 0x95d   :  { %v9731_v56 = vpop.f32.mrb[238].mxu0 }
 0x95e   :  { %vm6881_vm8 = vcmp.gt.f32.partialorder %v9731_v56, 1.0  ;;  %v6809_v55 = vpop.f32.mrb[239].mxu0 }
 0x95f   :  { %v8672_v59 = vsel %vm6881_vm8, 1.0, %v15881_v30  ;;  %vm6880_vm9 = vcmp.gt.f32.partialorder %v6809_v55, 1.0 }
 0x960   :  { %v8671_v51 = vsel %vm6880_vm9, 1.0, %v15881_v30  ;;  %v14580_v15 = vadd.f32 %v10140_v21, %v8672_v59 }
 0x961   :  { %v14585_v1 = vadd.f32 %v10141_v6, %v8671_v51  ;;  %v10148_v51 = vld [vmem:[%s15423_s0 + $0xf8] sm:$0xff]  ;;  %v10149_v6 = vld [vmem:[%s15423_s0 + $0xf0] sm:$0xff] }
 0x962   :  { %v7057_v27 = vsel %vm85_vm0, %v14580_v15, 0.0 }
 0x963   :  { %7058 = vadd.xlane.f32.xlu1 %v7057_v27  ;;  %v7054_v61 = vsel %vm85_vm0, %v14585_v1, 0.0 }
 0x964   :  { %7055 = vadd.xlane.f32.xlu0 %v7054_v61 }
 0x965   :  { %v9734_v57 = vpop.f32.mrb[240].mxu0 }
 0x966   :  { %vm6883_vm10 = vcmp.gt.f32.partialorder %v9734_v57, 1.0  ;;  %v6819_v41 = vpop.f32.mrb[241].mxu0 }
 0x967   :  { %v8674_v35 = vsel %vm6883_vm10, 1.0, %v15881_v30  ;;  %vm6882_vm11 = vcmp.gt.f32.partialorder %v6819_v41, 1.0 }
 0x968   :  { %v8673_v63 = vsel %vm6882_vm11, 1.0, %v15881_v30  ;;  %v14596_v38 = vadd.f32 %v10142_v31, %v8674_v35 }
 0x969   :  { %v14601_v53 = vadd.f32 %v10143_v44, %v8673_v63 }
 0x96a   :  { %v7063_v20 = vsel %vm85_vm0, %v14596_v38, 0.0 }
 0x96b   :  { %7064 = vadd.xlane.f32.xlu1 %v7063_v20  ;;  %v7060_v48 = vsel %vm85_vm0, %v14601_v53, 0.0 }
 0x96c   :  { %7061 = vadd.xlane.f32.xlu0 %v7060_v48 }
 0x96d   :  { %v9737_v50 = vpop.f32.mrb[242].mxu0 }
 0x96e   :  { %vm6885_vm12 = vcmp.gt.f32.partialorder %v9737_v50, 1.0  ;;  %v6829_v54 = vpop.f32.mrb[243].mxu0 }
 0x96f   :  { %v8676_v62 = vsel %vm6885_vm12, 1.0, %v15881_v30  ;;  %vm6884_vm13 = vcmp.gt.f32.partialorder %v6829_v54, 1.0 }
 0x970   :  { %v8675_v29 = vsel %vm6884_vm13, 1.0, %v15881_v30  ;;  %v14612_v33 = vadd.f32 %v10144_v3, %v8676_v62 }
 0x971   :  { %v14617_v12 = vadd.f32 %v10145_v45, %v8675_v29 }
 0x972   :  { %v7069_v4 = vsel %vm85_vm0, %v14612_v33, 0.0 }
 0x973   :  { %7070 = vadd.xlane.f32.xlu1 %v7069_v4  ;;  %v7066_v32 = vsel %vm85_vm0, %v14617_v12, 0.0 }
 0x974   :  { %7067 = vadd.xlane.f32.xlu0 %v7066_v32 }
 0x975   :  { %v9740_v34 = vpop.f32.mrb[244].mxu0 }
 0x976   :  { %vm6887_vm14 = vcmp.gt.f32.partialorder %v9740_v34, 1.0  ;;  %v6839_v58 = vpop.f32.mrb[245].mxu0 }
 0x977   :  { %v8678_v24 = vsel %vm6887_vm14, 1.0, %v15881_v30  ;;  %vm6886_vm15 = vcmp.gt.f32.partialorder %v6839_v58, 1.0 }
 0x978   :  { %v8677_v18 = vsel %vm6886_vm15, 1.0, %v15881_v30  ;;  %v14628_v7 = vadd.f32 %v10146_v10, %v8678_v24 }
 0x979   :  { %v14633_v39 = vadd.f32 %v10147_v60, %v8677_v18 }
 0x97a   :  { %v7075_v23 = vsel %vm85_vm0, %v14628_v7, 0.0 }
 0x97b   :  { %7076 = vadd.xlane.f32.xlu1 %v7075_v23  ;;  %v7072_v52 = vsel %vm85_vm0, %v14633_v39, 0.0 }
 0x97c   :  { %7073 = vadd.xlane.f32.xlu0 %v7072_v52 }
 0x97d   :  { %v9743_v5 = vpop.f32.mrb[246].mxu0 }
 0x97e   :  { %vm6889_vm1 = vcmp.gt.f32.partialorder %v9743_v5, 1.0  ;;  %v6849_v56 = vpop.f32.mrb[247].mxu0 }
 0x97f   :  { %v8680_v55 = vsel %vm6889_vm1, 1.0, %v15881_v30  ;;  %vm6888_vm2 = vcmp.gt.f32.partialorder %v6849_v56, 1.0 }
 0x980   :  { %v8679_v59 = vsel %vm6888_vm2, 1.0, %v15881_v30  ;;  %v14644_v21 = vadd.f32 %v10148_v51, %v8680_v55 }
 0x981   :  { %v14649_v27 = vadd.f32 %v10149_v6, %v8679_v59 }
 0x982   :  { %v7081_v61 = vsel %vm85_vm0, %v14644_v21, 0.0 }
 0x983   :  { %7082 = vadd.xlane.f32.xlu1 %v7081_v61  ;;  %v7078_v57 = vsel %vm85_vm0, %v14649_v27, 0.0 }
 0x984   :  { %7079 = vadd.xlane.f32.xlu0 %v7078_v57 }
 0x998   :  { %v6993_v30 = vpop.xlane.xlu0 %6992 }
 0x999   :  { %v7086_v41 = vmul.f32 0.03125, %v6993_v30 }
 0x99b   :  { %v14656_v35 = vsub.f32 %v14404_v14, %v7086_v41 }
 0x99c   :  { %v6990_v63 = vpop.xlane.xlu0 %6989 }
 0x99d   :  { %v7085_v31 = vmul.f32 0.03125, %v6990_v63  ;;  %v7150_v44 = vmul.f32 %v14656_v35, %v14656_v35 }
 0x99f   :  { %v14661_v20 = vsub.f32 %v14411_v22, %v7085_v31  ;;  %v7184_v48 = vsel %vm85_vm0, %v7150_v44, 0.0 }
 0x9a0   :  { %v6999_v50 = vpop.xlane.xlu1 %6998  ;;  %7185 = vadd.xlane.f32.xlu1 %v7184_v48 }
 0x9a1   :  { %v7088_v54 = vmul.f32 0.03125, %v6999_v50  ;;  %v7149_v62 = vmul.f32 %v14661_v20, %v14661_v20 }
 0x9a3   :  { %v14667_v29 = vsub.f32 %v14420_v40, %v7088_v54  ;;  %v7181_v14 = vsel %vm85_vm0, %v7149_v62, 0.0 }
 0x9a4   :  { %v6996_v3 = vpop.xlane.xlu1 %6995  ;;  %7182 = vadd.xlane.f32.xlu0 %v7181_v14 }
 0x9a5   :  { %v7087_v45 = vmul.f32 0.03125, %v6996_v3  ;;  %v7152_v22 = vmul.f32 %v14667_v29, %v14667_v29 }
 0x9a7   :  { %v14673_v4 = vsub.f32 %v14427_v11, %v7087_v45  ;;  %v7190_v32 = vsel %vm85_vm0, %v7152_v22, 0.0 }
 0x9a8   :  { %v7005_v34 = vpop.xlane.xlu1 %7004  ;;  %7191 = vadd.xlane.f32.xlu1 %v7190_v32 }
 0x9a9   :  { %v7090_v58 = vmul.f32 0.03125, %v7005_v34  ;;  %v7002_v24 = vpop.xlane.xlu0 %7001  ;;  %v7151_v40 = vmul.f32 %v14673_v4, %v14673_v4 }
 0x9aa   :  { %v7089_v18 = vmul.f32 0.03125, %v7002_v24 }
 0x9ab   :  { %v14679_v10 = vsub.f32 %v14436_v26, %v7090_v58  ;;  %v7187_v60 = vsel %vm85_vm0, %v7151_v40, 0.0 }
 0x9ac   :  { %v14683_v23 = vsub.f32 %v14441_v25, %v7089_v18  ;;  %7188 = vadd.xlane.f32.xlu0 %v7187_v60 }
 0x9ad   :  { %v7154_v11 = vmul.f32 %v14679_v10, %v14679_v10 }
 0x9ae   :  { %v7153_v52 = vmul.f32 %v14683_v23, %v14683_v23 }
 0x9af   :  { %v7196_v5 = vsel %vm85_vm0, %v7154_v11, 0.0 }
 0x9b0   :  { %v7011_v56 = vpop.xlane.xlu1 %7010  ;;  %7197 = vadd.xlane.f32.xlu1 %v7196_v5  ;;  %v7193_v55 = vsel %vm85_vm0, %v7153_v52, 0.0 }
 0x9b1   :  { %v7092_v26 = vmul.f32 0.03125, %v7011_v56  ;;  %v7008_v59 = vpop.xlane.xlu0 %7007  ;;  %7194 = vadd.xlane.f32.xlu0 %v7193_v55 }
 0x9b2   :  { %v7091_v51 = vmul.f32 0.03125, %v7008_v59 }
 0x9b3   :  { %v14692_v25 = vsub.f32 %v14452_v13, %v7092_v26 }
 0x9b4   :  { %v14695_v6 = vsub.f32 %v14457_v8, %v7091_v51 }
 0x9b5   :  { %v7156_v61 = vmul.f32 %v14692_v25, %v14692_v25 }
 0x9b6   :  { %v7155_v57 = vmul.f32 %v14695_v6, %v14695_v6 }
 0x9b7   :  { %v7202_v30 = vsel %vm85_vm0, %v7156_v61, 0.0 }
 0x9b8   :  { %v7017_v41 = vpop.xlane.xlu1 %7016  ;;  %7203 = vadd.xlane.f32.xlu1 %v7202_v30  ;;  %v7199_v63 = vsel %vm85_vm0, %v7155_v57, 0.0 }
 0x9b9   :  { %v7094_v31 = vmul.f32 0.03125, %v7017_v41  ;;  %v7014_v44 = vpop.xlane.xlu0 %7013  ;;  %7200 = vadd.xlane.f32.xlu0 %v7199_v63 }
 0x9ba   :  { %v7093_v13 = vmul.f32 0.03125, %v7014_v44 }
 0x9bb   :  { %v14704_v48 = vsub.f32 %v14468_v16, %v7094_v31 }
 0x9bc   :  { %v14707_v8 = vsub.f32 %v14473_v28, %v7093_v13 }
 0x9bd   :  { %v7158_v50 = vmul.f32 %v14704_v48, %v14704_v48 }
 0x9be   :  { %v7157_v54 = vmul.f32 %v14707_v8, %v14707_v8 }
 0x9bf   :  { %v7208_v62 = vsel %vm85_vm0, %v7158_v50, 0.0 }
 0x9c0   :  { %v7023_v14 = vpop.xlane.xlu1 %7022  ;;  %7209 = vadd.xlane.f32.xlu1 %v7208_v62  ;;  %v7205_v3 = vsel %vm85_vm0, %v7157_v54, 0.0 }
 0x9c1   :  { %v7096_v45 = vmul.f32 0.03125, %v7023_v14  ;;  %v7020_v22 = vpop.xlane.xlu0 %7019  ;;  %7206 = vadd.xlane.f32.xlu0 %v7205_v3 }
 0x9c2   :  { %v7095_v16 = vmul.f32 0.03125, %v7020_v22 }
 0x9c3   :  { %v14716_v32 = vsub.f32 %v14484_v49, %v7096_v45 }
 0x9c4   :  { %v14719_v28 = vsub.f32 %v14489_v43, %v7095_v16 }
 0x9c5   :  { %v7160_v34 = vmul.f32 %v14716_v32, %v14716_v32 }
 0x9c6   :  { %v7159_v58 = vmul.f32 %v14719_v28, %v14719_v28 }
 0x9c7   :  { %v7214_v24 = vsel %vm85_vm0, %v7160_v34, 0.0 }
 0x9c8   :  { %v7029_v40 = vpop.xlane.xlu1 %7028  ;;  %7215 = vadd.xlane.f32.xlu1 %v7214_v24  ;;  %v7211_v18 = vsel %vm85_vm0, %v7159_v58, 0.0 }
 0x9c9   :  { %v7098_v60 = vmul.f32 0.03125, %v7029_v40  ;;  %v7026_v11 = vpop.xlane.xlu0 %7025  ;;  %7212 = vadd.xlane.f32.xlu0 %v7211_v18 }
 0x9ca   :  { %v7097_v49 = vmul.f32 0.03125, %v7026_v11 }
 0x9cb   :  { %v14728_v52 = vsub.f32 %v14500_v19, %v7098_v60 }
 0x9cc   :  { %v14731_v43 = vsub.f32 %v14505_v17, %v7097_v49 }
 0x9cd   :  { %v7162_v5 = vmul.f32 %v14728_v52, %v14728_v52 }
 0x9ce   :  { %v7161_v56 = vmul.f32 %v14731_v43, %v14731_v43 }
 0x9cf   :  { %v7220_v55 = vsel %vm85_vm0, %v7162_v5, 0.0 }
 0x9d0   :  { %v7035_v26 = vpop.xlane.xlu1 %7034  ;;  %7221 = vadd.xlane.f32.xlu1 %v7220_v55  ;;  %v7217_v59 = vsel %vm85_vm0, %v7161_v56, 0.0 }
 0x9d1   :  { %v7100_v51 = vmul.f32 0.03125, %v7035_v26  ;;  %v7032_v61 = vpop.xlane.xlu0 %7031  ;;  %7218 = vadd.xlane.f32.xlu0 %v7217_v59 }
 0x9d2   :  { %v7099_v19 = vmul.f32 0.03125, %v7032_v61 }
 0x9d3   :  { %v14740_v57 = vsub.f32 %v14516_v46, %v7100_v51 }
 0x9d4   :  { %v14743_v17 = vsub.f32 %v14521_v2, %v7099_v19 }
 0x9d5   :  { %v7164_v30 = vmul.f32 %v14740_v57, %v14740_v57 }
 0x9d6   :  { %v7163_v41 = vmul.f32 %v14743_v17, %v14743_v17 }
 0x9d7   :  { %v7226_v63 = vsel %vm85_vm0, %v7164_v30, 0.0 }
 0x9d8   :  { %v7041_v31 = vpop.xlane.xlu1 %7040  ;;  %7227 = vadd.xlane.f32.xlu1 %v7226_v63  ;;  %v7223_v44 = vsel %vm85_vm0, %v7163_v41, 0.0 }
 0x9d9   :  { %v7102_v13 = vmul.f32 0.03125, %v7041_v31  ;;  %v7038_v50 = vpop.xlane.xlu0 %7037  ;;  %7224 = vadd.xlane.f32.xlu0 %v7223_v44 }
 0x9da   :  { %v7101_v46 = vmul.f32 0.03125, %v7038_v50 }
 0x9db   :  { %v14752_v54 = vsub.f32 %v14532_v36, %v7102_v13 }
 0x9dc   :  { %v14755_v2 = vsub.f32 %v14537_v42, %v7101_v46 }
 0x9dd   :  { %v7166_v62 = vmul.f32 %v14752_v54, %v14752_v54 }
 0x9de   :  { %v7165_v14 = vmul.f32 %v14755_v2, %v14755_v2 }
 0x9df   :  { %v7232_v3 = vsel %vm85_vm0, %v7166_v62, 0.0 }
 0x9e0   :  { %v7047_v45 = vpop.xlane.xlu1 %7046  ;;  %7233 = vadd.xlane.f32.xlu1 %v7232_v3  ;;  %v7229_v22 = vsel %vm85_vm0, %v7165_v14, 0.0 }
 0x9e1   :  { %v7104_v16 = vmul.f32 0.03125, %v7047_v45  ;;  %v7044_v34 = vpop.xlane.xlu0 %7043  ;;  %7230 = vadd.xlane.f32.xlu0 %v7229_v22 }
 0x9e2   :  { %v7103_v36 = vmul.f32 0.03125, %v7044_v34 }
 0x9e3   :  { %v14764_v58 = vsub.f32 %v14548_v47, %v7104_v16 }
 0x9e4   :  { %v14767_v42 = vsub.f32 %v14553_v9, %v7103_v36 }
 0x9e5   :  { %v7168_v24 = vmul.f32 %v14764_v58, %v14764_v58 }
 0x9e6   :  { %v7167_v40 = vmul.f32 %v14767_v42, %v14767_v42 }
 0x9e7   :  { %v7238_v18 = vsel %vm85_vm0, %v7168_v24, 0.0 }
 0x9e8   :  { %v7053_v60 = vpop.xlane.xlu1 %7052  ;;  %7239 = vadd.xlane.f32.xlu1 %v7238_v18  ;;  %v7235_v11 = vsel %vm85_vm0, %v7167_v40, 0.0 }
 0x9e9   :  { %v7106_v49 = vmul.f32 0.03125, %v7053_v60  ;;  %v7050_v5 = vpop.xlane.xlu0 %7049  ;;  %7236 = vadd.xlane.f32.xlu0 %v7235_v11 }
 0x9ea   :  { %v7105_v47 = vmul.f32 0.03125, %v7050_v5 }
 0x9eb   :  { %v14776_v56 = vsub.f32 %v14564_v0, %v7106_v49 }
 0x9ec   :  { %v14779_v9 = vsub.f32 %v14569_v37, %v7105_v47 }
 0x9ed   :  { %v7170_v55 = vmul.f32 %v14776_v56, %v14776_v56 }
 0x9ee   :  { %v7169_v26 = vmul.f32 %v14779_v9, %v14779_v9 }
 0x9ef   :  { %v7244_v59 = vsel %vm85_vm0, %v7170_v55, 0.0 }
 0x9f0   :  { %v7059_v51 = vpop.xlane.xlu1 %7058  ;;  %7245 = vadd.xlane.f32.xlu1 %v7244_v59  ;;  %v7241_v61 = vsel %vm85_vm0, %v7169_v26, 0.0 }
 0x9f1   :  { %v7108_v19 = vmul.f32 0.03125, %v7059_v51  ;;  %v7056_v30 = vpop.xlane.xlu0 %7055  ;;  %7242 = vadd.xlane.f32.xlu0 %v7241_v61 }
 0x9f2   :  { %v7107_v0 = vmul.f32 0.03125, %v7056_v30 }
 0x9f3   :  { %v14788_v41 = vsub.f32 %v14580_v15, %v7108_v19 }
 0x9f4   :  { %v14791_v37 = vsub.f32 %v14585_v1, %v7107_v0 }
 0x9f5   :  { %v7172_v63 = vmul.f32 %v14788_v41, %v14788_v41 }
 0x9f6   :  { %v7171_v31 = vmul.f32 %v14791_v37, %v14791_v37 }
 0x9f7   :  { %v7250_v44 = vsel %vm85_vm0, %v7172_v63, 0.0 }
 0x9f8   :  { %v7065_v13 = vpop.xlane.xlu1 %7064  ;;  %7251 = vadd.xlane.f32.xlu1 %v7250_v44  ;;  %v7247_v50 = vsel %vm85_vm0, %v7171_v31, 0.0 }
 0x9f9   :  { %v7110_v46 = vmul.f32 0.03125, %v7065_v13  ;;  %v7062_v62 = vpop.xlane.xlu0 %7061  ;;  %7248 = vadd.xlane.f32.xlu0 %v7247_v50 }
 0x9fa   :  { %v7109_v15 = vmul.f32 0.03125, %v7062_v62 }
 0x9fb   :  { %v14800_v14 = vsub.f32 %v14596_v38, %v7110_v46 }
 0x9fc   :  { %v14803_v1 = vsub.f32 %v14601_v53, %v7109_v15 }
 0x9fd   :  { %v7174_v3 = vmul.f32 %v14800_v14, %v14800_v14 }
 0x9fe   :  { %v7173_v45 = vmul.f32 %v14803_v1, %v14803_v1 }
 0x9ff   :  { %v7256_v22 = vsel %vm85_vm0, %v7174_v3, 0.0 }
 0xa00   :  { %v7071_v16 = vpop.xlane.xlu1 %7070  ;;  %7257 = vadd.xlane.f32.xlu1 %v7256_v22  ;;  %v7253_v34 = vsel %vm85_vm0, %v7173_v45, 0.0 }
 0xa01   :  { %v7112_v36 = vmul.f32 0.03125, %v7071_v16  ;;  %v7068_v24 = vpop.xlane.xlu0 %7067  ;;  %7254 = vadd.xlane.f32.xlu0 %v7253_v34 }
 0xa02   :  { %v7111_v38 = vmul.f32 0.03125, %v7068_v24 }
 0xa03   :  { %v14812_v40 = vsub.f32 %v14612_v33, %v7112_v36 }
 0xa04   :  { %v14815_v53 = vsub.f32 %v14617_v12, %v7111_v38 }
 0xa05   :  { %v7176_v18 = vmul.f32 %v14812_v40, %v14812_v40 }
 0xa06   :  { %v7175_v60 = vmul.f32 %v14815_v53, %v14815_v53 }
 0xa07   :  { %v7262_v11 = vsel %vm85_vm0, %v7176_v18, 0.0 }
 0xa08   :  { %v7077_v49 = vpop.xlane.xlu1 %7076  ;;  %7263 = vadd.xlane.f32.xlu1 %v7262_v11  ;;  %v7259_v5 = vsel %vm85_vm0, %v7175_v60, 0.0  ;;  %v14850_v60 = vld [vmem:[%s15428_s5] ss:$0 sm:$0xff] }
 0xa09   :  { %v7114_v47 = vmul.f32 0.03125, %v7077_v49  ;;  %v7074_v55 = vpop.xlane.xlu0 %7073  ;;  %7260 = vadd.xlane.f32.xlu0 %v7259_v5 }
 0xa0a   :  { %v7113_v33 = vmul.f32 0.03125, %v7074_v55  ;;  %v14856_v55 = vld [vmem:[%s15429_s6] ss:$0 sm:$0xff] }
 0xa0b   :  { %v14824_v26 = vsub.f32 %v14628_v7, %v7114_v47 }
 0xa0c   :  { %v14827_v12 = vsub.f32 %v14633_v39, %v7113_v33 }
 0xa0d   :  { %v7178_v59 = vmul.f32 %v14824_v26, %v14824_v26 }
 0xa0e   :  { %v7177_v51 = vmul.f32 %v14827_v12, %v14827_v12 }
 0xa0f   :  { %v7268_v61 = vsel %vm85_vm0, %v7178_v59, 0.0 }
 0xa10   :  { %7269 = vadd.xlane.f32.xlu1 %v7268_v61  ;;  %v7083_v19 = vpop.xlane.xlu1 %7082  ;;  %v7265_v30 = vsel %vm85_vm0, %v7177_v51, 0.0 }
 0xa11   :  { %v7116_v0 = vmul.f32 0.03125, %v7083_v19  ;;  %7266 = vadd.xlane.f32.xlu0 %v7265_v30  ;;  %v7080_v63 = vpop.xlane.xlu0 %7079 }
 0xa12   :  { %v7115_v7 = vmul.f32 0.03125, %v7080_v63 }
 0xa13   :  { %v14836_v31 = vsub.f32 %v14644_v21, %v7116_v0 }
 0xa14   :  { %v14839_v39 = vsub.f32 %v14649_v27, %v7115_v7 }
 0xa15   :  { %v7180_v44 = vmul.f32 %v14836_v31, %v14836_v31 }
 0xa16   :  { %v7179_v13 = vmul.f32 %v14839_v39, %v14839_v39 }
 0xa17   :  { %v7274_v50 = vsel %vm85_vm0, %v7180_v44, 0.0 }
 0xa18   :  { %7275 = vadd.xlane.f32.xlu1 %v7274_v50  ;;  %v7271_v46 = vsel %vm85_vm0, %v7179_v13, 0.0 }
 0xa19   :  { %7272 = vadd.xlane.f32.xlu0 %v7271_v46 }
 0xa2d   :  { %v7186_v62 = vpop.xlane.xlu1 %7185 }
 0xa2e   :  { %v7278_v15 = vmul.f32 0.03125, %v7186_v62 }
 0xa30   :  { %v7310_v3 = vadd.f32 1e-05, %v7278_v15 }
 0xa31   :  { %v7183_v21 = vpop.xlane.xlu0 %7182 }
 0xa32   :  { %9926 = vrsqrt.f32 %v7310_v3  ;;  %v7277_v45 = vmul.f32 0.03125, %v7183_v21 }
 0xa34   :  { %v7309_v27 = vadd.f32 1e-05, %v7277_v45 }
 0xa35   :  { %v7192_v22 = vpop.xlane.xlu1 %7191 }
 0xa36   :  { %9928 = vrsqrt.f32 %v7309_v27  ;;  %v7280_v16 = vmul.f32 0.03125, %v7192_v22 }
 0xa38   :  { %v7312_v34 = vadd.f32 1e-05, %v7280_v16 }
 0xa39   :  { %v7189_v36 = vpop.xlane.xlu0 %7188 }
 0xa3a   :  { %9930 = vrsqrt.f32 %v7312_v34  ;;  %v7279_v24 = vmul.f32 0.03125, %v7189_v36 }
 0xa3c   :  { %v9927_v38 = vpop.eup %9926  ;;  %v7311_v18 = vadd.f32 1e-05, %v7279_v24 }
 0xa3d   :  { %v7198_v11 = vpop.xlane.xlu1 %7197  ;;  %v7374_v49 = vmul.f32 %v9927_v38, %v14656_v35 }
 0xa3e   :  { %9932 = vrsqrt.f32 %v7311_v18  ;;  %v7282_v5 = vmul.f32 0.03125, %v7198_v11  ;;  %v7195_v47 = vpop.xlane.xlu0 %7194 }
 0xa3f   :  { %v7281_v33 = vmul.f32 0.03125, %v7195_v47  ;;  %v7412_v59 = vmul.f32 %v14850_v60, %v7374_v49 }
 0xa40   :  { %v9929_v51 = vpop.eup %9928  ;;  %v7314_v61 = vadd.f32 1e-05, %v7282_v5 }
 0xa41   :  { %v7313_v19 = vadd.f32 1e-05, %v7281_v33  ;;  %v14860_v30 = vadd.f32 %v14856_v55, %v7412_v59  ;;  %v7373_v0 = vmul.f32 %v9929_v51, %v14661_v20 }
 0xa42   :  { %9934 = vrsqrt.f32 %v7314_v61 }
 0xa43   :  { %9936 = vrsqrt.f32 %v7313_v19  ;;  %v7486_v35 = vsel %vm85_vm0, %v14860_v30, 0.0  ;;  %v7411_v63 = vmul.f32 %v14850_v60, %v7373_v0 }
 0xa44   :  { %v9931_v7 = vpop.eup %9930  ;;  %7487 = vadd.xlane.f32.xlu1 %v7486_v35 }
 0xa45   :  { %v7204_v44 = vpop.xlane.xlu1 %7203  ;;  %v14867_v13 = vadd.f32 %v14856_v55, %v7411_v63  ;;  %v7376_v50 = vmul.f32 %v9931_v7, %v14667_v29 }
 0xa46   :  { %v7284_v46 = vmul.f32 0.03125, %v7204_v44  ;;  %v7201_v62 = vpop.xlane.xlu0 %7200 }
 0xa47   :  { %v7283_v15 = vmul.f32 0.03125, %v7201_v62  ;;  %v7483_v20 = vsel %vm85_vm0, %v14867_v13, 0.0  ;;  %v7414_v3 = vmul.f32 %v14850_v60, %v7376_v50 }
 0xa48   :  { %v9933_v21 = vpop.eup %9932  ;;  %v7316_v45 = vadd.f32 1e-05, %v7284_v46  ;;  %7484 = vadd.xlane.f32.xlu0 %v7483_v20 }
 0xa49   :  { %v7315_v27 = vadd.f32 1e-05, %v7283_v15  ;;  %v14874_v22 = vadd.f32 %v14856_v55, %v7414_v3  ;;  %v7375_v16 = vmul.f32 %v9933_v21, %v14673_v4 }
 0xa4a   :  { %9938 = vrsqrt.f32 %v7316_v45 }
 0xa4b   :  { %9940 = vrsqrt.f32 %v7315_v27  ;;  %v7492_v29 = vsel %vm85_vm0, %v14874_v22, 0.0  ;;  %v7413_v34 = vmul.f32 %v14850_v60, %v7375_v16 }
 0xa4c   :  { %v9935_v36 = vpop.eup %9934  ;;  %7493 = vadd.xlane.f32.xlu1 %v7492_v29 }
 0xa4d   :  { %v9937_v24 = vpop.eup %9936  ;;  %v7210_v38 = vpop.xlane.xlu1 %7209  ;;  %v14881_v18 = vadd.f32 %v14856_v55, %v7413_v34  ;;  %v7378_v11 = vmul.f32 %v9935_v36, %v14679_v10 }
 0xa4e   :  { %v7286_v49 = vmul.f32 0.03125, %v7210_v38  ;;  %v7207_v5 = vpop.xlane.xlu0 %7206  ;;  %v7377_v4 = vmul.f32 %v9937_v24, %v14683_v23 }
 0xa4f   :  { %v7285_v47 = vmul.f32 0.03125, %v7207_v5  ;;  %v7489_v33 = vsel %vm85_vm0, %v14881_v18, 0.0  ;;  %v7416_v59 = vmul.f32 %v14850_v60, %v7378_v11 }
 0xa50   :  { %v7318_v51 = vadd.f32 1e-05, %v7286_v49  ;;  %7490 = vadd.xlane.f32.xlu0 %v7489_v33  ;;  %v7415_v61 = vmul.f32 %v14850_v60, %v7377_v4 }
 0xa51   :  { %v7317_v19 = vadd.f32 1e-05, %v7285_v47  ;;  %v14890_v0 = vadd.f32 %v14856_v55, %v7416_v59 }
 0xa52   :  { %9942 = vrsqrt.f32 %v7318_v51  ;;  %v14893_v10 = vadd.f32 %v14856_v55, %v7415_v61 }
 0xa53   :  { %9944 = vrsqrt.f32 %v7317_v19  ;;  %v7498_v23 = vsel %vm85_vm0, %v14890_v0, 0.0 }
 0xa54   :  { %v9939_v35 = vpop.eup %9938  ;;  %7499 = vadd.xlane.f32.xlu1 %v7498_v23  ;;  %v7495_v63 = vsel %vm85_vm0, %v14893_v10, 0.0 }
 0xa55   :  { %v9941_v7 = vpop.eup %9940  ;;  %v7216_v44 = vpop.xlane.xlu1 %7215  ;;  %7496 = vadd.xlane.f32.xlu0 %v7495_v63  ;;  %v7380_v50 = vmul.f32 %v9939_v35, %v14692_v25 }
 0xa56   :  { %v7288_v46 = vmul.f32 0.03125, %v7216_v44  ;;  %v7213_v62 = vpop.xlane.xlu0 %7212  ;;  %v7379_v15 = vmul.f32 %v9941_v7, %v14695_v6 }
 0xa57   :  { %v7287_v20 = vmul.f32 0.03125, %v7213_v62  ;;  %v7418_v3 = vmul.f32 %v14850_v60, %v7380_v50 }
 0xa58   :  { %v7320_v21 = vadd.f32 1e-05, %v7288_v46  ;;  %v7417_v45 = vmul.f32 %v14850_v60, %v7379_v15 }
 0xa59   :  { %v7319_v27 = vadd.f32 1e-05, %v7287_v20  ;;  %v14904_v16 = vadd.f32 %v14856_v55, %v7418_v3 }
 0xa5a   :  { %9946 = vrsqrt.f32 %v7320_v21  ;;  %v14907_v29 = vadd.f32 %v14856_v55, %v7417_v45 }
 0xa5b   :  { %9948 = vrsqrt.f32 %v7319_v27  ;;  %v7504_v25 = vsel %vm85_vm0, %v14904_v16, 0.0 }
 0xa5c   :  { %v9943_v34 = vpop.eup %9942  ;;  %7505 = vadd.xlane.f32.xlu1 %v7504_v25  ;;  %v7501_v6 = vsel %vm85_vm0, %v14907_v29, 0.0 }
 0xa5d   :  { %v9945_v36 = vpop.eup %9944  ;;  %v7222_v24 = vpop.xlane.xlu1 %7221  ;;  %7502 = vadd.xlane.f32.xlu0 %v7501_v6  ;;  %v7382_v38 = vmul.f32 %v9943_v34, %v14704_v48 }
 0xa5e   :  { %v7290_v11 = vmul.f32 0.03125, %v7222_v24  ;;  %v7219_v49 = vpop.xlane.xlu0 %7218  ;;  %v7381_v5 = vmul.f32 %v9945_v36, %v14707_v8 }
 0xa5f   :  { %v7289_v4 = vmul.f32 0.03125, %v7219_v49  ;;  %v7420_v47 = vmul.f32 %v14850_v60, %v7382_v38 }
 0xa60   :  { %v7322_v33 = vadd.f32 1e-05, %v7290_v11  ;;  %v7419_v59 = vmul.f32 %v14850_v60, %v7381_v5 }
 0xa61   :  { %v7321_v51 = vadd.f32 1e-05, %v7289_v4  ;;  %v14918_v61 = vadd.f32 %v14856_v55, %v7420_v47 }
 0xa62   :  { %9950 = vrsqrt.f32 %v7322_v33  ;;  %v14921_v19 = vadd.f32 %v14856_v55, %v7419_v59 }
 0xa63   :  { %9952 = vrsqrt.f32 %v7321_v51  ;;  %v7510_v48 = vsel %vm85_vm0, %v14918_v61, 0.0 }
 0xa64   :  { %v9947_v23 = vpop.eup %9946  ;;  %7511 = vadd.xlane.f32.xlu1 %v7510_v48  ;;  %v7507_v8 = vsel %vm85_vm0, %v14921_v19, 0.0 }
 0xa65   :  { %v9949_v35 = vpop.eup %9948  ;;  %v7228_v63 = vpop.xlane.xlu1 %7227  ;;  %7508 = vadd.xlane.f32.xlu0 %v7507_v8  ;;  %v7384_v7 = vmul.f32 %v9947_v23, %v14716_v32 }
 0xa66   :  { %v7292_v44 = vmul.f32 0.03125, %v7228_v63  ;;  %v7225_v50 = vpop.xlane.xlu0 %7224  ;;  %v7383_v46 = vmul.f32 %v9949_v35, %v14719_v28 }
 0xa67   :  { %v7291_v62 = vmul.f32 0.03125, %v7225_v50  ;;  %v7422_v15 = vmul.f32 %v14850_v60, %v7384_v7 }
 0xa68   :  { %v7324_v20 = vadd.f32 1e-05, %v7292_v44  ;;  %v7421_v3 = vmul.f32 %v14850_v60, %v7383_v46 }
 0xa69   :  { %v7323_v21 = vadd.f32 1e-05, %v7291_v62  ;;  %v14932_v45 = vadd.f32 %v14856_v55, %v7422_v15 }
 0xa6a   :  { %9954 = vrsqrt.f32 %v7324_v20  ;;  %v14935_v27 = vadd.f32 %v14856_v55, %v7421_v3 }
 0xa6b   :  { %9956 = vrsqrt.f32 %v7323_v21  ;;  %v7516_v32 = vsel %vm85_vm0, %v14932_v45, 0.0 }
 0xa6c   :  { %v9951_v25 = vpop.eup %9950  ;;  %7517 = vadd.xlane.f32.xlu1 %v7516_v32  ;;  %v7513_v28 = vsel %vm85_vm0, %v14935_v27, 0.0 }
 0xa6d   :  { %v9953_v34 = vpop.eup %9952  ;;  %v7234_v6 = vpop.xlane.xlu1 %7233  ;;  %7514 = vadd.xlane.f32.xlu0 %v7513_v28  ;;  %v7386_v36 = vmul.f32 %v9951_v25, %v14728_v52 }
 0xa6e   :  { %v7294_v24 = vmul.f32 0.03125, %v7234_v6  ;;  %v7231_v38 = vpop.xlane.xlu0 %7230  ;;  %v7385_v11 = vmul.f32 %v9953_v34, %v14731_v43 }
 0xa6f   :  { %v7293_v49 = vmul.f32 0.03125, %v7231_v38  ;;  %v7424_v5 = vmul.f32 %v14850_v60, %v7386_v36 }
 0xa70   :  { %v7326_v4 = vadd.f32 1e-05, %v7294_v24  ;;  %v7423_v47 = vmul.f32 %v14850_v60, %v7385_v11 }
 0xa71   :  { %v7325_v33 = vadd.f32 1e-05, %v7293_v49  ;;  %v14946_v59 = vadd.f32 %v14856_v55, %v7424_v5 }
 0xa72   :  { %9958 = vrsqrt.f32 %v7326_v4  ;;  %v14949_v51 = vadd.f32 %v14856_v55, %v7423_v47 }
 0xa73   :  { %9960 = vrsqrt.f32 %v7325_v33  ;;  %v7522_v52 = vsel %vm85_vm0, %v14946_v59, 0.0 }
 0xa74   :  { %v9955_v48 = vpop.eup %9954  ;;  %7523 = vadd.xlane.f32.xlu1 %v7522_v52  ;;  %v7519_v43 = vsel %vm85_vm0, %v14949_v51, 0.0 }
 0xa75   :  { %v9957_v23 = vpop.eup %9956  ;;  %v7240_v8 = vpop.xlane.xlu1 %7239  ;;  %7520 = vadd.xlane.f32.xlu0 %v7519_v43  ;;  %v7388_v35 = vmul.f32 %v9955_v48, %v14740_v57 }
 0xa76   :  { %v7296_v63 = vmul.f32 0.03125, %v7240_v8  ;;  %v7237_v7 = vpop.xlane.xlu0 %7236  ;;  %v7387_v44 = vmul.f32 %v9957_v23, %v14743_v17 }
 0xa77   :  { %v7295_v50 = vmul.f32 0.03125, %v7237_v7  ;;  %v7426_v46 = vmul.f32 %v14850_v60, %v7388_v35 }
 0xa78   :  { %v7328_v62 = vadd.f32 1e-05, %v7296_v63  ;;  %v7425_v15 = vmul.f32 %v14850_v60, %v7387_v44 }
 0xa79   :  { %v7327_v20 = vadd.f32 1e-05, %v7295_v50  ;;  %v14960_v3 = vadd.f32 %v14856_v55, %v7426_v46 }
 0xa7a   :  { %9962 = vrsqrt.f32 %v7328_v62  ;;  %v14963_v21 = vadd.f32 %v14856_v55, %v7425_v15 }
 0xa7b   :  { %9964 = vrsqrt.f32 %v7327_v20  ;;  %v7528_v57 = vsel %vm85_vm0, %v14960_v3, 0.0 }
 0xa7c   :  { %v9959_v32 = vpop.eup %9958  ;;  %7529 = vadd.xlane.f32.xlu1 %v7528_v57  ;;  %v7525_v17 = vsel %vm85_vm0, %v14963_v21, 0.0 }
 0xa7d   :  { %v9961_v25 = vpop.eup %9960  ;;  %v7246_v28 = vpop.xlane.xlu1 %7245  ;;  %7526 = vadd.xlane.f32.xlu0 %v7525_v17  ;;  %v7390_v34 = vmul.f32 %v9959_v32, %v14752_v54 }
 0xa7e   :  { %v7298_v6 = vmul.f32 0.03125, %v7246_v28  ;;  %v7243_v36 = vpop.xlane.xlu0 %7242  ;;  %v7389_v24 = vmul.f32 %v9961_v25, %v14755_v2 }
 0xa7f   :  { %v7297_v38 = vmul.f32 0.03125, %v7243_v36  ;;  %v7428_v11 = vmul.f32 %v14850_v60, %v7390_v34 }
 0xa80   :  { %v7330_v49 = vadd.f32 1e-05, %v7298_v6  ;;  %v7427_v5 = vmul.f32 %v14850_v60, %v7389_v24 }
 0xa81   :  { %v7329_v4 = vadd.f32 1e-05, %v7297_v38  ;;  %v14974_v47 = vadd.f32 %v14856_v55, %v7428_v11 }
 0xa82   :  { %9966 = vrsqrt.f32 %v7330_v49  ;;  %v14977_v33 = vadd.f32 %v14856_v55, %v7427_v5 }
 0xa83   :  { %9968 = vrsqrt.f32 %v7329_v4  ;;  %v7534_v54 = vsel %vm85_vm0, %v14974_v47, 0.0 }
 0xa84   :  { %v9963_v52 = vpop.eup %9962  ;;  %7535 = vadd.xlane.f32.xlu1 %v7534_v54  ;;  %v7531_v2 = vsel %vm85_vm0, %v14977_v33, 0.0 }
 0xa85   :  { %v9965_v48 = vpop.eup %9964  ;;  %v7252_v43 = vpop.xlane.xlu1 %7251  ;;  %7532 = vadd.xlane.f32.xlu0 %v7531_v2  ;;  %v7392_v23 = vmul.f32 %v9963_v52, %v14764_v58 }
 0xa86   :  { %v7300_v8 = vmul.f32 0.03125, %v7252_v43  ;;  %v7249_v35 = vpop.xlane.xlu0 %7248  ;;  %v7391_v63 = vmul.f32 %v9965_v48, %v14767_v42 }
 0xa87   :  { %v7299_v7 = vmul.f32 0.03125, %v7249_v35  ;;  %v7430_v44 = vmul.f32 %v14850_v60, %v7392_v23 }
 0xa88   :  { %v7332_v50 = vadd.f32 1e-05, %v7300_v8  ;;  %v7429_v46 = vmul.f32 %v14850_v60, %v7391_v63 }
 0xa89   :  { %v7331_v62 = vadd.f32 1e-05, %v7299_v7  ;;  %v14988_v15 = vadd.f32 %v14856_v55, %v7430_v44 }
 0xa8a   :  { %9970 = vrsqrt.f32 %v7332_v50  ;;  %v14991_v20 = vadd.f32 %v14856_v55, %v7429_v46 }
 0xa8b   :  { %9972 = vrsqrt.f32 %v7331_v62  ;;  %v7540_v58 = vsel %vm85_vm0, %v14988_v15, 0.0 }
 0xa8c   :  { %v9967_v57 = vpop.eup %9966  ;;  %7541 = vadd.xlane.f32.xlu1 %v7540_v58  ;;  %v7537_v42 = vsel %vm85_vm0, %v14991_v20, 0.0 }
 0xa8d   :  { %v9969_v32 = vpop.eup %9968  ;;  %v7258_v17 = vpop.xlane.xlu1 %7257  ;;  %7538 = vadd.xlane.f32.xlu0 %v7537_v42  ;;  %v7394_v25 = vmul.f32 %v9967_v57, %v14776_v56 }
 0xa8e   :  { %v7302_v28 = vmul.f32 0.03125, %v7258_v17  ;;  %v7255_v34 = vpop.xlane.xlu0 %7254  ;;  %v7393_v6 = vmul.f32 %v9969_v32, %v14779_v9 }
 0xa8f   :  { %v7301_v36 = vmul.f32 0.03125, %v7255_v34  ;;  %v7432_v24 = vmul.f32 %v14850_v60, %v7394_v25 }
 0xa90   :  { %v7334_v38 = vadd.f32 1e-05, %v7302_v28  ;;  %v7431_v11 = vmul.f32 %v14850_v60, %v7393_v6 }
 0xa91   :  { %v7333_v49 = vadd.f32 1e-05, %v7301_v36  ;;  %v15002_v5 = vadd.f32 %v14856_v55, %v7432_v24 }
 0xa92   :  { %9974 = vrsqrt.f32 %v7334_v38  ;;  %v15005_v4 = vadd.f32 %v14856_v55, %v7431_v11 }
 0xa93   :  { %9976 = vrsqrt.f32 %v7333_v49  ;;  %v7546_v56 = vsel %vm85_vm0, %v15002_v5, 0.0 }
 0xa94   :  { %v9971_v54 = vpop.eup %9970  ;;  %7547 = vadd.xlane.f32.xlu1 %v7546_v56  ;;  %v7543_v9 = vsel %vm85_vm0, %v15005_v4, 0.0 }
 0xa95   :  { %v9973_v52 = vpop.eup %9972  ;;  %v7264_v2 = vpop.xlane.xlu1 %7263  ;;  %7544 = vadd.xlane.f32.xlu0 %v7543_v9  ;;  %v7396_v48 = vmul.f32 %v9971_v54, %v14788_v41 }
 0xa96   :  { %v7304_v43 = vmul.f32 0.03125, %v7264_v2  ;;  %v7261_v23 = vpop.xlane.xlu0 %7260  ;;  %v7395_v8 = vmul.f32 %v9973_v52, %v14791_v37 }
 0xa97   :  { %v7303_v35 = vmul.f32 0.03125, %v7261_v23  ;;  %v7434_v63 = vmul.f32 %v14850_v60, %v7396_v48 }
 0xa98   :  { %v7336_v7 = vadd.f32 1e-05, %v7304_v43  ;;  %v7433_v44 = vmul.f32 %v14850_v60, %v7395_v8 }
 0xa99   :  { %v7335_v50 = vadd.f32 1e-05, %v7303_v35  ;;  %v15016_v46 = vadd.f32 %v14856_v55, %v7434_v63 }
 0xa9a   :  { %9978 = vrsqrt.f32 %v7336_v7  ;;  %v15019_v62 = vadd.f32 %v14856_v55, %v7433_v44 }
 0xa9b   :  { %9980 = vrsqrt.f32 %v7335_v50  ;;  %v7552_v41 = vsel %vm85_vm0, %v15016_v46, 0.0 }
 0xa9c   :  { %v9975_v58 = vpop.eup %9974  ;;  %7553 = vadd.xlane.f32.xlu1 %v7552_v41  ;;  %v7549_v37 = vsel %vm85_vm0, %v15019_v62, 0.0 }
 0xa9d   :  { %v9977_v57 = vpop.eup %9976  ;;  %v7270_v42 = vpop.xlane.xlu1 %7269  ;;  %7550 = vadd.xlane.f32.xlu0 %v7549_v37  ;;  %v7398_v32 = vmul.f32 %v9975_v58, %v14800_v14 }
 0xa9e   :  { %v7306_v17 = vmul.f32 0.03125, %v7270_v42  ;;  %v7267_v25 = vpop.xlane.xlu0 %7266  ;;  %v7397_v28 = vmul.f32 %v9977_v57, %v14803_v1 }
 0xa9f   :  { %v7305_v34 = vmul.f32 0.03125, %v7267_v25  ;;  %v7436_v6 = vmul.f32 %v14850_v60, %v7398_v32 }
 0xaa0   :  { %v7338_v36 = vadd.f32 1e-05, %v7306_v17  ;;  %v7435_v24 = vmul.f32 %v14850_v60, %v7397_v28 }
 0xaa1   :  { %v7337_v38 = vadd.f32 1e-05, %v7305_v34  ;;  %v15030_v11 = vadd.f32 %v14856_v55, %v7436_v6 }
 0xaa2   :  { %9982 = vrsqrt.f32 %v7338_v36  ;;  %v15033_v49 = vadd.f32 %v14856_v55, %v7435_v24 }
 0xaa3   :  { %9984 = vrsqrt.f32 %v7337_v38  ;;  %v7558_v14 = vsel %vm85_vm0, %v15030_v11, 0.0 }
 0xaa4   :  { %v9979_v56 = vpop.eup %9978  ;;  %7559 = vadd.xlane.f32.xlu1 %v7558_v14  ;;  %v7555_v1 = vsel %vm85_vm0, %v15033_v49, 0.0 }
 0xaa5   :  { %v9981_v54 = vpop.eup %9980  ;;  %v7276_v9 = vpop.xlane.xlu1 %7275  ;;  %7556 = vadd.xlane.f32.xlu0 %v7555_v1  ;;  %v7400_v52 = vmul.f32 %v9979_v56, %v14812_v40 }
 0xaa6   :  { %v7308_v2 = vmul.f32 0.03125, %v7276_v9  ;;  %v7273_v48 = vpop.xlane.xlu0 %7272  ;;  %v7399_v43 = vmul.f32 %v9981_v54, %v14815_v53 }
 0xaa7   :  { %v7307_v23 = vmul.f32 0.03125, %v7273_v48  ;;  %v7438_v8 = vmul.f32 %v14850_v60, %v7400_v52 }
 0xaa8   :  { %v7340_v35 = vadd.f32 1e-05, %v7308_v2  ;;  %v7437_v63 = vmul.f32 %v14850_v60, %v7399_v43 }
 0xaa9   :  { %v7339_v7 = vadd.f32 1e-05, %v7307_v23  ;;  %v15044_v44 = vadd.f32 %v14856_v55, %v7438_v8 }
 0xaaa   :  { %9986 = vrsqrt.f32 %v7340_v35  ;;  %v15047_v50 = vadd.f32 %v14856_v55, %v7437_v63 }
 0xaab   :  { %9988 = vrsqrt.f32 %v7339_v7  ;;  %v7564_v40 = vsel %vm85_vm0, %v15044_v44, 0.0 }
 0xaac   :  { %v9983_v41 = vpop.eup %9982  ;;  %7565 = vadd.xlane.f32.xlu1 %v7564_v40  ;;  %v7561_v53 = vsel %vm85_vm0, %v15047_v50, 0.0 }
 0xaad   :  { %v9985_v58 = vpop.eup %9984  ;;  %7562 = vadd.xlane.f32.xlu0 %v7561_v53  ;;  %v7402_v37 = vmul.f32 %v9983_v41, %v14824_v26 }
 0xaae   :  { %v7401_v57 = vmul.f32 %v9985_v58, %v14827_v12 }
 0xaaf   :  { %v7440_v42 = vmul.f32 %v14850_v60, %v7402_v37 }
 0xab0   :  { %v7439_v32 = vmul.f32 %v14850_v60, %v7401_v57 }
 0xab1   :  { %v15058_v17 = vadd.f32 %v14856_v55, %v7440_v42 }
 0xab2   :  { %v15061_v25 = vadd.f32 %v14856_v55, %v7439_v32 }
 0xab3   :  { %v7570_v28 = vsel %vm85_vm0, %v15058_v17, 0.0 }
 0xab4   :  { %v9987_v34 = vpop.eup %9986  ;;  %7571 = vadd.xlane.f32.xlu1 %v7570_v28  ;;  %v7567_v26 = vsel %vm85_vm0, %v15061_v25, 0.0 }
 0xab5   :  { %v9989_v6 = vpop.eup %9988  ;;  %7568 = vadd.xlane.f32.xlu0 %v7567_v26  ;;  %v7404_v12 = vmul.f32 %v9987_v34, %v14836_v31 }
 0xab6   :  { %v7403_v36 = vmul.f32 %v9989_v6, %v14839_v39 }
 0xab7   :  { %v7442_v24 = vmul.f32 %v14850_v60, %v7404_v12 }
 0xab8   :  { %v7441_v38 = vmul.f32 %v14850_v60, %v7403_v36 }
 0xab9   :  { %v15072_v14 = vadd.f32 %v14856_v55, %v7442_v24 }
 0xaba   :  { %v15075_v56 = vadd.f32 %v14856_v55, %v7441_v38 }
 0xabb   :  { %v7576_v1 = vsel %vm85_vm0, %v15072_v14, 0.0 }
 0xabc   :  { %7577 = vadd.xlane.f32.xlu1 %v7576_v1  ;;  %v7573_v54 = vsel %vm85_vm0, %v15075_v56, 0.0 }
 0xabd   :  { %7574 = vadd.xlane.f32.xlu0 %v7573_v54 }
 0xad1   :  { %v7488_v31 = vpop.xlane.xlu1 %7487 }
 0xad2   :  { %v7580_v39 = vmul.f32 0.03125, %v7488_v31 }
 0xad4   :  { %v15082_v9 = vsub.f32 %v14860_v30, %v7580_v39 }
 0xad5   :  { %v7485_v60 = vpop.xlane.xlu0 %7484 }
 0xad6   :  { %v7579_v52 = vmul.f32 0.03125, %v7485_v60  ;;  %v7644_v2 = vmul.f32 %v15082_v9, %v15082_v9 }
 0xad8   :  { %v15087_v55 = vsub.f32 %v14867_v13, %v7579_v52  ;;  %v7678_v48 = vsel %vm85_vm0, %v7644_v2, 0.0 }
 0xad9   :  { %7679 = vadd.xlane.f32.xlu1 %v7678_v48  ;;  %v7494_v43 = vpop.xlane.xlu1 %7493 }
 0xada   :  { %v7582_v23 = vmul.f32 0.03125, %v7494_v43  ;;  %v7643_v8 = vmul.f32 %v15087_v55, %v15087_v55 }
 0xadc   :  { %v15093_v35 = vsub.f32 %v14874_v22, %v7582_v23  ;;  %v7675_v30 = vsel %vm85_vm0, %v7643_v8, 0.0 }
 0xadd   :  { %7676 = vadd.xlane.f32.xlu0 %v7675_v30  ;;  %v7491_v63 = vpop.xlane.xlu0 %7490 }
 0xade   :  { %v7581_v7 = vmul.f32 0.03125, %v7491_v63  ;;  %v7646_v13 = vmul.f32 %v15093_v35, %v15093_v35 }
 0xae0   :  { %v15099_v40 = vsub.f32 %v14881_v18, %v7581_v7  ;;  %v7684_v41 = vsel %vm85_vm0, %v7646_v13, 0.0 }
 0xae1   :  { %7685 = vadd.xlane.f32.xlu1 %v7684_v41  ;;  %v7500_v53 = vpop.xlane.xlu1 %7499 }
 0xae2   :  { %v7584_v58 = vmul.f32 0.03125, %v7500_v53  ;;  %v7497_v37 = vpop.xlane.xlu0 %7496  ;;  %v7645_v22 = vmul.f32 %v15099_v40, %v15099_v40 }
 0xae3   :  { %v7583_v57 = vmul.f32 0.03125, %v7497_v37 }
 0xae4   :  { %v15105_v42 = vsub.f32 %v14890_v0, %v7584_v58  ;;  %v7681_v32 = vsel %vm85_vm0, %v7645_v22, 0.0 }
 0xae5   :  { %v15109_v28 = vsub.f32 %v14893_v10, %v7583_v57  ;;  %7682 = vadd.xlane.f32.xlu0 %v7681_v32 }
 0xae6   :  { %v7648_v18 = vmul.f32 %v15105_v42, %v15105_v42 }
 0xae7   :  { %v7647_v34 = vmul.f32 %v15109_v28, %v15109_v28 }
 0xae8   :  { %v7690_v26 = vsel %vm85_vm0, %v7648_v18, 0.0 }
 0xae9   :  { %7691 = vadd.xlane.f32.xlu1 %v7690_v26  ;;  %v7506_v6 = vpop.xlane.xlu1 %7505  ;;  %v7687_v12 = vsel %vm85_vm0, %v7647_v34, 0.0 }
 0xaea   :  { %v7586_v0 = vmul.f32 0.03125, %v7506_v6  ;;  %7688 = vadd.xlane.f32.xlu0 %v7687_v12  ;;  %v7503_v36 = vpop.xlane.xlu0 %7502 }
 0xaeb   :  { %v7585_v24 = vmul.f32 0.03125, %v7503_v36 }
 0xaec   :  { %v15118_v10 = vsub.f32 %v14904_v16, %v7586_v0 }
 0xaed   :  { %v15121_v38 = vsub.f32 %v14907_v29, %v7585_v24 }
 0xaee   :  { %v7650_v1 = vmul.f32 %v15118_v10, %v15118_v10 }
 0xaef   :  { %v7649_v54 = vmul.f32 %v15121_v38, %v15121_v38 }
 0xaf0   :  { %v7696_v31 = vsel %vm85_vm0, %v7650_v1, 0.0 }
 0xaf1   :  { %7697 = vadd.xlane.f32.xlu1 %v7696_v31  ;;  %v7512_v39 = vpop.xlane.xlu1 %7511  ;;  %v7693_v60 = vsel %vm85_vm0, %v7649_v54, 0.0 }
 0xaf2   :  { %v7588_v52 = vmul.f32 0.03125, %v7512_v39  ;;  %7694 = vadd.xlane.f32.xlu0 %v7693_v60  ;;  %v7509_v2 = vpop.xlane.xlu0 %7508 }
 0xaf3   :  { %v7587_v16 = vmul.f32 0.03125, %v7509_v2 }
 0xaf4   :  { %v15130_v48 = vsub.f32 %v14918_v61, %v7588_v52 }
 0xaf5   :  { %v15133_v29 = vsub.f32 %v14921_v19, %v7587_v16 }
 0xaf6   :  { %v7652_v43 = vmul.f32 %v15130_v48, %v15130_v48 }
 0xaf7   :  { %v7651_v23 = vmul.f32 %v15133_v29, %v15133_v29 }
 0xaf8   :  { %v7702_v8 = vsel %vm85_vm0, %v7652_v43, 0.0 }
 0xaf9   :  { %7703 = vadd.xlane.f32.xlu1 %v7702_v8  ;;  %v7518_v30 = vpop.xlane.xlu1 %7517  ;;  %v7699_v63 = vsel %vm85_vm0, %v7651_v23, 0.0 }
 0xafa   :  { %v7590_v7 = vmul.f32 0.03125, %v7518_v30  ;;  %7700 = vadd.xlane.f32.xlu0 %v7699_v63  ;;  %v7515_v13 = vpop.xlane.xlu0 %7514 }
 0xafb   :  { %v7589_v61 = vmul.f32 0.03125, %v7515_v13 }
 0xafc   :  { %v15142_v41 = vsub.f32 %v14932_v45, %v7590_v7 }
 0xafd   :  { %v15145_v19 = vsub.f32 %v14935_v27, %v7589_v61 }
 0xafe   :  { %v7654_v53 = vmul.f32 %v15142_v41, %v15142_v41 }
 0xaff   :  { %v7653_v58 = vmul.f32 %v15145_v19, %v15145_v19 }
 0xb00   :  { %v7708_v37 = vsel %vm85_vm0, %v7654_v53, 0.0 }
 0xb01   :  { %7709 = vadd.xlane.f32.xlu1 %v7708_v37  ;;  %v7524_v22 = vpop.xlane.xlu1 %7523  ;;  %v7705_v57 = vsel %vm85_vm0, %v7653_v58, 0.0 }
 0xb02   :  { %v7592_v32 = vmul.f32 0.03125, %v7524_v22  ;;  %7706 = vadd.xlane.f32.xlu0 %v7705_v57  ;;  %v7521_v18 = vpop.xlane.xlu0 %7520 }
 0xb03   :  { %v7591_v45 = vmul.f32 0.03125, %v7521_v18 }
 0xb04   :  { %v15154_v34 = vsub.f32 %v14946_v59, %v7592_v32 }
 0xb05   :  { %v15157_v27 = vsub.f32 %v14949_v51, %v7591_v45 }
 0xb06   :  { %v7656_v26 = vmul.f32 %v15154_v34, %v15154_v34 }
 0xb07   :  { %v7655_v6 = vmul.f32 %v15157_v27, %v15157_v27 }
 0xb08   :  { %v7714_v12 = vsel %vm85_vm0, %v7656_v26, 0.0 }
 0xb09   :  { %7715 = vadd.xlane.f32.xlu1 %v7714_v12  ;;  %v7530_v0 = vpop.xlane.xlu1 %7529  ;;  %v7711_v36 = vsel %vm85_vm0, %v7655_v6, 0.0 }
 0xb0a   :  { %v7594_v24 = vmul.f32 0.03125, %v7530_v0  ;;  %7712 = vadd.xlane.f32.xlu0 %v7711_v36  ;;  %v7527_v1 = vpop.xlane.xlu0 %7526 }
 0xb0b   :  { %v7593_v59 = vmul.f32 0.03125, %v7527_v1 }
 0xb0c   :  { %v15166_v54 = vsub.f32 %v14960_v3, %v7594_v24 }
 0xb0d   :  { %v15169_v51 = vsub.f32 %v14963_v21, %v7593_v59 }
 0xb0e   :  { %v7658_v31 = vmul.f32 %v15166_v54, %v15166_v54 }
 0xb0f   :  { %v7657_v39 = vmul.f32 %v15169_v51, %v15169_v51 }
 0xb10   :  { %v7720_v60 = vsel %vm85_vm0, %v7658_v31, 0.0 }
 0xb11   :  { %7721 = vadd.xlane.f32.xlu1 %v7720_v60  ;;  %v7536_v52 = vpop.xlane.xlu1 %7535  ;;  %v7717_v2 = vsel %vm85_vm0, %v7657_v39, 0.0 }
 0xb12   :  { %v7596_v16 = vmul.f32 0.03125, %v7536_v52  ;;  %7718 = vadd.xlane.f32.xlu0 %v7717_v2  ;;  %v7533_v43 = vpop.xlane.xlu0 %7532 }
 0xb13   :  { %v7595_v3 = vmul.f32 0.03125, %v7533_v43 }
 0xb14   :  { %v15178_v23 = vsub.f32 %v14974_v47, %v7596_v16 }
 0xb15   :  { %v15181_v21 = vsub.f32 %v14977_v33, %v7595_v3 }
 0xb16   :  { %v7660_v8 = vmul.f32 %v15178_v23, %v15178_v23 }
 0xb17   :  { %v7659_v30 = vmul.f32 %v15181_v21, %v15181_v21 }
 0xb18   :  { %v7726_v63 = vsel %vm85_vm0, %v7660_v8, 0.0 }
 0xb19   :  { %7727 = vadd.xlane.f32.xlu1 %v7726_v63  ;;  %v7542_v7 = vpop.xlane.xlu1 %7541  ;;  %v7723_v13 = vsel %vm85_vm0, %v7659_v30, 0.0 }
 0xb1a   :  { %v7598_v61 = vmul.f32 0.03125, %v7542_v7  ;;  %7724 = vadd.xlane.f32.xlu0 %v7723_v13  ;;  %v7539_v53 = vpop.xlane.xlu0 %7538 }
 0xb1b   :  { %v7597_v47 = vmul.f32 0.03125, %v7539_v53 }
 0xb1c   :  { %v15190_v58 = vsub.f32 %v14988_v15, %v7598_v61 }
 0xb1d   :  { %v15193_v33 = vsub.f32 %v14991_v20, %v7597_v47 }
 0xb1e   :  { %v7662_v37 = vmul.f32 %v15190_v58, %v15190_v58 }
 0xb1f   :  { %v7661_v22 = vmul.f32 %v15193_v33, %v15193_v33 }
 0xb20   :  { %v7732_v57 = vsel %vm85_vm0, %v7662_v37, 0.0 }
 0xb21   :  { %7733 = vadd.xlane.f32.xlu1 %v7732_v57  ;;  %v7548_v32 = vpop.xlane.xlu1 %7547  ;;  %v7729_v18 = vsel %vm85_vm0, %v7661_v22, 0.0 }
 0xb22   :  { %v7600_v45 = vmul.f32 0.03125, %v7548_v32  ;;  %7730 = vadd.xlane.f32.xlu0 %v7729_v18  ;;  %v7545_v26 = vpop.xlane.xlu0 %7544 }
 0xb23   :  { %v7599_v15 = vmul.f32 0.03125, %v7545_v26 }
 0xb24   :  { %v15202_v6 = vsub.f32 %v15002_v5, %v7600_v45 }
 0xb25   :  { %v15205_v20 = vsub.f32 %v15005_v4, %v7599_v15 }
 0xb26   :  { %v7664_v12 = vmul.f32 %v15202_v6, %v15202_v6 }
 0xb27   :  { %v7663_v0 = vmul.f32 %v15205_v20, %v15205_v20 }
 0xb28   :  { %v7738_v36 = vsel %vm85_vm0, %v7664_v12, 0.0 }
 0xb29   :  { %7739 = vadd.xlane.f32.xlu1 %v7738_v36  ;;  %v7554_v24 = vpop.xlane.xlu1 %7553  ;;  %v7735_v1 = vsel %vm85_vm0, %v7663_v0, 0.0 }
 0xb2a   :  { %v7602_v59 = vmul.f32 0.03125, %v7554_v24  ;;  %7736 = vadd.xlane.f32.xlu0 %v7735_v1  ;;  %v7551_v31 = vpop.xlane.xlu0 %7550 }
 0xb2b   :  { %v7601_v5 = vmul.f32 0.03125, %v7551_v31 }
 0xb2c   :  { %v15214_v39 = vsub.f32 %v15016_v46, %v7602_v59 }
 0xb2d   :  { %v15217_v4 = vsub.f32 %v15019_v62, %v7601_v5 }
 0xb2e   :  { %v7666_v60 = vmul.f32 %v15214_v39, %v15214_v39 }
 0xb2f   :  { %v7665_v52 = vmul.f32 %v15217_v4, %v15217_v4 }
 0xb30   :  { %v7744_v2 = vsel %vm85_vm0, %v7666_v60, 0.0 }
 0xb31   :  { %7745 = vadd.xlane.f32.xlu1 %v7744_v2  ;;  %v7560_v16 = vpop.xlane.xlu1 %7559  ;;  %v7741_v43 = vsel %vm85_vm0, %v7665_v52, 0.0 }
 0xb32   :  { %v7604_v3 = vmul.f32 0.03125, %v7560_v16  ;;  %7742 = vadd.xlane.f32.xlu0 %v7741_v43  ;;  %v7557_v8 = vpop.xlane.xlu0 %7556 }
 0xb33   :  { %v7603_v46 = vmul.f32 0.03125, %v7557_v8 }
 0xb34   :  { %v15226_v30 = vsub.f32 %v15030_v11, %v7604_v3 }
 0xb35   :  { %v15229_v62 = vsub.f32 %v15033_v49, %v7603_v46 }
 0xb36   :  { %v7668_v63 = vmul.f32 %v15226_v30, %v15226_v30 }
 0xb37   :  { %v7667_v7 = vmul.f32 %v15229_v62, %v15229_v62 }
 0xb38   :  { %v7750_v13 = vsel %vm85_vm0, %v7668_v63, 0.0 }
 0xb39   :  { %7751 = vadd.xlane.f32.xlu1 %v7750_v13  ;;  %v7566_v61 = vpop.xlane.xlu1 %7565  ;;  %v7747_v53 = vsel %vm85_vm0, %v7667_v7, 0.0 }
 0xb3a   :  { %v7606_v47 = vmul.f32 0.03125, %v7566_v61  ;;  %7748 = vadd.xlane.f32.xlu0 %v7747_v53  ;;  %v7563_v37 = vpop.xlane.xlu0 %7562 }
 0xb3b   :  { %v7605_v11 = vmul.f32 0.03125, %v7563_v37 }
 0xb3c   :  { %v15238_v22 = vsub.f32 %v15044_v44, %v7606_v47 }
 0xb3d   :  { %v15241_v49 = vsub.f32 %v15047_v50, %v7605_v11 }
 0xb3e   :  { %v7670_v57 = vmul.f32 %v15238_v22, %v15238_v22 }
 0xb3f   :  { %v7669_v32 = vmul.f32 %v15241_v49, %v15241_v49 }
 0xb40   :  { %v7756_v18 = vsel %vm85_vm0, %v7670_v57, 0.0  ;;  %v15276_v57 = vld [vmem:[%s15430_s7] ss:$0 sm:$0xff]  ;;  %s10176_s7 = smov [#allocation2]  }
 0xb41   :  { %7757 = vadd.xlane.f32.xlu1 %v7756_v18  ;;  %v7572_v45 = vpop.xlane.xlu1 %7571  ;;  %v7753_v26 = vsel %vm85_vm0, %v7669_v32, 0.0 }
 0xb42   :  { %v7608_v15 = vmul.f32 0.03125, %v7572_v45  ;;  %7754 = vadd.xlane.f32.xlu0 %v7753_v26  ;;  %v7569_v12 = vpop.xlane.xlu0 %7568  ;;  %v15282_v26 = vld [vmem:[%s15431_s8] ss:$0 sm:$0xff]  ;;  %s8012_s8 = sshll.u32 %s10176_s7, 4  ;;  %s8013_s8 = int_to_ptr.vmem [resolvable:$true] %s8012_s8 }
 0xb43   :  { %v7607_v44 = vmul.f32 0.03125, %v7569_v12  ;;  %s10150_s29 = scalar_lea.vmem %s8013_s8, 4096  ;;  %p10155_p1 = scmp.lt.s32.totalorder %s8013_s8, %s8013_s8 }
 0xb44   :  { %v15250_v0 = vsub.f32 %v15058_v17, %v7608_v15  ;;  %p10151_p0 = scmp.ne.s32.totalorder %s8013_s8, %s10150_s29  ;;  %p10156_p2 = scmp.lt.s32.totalorder %s10150_s29, %s10150_s29 }
 0xb45   :  { %v15253_v50 = vsub.f32 %v15061_v25, %v7607_v44 }
 0xb46   :  { %v7672_v36 = vmul.f32 %v15250_v0, %v15250_v0  ;;  %p10157_p3 = por %p10156_p2, %p10155_p1 }
 0xb47   :  { %v7671_v24 = vmul.f32 %v15253_v50, %v15253_v50 }
 0xb48   :  { %v7762_v1 = vsel %vm85_vm0, %v7672_v36, 0.0  ;;  %p10158_p4 = pnand %p10157_p3, %p10151_p0 }
 0xb49   :  { %7763 = vadd.xlane.f32.xlu1 %v7762_v1  ;;  %v7578_v59 = vpop.xlane.xlu1 %7577  ;;  %v7759_v31 = vsel %vm85_vm0, %v7671_v24, 0.0 }
 0xb4a   :  { %v7610_v5 = vmul.f32 0.03125, %v7578_v59  ;;  %7760 = vadd.xlane.f32.xlu0 %v7759_v31  ;;  %v7575_v60 = vpop.xlane.xlu0 %7574 }
 0xb4b   :  { %v7609_v17 = vmul.f32 0.03125, %v7575_v60 }
 0xb4c   :  { %v15262_v52 = vsub.f32 %v15072_v14, %v7610_v5 }
 0xb4d   :  { %v15265_v25 = vsub.f32 %v15075_v56, %v7609_v17 }
 0xb4e   :  { %v7674_v2 = vmul.f32 %v15262_v52, %v15262_v52 }
 0xb4f   :  { %v7673_v16 = vmul.f32 %v15265_v25, %v15265_v25 }
 0xb50   :  { %v7768_v43 = vsel %vm85_vm0, %v7674_v2, 0.0 }
 0xb51   :  { %7769 = vadd.xlane.f32.xlu1 %v7768_v43  ;;  %v7765_v3 = vsel %vm85_vm0, %v7673_v16, 0.0 }
 0xb52   :  { %7766 = vadd.xlane.f32.xlu0 %v7765_v3 }
 0xb66   :  { %v7680_v8 = vpop.xlane.xlu1 %7679 }
 0xb67   :  { %v7772_v46 = vmul.f32 0.03125, %v7680_v8 }
 0xb69   :  { %v7804_v63 = vadd.f32 1e-05, %v7772_v46 }
 0xb6a   :  { %v7677_v14 = vpop.xlane.xlu0 %7676 }
 0xb6b   :  { %9990 = vrsqrt.f32 %v7804_v63  ;;  %v7771_v7 = vmul.f32 0.03125, %v7677_v14 }
 0xb6d   :  { %v7803_v56 = vadd.f32 1e-05, %v7771_v7 }
 0xb6e   :  { %v7686_v13 = vpop.xlane.xlu1 %7685 }
 0xb6f   :  { %9992 = vrsqrt.f32 %v7803_v56  ;;  %v7774_v61 = vmul.f32 0.03125, %v7686_v13 }
 0xb71   :  { %v7806_v53 = vadd.f32 1e-05, %v7774_v61 }
 0xb72   :  { %v7683_v47 = vpop.xlane.xlu0 %7682 }
 0xb73   :  { %9994 = vrsqrt.f32 %v7806_v53  ;;  %v7773_v37 = vmul.f32 0.03125, %v7683_v47 }
 0xb75   :  { %v9991_v11 = vpop.eup %9990  ;;  %v7805_v32 = vadd.f32 1e-05, %v7773_v37 }
 0xb76   :  { %v7868_v18 = vmul.f32 %v9991_v11, %v15082_v9  ;;  %v7692_v45 = vpop.xlane.xlu1 %7691 }
 0xb77   :  { %9996 = vrsqrt.f32 %v7805_v32  ;;  %v7776_v15 = vmul.f32 0.03125, %v7692_v45  ;;  %v7689_v12 = vpop.xlane.xlu0 %7688 }
 0xb78   :  { %v7906_v44 = vmul.f32 %v15276_v57, %v7868_v18  ;;  %v7775_v36 = vmul.f32 0.03125, %v7689_v12 }
 0xb79   :  { %v9993_v24 = vpop.eup %9992  ;;  %v7808_v1 = vadd.f32 1e-05, %v7776_v15 }
 0xb7a   :  { %v7944_v59 = vadd.f32 %v15282_v26, %v7906_v44  ;;  %v7867_v31 = vmul.f32 %v9993_v24, %v15087_v55  ;;  %v7807_v5 = vadd.f32 1e-05, %v7775_v36 }
 0xb7b   :  { %9998 = vrsqrt.f32 %v7808_v1 }
 0xb7c   :  { %7976 = vst.msk [vmem:[#allocation2 + $0x8] sm:$0xff] %vm85_vm0, %v7944_v59  ;;  %v7905_v9 = vmul.f32 %v15276_v57, %v7867_v31  ;;  %10000 = vrsqrt.f32 %v7807_v5 }
 0xb7d   :  { %v9995_v60 = vpop.eup %9994 }
 0xb7e   :  { %v7943_v17 = vadd.f32 %v15282_v26, %v7905_v9  ;;  %v7870_v2 = vmul.f32 %v9995_v60, %v15093_v35  ;;  %v7698_v16 = vpop.xlane.xlu1 %7697 }
 0xb7f   :  { %v7778_v43 = vmul.f32 0.03125, %v7698_v16  ;;  %v7695_v3 = vpop.xlane.xlu0 %7694 }
 0xb80   :  { %7975 = vst.msk [vmem:[#allocation2] sm:$0xff] %vm85_vm0, %v7943_v17  ;;  %v7908_v8 = vmul.f32 %v15276_v57, %v7870_v2  ;;  %v7777_v55 = vmul.f32 0.03125, %v7695_v3 }
 0xb81   :  { %v9997_v46 = vpop.eup %9996  ;;  %v7810_v63 = vadd.f32 1e-05, %v7778_v43 }
 0xb82   :  { %v7946_v14 = vadd.f32 %v15282_v26, %v7908_v8  ;;  %v7869_v7 = vmul.f32 %v9997_v46, %v15099_v40  ;;  %v7809_v56 = vadd.f32 1e-05, %v7777_v55 }
 0xb83   :  { %10002 = vrsqrt.f32 %v7810_v63 }
 0xb84   :  { %7978 = vst.msk [vmem:[#allocation2 + $0x18] sm:$0xff] %vm85_vm0, %v7946_v14  ;;  %v7907_v35 = vmul.f32 %v15276_v57, %v7869_v7  ;;  %10004 = vrsqrt.f32 %v7809_v56 }
 0xb85   :  { %v9999_v13 = vpop.eup %9998 }
 0xb86   :  { %v10001_v61 = vpop.eup %10000  ;;  %v7945_v53 = vadd.f32 %v15282_v26, %v7907_v35  ;;  %v7872_v47 = vmul.f32 %v9999_v13, %v15105_v42  ;;  %v7704_v37 = vpop.xlane.xlu1 %7703 }
 0xb87   :  { %v7871_v11 = vmul.f32 %v10001_v61, %v15109_v28  ;;  %v7780_v32 = vmul.f32 0.03125, %v7704_v37  ;;  %v7701_v18 = vpop.xlane.xlu0 %7700 }
 0xb88   :  { %7977 = vst.msk [vmem:[#allocation2 + $0x10] sm:$0xff] %vm85_vm0, %v7945_v53  ;;  %v7910_v40 = vmul.f32 %v15276_v57, %v7872_v47  ;;  %v7779_v45 = vmul.f32 0.03125, %v7701_v18 }
 0xb89   :  { %v7909_v15 = vmul.f32 %v15276_v57, %v7871_v11  ;;  %v7812_v12 = vadd.f32 1e-05, %v7780_v32 }
 0xb8a   :  { %v7948_v44 = vadd.f32 %v15282_v26, %v7910_v40  ;;  %v7811_v36 = vadd.f32 1e-05, %v7779_v45 }
 0xb8b   :  { %v7947_v24 = vadd.f32 %v15282_v26, %v7909_v15  ;;  %10006 = vrsqrt.f32 %v7812_v12 }
 0xb8c   :  { %7980 = vst.msk [vmem:[#allocation2 + $0x28] sm:$0xff] %vm85_vm0, %v7948_v44  ;;  %10008 = vrsqrt.f32 %v7811_v36 }
 0xb8d   :  { %v10003_v42 = vpop.eup %10002  ;;  %7979 = vst.msk [vmem:[#allocation2 + $0x20] sm:$0xff] %vm85_vm0, %v7947_v24 }
 0xb8e   :  { %v10005_v28 = vpop.eup %10004  ;;  %v7874_v1 = vmul.f32 %v10003_v42, %v15118_v10  ;;  %v7710_v59 = vpop.xlane.xlu1 %7709 }
 0xb8f   :  { %v7873_v31 = vmul.f32 %v10005_v28, %v15121_v38  ;;  %v7782_v5 = vmul.f32 0.03125, %v7710_v59  ;;  %v7707_v9 = vpop.xlane.xlu0 %7706 }
 0xb90   :  { %v7912_v60 = vmul.f32 %v15276_v57, %v7874_v1  ;;  %v7781_v17 = vmul.f32 0.03125, %v7707_v9 }
 0xb91   :  { %v7911_v2 = vmul.f32 %v15276_v57, %v7873_v31  ;;  %v7814_v16 = vadd.f32 1e-05, %v7782_v5 }
 0xb92   :  { %v7950_v43 = vadd.f32 %v15282_v26, %v7912_v60  ;;  %v7813_v3 = vadd.f32 1e-05, %v7781_v17 }
 0xb93   :  { %v7949_v8 = vadd.f32 %v15282_v26, %v7911_v2  ;;  %10010 = vrsqrt.f32 %v7814_v16 }
 0xb94   :  { %7982 = vst.msk [vmem:[#allocation2 + $0x38] sm:$0xff] %vm85_vm0, %v7950_v43  ;;  %10012 = vrsqrt.f32 %v7813_v3 }
 0xb95   :  { %v10007_v10 = vpop.eup %10006  ;;  %7981 = vst.msk [vmem:[#allocation2 + $0x30] sm:$0xff] %vm85_vm0, %v7949_v8 }
 0xb96   :  { %v10009_v38 = vpop.eup %10008  ;;  %v7876_v55 = vmul.f32 %v10007_v10, %v15130_v48  ;;  %v7716_v46 = vpop.xlane.xlu1 %7715 }
 0xb97   :  { %v7875_v63 = vmul.f32 %v10009_v38, %v15133_v29  ;;  %v7784_v14 = vmul.f32 0.03125, %v7716_v46  ;;  %v7713_v7 = vpop.xlane.xlu0 %7712 }
 0xb98   :  { %v7914_v56 = vmul.f32 %v15276_v57, %v7876_v55  ;;  %v7783_v35 = vmul.f32 0.03125, %v7713_v7 }
 0xb99   :  { %v7913_v13 = vmul.f32 %v15276_v57, %v7875_v63  ;;  %v7816_v61 = vadd.f32 1e-05, %v7784_v14 }
 0xb9a   :  { %v7952_v53 = vadd.f32 %v15282_v26, %v7914_v56  ;;  %v7815_v47 = vadd.f32 1e-05, %v7783_v35 }
 0xb9b   :  { %v7951_v37 = vadd.f32 %v15282_v26, %v7913_v13  ;;  %10014 = vrsqrt.f32 %v7816_v61 }
 0xb9c   :  { %7984 = vst.msk [vmem:[#allocation2 + $0x48] sm:$0xff] %vm85_vm0, %v7952_v53  ;;  %10016 = vrsqrt.f32 %v7815_v47 }
 0xb9d   :  { %v10011_v48 = vpop.eup %10010  ;;  %7983 = vst.msk [vmem:[#allocation2 + $0x40] sm:$0xff] %vm85_vm0, %v7951_v37 }
 0xb9e   :  { %v10013_v29 = vpop.eup %10012  ;;  %v7878_v11 = vmul.f32 %v10011_v48, %v15142_v41  ;;  %v7722_v32 = vpop.xlane.xlu1 %7721 }
 0xb9f   :  { %v7877_v18 = vmul.f32 %v10013_v29, %v15145_v19  ;;  %v7786_v40 = vmul.f32 0.03125, %v7722_v32  ;;  %v7719_v45 = vpop.xlane.xlu0 %7718 }
 0xba0   :  { %v7916_v15 = vmul.f32 %v15276_v57, %v7878_v11  ;;  %v7785_v12 = vmul.f32 0.03125, %v7719_v45 }
 0xba1   :  { %v7915_v44 = vmul.f32 %v15276_v57, %v7877_v18  ;;  %v7818_v36 = vadd.f32 1e-05, %v7786_v40 }
 0xba2   :  { %v7954_v24 = vadd.f32 %v15282_v26, %v7916_v15  ;;  %v7817_v42 = vadd.f32 1e-05, %v7785_v12 }
 0xba3   :  { %v7953_v28 = vadd.f32 %v15282_v26, %v7915_v44  ;;  %10018 = vrsqrt.f32 %v7818_v36 }
 0xba4   :  { %7986 = vst.msk [vmem:[#allocation2 + $0x58] sm:$0xff] %vm85_vm0, %v7954_v24  ;;  %10020 = vrsqrt.f32 %v7817_v42 }
 0xba5   :  { %v10015_v41 = vpop.eup %10014  ;;  %7985 = vst.msk [vmem:[#allocation2 + $0x50] sm:$0xff] %vm85_vm0, %v7953_v28 }
 0xba6   :  { %v10017_v19 = vpop.eup %10016  ;;  %v7880_v1 = vmul.f32 %v10015_v41, %v15154_v34  ;;  %v7728_v59 = vpop.xlane.xlu1 %7727 }
 0xba7   :  { %v7879_v31 = vmul.f32 %v10017_v19, %v15157_v27  ;;  %v7788_v5 = vmul.f32 0.03125, %v7728_v59  ;;  %v7725_v9 = vpop.xlane.xlu0 %7724 }
 0xba8   :  { %v7918_v60 = vmul.f32 %v15276_v57, %v7880_v1  ;;  %v7787_v17 = vmul.f32 0.03125, %v7725_v9 }
 0xba9   :  { %v7917_v2 = vmul.f32 %v15276_v57, %v7879_v31  ;;  %v7820_v16 = vadd.f32 1e-05, %v7788_v5 }
 0xbaa   :  { %v7956_v43 = vadd.f32 %v15282_v26, %v7918_v60  ;;  %v7819_v3 = vadd.f32 1e-05, %v7787_v17 }
 0xbab   :  { %v7955_v8 = vadd.f32 %v15282_v26, %v7917_v2  ;;  %10022 = vrsqrt.f32 %v7820_v16 }
 0xbac   :  { %7988 = vst.msk [vmem:[#allocation2 + $0x68] sm:$0xff] %vm85_vm0, %v7956_v43  ;;  %10024 = vrsqrt.f32 %v7819_v3 }
 0xbad   :  { %v10019_v34 = vpop.eup %10018  ;;  %7987 = vst.msk [vmem:[#allocation2 + $0x60] sm:$0xff] %vm85_vm0, %v7955_v8 }
 0xbae   :  { %v10021_v27 = vpop.eup %10020  ;;  %v7882_v10 = vmul.f32 %v10019_v34, %v15166_v54  ;;  %v7734_v38 = vpop.xlane.xlu1 %7733 }
 0xbaf   :  { %v7881_v55 = vmul.f32 %v10021_v27, %v15169_v51  ;;  %v7790_v46 = vmul.f32 0.03125, %v7734_v38  ;;  %v7731_v63 = vpop.xlane.xlu0 %7730 }
 0xbb0   :  { %v7920_v14 = vmul.f32 %v15276_v57, %v7882_v10  ;;  %v7789_v7 = vmul.f32 0.03125, %v7731_v63 }
 0xbb1   :  { %v7919_v56 = vmul.f32 %v15276_v57, %v7881_v55  ;;  %v7822_v35 = vadd.f32 1e-05, %v7790_v46 }
 0xbb2   :  { %v7958_v13 = vadd.f32 %v15282_v26, %v7920_v14  ;;  %v7821_v61 = vadd.f32 1e-05, %v7789_v7 }
 0xbb3   :  { %v7957_v53 = vadd.f32 %v15282_v26, %v7919_v56  ;;  %10026 = vrsqrt.f32 %v7822_v35 }
 0xbb4   :  { %7990 = vst.msk [vmem:[#allocation2 + $0x78] sm:$0xff] %vm85_vm0, %v7958_v13  ;;  %10028 = vrsqrt.f32 %v7821_v61 }
 0xbb5   :  { %v10023_v54 = vpop.eup %10022  ;;  %7989 = vst.msk [vmem:[#allocation2 + $0x70] sm:$0xff] %vm85_vm0, %v7957_v53 }
 0xbb6   :  { %v10025_v51 = vpop.eup %10024  ;;  %v7884_v47 = vmul.f32 %v10023_v54, %v15178_v23  ;;  %v7740_v37 = vpop.xlane.xlu1 %7739 }
 0xbb7   :  { %v7883_v48 = vmul.f32 %v10025_v51, %v15181_v21  ;;  %v7792_v29 = vmul.f32 0.03125, %v7740_v37  ;;  %v7737_v11 = vpop.xlane.xlu0 %7736 }
 0xbb8   :  { %v7922_v32 = vmul.f32 %v15276_v57, %v7884_v47  ;;  %v7791_v18 = vmul.f32 0.03125, %v7737_v11 }
 0xbb9   :  { %v7921_v40 = vmul.f32 %v15276_v57, %v7883_v48  ;;  %v7824_v45 = vadd.f32 1e-05, %v7792_v29 }
 0xbba   :  { %v7960_v15 = vadd.f32 %v15282_v26, %v7922_v32  ;;  %v7823_v12 = vadd.f32 1e-05, %v7791_v18 }
 0xbbb   :  { %v7959_v44 = vadd.f32 %v15282_v26, %v7921_v40  ;;  %10030 = vrsqrt.f32 %v7824_v45 }
 0xbbc   :  { %7992 = vst.msk [vmem:[#allocation2 + $0x88] sm:$0xff] %vm85_vm0, %v7960_v15  ;;  %10032 = vrsqrt.f32 %v7823_v12 }
 0xbbd   :  { %v10027_v23 = vpop.eup %10026  ;;  %7991 = vst.msk [vmem:[#allocation2 + $0x80] sm:$0xff] %vm85_vm0, %v7959_v44 }
 0xbbe   :  { %v10029_v21 = vpop.eup %10028  ;;  %v7886_v36 = vmul.f32 %v10027_v23, %v15190_v58  ;;  %v7746_v24 = vpop.xlane.xlu1 %7745 }
 0xbbf   :  { %v7885_v42 = vmul.f32 %v10029_v21, %v15193_v33  ;;  %v7794_v28 = vmul.f32 0.03125, %v7746_v24  ;;  %v7743_v41 = vpop.xlane.xlu0 %7742 }
 0xbc0   :  { %v7924_v19 = vmul.f32 %v15276_v57, %v7886_v36  ;;  %v7793_v1 = vmul.f32 0.03125, %v7743_v41 }
 0xbc1   :  { %v7923_v59 = vmul.f32 %v15276_v57, %v7885_v42  ;;  %v7826_v31 = vadd.f32 1e-05, %v7794_v28 }
 0xbc2   :  { %v7962_v5 = vadd.f32 %v15282_v26, %v7924_v19  ;;  %v7825_v9 = vadd.f32 1e-05, %v7793_v1 }
 0xbc3   :  { %v7961_v60 = vadd.f32 %v15282_v26, %v7923_v59  ;;  %10034 = vrsqrt.f32 %v7826_v31 }
 0xbc4   :  { %7994 = vst.msk [vmem:[#allocation2 + $0x98] sm:$0xff] %vm85_vm0, %v7962_v5  ;;  %10036 = vrsqrt.f32 %v7825_v9 }
 0xbc5   :  { %v10031_v58 = vpop.eup %10030  ;;  %7993 = vst.msk [vmem:[#allocation2 + $0x90] sm:$0xff] %vm85_vm0, %v7961_v60 }
 0xbc6   :  { %v10033_v33 = vpop.eup %10032  ;;  %v7888_v17 = vmul.f32 %v10031_v58, %v15202_v6  ;;  %v7752_v2 = vpop.xlane.xlu1 %7751 }
 0xbc7   :  { %v7887_v16 = vmul.f32 %v10033_v33, %v15205_v20  ;;  %v7796_v43 = vmul.f32 0.03125, %v7752_v2  ;;  %v7749_v3 = vpop.xlane.xlu0 %7748 }
 0xbc8   :  { %v7926_v8 = vmul.f32 %v15276_v57, %v7888_v17  ;;  %v7795_v34 = vmul.f32 0.03125, %v7749_v3 }
 0xbc9   :  { %v7925_v27 = vmul.f32 %v15276_v57, %v7887_v16  ;;  %v7828_v10 = vadd.f32 1e-05, %v7796_v43 }
 0xbca   :  { %v7964_v38 = vadd.f32 %v15282_v26, %v7926_v8  ;;  %v7827_v55 = vadd.f32 1e-05, %v7795_v34 }
 0xbcb   :  { %v7963_v46 = vadd.f32 %v15282_v26, %v7925_v27  ;;  %10038 = vrsqrt.f32 %v7828_v10 }
 0xbcc   :  { %7996 = vst.msk [vmem:[#allocation2 + $0xa8] sm:$0xff] %vm85_vm0, %v7964_v38  ;;  %10040 = vrsqrt.f32 %v7827_v55 }
 0xbcd   :  { %v10035_v6 = vpop.eup %10034  ;;  %7995 = vst.msk [vmem:[#allocation2 + $0xa0] sm:$0xff] %vm85_vm0, %v7963_v46 }
 0xbce   :  { %v10037_v20 = vpop.eup %10036  ;;  %v7890_v63 = vmul.f32 %v10035_v6, %v15214_v39  ;;  %v7758_v14 = vpop.xlane.xlu1 %7757 }
 0xbcf   :  { %v7889_v7 = vmul.f32 %v10037_v20, %v15217_v4  ;;  %v7798_v56 = vmul.f32 0.03125, %v7758_v14  ;;  %v7755_v35 = vpop.xlane.xlu0 %7754 }
 0xbd0   :  { %v7928_v13 = vmul.f32 %v15276_v57, %v7890_v63  ;;  %v7797_v61 = vmul.f32 0.03125, %v7755_v35 }
 0xbd1   :  { %v7927_v53 = vmul.f32 %v15276_v57, %v7889_v7  ;;  %v7830_v54 = vadd.f32 1e-05, %v7798_v56 }
 0xbd2   :  { %v7966_v51 = vadd.f32 %v15282_v26, %v7928_v13  ;;  %v7829_v47 = vadd.f32 1e-05, %v7797_v61 }
 0xbd3   :  { %v7965_v37 = vadd.f32 %v15282_v26, %v7927_v53  ;;  %10042 = vrsqrt.f32 %v7830_v54 }
 0xbd4   :  { %7998 = vst.msk [vmem:[#allocation2 + $0xb8] sm:$0xff] %vm85_vm0, %v7966_v51  ;;  %10044 = vrsqrt.f32 %v7829_v47 }
 0xbd5   :  { %v10039_v39 = vpop.eup %10038  ;;  %7997 = vst.msk [vmem:[#allocation2 + $0xb0] sm:$0xff] %vm85_vm0, %v7965_v37 }
 0xbd6   :  { %v10041_v4 = vpop.eup %10040  ;;  %v7892_v48 = vmul.f32 %v10039_v39, %v15226_v30  ;;  %v7764_v29 = vpop.xlane.xlu1 %7763 }
 0xbd7   :  { %v7891_v11 = vmul.f32 %v10041_v4, %v15229_v62  ;;  %v7800_v32 = vmul.f32 0.03125, %v7764_v29  ;;  %v7761_v18 = vpop.xlane.xlu0 %7760 }
 0xbd8   :  { %v7930_v40 = vmul.f32 %v15276_v57, %v7892_v48  ;;  %v7799_v45 = vmul.f32 0.03125, %v7761_v18 }
 0xbd9   :  { %v7929_v15 = vmul.f32 %v15276_v57, %v7891_v11  ;;  %v7832_v12 = vadd.f32 1e-05, %v7800_v32 }
 0xbda   :  { %v7968_v44 = vadd.f32 %v15282_v26, %v7930_v40  ;;  %v7831_v23 = vadd.f32 1e-05, %v7799_v45 }
 0xbdb   :  { %v7967_v21 = vadd.f32 %v15282_v26, %v7929_v15  ;;  %10046 = vrsqrt.f32 %v7832_v12 }
 0xbdc   :  { %8000 = vst.msk [vmem:[#allocation2 + $0xc8] sm:$0xff] %vm85_vm0, %v7968_v44  ;;  %10048 = vrsqrt.f32 %v7831_v23 }
 0xbdd   :  { %v10043_v30 = vpop.eup %10042  ;;  %7999 = vst.msk [vmem:[#allocation2 + $0xc0] sm:$0xff] %vm85_vm0, %v7967_v21 }
 0xbde   :  { %v10045_v62 = vpop.eup %10044  ;;  %v7894_v36 = vmul.f32 %v10043_v30, %v15238_v22  ;;  %v7770_v24 = vpop.xlane.xlu1 %7769 }
 0xbdf   :  { %v7893_v42 = vmul.f32 %v10045_v62, %v15241_v49  ;;  %v7802_v28 = vmul.f32 0.03125, %v7770_v24  ;;  %v7767_v41 = vpop.xlane.xlu0 %7766 }
 0xbe0   :  { %v7932_v19 = vmul.f32 %v15276_v57, %v7894_v36  ;;  %v7801_v1 = vmul.f32 0.03125, %v7767_v41 }
 0xbe1   :  { %v7931_v59 = vmul.f32 %v15276_v57, %v7893_v42  ;;  %v7834_v31 = vadd.f32 1e-05, %v7802_v28 }
 0xbe2   :  { %v7970_v5 = vadd.f32 %v15282_v26, %v7932_v19  ;;  %v7833_v9 = vadd.f32 1e-05, %v7801_v1 }
 0xbe3   :  { %v7969_v60 = vadd.f32 %v15282_v26, %v7931_v59  ;;  %10050 = vrsqrt.f32 %v7834_v31 }
 0xbe4   :  { %8002 = vst.msk [vmem:[#allocation2 + $0xd8] sm:$0xff] %vm85_vm0, %v7970_v5  ;;  %10052 = vrsqrt.f32 %v7833_v9 }
 0xbe5   :  { %v10047_v22 = vpop.eup %10046  ;;  %8001 = vst.msk [vmem:[#allocation2 + $0xd0] sm:$0xff] %vm85_vm0, %v7969_v60 }
 0xbe6   :  { %v10049_v49 = vpop.eup %10048  ;;  %v7896_v58 = vmul.f32 %v10047_v22, %v15250_v0 }
 0xbe7   :  { %v7895_v33 = vmul.f32 %v10049_v49, %v15253_v50 }
 0xbe8   :  { %v7934_v17 = vmul.f32 %v15276_v57, %v7896_v58 }
 0xbe9   :  { %v7933_v2 = vmul.f32 %v15276_v57, %v7895_v33 }
 0xbea   :  { %v7972_v16 = vadd.f32 %v15282_v26, %v7934_v17 }
 0xbeb   :  { %v7971_v43 = vadd.f32 %v15282_v26, %v7933_v2 }
 0xbec   :  { %8004 = vst.msk [vmem:[#allocation2 + $0xe8] sm:$0xff] %vm85_vm0, %v7972_v16 }
 0xbed   :  { %v10051_v3 = vpop.eup %10050  ;;  %8003 = vst.msk [vmem:[#allocation2 + $0xe0] sm:$0xff] %vm85_vm0, %v7971_v43 }
 0xbee   :  { %v10053_v8 = vpop.eup %10052  ;;  %v7898_v34 = vmul.f32 %v10051_v3, %v15262_v52 }
 0xbef   :  { %v7897_v0 = vmul.f32 %v10053_v8, %v15265_v25 }
 0xbf0   :  { %v7936_v50 = vmul.f32 %v15276_v57, %v7898_v34 }
 0xbf1   :  { %v7935_v27 = vmul.f32 %v15276_v57, %v7897_v0 }
 0xbf2   :  { %v7974_v10 = vadd.f32 %v15282_v26, %v7936_v50 }
 0xbf3   :  { %v7973_v38 = vadd.f32 %v15282_v26, %v7935_v27 }
 0xbf4   :  { %8006 = vst.msk [vmem:[#allocation2 + $0xf8] sm:$0xff] %vm85_vm0, %v7974_v10 }
 0xbf5   :  { %8005 = vst.msk [vmem:[#allocation2 + $0xf0] sm:$0xff] %vm85_vm0, %v7973_v38 }
 0xbf6   :  { %10161 = shalt.err (!%p10158_p4)
}
 0xbf7   :  { %s10162_s15 = scalar_lea.hbm %s15437_s14, 4096 }
 0xbf8   :  { %p10163_p5 = scmp.ne.s32.totalorder %s15437_s14, %s10162_s15  ;;  %p10166_p6 = scmp.lt.u32.totalorder %s10162_s15, %s15437_s14 }
 0xbfa   :  { %p10168_p7 = pnand %p10166_p6, %p10163_p5 }
 0xbfc   :  { %10171 = shalt.err (!%p10168_p7)
}
 0xbfd   :  { %s10177_s18 = smov 128   ;;  %s10178_s19 = smov 8  }
 0xbfe   :  { %8018 = dma.vmem_to_hbm [thread:$0]  %s8013_s8, 4096, %s15437_s14, [#allocation3], %s10177_s18, %s10177_s18, %s10178_s19  }
 0xbff   :  { %10172 = dma.done.wait [#allocation3], 4096  }
 0xc00   :  { %10173 = vsyncadd [#allocation3], 4294963200 }
 0xc01   :  { %8022 = vsyncpa [#allocation3], 1 }

</bundles_post_ra>
